<compile_context>
chip_gen: v7x
topology: tpu7x:2x2x1
jax: 0.10.0
libtpu: 0.0.40
codegen_flags: <defaults>
</compile_context>

<pallas_src>
import jax
import jax.numpy as jnp
from jax.experimental import pallas as pl
from jax.experimental.pallas import tpu as pltpu


# ---------------------------------------------------------------------------
# tiling helpers
# ---------------------------------------------------------------------------

def _largest_divisor_le(n, cap):
    cap = int(max(1, min(n, cap)))
    for d in range(cap, 0, -1):
        if n % d == 0:
            return d
    return 1


def _pick_row_tile(n_batch, h, bytes_per_row, budget_bytes, max_rows=128):
    cap = max(1, budget_bytes // max(1, bytes_per_row))
    t = _largest_divisor_le(h, min(cap, max_rows))
    # keep >= 2 total grid steps so both TensorCores (v7x megacore) get work
    while n_batch * (h // t) < 2 and t > 1:
        t = _largest_divisor_le(h, t - 1)
    return t


# ---------------------------------------------------------------------------
# Kernel 1: ConvTranspose2d(kernel_size=2, stride=2), row-blocked, one matmul
# per grid step, written directly in the upsampled layout.
# ---------------------------------------------------------------------------

def _make_upsample_kernel(tile_h, width, cout, matmul_dtype):
    def kernel(x_ref, w_ref, b_ref, o_ref):
        # x: (1, tile_h, W, Cin)  w: (Cin, 4*Cout)  b: (1, 4*Cout)
        # o: (1, tile_h, 2, W, 2*Cout); o[0,h,kh,w,kw*Cout+co] = up[2h+kh, 2w+kw, co]
        cin = x_ref.shape[-1]
        x2d = x_ref[0].reshape(tile_h * width, cin).astype(matmul_dtype)
        r = jnp.dot(x2d, w_ref[...].astype(matmul_dtype),
                    preferred_element_type=jnp.float32) + b_ref[...]
        for kh in range(2):
            blk = r[:, kh * 2 * cout:(kh + 1) * 2 * cout]
            o_ref[0, :, kh, :, :] = blk.reshape(tile_h, width, 2 * cout).astype(o_ref.dtype)
    return kernel


def conv_transpose_2x2_s2(x_nhwc, wt, bt, matmul_dtype=jnp.bfloat16):
    """nn.ConvTranspose2d(k=2, s=2).  wt: (Cin, Cout, 2, 2), bt: (Cout,)."""
    N, H, W, Cin = x_nhwc.shape
    Cout = wt.shape[1]
    # w4[ci, kh*2*Cout + kw*Cout + co] = wt[ci, co, kh, kw]
    w4 = jnp.transpose(wt, (0, 2, 3, 1)).reshape(Cin, 4 * Cout)
    b4 = jnp.tile(bt, 4).reshape(1, 4 * Cout)

    bytes_per_row = W * (2 * Cin + 2 * 4 * Cout) * 4
    tile_h = _pick_row_tile(N, H, bytes_per_row, 8 * 1024 * 1024)

    out = pl.pallas_call(
        _make_upsample_kernel(tile_h, W, Cout, matmul_dtype),
        grid=(N, H // tile_h),
        in_specs=[
            pl.BlockSpec((1, tile_h, W, Cin), lambda n, i: (n, i, 0, 0)),
            pl.BlockSpec((Cin, 4 * Cout), lambda n, i: (0, 0)),
            pl.BlockSpec((1, 4 * Cout), lambda n, i: (0, 0)),
        ],
        out_specs=pl.BlockSpec((1, tile_h, 2, W, 2 * Cout),
                               lambda n, i: (n, i, 0, 0, 0)),
        out_shape=jax.ShapeDtypeStruct((N, H, 2, W, 2 * Cout), jnp.float32),
        compiler_params=pltpu.CompilerParams(
            dimension_semantics=("parallel", "parallel"),
            vmem_limit_bytes=64 * 1024 * 1024),
    )(x_nhwc, w4, b4)
    # (N, H, 2, W, 2*Cout) -> (N, 2H, 2W, Cout): row-major preserving, free reshape
    return out.reshape(N, 2 * H, 2 * W, Cout)


# ---------------------------------------------------------------------------
# Kernel 2: fused 3x3 "same" conv over the channel-concatenation of 1..2 inputs,
# row-blocked, with the previous BN-affine + ReLU applied in-kernel, fused conv
# bias, and per-block BatchNorm partial sums (sum / sum-of-squares) as outputs.
# ---------------------------------------------------------------------------

def _make_conv_kernel(nin, act_flags, tile_h, width, n_hblocks, matmul_dtype):
    def kernel(*refs):
        out_ref, sum_ref, sq_ref = refs[-3], refs[-2], refs[-1]
        in_refs = refs[:-3]
        b_ref = in_refs[-1]
        cout = b_ref.shape[-1]

        i = pl.program_id(1)
        top_keep = (i > 0).astype(jnp.float32)                 # zero halo at image top
        bot_keep = (i < n_hblocks - 1).astype(jnp.float32)     # zero halo at image bottom

        acc = jnp.zeros((tile_h * width, cout), jnp.float32)
        p = 0
        for j in range(nin):
            main_ref, top_ref, bot_ref, w_ref = in_refs[p:p + 4]
            p += 4
            if act_flags[j]:
                s_ref, t_ref = in_refs[p], in_refs[p + 1]
                p += 2
            cj = main_ref.shape[-1]

            main = main_ref[0].astype(jnp.float32)             # (tile_h, W, Cj)
            top = top_ref[0].astype(jnp.float32)               # (1, W, Cj)
            bot = bot_ref[0].astype(jnp.float32)               # (1, W, Cj)

            if act_flags[j]:
                # previous ConvBlock's BN-affine + ReLU (hoisted out of the kh loop);
                # conv zero-padding lives in the *activated* domain, so halos stay 0.
                s = s_ref[...].reshape(1, 1, cj)
                t = t_ref[...].reshape(1, 1, cj)
                main = jnp.maximum(main * s + t, 0.0)
                top = jnp.maximum(top * s + t, 0.0)
                bot = jnp.maximum(bot * s + t, 0.0)

            top = top * top_keep
            bot = bot * bot_keep

            # (tile_h+2, W+2, Cj) window with zero width halo, built in VMEM
            win = jnp.concatenate([top, main, bot], axis=0)
            zcol = jnp.zeros((tile_h + 2, 1, cj), jnp.float32)
            win = jnp.concatenate([zcol, win, zcol], axis=1)

            for kh in range(3):
                xk = win[kh:kh + tile_h]                        # (tile_h, W+2, Cj)
                # merge the 3 kw taps into one K = 3*Cj matmul
                lhs = jnp.concatenate(
                    [xk[:, 0:width], xk[:, 1:width + 1], xk[:, 2:width + 2]],
                    axis=-1).reshape(tile_h * width, 3 * cj)
                acc = acc + jnp.dot(lhs.astype(matmul_dtype),
                                    w_ref[kh].astype(matmul_dtype),
                                    preferred_element_type=jnp.float32)

        acc = acc + b_ref[...]                                  # fused conv bias
        out_ref[0] = acc.reshape(tile_h, width, cout).astype(out_ref.dtype)
        # single-pass partials for this conv's own BatchNorm (one write per block)
        sum_ref[0, 0] = jnp.sum(acc, axis=0, keepdims=True)
        sq_ref[0, 0] = jnp.sum(acc * acc, axis=0, keepdims=True)

    return kernel


def conv3x3_bn_fused(inputs, weights, bias, acts, matmul_dtype=jnp.bfloat16):
    """3x3 / stride-1 / pad-1 conv over concat(inputs, channel axis).

    inputs[j]:  (N, H, W, Cj) NHWC (unpadded; halos handled in-kernel)
    weights[j]: (3, 3, Cj, Cout) HWIO
    acts[j]:    None, or (scale_j, shift_j): fused previous BatchNorm+ReLU.
    Returns (conv_out (N,H,W,Cout) f32, block_sum, block_sqsum).
    """
    N, H, W, _ = inputs[0].shape
    Cout = weights[0].shape[-1]
    nin = len(inputs)

    c_sum = sum(int(x.shape[-1]) for x in inputs)
    # rough per-row VMEM demand: double-buffered inputs + f32 output + windows/LHS
    bytes_per_row = W * (2 * c_sum + 2 * Cout + 4 * c_sum) * 4
    tile_h = _pick_row_tile(N, H, bytes_per_row, 12 * 1024 * 1024)
    n_hblocks = H // tile_h

    args, in_specs = [], []
    for j in range(nin):
        x = inputs[j]
        Cj = int(x.shape[-1])
        # main TILE_H-row block + two 1-row halo refs (clamped index maps)
        args.append(x)
        in_specs.append(pl.BlockSpec((1, tile_h, W, Cj), lambda n, i: (n, i, 0, 0)))
        args.append(x)
        in_specs.append(pl.BlockSpec(
            (1, 1, W, Cj),
            lambda n, i, th=tile_h: (n, jnp.maximum(i * th - 1, 0), 0, 0)))
        args.append(x)
        in_specs.append(pl.BlockSpec(
            (1, 1, W, Cj),
            lambda n, i, th=tile_h, hh=H: (n, jnp.minimum((i + 1) * th, hh - 1), 0, 0)))
        # weights pre-merged over kw: (3, 3*Cj, Cout)
        args.append(weights[j].reshape(3, 3 * Cj, Cout))
        in_specs.append(pl.BlockSpec((3, 3 * Cj, Cout), lambda n, i: (0, 0, 0)))
        if acts[j] is not None:
            scale, shift = acts[j]
            args.append(scale.reshape(1, Cj))
            in_specs.append(pl.BlockSpec((1, Cj), lambda n, i: (0, 0)))
            args.append(shift.reshape(1, Cj))
            in_specs.append(pl.BlockSpec((1, Cj), lambda n, i: (0, 0)))
    args.append(bias.reshape(1, Cout))
    in_specs.append(pl.BlockSpec((1, Cout), lambda n, i: (0, 0)))

    kernel = _make_conv_kernel(nin, tuple(a is not None for a in acts),
                               tile_h, W, n_hblocks, matmul_dtype)

    y, rs, rss = pl.pallas_call(
        kernel,
        grid=(N, n_hblocks),
        in_specs=in_specs,
        out_specs=[
            pl.BlockSpec((1, tile_h, W, Cout), lambda n, i: (n, i, 0, 0)),
            pl.BlockSpec((1, 1, 1, Cout), lambda n, i: (n, i, 0, 0)),
            pl.BlockSpec((1, 1, 1, Cout), lambda n, i: (n, i, 0, 0)),
        ],
        out_shape=(
            jax.ShapeDtypeStruct((N, H, W, Cout), jnp.float32),
            jax.ShapeDtypeStruct((N, n_hblocks, 1, Cout), jnp.float32),
            jax.ShapeDtypeStruct((N, n_hblocks, 1, Cout), jnp.float32),
        ),
        compiler_params=pltpu.CompilerParams(
            dimension_semantics=("parallel", "parallel"),
            vmem_limit_bytes=64 * 1024 * 1024),
    )(*args)
    return y, rs, rss


# ---------------------------------------------------------------------------
# Kernel 3: final BN-affine + ReLU (no following conv to fuse into), lane-dense.
# ---------------------------------------------------------------------------

def _affine_relu_kernel(x_ref, s_ref, t_ref, o_ref):
    o_ref[...] = jnp.maximum(x_ref[...] * s_ref[...] + t_ref[...], 0.0)


def affine_relu_nhwc(x_nhwc, scale, shift):
    N, H, W, C = x_nhwc.shape
    rows, cols = N * H, W * C
    xf = x_nhwc.reshape(rows, cols)                 # free (adjacent-dim) reshape
    srow = jnp.tile(scale, W).reshape(1, cols)
    trow = jnp.tile(shift, W).reshape(1, cols)
    cap = max(1, (8 * 1024 * 1024) // max(1, cols * 4 * 4))
    tr = _largest_divisor_le(rows, min(cap, 512))
    while rows // tr < 2 and tr > 1:
        tr = _largest_divisor_le(rows, tr - 1)
    out = pl.pallas_call(
        _affine_relu_kernel,
        grid=(rows // tr,),
        in_specs=[
            pl.BlockSpec((tr, cols), lambda i: (i, 0)),
            pl.BlockSpec((1, cols), lambda i: (0, 0)),
            pl.BlockSpec((1, cols), lambda i: (0, 0)),
        ],
        out_specs=pl.BlockSpec((tr, cols), lambda i: (i, 0)),
        out_shape=jax.ShapeDtypeStruct((rows, cols), jnp.float32),
        compiler_params=pltpu.CompilerParams(dimension_semantics=("parallel",)),
    )(xf, srow, trow)
    return out.reshape(N, H, W, C)


# ---------------------------------------------------------------------------
# BatchNorm scale/shift from the kernel-emitted per-block partials (tiny reduction).
# ---------------------------------------------------------------------------

def _bn_scale_shift(blk_sum, blk_sqsum, gamma, beta, count, eps=1e-5):
    s = jnp.sum(blk_sum, axis=(0, 1, 2))
    ss = jnp.sum(blk_sqsum, axis=(0, 1, 2))
    mean = s / count
    var = jnp.maximum(ss / count - mean * mean, 0.0)   # biased variance (train mode)
    scale = gamma * jax.lax.rsqrt(var + eps)
    shift = beta - mean * scale
    return scale, shift


# ---------------------------------------------------------------------------
# Module forward
# ---------------------------------------------------------------------------

def up_block_forward(params, up_x_nchw, down_x_nchw, matmul_dtype=jnp.bfloat16):
    """Pallas implementation of UpBlockForUNetWithResNet50.forward (NCHW in/out)."""
    up = jnp.transpose(up_x_nchw, (0, 2, 3, 1))        # boundary: NCHW -> NHWC
    down = jnp.transpose(down_x_nchw, (0, 2, 3, 1))

    # upsample = ConvTranspose2d(k=2, s=2)
    x_up = conv_transpose_2x2_s2(up, params["wt"], params["bt"], matmul_dtype)
    N, Ho, Wo, Cup = x_up.shape

    # conv_block_1: conv3x3 over torch.cat([x_up, down], 1), concat folded into two
    # weight groups (conv(cat(a,b)) == conv_a(a) + conv_b(b)).
    w1a = jnp.transpose(params["w1"][:, :Cup], (2, 3, 1, 0))
    w1b = jnp.transpose(params["w1"][:, Cup:], (2, 3, 1, 0))
    y1, rs1, rss1 = conv3x3_bn_fused([x_up, down], [w1a, w1b], params["b1"],
                                     [None, None], matmul_dtype)
    sc1, sh1 = _bn_scale_shift(rs1, rss1, params["g1"], params["be1"], N * Ho * Wo)

    # conv_block_2: BN1-affine + ReLU applied to the loaded rows inside the conv
    # kernel (no extra HBM round trip for the activation).
    w2 = jnp.transpose(params["w2"], (2, 3, 1, 0))
    y2, rs2, rss2 = conv3x3_bn_fused([y1], [w2], params["b2"],
                                     [(sc1, sh1)], matmul_dtype)
    sc2, sh2 = _bn_scale_shift(rs2, rss2, params["g2"], params["be2"], N * Ho * Wo)

    out = affine_relu_nhwc(y2, sc2, sh2)               # final BN2 + ReLU
    return jnp.transpose(out, (0, 3, 1, 2))            # boundary: NHWC -> NCHW


# ---------------------------------------------------------------------------
# Pure-JAX reference (for verification)
# ---------------------------------------------------------------------------

def _ref_conv_transpose(x, w, b):
    N, H, W, Cin = x.shape
    Cout = w.shape[1]
    t = jnp.einsum("nhwc,cokl->nhwklo", x, w, precision=jax.lax.Precision.HIGHEST)
    t = jnp.transpose(t, (0, 1, 3, 2, 4, 5)).reshape(N, 2 * H, 2 * W, Cout)
    return t + b[None, None, None, :]


def _ref_conv3x3(x, w, b):
    N, H, W, Cin = x.shape
    xp = jnp.pad(x, ((0, 0), (1, 1), (1, 1), (0, 0)))
    out = jnp.broadcast_to(b, (N, H, W, w.shape[0])).astype(jnp.float32)
    for dh in range(3):
        for dw in range(3):
            out = out + jnp.einsum("nhwc,oc->nhwo", xp[:, dh:dh + H, dw:dw + W, :],
                                   w[:, :, dh, dw],
                                   precision=jax.lax.Precision.HIGHEST)
    return out


def _ref_bn_relu(x, g, be, eps=1e-5):
    mean = jnp.mean(x, axis=(0, 1, 2))
    var = jnp.var(x, axis=(0, 1, 2))
    y = (x - mean) * jax.lax.rsqrt(var + eps) * g + be
    return jnp.maximum(y, 0.0)


def up_block_reference(params, up_x_nchw, down_x_nchw):
    up = jnp.transpose(up_x_nchw, (0, 2, 3, 1))
    down = jnp.transpose(down_x_nchw, (0, 2, 3, 1))
    x = _ref_conv_transpose(up, params["wt"], params["bt"])
    x = jnp.concatenate([x, down], axis=-1)
    x = _ref_bn_relu(_ref_conv3x3(x, params["w1"], params["b1"]), params["g1"], params["be1"])
    x = _ref_bn_relu(_ref_conv3x3(x, params["w2"], params["b2"]), params["g2"], params["be2"])
    return jnp.transpose(x, (0, 3, 1, 2))


# ---------------------------------------------------------------------------
# main
# ---------------------------------------------------------------------------

if __name__ == "__main__":
    key = jax.random.PRNGKey(0)
    ks = iter(jax.random.split(key, 16))

    # module config: in_channels=8, out_channels=4 (up_conv defaults to the same)
    N = 2
    in_ch, out_ch = 8, 4
    Hs, Ws = 8, 8                        # up_x spatial; upsampled to 16x16
    down_ch = in_ch - out_ch             # so that cat channels == in_channels

    params = {
        "wt": 0.1 * jax.random.normal(next(ks), (in_ch, out_ch, 2, 2), jnp.float32),
        "bt": 0.1 * jax.random.normal(next(ks), (out_ch,), jnp.float32),
        "w1": 0.1 * jax.random.normal(next(ks), (out_ch, in_ch, 3, 3), jnp.float32),
        "b1": 0.1 * jax.random.normal(next(ks), (out_ch,), jnp.float32),
        "g1": jnp.ones((out_ch,), jnp.float32),
        "be1": jnp.zeros((out_ch,), jnp.float32),
        "w2": 0.1 * jax.random.normal(next(ks), (out_ch, out_ch, 3, 3), jnp.float32),
        "b2": 0.1 * jax.random.normal(next(ks), (out_ch,), jnp.float32),
        "g2": jnp.ones((out_ch,), jnp.float32),
        "be2": jnp.zeros((out_ch,), jnp.float32),
    }

    up_x = jax.random.normal(next(ks), (N, in_ch, Hs, Ws), jnp.float32)              # NCHW
    down_x = jax.random.normal(next(ks), (N, down_ch, 2 * Hs, 2 * Ws), jnp.float32)  # NCHW

    fwd = jax.jit(up_block_forward)
    out = jax.block_until_ready(fwd(params, up_x, down_x))

    ref = up_block_reference(params, up_x, down_x)
    assert out.shape == (N, out_ch, 2 * Hs, 2 * Ws), out.shape
    max_err = float(jnp.max(jnp.abs(out - ref)))
    # bf16 MXU operands (f32 accumulation) -> loosened tolerance vs f32 reference
    assert jnp.allclose(out, ref, atol=5e-2, rtol=5e-2), max_err

    print("KERNEL_OK")
</pallas_src>

<mosaic_0001>
module attributes {stable_mosaic.version = 11 : i64} {
  func.func @kernel(%arg0: i32, %arg1: i32, %arg2: memref<1x8x8x8xf32, #tpu.memory_space<vmem>>, %arg3: memref<8x16xf32, #tpu.memory_space<vmem>>, %arg4: memref<1x16xf32, #tpu.memory_space<vmem>>, %arg5: memref<1x8x2x8x8xf32, #tpu.memory_space<vmem>>) attributes {dimension_semantics = [#tpu.dimension_semantics<parallel>, #tpu.dimension_semantics<parallel>], iteration_bounds = array<i64: 2, 1>, scalar_prefetch = 0 : i64, scratch_operands = 0 : i64, tpu.core_type = #tpu.core_type<tc>, window_params = [{transform_indices = @transform_0, window_bounds = array<i64: 1, 8, 8, 8>}, {pipeline_mode = #tpu.pipeline_mode<synchronous>, transform_indices = @transform_1, window_bounds = array<i64: 8, 16>}, {pipeline_mode = #tpu.pipeline_mode<synchronous>, transform_indices = @transform_2, window_bounds = array<i64: 1, 16>}, {transform_indices = @transform_3, window_bounds = array<i64: 1, 8, 2, 8, 8>}]} {
    %c0 = arith.constant 0 : index
    %c0_0 = arith.constant 0 : index
    %c0_1 = arith.constant 0 : index
    %c0_2 = arith.constant 0 : index
    %0 = vector.load %arg2[%c0, %c0_0, %c0_1, %c0_2] : memref<1x8x8x8xf32, #tpu.memory_space<vmem>>, vector<1x8x8x8xf32>
    %1 = vector.shape_cast %0 : vector<1x8x8x8xf32> to vector<8x8x8xf32>
    %2 = vector.shape_cast %1 : vector<8x8x8xf32> to vector<64x8xf32>
    %3 = arith.truncf %2 : vector<64x8xf32> to vector<64x8xbf16>
    %c0_3 = arith.constant 0 : index
    %c0_4 = arith.constant 0 : index
    %4 = vector.load %arg3[%c0_3, %c0_4] : memref<8x16xf32, #tpu.memory_space<vmem>>, vector<8x16xf32>
    %5 = arith.truncf %4 : vector<8x16xf32> to vector<8x16xbf16>
    %cst = arith.constant dense<0.000000e+00> : vector<64x16xf32>
    %6 = tpu.matmul %3, %5, %cst {dimension_numbers = #tpu.dot_dimension_numbers<[1], [0], [0], [1], [0, 0, 1, 1], [], []>} : vector<64x8xbf16>, vector<8x16xbf16>, vector<64x16xf32> -> vector<64x16xf32>
    %c0_5 = arith.constant 0 : index
    %c0_6 = arith.constant 0 : index
    %7 = vector.load %arg4[%c0_5, %c0_6] : memref<1x16xf32, #tpu.memory_space<vmem>>, vector<1x16xf32>
    %8 = vector.broadcast %7 : vector<1x16xf32> to vector<64x16xf32>
    %9 = arith.addf %6, %8 : vector<64x16xf32>
    %10 = vector.extract_strided_slice %9 {offsets = [0, 0], sizes = [64, 8], strides = [1, 1]} : vector<64x16xf32> to vector<64x8xf32>
    %11 = vector.shape_cast %10 : vector<64x8xf32> to vector<8x8x8xf32>
    %c0_7 = arith.constant 0 : index
    %c0_8 = arith.constant 0 : index
    %c0_9 = arith.constant 0 : index
    %c0_10 = arith.constant 0 : index
    %c0_11 = arith.constant 0 : index
    %12 = vector.load %arg5[%c0_7, %c0_8, %c0_9, %c0_10, %c0_11] : memref<1x8x2x8x8xf32, #tpu.memory_space<vmem>>, vector<1x8x1x8x8xf32>
    %13 = vector.shape_cast %12 : vector<1x8x1x8x8xf32> to vector<8x8x8xf32>
    %14 = vector.shape_cast %11 : vector<8x8x8xf32> to vector<1x8x1x8x8xf32>
    tpu.vector_store %arg5[%c0_7, %c0_8, %c0_9, %c0_10, %c0_11], %14 {strides = array<i32>} : memref<1x8x2x8x8xf32, #tpu.memory_space<vmem>>, vector<1x8x1x8x8xf32>,
    %15 = vector.extract_strided_slice %9 {offsets = [0, 8], sizes = [64, 8], strides = [1, 1]} : vector<64x16xf32> to vector<64x8xf32>
    %16 = vector.shape_cast %15 : vector<64x8xf32> to vector<8x8x8xf32>
    %c0_12 = arith.constant 0 : index
    %c0_13 = arith.constant 0 : index
    %c1 = arith.constant 1 : index
    %c0_14 = arith.constant 0 : index
    %c0_15 = arith.constant 0 : index
    %17 = vector.load %arg5[%c0_12, %c0_13, %c1, %c0_14, %c0_15] : memref<1x8x2x8x8xf32, #tpu.memory_space<vmem>>, vector<1x8x1x8x8xf32>
    %18 = vector.shape_cast %17 : vector<1x8x1x8x8xf32> to vector<8x8x8xf32>
    %19 = vector.shape_cast %16 : vector<8x8x8xf32> to vector<1x8x1x8x8xf32>
    tpu.vector_store %arg5[%c0_12, %c0_13, %c1, %c0_14, %c0_15], %19 {strides = array<i32>} : memref<1x8x2x8x8xf32, #tpu.memory_space<vmem>>, vector<1x8x1x8x8xf32>,
    return
  }
  func.func @transform_0(%arg0: i32, %arg1: i32) -> (i32, i32, i32, i32) {
    %c0_i32 = arith.constant 0 : i32
    %c0_i32_0 = arith.constant 0 : i32
    %c0_i32_1 = arith.constant 0 : i32
    return %arg0, %arg1, %c0_i32, %c0_i32_0 : i32, i32, i32, i32
  }
  func.func @transform_1(%arg0: i32, %arg1: i32) -> (i32, i32) {
    %c0_i32 = arith.constant 0 : i32
    %c0_i32_0 = arith.constant 0 : i32
    %c0_i32_1 = arith.constant 0 : i32
    return %c0_i32, %c0_i32_0 : i32, i32
  }
  func.func @transform_2(%arg0: i32, %arg1: i32) -> (i32, i32) {
    %c0_i32 = arith.constant 0 : i32
    %c0_i32_0 = arith.constant 0 : i32
    %c0_i32_1 = arith.constant 0 : i32
    return %c0_i32, %c0_i32_0 : i32, i32
  }
  func.func @transform_3(%arg0: i32, %arg1: i32) -> (i32, i32, i32, i32, i32) {
    %c0_i32 = arith.constant 0 : i32
    %c0_i32_0 = arith.constant 0 : i32
    %c0_i32_1 = arith.constant 0 : i32
    %c0_i32_2 = arith.constant 0 : i32
    return %arg0, %arg1, %c0_i32, %c0_i32_0, %c0_i32_1 : i32, i32, i32, i32, i32
  }
}

module attributes {stable_mosaic.version = 11 : i64} {
  func.func @kernel(%arg0: i32, %arg1: i32, %arg2: memref<1x16x16x4xf32, #tpu.memory_space<vmem>>, %arg3: memref<1x1x16x4xf32, #tpu.memory_space<vmem>>, %arg4: memref<1x1x16x4xf32, #tpu.memory_space<vmem>>, %arg5: memref<3x12x4xf32, #tpu.memory_space<vmem>>, %arg6: memref<1x16x16x4xf32, #tpu.memory_space<vmem>>, %arg7: memref<1x1x16x4xf32, #tpu.memory_space<vmem>>, %arg8: memref<1x1x16x4xf32, #tpu.memory_space<vmem>>, %arg9: memref<3x12x4xf32, #tpu.memory_space<vmem>>, %arg10: memref<1x4xf32, #tpu.memory_space<vmem>>, %arg11: memref<1x16x16x4xf32, #tpu.memory_space<vmem>>, %arg12: memref<1x1x1x4xf32, #tpu.memory_space<vmem>>, %arg13: memref<1x1x1x4xf32, #tpu.memory_space<vmem>>) attributes {dimension_semantics = [#tpu.dimension_semantics<parallel>, #tpu.dimension_semantics<parallel>], iteration_bounds = array<i64: 2, 1>, scalar_prefetch = 0 : i64, scratch_operands = 0 : i64, tpu.core_type = #tpu.core_type<tc>, window_params = [{transform_indices = @transform_0, window_bounds = array<i64: 1, 16, 16, 4>}, {transform_indices = @transform_1, window_bounds = array<i64: 1, 1, 16, 4>}, {transform_indices = @transform_2, window_bounds = array<i64: 1, 1, 16, 4>}, {pipeline_mode = #tpu.pipeline_mode<synchronous>, transform_indices = @transform_3, window_bounds = array<i64: 3, 12, 4>}, {transform_indices = @transform_4, window_bounds = array<i64: 1, 16, 16, 4>}, {transform_indices = @transform_5, window_bounds = array<i64: 1, 1, 16, 4>}, {transform_indices = @transform_6, window_bounds = array<i64: 1, 1, 16, 4>}, {pipeline_mode = #tpu.pipeline_mode<synchronous>, transform_indices = @transform_7, window_bounds = array<i64: 3, 12, 4>}, {pipeline_mode = #tpu.pipeline_mode<synchronous>, transform_indices = @transform_8, window_bounds = array<i64: 1, 4>}, {transform_indices = @transform_9, window_bounds = array<i64: 1, 16, 16, 4>}, {transform_indices = @transform_10, window_bounds = array<i64: 1, 1, 1, 4>}, {transform_indices = @transform_11, window_bounds = array<i64: 1, 1, 1, 4>}]} {
    %c0_i32 = arith.constant 0 : i32
    %0 = arith.cmpi sgt, %arg1, %c0_i32 : i32
    %1 = arith.extui %0 : i1 to i32
    %2 = arith.sitofp %1 : i32 to f32
    %c0_i32_0 = arith.constant 0 : i32
    %3 = arith.cmpi slt, %arg1, %c0_i32_0 : i32
    %4 = arith.extui %3 : i1 to i32
    %5 = arith.sitofp %4 : i32 to f32
    %cst = arith.constant 0.000000e+00 : f32
    %6 = vector.broadcast %cst : f32 to vector<256x4xf32>
    %c0 = arith.constant 0 : index
    %c0_1 = arith.constant 0 : index
    %c0_2 = arith.constant 0 : index
    %c0_3 = arith.constant 0 : index
    %7 = vector.load %arg2[%c0, %c0_1, %c0_2, %c0_3] : memref<1x16x16x4xf32, #tpu.memory_space<vmem>>, vector<1x16x16x4xf32>
    %8 = vector.shape_cast %7 : vector<1x16x16x4xf32> to vector<16x16x4xf32>
    %c0_4 = arith.constant 0 : index
    %c0_5 = arith.constant 0 : index
    %c0_6 = arith.constant 0 : index
    %c0_7 = arith.constant 0 : index
    %9 = vector.load %arg3[%c0_4, %c0_5, %c0_6, %c0_7] : memref<1x1x16x4xf32, #tpu.memory_space<vmem>>, vector<1x1x16x4xf32>
    %10 = vector.shape_cast %9 : vector<1x1x16x4xf32> to vector<1x16x4xf32>
    %c0_8 = arith.constant 0 : index
    %c0_9 = arith.constant 0 : index
    %c0_10 = arith.constant 0 : index
    %c0_11 = arith.constant 0 : index
    %11 = vector.load %arg4[%c0_8, %c0_9, %c0_10, %c0_11] : memref<1x1x16x4xf32, #tpu.memory_space<vmem>>, vector<1x1x16x4xf32>
    %12 = vector.shape_cast %11 : vector<1x1x16x4xf32> to vector<1x16x4xf32>
    %13 = vector.broadcast %2 : f32 to vector<1x16x4xf32>
    %14 = arith.mulf %10, %13 : vector<1x16x4xf32>
    %15 = vector.broadcast %5 : f32 to vector<1x16x4xf32>
    %16 = arith.mulf %12, %15 : vector<1x16x4xf32>
    %17 = tpu.concatenate %14, %8, %16 in 0 : vector<1x16x4xf32>, vector<16x16x4xf32>, vector<1x16x4xf32> -> vector<18x16x4xf32>
    %cst_12 = arith.constant 0.000000e+00 : f32
    %18 = vector.broadcast %cst_12 : f32 to vector<18x1x4xf32>
    %19 = tpu.concatenate %18, %17, %18 in 1 : vector<18x1x4xf32>, vector<18x16x4xf32>, vector<18x1x4xf32> -> vector<18x18x4xf32>
    %20 = vector.extract_strided_slice %19 {offsets = [0, 0, 0], sizes = [16, 18, 4], strides = [1, 1, 1]} : vector<18x18x4xf32> to vector<16x18x4xf32>
    %21 = vector.extract_strided_slice %20 {offsets = [0, 0, 0], sizes = [16, 16, 4], strides = [1, 1, 1]} : vector<16x18x4xf32> to vector<16x16x4xf32>
    %22 = vector.extract_strided_slice %20 {offsets = [0, 1, 0], sizes = [16, 16, 4], strides = [1, 1, 1]} : vector<16x18x4xf32> to vector<16x16x4xf32>
    %23 = vector.extract_strided_slice %20 {offsets = [0, 2, 0], sizes = [16, 16, 4], strides = [1, 1, 1]} : vector<16x18x4xf32> to vector<16x16x4xf32>
    %24 = tpu.concatenate %21, %22, %23 in 2 : vector<16x16x4xf32>, vector<16x16x4xf32>, vector<16x16x4xf32> -> vector<16x16x12xf32>
    %25 = vector.shape_cast %24 : vector<16x16x12xf32> to vector<256x12xf32>
    %26 = arith.truncf %25 : vector<256x12xf32> to vector<256x12xbf16>
    %c0_13 = arith.constant 0 : index
    %c0_14 = arith.constant 0 : index
    %c0_15 = arith.constant 0 : index
    %27 = vector.load %arg5[%c0_13, %c0_14, %c0_15] : memref<3x12x4xf32, #tpu.memory_space<vmem>>, vector<1x12x4xf32>
    %28 = vector.shape_cast %27 : vector<1x12x4xf32> to vector<12x4xf32>
    %29 = arith.truncf %28 : vector<12x4xf32> to vector<12x4xbf16>
    %cst_16 = arith.constant dense<0.000000e+00> : vector<256x4xf32>
    %30 = tpu.matmul %26, %29, %cst_16 {dimension_numbers = #tpu.dot_dimension_numbers<[1], [0], [0], [1], [0, 0, 1, 1], [], []>} : vector<256x12xbf16>, vector<12x4xbf16>, vector<256x4xf32> -> vector<256x4xf32>
    %31 = arith.addf %6, %30 : vector<256x4xf32>
    %32 = vector.extract_strided_slice %19 {offsets = [1, 0, 0], sizes = [16, 18, 4], strides = [1, 1, 1]} : vector<18x18x4xf32> to vector<16x18x4xf32>
    %33 = vector.extract_strided_slice %32 {offsets = [0, 0, 0], sizes = [16, 16, 4], strides = [1, 1, 1]} : vector<16x18x4xf32> to vector<16x16x4xf32>
    %34 = vector.extract_strided_slice %32 {offsets = [0, 1, 0], sizes = [16, 16, 4], strides = [1, 1, 1]} : vector<16x18x4xf32> to vector<16x16x4xf32>
    %35 = vector.extract_strided_slice %32 {offsets = [0, 2, 0], sizes = [16, 16, 4], strides = [1, 1, 1]} : vector<16x18x4xf32> to vector<16x16x4xf32>
    %36 = tpu.concatenate %33, %34, %35 in 2 : vector<16x16x4xf32>, vector<16x16x4xf32>, vector<16x16x4xf32> -> vector<16x16x12xf32>
    %37 = vector.shape_cast %36 : vector<16x16x12xf32> to vector<256x12xf32>
    %38 = arith.truncf %37 : vector<256x12xf32> to vector<256x12xbf16>
    %c1 = arith.constant 1 : index
    %c0_17 = arith.constant 0 : index
    %c0_18 = arith.constant 0 : index
    %39 = vector.load %arg5[%c1, %c0_17, %c0_18] : memref<3x12x4xf32, #tpu.memory_space<vmem>>, vector<1x12x4xf32>
    %40 = vector.shape_cast %39 : vector<1x12x4xf32> to vector<12x4xf32>
    %41 = arith.truncf %40 : vector<12x4xf32> to vector<12x4xbf16>
    %cst_19 = arith.constant dense<0.000000e+00> : vector<256x4xf32>
    %42 = tpu.matmul %38, %41, %cst_19 {dimension_numbers = #tpu.dot_dimension_numbers<[1], [0], [0], [1], [0, 0, 1, 1], [], []>} : vector<256x12xbf16>, vector<12x4xbf16>, vector<256x4xf32> -> vector<256x4xf32>
    %43 = arith.addf %31, %42 : vector<256x4xf32>
    %44 = vector.extract_strided_slice %19 {offsets = [2, 0, 0], sizes = [16, 18, 4], strides = [1, 1, 1]} : vector<18x18x4xf32> to vector<16x18x4xf32>
    %45 = vector.extract_strided_slice %44 {offsets = [0, 0, 0], sizes = [16, 16, 4], strides = [1, 1, 1]} : vector<16x18x4xf32> to vector<16x16x4xf32>
    %46 = vector.extract_strided_slice %44 {offsets = [0, 1, 0], sizes = [16, 16, 4], strides = [1, 1, 1]} : vector<16x18x4xf32> to vector<16x16x4xf32>
    %47 = vector.extract_strided_slice %44 {offsets = [0, 2, 0], sizes = [16, 16, 4], strides = [1, 1, 1]} : vector<16x18x4xf32> to vector<16x16x4xf32>
    %48 = tpu.concatenate %45, %46, %47 in 2 : vector<16x16x4xf32>, vector<16x16x4xf32>, vector<16x16x4xf32> -> vector<16x16x12xf32>
    %49 = vector.shape_cast %48 : vector<16x16x12xf32> to vector<256x12xf32>
    %50 = arith.truncf %49 : vector<256x12xf32> to vector<256x12xbf16>
    %c2 = arith.constant 2 : index
    %c0_20 = arith.constant 0 : index
    %c0_21 = arith.constant 0 : index
    %51 = vector.load %arg5[%c2, %c0_20, %c0_21] : memref<3x12x4xf32, #tpu.memory_space<vmem>>, vector<1x12x4xf32>
    %52 = vector.shape_cast %51 : vector<1x12x4xf32> to vector<12x4xf32>
    %53 = arith.truncf %52 : vector<12x4xf32> to vector<12x4xbf16>
    %cst_22 = arith.constant dense<0.000000e+00> : vector<256x4xf32>
    %54 = tpu.matmul %50, %53, %cst_22 {dimension_numbers = #tpu.dot_dimension_numbers<[1], [0], [0], [1], [0, 0, 1, 1], [], []>} : vector<256x12xbf16>, vector<12x4xbf16>, vector<256x4xf32> -> vector<256x4xf32>
    %55 = arith.addf %43, %54 : vector<256x4xf32>
    %c0_23 = arith.constant 0 : index
    %c0_24 = arith.constant 0 : index
    %c0_25 = arith.constant 0 : index
    %c0_26 = arith.constant 0 : index
    %56 = vector.load %arg6[%c0_23, %c0_24, %c0_25, %c0_26] : memref<1x16x16x4xf32, #tpu.memory_space<vmem>>, vector<1x16x16x4xf32>
    %57 = vector.shape_cast %56 : vector<1x16x16x4xf32> to vector<16x16x4xf32>
    %c0_27 = arith.constant 0 : index
    %c0_28 = arith.constant 0 : index
    %c0_29 = arith.constant 0 : index
    %c0_30 = arith.constant 0 : index
    %58 = vector.load %arg7[%c0_27, %c0_28, %c0_29, %c0_30] : memref<1x1x16x4xf32, #tpu.memory_space<vmem>>, vector<1x1x16x4xf32>
    %59 = vector.shape_cast %58 : vector<1x1x16x4xf32> to vector<1x16x4xf32>
    %c0_31 = arith.constant 0 : index
    %c0_32 = arith.constant 0 : index
    %c0_33 = arith.constant 0 : index
    %c0_34 = arith.constant 0 : index
    %60 = vector.load %arg8[%c0_31, %c0_32, %c0_33, %c0_34] : memref<1x1x16x4xf32, #tpu.memory_space<vmem>>, vector<1x1x16x4xf32>
    %61 = vector.shape_cast %60 : vector<1x1x16x4xf32> to vector<1x16x4xf32>
    %62 = vector.broadcast %2 : f32 to vector<1x16x4xf32>
    %63 = arith.mulf %59, %62 : vector<1x16x4xf32>
    %64 = vector.broadcast %5 : f32 to vector<1x16x4xf32>
    %65 = arith.mulf %61, %64 : vector<1x16x4xf32>
    %66 = tpu.concatenate %63, %57, %65 in 0 : vector<1x16x4xf32>, vector<16x16x4xf32>, vector<1x16x4xf32> -> vector<18x16x4xf32>
    %cst_35 = arith.constant 0.000000e+00 : f32
    %67 = vector.broadcast %cst_35 : f32 to vector<18x1x4xf32>
    %68 = tpu.concatenate %67, %66, %67 in 1 : vector<18x1x4xf32>, vector<18x16x4xf32>, vector<18x1x4xf32> -> vector<18x18x4xf32>
    %69 = vector.extract_strided_slice %68 {offsets = [0, 0, 0], sizes = [16, 18, 4], strides = [1, 1, 1]} : vector<18x18x4xf32> to vector<16x18x4xf32>
    %70 = vector.extract_strided_slice %69 {offsets = [0, 0, 0], sizes = [16, 16, 4], strides = [1, 1, 1]} : vector<16x18x4xf32> to vector<16x16x4xf32>
    %71 = vector.extract_strided_slice %69 {offsets = [0, 1, 0], sizes = [16, 16, 4], strides = [1, 1, 1]} : vector<16x18x4xf32> to vector<16x16x4xf32>
    %72 = vector.extract_strided_slice %69 {offsets = [0, 2, 0], sizes = [16, 16, 4], strides = [1, 1, 1]} : vector<16x18x4xf32> to vector<16x16x4xf32>
    %73 = tpu.concatenate %70, %71, %72 in 2 : vector<16x16x4xf32>, vector<16x16x4xf32>, vector<16x16x4xf32> -> vector<16x16x12xf32>
    %74 = vector.shape_cast %73 : vector<16x16x12xf32> to vector<256x12xf32>
    %75 = arith.truncf %74 : vector<256x12xf32> to vector<256x12xbf16>
    %c0_36 = arith.constant 0 : index
    %c0_37 = arith.constant 0 : index
    %c0_38 = arith.constant 0 : index
    %76 = vector.load %arg9[%c0_36, %c0_37, %c0_38] : memref<3x12x4xf32, #tpu.memory_space<vmem>>, vector<1x12x4xf32>
    %77 = vector.shape_cast %76 : vector<1x12x4xf32> to vector<12x4xf32>
    %78 = arith.truncf %77 : vector<12x4xf32> to vector<12x4xbf16>
    %cst_39 = arith.constant dense<0.000000e+00> : vector<256x4xf32>
    %79 = tpu.matmul %75, %78, %cst_39 {dimension_numbers = #tpu.dot_dimension_numbers<[1], [0], [0], [1], [0, 0, 1, 1], [], []>} : vector<256x12xbf16>, vector<12x4xbf16>, vector<256x4xf32> -> vector<256x4xf32>
    %80 = arith.addf %55, %79 : vector<256x4xf32>
    %81 = vector.extract_strided_slice %68 {offsets = [1, 0, 0], sizes = [16, 18, 4], strides = [1, 1, 1]} : vector<18x18x4xf32> to vector<16x18x4xf32>
    %82 = vector.extract_strided_slice %81 {offsets = [0, 0, 0], sizes = [16, 16, 4], strides = [1, 1, 1]} : vector<16x18x4xf32> to vector<16x16x4xf32>
    %83 = vector.extract_strided_slice %81 {offsets = [0, 1, 0], sizes = [16, 16, 4], strides = [1, 1, 1]} : vector<16x18x4xf32> to vector<16x16x4xf32>
    %84 = vector.extract_strided_slice %81 {offsets = [0, 2, 0], sizes = [16, 16, 4], strides = [1, 1, 1]} : vector<16x18x4xf32> to vector<16x16x4xf32>
    %85 = tpu.concatenate %82, %83, %84 in 2 : vector<16x16x4xf32>, vector<16x16x4xf32>, vector<16x16x4xf32> -> vector<16x16x12xf32>
    %86 = vector.shape_cast %85 : vector<16x16x12xf32> to vector<256x12xf32>
    %87 = arith.truncf %86 : vector<256x12xf32> to vector<256x12xbf16>
    %c1_40 = arith.constant 1 : index
    %c0_41 = arith.constant 0 : index
    %c0_42 = arith.constant 0 : index
    %88 = vector.load %arg9[%c1_40, %c0_41, %c0_42] : memref<3x12x4xf32, #tpu.memory_space<vmem>>, vector<1x12x4xf32>
    %89 = vector.shape_cast %88 : vector<1x12x4xf32> to vector<12x4xf32>
    %90 = arith.truncf %89 : vector<12x4xf32> to vector<12x4xbf16>
    %cst_43 = arith.constant dense<0.000000e+00> : vector<256x4xf32>
    %91 = tpu.matmul %87, %90, %cst_43 {dimension_numbers = #tpu.dot_dimension_numbers<[1], [0], [0], [1], [0, 0, 1, 1], [], []>} : vector<256x12xbf16>, vector<12x4xbf16>, vector<256x4xf32> -> vector<256x4xf32>
    %92 = arith.addf %80, %91 : vector<256x4xf32>
    %93 = vector.extract_strided_slice %68 {offsets = [2, 0, 0], sizes = [16, 18, 4], strides = [1, 1, 1]} : vector<18x18x4xf32> to vector<16x18x4xf32>
    %94 = vector.extract_strided_slice %93 {offsets = [0, 0, 0], sizes = [16, 16, 4], strides = [1, 1, 1]} : vector<16x18x4xf32> to vector<16x16x4xf32>
    %95 = vector.extract_strided_slice %93 {offsets = [0, 1, 0], sizes = [16, 16, 4], strides = [1, 1, 1]} : vector<16x18x4xf32> to vector<16x16x4xf32>
    %96 = vector.extract_strided_slice %93 {offsets = [0, 2, 0], sizes = [16, 16, 4], strides = [1, 1, 1]} : vector<16x18x4xf32> to vector<16x16x4xf32>
    %97 = tpu.concatenate %94, %95, %96 in 2 : vector<16x16x4xf32>, vector<16x16x4xf32>, vector<16x16x4xf32> -> vector<16x16x12xf32>
    %98 = vector.shape_cast %97 : vector<16x16x12xf32> to vector<256x12xf32>
    %99 = arith.truncf %98 : vector<256x12xf32> to vector<256x12xbf16>
    %c2_44 = arith.constant 2 : index
    %c0_45 = arith.constant 0 : index
    %c0_46 = arith.constant 0 : index
    %100 = vector.load %arg9[%c2_44, %c0_45, %c0_46] : memref<3x12x4xf32, #tpu.memory_space<vmem>>, vector<1x12x4xf32>
    %101 = vector.shape_cast %100 : vector<1x12x4xf32> to vector<12x4xf32>
    %102 = arith.truncf %101 : vector<12x4xf32> to vector<12x4xbf16>
    %cst_47 = arith.constant dense<0.000000e+00> : vector<256x4xf32>
    %103 = tpu.matmul %99, %102, %cst_47 {dimension_numbers = #tpu.dot_dimension_numbers<[1], [0], [0], [1], [0, 0, 1, 1], [], []>} : vector<256x12xbf16>, vector<12x4xbf16>, vector<256x4xf32> -> vector<256x4xf32>
    %104 = arith.addf %92, %103 : vector<256x4xf32>
    %c0_48 = arith.constant 0 : index
    %c0_49 = arith.constant 0 : index
    %105 = vector.load %arg10[%c0_48, %c0_49] : memref<1x4xf32, #tpu.memory_space<vmem>>, vector<1x4xf32>
    %106 = vector.broadcast %105 : vector<1x4xf32> to vector<256x4xf32>
    %107 = arith.addf %104, %106 : vector<256x4xf32>
    %108 = vector.shape_cast %107 : vector<256x4xf32> to vector<16x16x4xf32>
    %c0_50 = arith.constant 0 : index
    %c0_51 = arith.constant 0 : index
    %c0_52 = arith.constant 0 : index
    %c0_53 = arith.constant 0 : index
    %109 = vector.load %arg11[%c0_50, %c0_51, %c0_52, %c0_53] : memref<1x16x16x4xf32, #tpu.memory_space<vmem>>, vector<1x16x16x4xf32>
    %110 = vector.shape_cast %109 : vector<1x16x16x4xf32> to vector<16x16x4xf32>
    %111 = vector.shape_cast %108 : vector<16x16x4xf32> to vector<1x16x16x4xf32>
    tpu.vector_store %arg11[%c0_50, %c0_51, %c0_52, %c0_53], %111 {strides = array<i32>} : memref<1x16x16x4xf32, #tpu.memory_space<vmem>>, vector<1x16x16x4xf32>,
    %cst_54 = arith.constant dense<0.000000e+00> : vector<4xf32>
    %112 = vector.multi_reduction <add>, %107, %cst_54 [0] : vector<256x4xf32> to vector<4xf32>
    %113 = vector.shape_cast %112 : vector<4xf32> to vector<1x4xf32>
    %c0_55 = arith.constant 0 : index
    %c0_56 = arith.constant 0 : index
    %c0_57 = arith.constant 0 : index
    %c0_58 = arith.constant 0 : index
    %114 = vector.load %arg12[%c0_55, %c0_56, %c0_57, %c0_58] : memref<1x1x1x4xf32, #tpu.memory_space<vmem>>, vector<1x1x1x4xf32>
    %115 = vector.shape_cast %114 : vector<1x1x1x4xf32> to vector<1x4xf32>
    %116 = vector.shape_cast %113 : vector<1x4xf32> to vector<1x1x1x4xf32>
    tpu.vector_store %arg12[%c0_55, %c0_56, %c0_57, %c0_58], %116 {strides = array<i32>} : memref<1x1x1x4xf32, #tpu.memory_space<vmem>>, vector<1x1x1x4xf32>,
    %117 = arith.mulf %107, %107 : vector<256x4xf32>
    %cst_59 = arith.constant dense<0.000000e+00> : vector<4xf32>
    %118 = vector.multi_reduction <add>, %117, %cst_59 [0] : vector<256x4xf32> to vector<4xf32>
    %119 = vector.shape_cast %118 : vector<4xf32> to vector<1x4xf32>
    %c0_60 = arith.constant 0 : index
    %c0_61 = arith.constant 0 : index
    %c0_62 = arith.constant 0 : index
    %c0_63 = arith.constant 0 : index
    %120 = vector.load %arg13[%c0_60, %c0_61, %c0_62, %c0_63] : memref<1x1x1x4xf32, #tpu.memory_space<vmem>>, vector<1x1x1x4xf32>
    %121 = vector.shape_cast %120 : vector<1x1x1x4xf32> to vector<1x4xf32>
    %122 = vector.shape_cast %119 : vector<1x4xf32> to vector<1x1x1x4xf32>
    tpu.vector_store %arg13[%c0_60, %c0_61, %c0_62, %c0_63], %122 {strides = array<i32>} : memref<1x1x1x4xf32, #tpu.memory_space<vmem>>, vector<1x1x1x4xf32>,
    return
  }
  func.func @transform_0(%arg0: i32, %arg1: i32) -> (i32, i32, i32, i32) {
    %c0_i32 = arith.constant 0 : i32
    %c0_i32_0 = arith.constant 0 : i32
    %c0_i32_1 = arith.constant 0 : i32
    return %arg0, %arg1, %c0_i32, %c0_i32_0 : i32, i32, i32, i32
  }
  func.func @transform_1(%arg0: i32, %arg1: i32) -> (i32, i32, i32, i32) {
    %c16_i32 = arith.constant 16 : i32
    %0 = arith.muli %arg1, %c16_i32 : i32
    %c1_i32 = arith.constant 1 : i32
    %1 = arith.subi %0, %c1_i32 : i32
    %c0_i32 = arith.constant 0 : i32
    %2 = arith.maxsi %1, %c0_i32 : i32
    %c0_i32_0 = arith.constant 0 : i32
    %c0_i32_1 = arith.constant 0 : i32
    %c0_i32_2 = arith.constant 0 : i32
    return %arg0, %2, %c0_i32_0, %c0_i32_1 : i32, i32, i32, i32
  }
  func.func @transform_2(%arg0: i32, %arg1: i32) -> (i32, i32, i32, i32) {
    %c1_i32 = arith.constant 1 : i32
    %0 = arith.addi %arg1, %c1_i32 : i32
    %c16_i32 = arith.constant 16 : i32
    %1 = arith.muli %0, %c16_i32 : i32
    %c15_i32 = arith.constant 15 : i32
    %2 = arith.minsi %1, %c15_i32 : i32
    %c0_i32 = arith.constant 0 : i32
    %c0_i32_0 = arith.constant 0 : i32
    %c0_i32_1 = arith.constant 0 : i32
    return %arg0, %2, %c0_i32, %c0_i32_0 : i32, i32, i32, i32
  }
  func.func @transform_3(%arg0: i32, %arg1: i32) -> (i32, i32, i32) {
    %c0_i32 = arith.constant 0 : i32
    %c0_i32_0 = arith.constant 0 : i32
    %c0_i32_1 = arith.constant 0 : i32
    %c0_i32_2 = arith.constant 0 : i32
    return %c0_i32, %c0_i32_0, %c0_i32_1 : i32, i32, i32
  }
  func.func @transform_4(%arg0: i32, %arg1: i32) -> (i32, i32, i32, i32) {
    %c0_i32 = arith.constant 0 : i32
    %c0_i32_0 = arith.constant 0 : i32
    %c0_i32_1 = arith.constant 0 : i32
    return %arg0, %arg1, %c0_i32, %c0_i32_0 : i32, i32, i32, i32
  }
  func.func @transform_5(%arg0: i32, %arg1: i32) -> (i32, i32, i32, i32) {
    %c16_i32 = arith.constant 16 : i32
    %0 = arith.muli %arg1, %c16_i32 : i32
    %c1_i32 = arith.constant 1 : i32
    %1 = arith.subi %0, %c1_i32 : i32
    %c0_i32 = arith.constant 0 : i32
    %2 = arith.maxsi %1, %c0_i32 : i32
    %c0_i32_0 = arith.constant 0 : i32
    %c0_i32_1 = arith.constant 0 : i32
    %c0_i32_2 = arith.constant 0 : i32
    return %arg0, %2, %c0_i32_0, %c0_i32_1 : i32, i32, i32, i32
  }
  func.func @transform_6(%arg0: i32, %arg1: i32) -> (i32, i32, i32, i32) {
    %c1_i32 = arith.constant 1 : i32
    %0 = arith.addi %arg1, %c1_i32 : i32
    %c16_i32 = arith.constant 16 : i32
    %1 = arith.muli %0, %c16_i32 : i32
    %c15_i32 = arith.constant 15 : i32
    %2 = arith.minsi %1, %c15_i32 : i32
    %c0_i32 = arith.constant 0 : i32
    %c0_i32_0 = arith.constant 0 : i32
    %c0_i32_1 = arith.constant 0 : i32
    return %arg0, %2, %c0_i32, %c0_i32_0 : i32, i32, i32, i32
  }
  func.func @transform_7(%arg0: i32, %arg1: i32) -> (i32, i32, i32) {
    %c0_i32 = arith.constant 0 : i32
    %c0_i32_0 = arith.constant 0 : i32
    %c0_i32_1 = arith.constant 0 : i32
    %c0_i32_2 = arith.constant 0 : i32
    return %c0_i32, %c0_i32_0, %c0_i32_1 : i32, i32, i32
  }
  func.func @transform_8(%arg0: i32, %arg1: i32) -> (i32, i32) {
    %c0_i32 = arith.constant 0 : i32
    %c0_i32_0 = arith.constant 0 : i32
    %c0_i32_1 = arith.constant 0 : i32
    return %c0_i32, %c0_i32_0 : i32, i32
  }
  func.func @transform_9(%arg0: i32, %arg1: i32) -> (i32, i32, i32, i32) {
    %c0_i32 = arith.constant 0 : i32
    %c0_i32_0 = arith.constant 0 : i32
    %c0_i32_1 = arith.constant 0 : i32
    return %arg0, %arg1, %c0_i32, %c0_i32_0 : i32, i32, i32, i32
  }
  func.func @transform_10(%arg0: i32, %arg1: i32) -> (i32, i32, i32, i32) {
    %c0_i32 = arith.constant 0 : i32
    %c0_i32_0 = arith.constant 0 : i32
    %c0_i32_1 = arith.constant 0 : i32
    return %arg0, %arg1, %c0_i32, %c0_i32_0 : i32, i32, i32, i32
  }
  func.func @transform_11(%arg0: i32, %arg1: i32) -> (i32, i32, i32, i32) {
    %c0_i32 = arith.constant 0 : i32
    %c0_i32_0 = arith.constant 0 : i32
    %c0_i32_1 = arith.constant 0 : i32
    return %arg0, %arg1, %c0_i32, %c0_i32_0 : i32, i32, i32, i32
  }
}

module attributes {stable_mosaic.version = 11 : i64} {
  func.func @kernel(%arg0: i32, %arg1: i32, %arg2: memref<1x16x16x4xf32, #tpu.memory_space<vmem>>, %arg3: memref<1x1x16x4xf32, #tpu.memory_space<vmem>>, %arg4: memref<1x1x16x4xf32, #tpu.memory_space<vmem>>, %arg5: memref<3x12x4xf32, #tpu.memory_space<vmem>>, %arg6: memref<1x4xf32, #tpu.memory_space<vmem>>, %arg7: memref<1x4xf32, #tpu.memory_space<vmem>>, %arg8: memref<1x4xf32, #tpu.memory_space<vmem>>, %arg9: memref<1x16x16x4xf32, #tpu.memory_space<vmem>>, %arg10: memref<1x1x1x4xf32, #tpu.memory_space<vmem>>, %arg11: memref<1x1x1x4xf32, #tpu.memory_space<vmem>>) attributes {dimension_semantics = [#tpu.dimension_semantics<parallel>, #tpu.dimension_semantics<parallel>], iteration_bounds = array<i64: 2, 1>, scalar_prefetch = 0 : i64, scratch_operands = 0 : i64, tpu.core_type = #tpu.core_type<tc>, window_params = [{transform_indices = @transform_0, window_bounds = array<i64: 1, 16, 16, 4>}, {transform_indices = @transform_1, window_bounds = array<i64: 1, 1, 16, 4>}, {transform_indices = @transform_2, window_bounds = array<i64: 1, 1, 16, 4>}, {pipeline_mode = #tpu.pipeline_mode<synchronous>, transform_indices = @transform_3, window_bounds = array<i64: 3, 12, 4>}, {pipeline_mode = #tpu.pipeline_mode<synchronous>, transform_indices = @transform_4, window_bounds = array<i64: 1, 4>}, {pipeline_mode = #tpu.pipeline_mode<synchronous>, transform_indices = @transform_5, window_bounds = array<i64: 1, 4>}, {pipeline_mode = #tpu.pipeline_mode<synchronous>, transform_indices = @transform_6, window_bounds = array<i64: 1, 4>}, {transform_indices = @transform_7, window_bounds = array<i64: 1, 16, 16, 4>}, {transform_indices = @transform_8, window_bounds = array<i64: 1, 1, 1, 4>}, {transform_indices = @transform_9, window_bounds = array<i64: 1, 1, 1, 4>}]} {
    %c0_i32 = arith.constant 0 : i32
    %0 = arith.cmpi sgt, %arg1, %c0_i32 : i32
    %1 = arith.extui %0 : i1 to i32
    %2 = arith.sitofp %1 : i32 to f32
    %c0_i32_0 = arith.constant 0 : i32
    %3 = arith.cmpi slt, %arg1, %c0_i32_0 : i32
    %4 = arith.extui %3 : i1 to i32
    %5 = arith.sitofp %4 : i32 to f32
    %cst = arith.constant 0.000000e+00 : f32
    %6 = vector.broadcast %cst : f32 to vector<256x4xf32>
    %c0 = arith.constant 0 : index
    %c0_1 = arith.constant 0 : index
    %c0_2 = arith.constant 0 : index
    %c0_3 = arith.constant 0 : index
    %7 = vector.load %arg2[%c0, %c0_1, %c0_2, %c0_3] : memref<1x16x16x4xf32, #tpu.memory_space<vmem>>, vector<1x16x16x4xf32>
    %8 = vector.shape_cast %7 : vector<1x16x16x4xf32> to vector<16x16x4xf32>
    %c0_4 = arith.constant 0 : index
    %c0_5 = arith.constant 0 : index
    %c0_6 = arith.constant 0 : index
    %c0_7 = arith.constant 0 : index
    %9 = vector.load %arg3[%c0_4, %c0_5, %c0_6, %c0_7] : memref<1x1x16x4xf32, #tpu.memory_space<vmem>>, vector<1x1x16x4xf32>
    %10 = vector.shape_cast %9 : vector<1x1x16x4xf32> to vector<1x16x4xf32>
    %c0_8 = arith.constant 0 : index
    %c0_9 = arith.constant 0 : index
    %c0_10 = arith.constant 0 : index
    %c0_11 = arith.constant 0 : index
    %11 = vector.load %arg4[%c0_8, %c0_9, %c0_10, %c0_11] : memref<1x1x16x4xf32, #tpu.memory_space<vmem>>, vector<1x1x16x4xf32>
    %12 = vector.shape_cast %11 : vector<1x1x16x4xf32> to vector<1x16x4xf32>
    %c0_12 = arith.constant 0 : index
    %c0_13 = arith.constant 0 : index
    %13 = vector.load %arg6[%c0_12, %c0_13] : memref<1x4xf32, #tpu.memory_space<vmem>>, vector<1x4xf32>
    %14 = vector.shape_cast %13 : vector<1x4xf32> to vector<1x1x4xf32>
    %c0_14 = arith.constant 0 : index
    %c0_15 = arith.constant 0 : index
    %15 = vector.load %arg7[%c0_14, %c0_15] : memref<1x4xf32, #tpu.memory_space<vmem>>, vector<1x4xf32>
    %16 = vector.shape_cast %15 : vector<1x4xf32> to vector<1x1x4xf32>
    %17 = vector.broadcast %14 : vector<1x1x4xf32> to vector<16x16x4xf32>
    %18 = arith.mulf %8, %17 : vector<16x16x4xf32>
    %19 = vector.broadcast %16 : vector<1x1x4xf32> to vector<16x16x4xf32>
    %20 = arith.addf %18, %19 : vector<16x16x4xf32>
    %cst_16 = arith.constant 0.000000e+00 : f32
    %21 = vector.broadcast %cst_16 : f32 to vector<16x16x4xf32>
    %22 = arith.maximumf %20, %21 : vector<16x16x4xf32>
    %23 = vector.broadcast %14 : vector<1x1x4xf32> to vector<1x16x4xf32>
    %24 = arith.mulf %10, %23 : vector<1x16x4xf32>
    %25 = vector.broadcast %16 : vector<1x1x4xf32> to vector<1x16x4xf32>
    %26 = arith.addf %24, %25 : vector<1x16x4xf32>
    %cst_17 = arith.constant 0.000000e+00 : f32
    %27 = vector.broadcast %cst_17 : f32 to vector<1x16x4xf32>
    %28 = arith.maximumf %26, %27 : vector<1x16x4xf32>
    %29 = vector.broadcast %14 : vector<1x1x4xf32> to vector<1x16x4xf32>
    %30 = arith.mulf %12, %29 : vector<1x16x4xf32>
    %31 = vector.broadcast %16 : vector<1x1x4xf32> to vector<1x16x4xf32>
    %32 = arith.addf %30, %31 : vector<1x16x4xf32>
    %cst_18 = arith.constant 0.000000e+00 : f32
    %33 = vector.broadcast %cst_18 : f32 to vector<1x16x4xf32>
    %34 = arith.maximumf %32, %33 : vector<1x16x4xf32>
    %35 = vector.broadcast %2 : f32 to vector<1x16x4xf32>
    %36 = arith.mulf %28, %35 : vector<1x16x4xf32>
    %37 = vector.broadcast %5 : f32 to vector<1x16x4xf32>
    %38 = arith.mulf %34, %37 : vector<1x16x4xf32>
    %39 = tpu.concatenate %36, %22, %38 in 0 : vector<1x16x4xf32>, vector<16x16x4xf32>, vector<1x16x4xf32> -> vector<18x16x4xf32>
    %cst_19 = arith.constant 0.000000e+00 : f32
    %40 = vector.broadcast %cst_19 : f32 to vector<18x1x4xf32>
    %41 = tpu.concatenate %40, %39, %40 in 1 : vector<18x1x4xf32>, vector<18x16x4xf32>, vector<18x1x4xf32> -> vector<18x18x4xf32>
    %42 = vector.extract_strided_slice %41 {offsets = [0, 0, 0], sizes = [16, 18, 4], strides = [1, 1, 1]} : vector<18x18x4xf32> to vector<16x18x4xf32>
    %43 = vector.extract_strided_slice %42 {offsets = [0, 0, 0], sizes = [16, 16, 4], strides = [1, 1, 1]} : vector<16x18x4xf32> to vector<16x16x4xf32>
    %44 = vector.extract_strided_slice %42 {offsets = [0, 1, 0], sizes = [16, 16, 4], strides = [1, 1, 1]} : vector<16x18x4xf32> to vector<16x16x4xf32>
    %45 = vector.extract_strided_slice %42 {offsets = [0, 2, 0], sizes = [16, 16, 4], strides = [1, 1, 1]} : vector<16x18x4xf32> to vector<16x16x4xf32>
    %46 = tpu.concatenate %43, %44, %45 in 2 : vector<16x16x4xf32>, vector<16x16x4xf32>, vector<16x16x4xf32> -> vector<16x16x12xf32>
    %47 = vector.shape_cast %46 : vector<16x16x12xf32> to vector<256x12xf32>
    %48 = arith.truncf %47 : vector<256x12xf32> to vector<256x12xbf16>
    %c0_20 = arith.constant 0 : index
    %c0_21 = arith.constant 0 : index
    %c0_22 = arith.constant 0 : index
    %49 = vector.load %arg5[%c0_20, %c0_21, %c0_22] : memref<3x12x4xf32, #tpu.memory_space<vmem>>, vector<1x12x4xf32>
    %50 = vector.shape_cast %49 : vector<1x12x4xf32> to vector<12x4xf32>
    %51 = arith.truncf %50 : vector<12x4xf32> to vector<12x4xbf16>
    %cst_23 = arith.constant dense<0.000000e+00> : vector<256x4xf32>
    %52 = tpu.matmul %48, %51, %cst_23 {dimension_numbers = #tpu.dot_dimension_numbers<[1], [0], [0], [1], [0, 0, 1, 1], [], []>} : vector<256x12xbf16>, vector<12x4xbf16>, vector<256x4xf32> -> vector<256x4xf32>
    %53 = arith.addf %6, %52 : vector<256x4xf32>
    %54 = vector.extract_strided_slice %41 {offsets = [1, 0, 0], sizes = [16, 18, 4], strides = [1, 1, 1]} : vector<18x18x4xf32> to vector<16x18x4xf32>
    %55 = vector.extract_strided_slice %54 {offsets = [0, 0, 0], sizes = [16, 16, 4], strides = [1, 1, 1]} : vector<16x18x4xf32> to vector<16x16x4xf32>
    %56 = vector.extract_strided_slice %54 {offsets = [0, 1, 0], sizes = [16, 16, 4], strides = [1, 1, 1]} : vector<16x18x4xf32> to vector<16x16x4xf32>
    %57 = vector.extract_strided_slice %54 {offsets = [0, 2, 0], sizes = [16, 16, 4], strides = [1, 1, 1]} : vector<16x18x4xf32> to vector<16x16x4xf32>
    %58 = tpu.concatenate %55, %56, %57 in 2 : vector<16x16x4xf32>, vector<16x16x4xf32>, vector<16x16x4xf32> -> vector<16x16x12xf32>
    %59 = vector.shape_cast %58 : vector<16x16x12xf32> to vector<256x12xf32>
    %60 = arith.truncf %59 : vector<256x12xf32> to vector<256x12xbf16>
    %c1 = arith.constant 1 : index
    %c0_24 = arith.constant 0 : index
    %c0_25 = arith.constant 0 : index
    %61 = vector.load %arg5[%c1, %c0_24, %c0_25] : memref<3x12x4xf32, #tpu.memory_space<vmem>>, vector<1x12x4xf32>
    %62 = vector.shape_cast %61 : vector<1x12x4xf32> to vector<12x4xf32>
    %63 = arith.truncf %62 : vector<12x4xf32> to vector<12x4xbf16>
    %cst_26 = arith.constant dense<0.000000e+00> : vector<256x4xf32>
    %64 = tpu.matmul %60, %63, %cst_26 {dimension_numbers = #tpu.dot_dimension_numbers<[1], [0], [0], [1], [0, 0, 1, 1], [], []>} : vector<256x12xbf16>, vector<12x4xbf16>, vector<256x4xf32> -> vector<256x4xf32>
    %65 = arith.addf %53, %64 : vector<256x4xf32>
    %66 = vector.extract_strided_slice %41 {offsets = [2, 0, 0], sizes = [16, 18, 4], strides = [1, 1, 1]} : vector<18x18x4xf32> to vector<16x18x4xf32>
    %67 = vector.extract_strided_slice %66 {offsets = [0, 0, 0], sizes = [16, 16, 4], strides = [1, 1, 1]} : vector<16x18x4xf32> to vector<16x16x4xf32>
    %68 = vector.extract_strided_slice %66 {offsets = [0, 1, 0], sizes = [16, 16, 4], strides = [1, 1, 1]} : vector<16x18x4xf32> to vector<16x16x4xf32>
    %69 = vector.extract_strided_slice %66 {offsets = [0, 2, 0], sizes = [16, 16, 4], strides = [1, 1, 1]} : vector<16x18x4xf32> to vector<16x16x4xf32>
    %70 = tpu.concatenate %67, %68, %69 in 2 : vector<16x16x4xf32>, vector<16x16x4xf32>, vector<16x16x4xf32> -> vector<16x16x12xf32>
    %71 = vector.shape_cast %70 : vector<16x16x12xf32> to vector<256x12xf32>
    %72 = arith.truncf %71 : vector<256x12xf32> to vector<256x12xbf16>
    %c2 = arith.constant 2 : index
    %c0_27 = arith.constant 0 : index
    %c0_28 = arith.constant 0 : index
    %73 = vector.load %arg5[%c2, %c0_27, %c0_28] : memref<3x12x4xf32, #tpu.memory_space<vmem>>, vector<1x12x4xf32>
    %74 = vector.shape_cast %73 : vector<1x12x4xf32> to vector<12x4xf32>
    %75 = arith.truncf %74 : vector<12x4xf32> to vector<12x4xbf16>
    %cst_29 = arith.constant dense<0.000000e+00> : vector<256x4xf32>
    %76 = tpu.matmul %72, %75, %cst_29 {dimension_numbers = #tpu.dot_dimension_numbers<[1], [0], [0], [1], [0, 0, 1, 1], [], []>} : vector<256x12xbf16>, vector<12x4xbf16>, vector<256x4xf32> -> vector<256x4xf32>
    %77 = arith.addf %65, %76 : vector<256x4xf32>
    %c0_30 = arith.constant 0 : index
    %c0_31 = arith.constant 0 : index
    %78 = vector.load %arg8[%c0_30, %c0_31] : memref<1x4xf32, #tpu.memory_space<vmem>>, vector<1x4xf32>
    %79 = vector.broadcast %78 : vector<1x4xf32> to vector<256x4xf32>
    %80 = arith.addf %77, %79 : vector<256x4xf32>
    %81 = vector.shape_cast %80 : vector<256x4xf32> to vector<16x16x4xf32>
    %c0_32 = arith.constant 0 : index
    %c0_33 = arith.constant 0 : index
    %c0_34 = arith.constant 0 : index
    %c0_35 = arith.constant 0 : index
    %82 = vector.load %arg9[%c0_32, %c0_33, %c0_34, %c0_35] : memref<1x16x16x4xf32, #tpu.memory_space<vmem>>, vector<1x16x16x4xf32>
    %83 = vector.shape_cast %82 : vector<1x16x16x4xf32> to vector<16x16x4xf32>
    %84 = vector.shape_cast %81 : vector<16x16x4xf32> to vector<1x16x16x4xf32>
    tpu.vector_store %arg9[%c0_32, %c0_33, %c0_34, %c0_35], %84 {strides = array<i32>} : memref<1x16x16x4xf32, #tpu.memory_space<vmem>>, vector<1x16x16x4xf32>,
    %cst_36 = arith.constant dense<0.000000e+00> : vector<4xf32>
    %85 = vector.multi_reduction <add>, %80, %cst_36 [0] : vector<256x4xf32> to vector<4xf32>
    %86 = vector.shape_cast %85 : vector<4xf32> to vector<1x4xf32>
    %c0_37 = arith.constant 0 : index
    %c0_38 = arith.constant 0 : index
    %c0_39 = arith.constant 0 : index
    %c0_40 = arith.constant 0 : index
    %87 = vector.load %arg10[%c0_37, %c0_38, %c0_39, %c0_40] : memref<1x1x1x4xf32, #tpu.memory_space<vmem>>, vector<1x1x1x4xf32>
    %88 = vector.shape_cast %87 : vector<1x1x1x4xf32> to vector<1x4xf32>
    %89 = vector.shape_cast %86 : vector<1x4xf32> to vector<1x1x1x4xf32>
    tpu.vector_store %arg10[%c0_37, %c0_38, %c0_39, %c0_40], %89 {strides = array<i32>} : memref<1x1x1x4xf32, #tpu.memory_space<vmem>>, vector<1x1x1x4xf32>,
    %90 = arith.mulf %80, %80 : vector<256x4xf32>
    %cst_41 = arith.constant dense<0.000000e+00> : vector<4xf32>
    %91 = vector.multi_reduction <add>, %90, %cst_41 [0] : vector<256x4xf32> to vector<4xf32>
    %92 = vector.shape_cast %91 : vector<4xf32> to vector<1x4xf32>
    %c0_42 = arith.constant 0 : index
    %c0_43 = arith.constant 0 : index
    %c0_44 = arith.constant 0 : index
    %c0_45 = arith.constant 0 : index
    %93 = vector.load %arg11[%c0_42, %c0_43, %c0_44, %c0_45] : memref<1x1x1x4xf32, #tpu.memory_space<vmem>>, vector<1x1x1x4xf32>
    %94 = vector.shape_cast %93 : vector<1x1x1x4xf32> to vector<1x4xf32>
    %95 = vector.shape_cast %92 : vector<1x4xf32> to vector<1x1x1x4xf32>
    tpu.vector_store %arg11[%c0_42, %c0_43, %c0_44, %c0_45], %95 {strides = array<i32>} : memref<1x1x1x4xf32, #tpu.memory_space<vmem>>, vector<1x1x1x4xf32>,
    return
  }
  func.func @transform_0(%arg0: i32, %arg1: i32) -> (i32, i32, i32, i32) {
    %c0_i32 = arith.constant 0 : i32
    %c0_i32_0 = arith.constant 0 : i32
    %c0_i32_1 = arith.constant 0 : i32
    return %arg0, %arg1, %c0_i32, %c0_i32_0 : i32, i32, i32, i32
  }
  func.func @transform_1(%arg0: i32, %arg1: i32) -> (i32, i32, i32, i32) {
    %c16_i32 = arith.constant 16 : i32
    %0 = arith.muli %arg1, %c16_i32 : i32
    %c1_i32 = arith.constant 1 : i32
    %1 = arith.subi %0, %c1_i32 : i32
    %c0_i32 = arith.constant 0 : i32
    %2 = arith.maxsi %1, %c0_i32 : i32
    %c0_i32_0 = arith.constant 0 : i32
    %c0_i32_1 = arith.constant 0 : i32
    %c0_i32_2 = arith.constant 0 : i32
    return %arg0, %2, %c0_i32_0, %c0_i32_1 : i32, i32, i32, i32
  }
  func.func @transform_2(%arg0: i32, %arg1: i32) -> (i32, i32, i32, i32) {
    %c1_i32 = arith.constant 1 : i32
    %0 = arith.addi %arg1, %c1_i32 : i32
    %c16_i32 = arith.constant 16 : i32
    %1 = arith.muli %0, %c16_i32 : i32
    %c15_i32 = arith.constant 15 : i32
    %2 = arith.minsi %1, %c15_i32 : i32
    %c0_i32 = arith.constant 0 : i32
    %c0_i32_0 = arith.constant 0 : i32
    %c0_i32_1 = arith.constant 0 : i32
    return %arg0, %2, %c0_i32, %c0_i32_0 : i32, i32, i32, i32
  }
  func.func @transform_3(%arg0: i32, %arg1: i32) -> (i32, i32, i32) {
    %c0_i32 = arith.constant 0 : i32
    %c0_i32_0 = arith.constant 0 : i32
    %c0_i32_1 = arith.constant 0 : i32
    %c0_i32_2 = arith.constant 0 : i32
    return %c0_i32, %c0_i32_0, %c0_i32_1 : i32, i32, i32
  }
  func.func @transform_4(%arg0: i32, %arg1: i32) -> (i32, i32) {
    %c0_i32 = arith.constant 0 : i32
    %c0_i32_0 = arith.constant 0 : i32
    %c0_i32_1 = arith.constant 0 : i32
    return %c0_i32, %c0_i32_0 : i32, i32
  }
  func.func @transform_5(%arg0: i32, %arg1: i32) -> (i32, i32) {
    %c0_i32 = arith.constant 0 : i32
    %c0_i32_0 = arith.constant 0 : i32
    %c0_i32_1 = arith.constant 0 : i32
    return %c0_i32, %c0_i32_0 : i32, i32
  }
  func.func @transform_6(%arg0: i32, %arg1: i32) -> (i32, i32) {
    %c0_i32 = arith.constant 0 : i32
    %c0_i32_0 = arith.constant 0 : i32
    %c0_i32_1 = arith.constant 0 : i32
    return %c0_i32, %c0_i32_0 : i32, i32
  }
  func.func @transform_7(%arg0: i32, %arg1: i32) -> (i32, i32, i32, i32) {
    %c0_i32 = arith.constant 0 : i32
    %c0_i32_0 = arith.constant 0 : i32
    %c0_i32_1 = arith.constant 0 : i32
    return %arg0, %arg1, %c0_i32, %c0_i32_0 : i32, i32, i32, i32
  }
  func.func @transform_8(%arg0: i32, %arg1: i32) -> (i32, i32, i32, i32) {
    %c0_i32 = arith.constant 0 : i32
    %c0_i32_0 = arith.constant 0 : i32
    %c0_i32_1 = arith.constant 0 : i32
    return %arg0, %arg1, %c0_i32, %c0_i32_0 : i32, i32, i32, i32
  }
  func.func @transform_9(%arg0: i32, %arg1: i32) -> (i32, i32, i32, i32) {
    %c0_i32 = arith.constant 0 : i32
    %c0_i32_0 = arith.constant 0 : i32
    %c0_i32_1 = arith.constant 0 : i32
    return %arg0, %arg1, %c0_i32, %c0_i32_0 : i32, i32, i32, i32
  }
}

module attributes {stable_mosaic.version = 11 : i64} {
  func.func @_affine_relu_kernel(%arg0: i32, %arg1: memref<16x64xf32, #tpu.memory_space<vmem>>, %arg2: memref<1x64xf32, #tpu.memory_space<vmem>>, %arg3: memref<1x64xf32, #tpu.memory_space<vmem>>, %arg4: memref<16x64xf32, #tpu.memory_space<vmem>>) attributes {dimension_semantics = [#tpu.dimension_semantics<parallel>], iteration_bounds = array<i64: 2>, scalar_prefetch = 0 : i64, scratch_operands = 0 : i64, tpu.core_type = #tpu.core_type<tc>, window_params = [{transform_indices = @transform_0, window_bounds = array<i64: 16, 64>}, {pipeline_mode = #tpu.pipeline_mode<synchronous>, transform_indices = @transform_1, window_bounds = array<i64: 1, 64>}, {pipeline_mode = #tpu.pipeline_mode<synchronous>, transform_indices = @transform_2, window_bounds = array<i64: 1, 64>}, {transform_indices = @transform_3, window_bounds = array<i64: 16, 64>}]} {
    %c0 = arith.constant 0 : index
    %c0_0 = arith.constant 0 : index
    %0 = vector.load %arg1[%c0, %c0_0] : memref<16x64xf32, #tpu.memory_space<vmem>>, vector<16x64xf32>
    %c0_1 = arith.constant 0 : index
    %c0_2 = arith.constant 0 : index
    %1 = vector.load %arg2[%c0_1, %c0_2] : memref<1x64xf32, #tpu.memory_space<vmem>>, vector<1x64xf32>
    %2 = vector.broadcast %1 : vector<1x64xf32> to vector<16x64xf32>
    %3 = arith.mulf %0, %2 : vector<16x64xf32>
    %c0_3 = arith.constant 0 : index
    %c0_4 = arith.constant 0 : index
    %4 = vector.load %arg3[%c0_3, %c0_4] : memref<1x64xf32, #tpu.memory_space<vmem>>, vector<1x64xf32>
    %5 = vector.broadcast %4 : vector<1x64xf32> to vector<16x64xf32>
    %6 = arith.addf %3, %5 : vector<16x64xf32>
    %cst = arith.constant 0.000000e+00 : f32
    %7 = vector.broadcast %cst : f32 to vector<16x64xf32>
    %8 = arith.maximumf %6, %7 : vector<16x64xf32>
    %c0_5 = arith.constant 0 : index
    %c0_6 = arith.constant 0 : index
    %9 = vector.load %arg4[%c0_5, %c0_6] : memref<16x64xf32, #tpu.memory_space<vmem>>, vector<16x64xf32>
    tpu.vector_store %arg4[%c0_5, %c0_6], %8 {strides = array<i32>} : memref<16x64xf32, #tpu.memory_space<vmem>>, vector<16x64xf32>,
    return
  }
  func.func @transform_0(%arg0: i32) -> (i32, i32) {
    %c0_i32 = arith.constant 0 : i32
    %c0_i32_0 = arith.constant 0 : i32
    return %arg0, %c0_i32 : i32, i32
  }
  func.func @transform_1(%arg0: i32) -> (i32, i32) {
    %c0_i32 = arith.constant 0 : i32
    %c0_i32_0 = arith.constant 0 : i32
    %c0_i32_1 = arith.constant 0 : i32
    return %c0_i32, %c0_i32_0 : i32, i32
  }
  func.func @transform_2(%arg0: i32) -> (i32, i32) {
    %c0_i32 = arith.constant 0 : i32
    %c0_i32_0 = arith.constant 0 : i32
    %c0_i32_1 = arith.constant 0 : i32
    return %c0_i32, %c0_i32_0 : i32, i32
  }
  func.func @transform_3(%arg0: i32) -> (i32, i32) {
    %c0_i32 = arith.constant 0 : i32
    %c0_i32_0 = arith.constant 0 : i32
    return %arg0, %c0_i32 : i32, i32
  }
}

</mosaic_0001>

<bundles_post_ra>
// kernel: tile.19
= control target key start
LH: loop header
LB: loop body
LE: loop exit
PB: predicated region body
PF: predicated region fallthrough
CT: control target
= control target key end

     0   :  { %s101_s0 = inlined_call_operand.vmem [shape: f32[4,4], index: 0, kind: input, shape index: {}]   ;;  %s102_s1 = inlined_call_operand.hbm [shape: f32[1,16], index: 1, kind: output, shape index: {}]  }
   0x1   :  { %v5_v0 = vld [vmem:[%s101_s0] sm:$0xf] }
   0x2   :  { %6 = vst [vmem:[#allocation3] sm:$0xf] %v5_v0 }
   0x3   :  { %2 = vsyncpa [#allocation1], 0  ;;  %vm8_vm0 = vcmask 31744   ;;  %s72_s0 = smov 12   ;;  %s73_s8 = smov 4   ;;  %vm14_vm1 = vcmask 130144  }
   0x4   :  { %s74_s9 = smov 8   ;;  %vm20_vm2 = vcmask 97344   ;;  %vm26_vm3 = vcmask 64544   ;;  %s75_s10 = smov [#allocation0]  }
   0x5   :  { %s38_s11 = sshll.u32 %s75_s10, 4  ;;  %s39_s11 = int_to_ptr.vmem [resolvable:$true] %s38_s11 }
   0x6   :  { %s48_s12 = scalar_lea.vmem %s39_s11, 16  ;;  %s52_s13 = scalar_lea.vmem %s39_s11, 32 }
   0x7   :  { %p49_p0 = scmp.ne.s32.totalorder %s39_s11, %s48_s12  ;;  %p53_p1 = scmp.lt.s32.totalorder %s39_s11, %s39_s11 }
   0x8   :  { %p54_p2 = scmp.lt.s32.totalorder %s52_s13, %s48_s12 }
   0x9   :  { %v11_v1 = vld [vmem:[#allocation3 + $0x3] sm:$0x1]   ;;  %v23_v2 = vld [vmem:[#allocation3 + $0x1] sm:$0x1]   ;;  %v7_v3 = vld [vmem:[#allocation3] sm:$0x1]  }
   0xa   :  { %12 = vrot.lane.b32.xlu0 %v11_v1, %s72_s0  ;;  %24 = vrot.lane.b32.xlu1 %v23_v2, %s73_s8  ;;  %v17_v4 = vld [vmem:[#allocation3 + $0x2] sm:$0x1]   ;;  %9 = vst.msk [vmem:[#allocation2] sm:$0x1] %vm8_vm0, %v7_v3   ;;  %p55_p3 = por %p54_p2, %p53_p1 }
   0xc   :  { %p56_p4 = pnand %p55_p3, %p49_p0 }
   0xe   :  { %18 = vrot.lane.b32.xlu0 %v17_v4, %s74_s9 }
  0x7c   :  { %v13_v5 = vpop.permute.xlu0 %12   ;;  %v25_v6 = vpop.permute.xlu1 %24  }
  0x7d   :  { %15 = vst.msk [vmem:[#allocation2] sm:$0x1] %vm14_vm1, %v13_v5  }
  0x80   :  { %v19_v7 = vpop.permute.xlu0 %18  }
  0x81   :  { %21 = vst.msk [vmem:[#allocation2] sm:$0x1] %vm20_vm2, %v19_v7  }
  0x82   :  { %27 = vst.msk [vmem:[#allocation2] sm:$0x1] %vm26_vm3, %v25_v6  }
  0x89   :  { %v31_v8 = vld [vmem:[#allocation2] sm:$0x1] }
  0x8a   :  { %33 = vst [vmem:[#allocation0] sm:$0x1] %v31_v8 }
  0x8b   :  { %59 = shalt.err (!%p56_p4)
}
  0x8c   :  { %s60_s16 = scalar_lea.hbm %s102_s1, 16 }
  0x8d   :  { %p61_p5 = scmp.ne.s32.totalorder %s102_s1, %s60_s16  ;;  %p64_p6 = scmp.lt.u32.totalorder %s60_s16, %s102_s1 }
  0x8f   :  { %p66_p7 = pnand %p64_p6, %p61_p5 }
  0x91   :  { %69 = shalt.err (!%p66_p7)
}
  0x92   :  { %41 = dma.vmem_to_hbm [thread:$0]  %s39_s11, 16, %s102_s1, [#allocation1]  }
  0x93   :  { %70 = dma.done.wait [#allocation1], 16  }
  0x94   :  { %71 = vsyncadd [#allocation1], 4294967280 }
  0x95   :  { %43 = vsyncpa [#allocation1], 1 }

// kernel: tile.18
= control target key start
LH: loop header
LB: loop body
LE: loop exit
PB: predicated region body
PF: predicated region fallthrough
CT: control target
= control target key end

     0   :  { %s22_s0 = inlined_call_operand.vmem [shape: f32[4], index: 0, kind: input, shape index: {}]   ;;  %s23_s1 = inlined_call_operand.vmem [shape: f32[4,4], index: 1, kind: output, shape index: {}]  }
   0x1   :  { %v4_v0 = vld [vmem:[%s22_s0] ss:$0 sm:$0xff] }
   0x2   :  { %5 = vst [vmem:[%s23_s1] sm:$0xf] %v4_v0 }

// kernel: tile.23
= control target key start
LH: loop header
LB: loop body
LE: loop exit
PB: predicated region body
PF: predicated region fallthrough
CT: control target
= control target key end

     0   :  { %s28_s0 = inlined_call_operand.vmem [shape: f32[4], index: 0, kind: input, shape index: {}]   ;;  %s29_s1 = inlined_call_operand.vmem [shape: f32[16,4], index: 1, kind: output, shape index: {}]  }
   0x1   :  { %v4_v0 = vld [vmem:[%s28_s0] ss:$0 sm:$0xff] }
   0x2   :  { %5 = vst [vmem:[%s29_s1] sm:$0xff] %v4_v0  ;;  %8 = vst [vmem:[%s29_s1 + $0x8] sm:$0xff] %v4_v0 }

// kernel: tile.24
= control target key start
LH: loop header
LB: loop body
LE: loop exit
PB: predicated region body
PF: predicated region fallthrough
CT: control target
= control target key end

     0   :  { %s131_s10 = smov 60   ;;  %s132_s11 = smov 52   ;;  %vm3_vm0 = vcmask 31744   ;;  %vm9_vm1 = vcmask 523744   ;;  %vm15_vm2 = vcmask 490944   ;;  %vm21_vm3 = vcmask 458144   ;;  %s207_s0 = inlined_call_operand.vmem [shape: f32[16,4], index: 0, kind: input, shape index: {}]   ;;  %s208_s1 = inlined_call_operand.vmem [shape: f32[1,64], index: 1, kind: output, shape index: {}]  }
   0x1   :  { %v101_v0 = vld [vmem:[%s207_s0 + $0xf] sm:$0x1]   ;;  %v103_v1 = vld [vmem:[%s207_s0 + $0xd] sm:$0x1]   ;;  %v102_v2 = vld [vmem:[%s207_s0 + $0xe] sm:$0x1]  }
   0x2   :  { %7 = vrot.lane.b32.xlu0 %v101_v0, %s131_s10  ;;  %19 = vrot.lane.b32.xlu1 %v103_v1, %s132_s11  ;;  %v104_v3 = vld [vmem:[%s207_s0 + $0xc] sm:$0x1]   ;;  %s133_s16 = smov 56   ;;  %s134_s17 = smov 48   ;;  %v105_v4 = vld [vmem:[%s207_s0 + $0xb] sm:$0x1]  }
   0x3   :  { %v106_v5 = vld [vmem:[%s207_s0 + $0xa] sm:$0x1]   ;;  %v2_v6 = vld [vmem:[%s207_s0] sm:$0x1]   ;;  %s135_s24 = smov 44   ;;  %s136_s25 = smov 40  }
   0x4   :  { %4 = vst.msk [vmem:[#allocation0] sm:$0x1] %vm3_vm0, %v2_v6   ;;  %v107_v7 = vld [vmem:[%s207_s0 + $0x9] sm:$0x1]   ;;  %v108_v8 = vld [vmem:[%s207_s0 + $0x8] sm:$0x1]  }
   0x5   :  { %s137_s30 = smov 36   ;;  %s138_s2 = smov 32   ;;  %v109_v9 = vld [vmem:[%s207_s0 + $0x7] sm:$0x1]   ;;  %v110_v10 = vld [vmem:[%s207_s0 + $0x6] sm:$0x1]  }
   0x6   :  { %13 = vrot.lane.b32.xlu0 %v102_v2, %s133_s16  ;;  %25 = vrot.lane.b32.xlu1 %v104_v3, %s134_s17  ;;  %s139_s7 = smov 28   ;;  %s140_s8 = smov 24   ;;  %v111_v11 = vld [vmem:[%s207_s0 + $0x5] sm:$0x1]   ;;  %v112_v12 = vld [vmem:[%s207_s0 + $0x4] sm:$0x1]  }
   0x7   :  { %s141_s13 = smov 20   ;;  %s142_s14 = smov 16   ;;  %v113_v13 = vld [vmem:[%s207_s0 + $0x3] sm:$0x1]   ;;  %v114_v14 = vld [vmem:[%s207_s0 + $0x2] sm:$0x1]  }
   0x8   :  { %s143_s19 = smov 12   ;;  %s144_s20 = smov 8   ;;  %v115_v15 = vld [vmem:[%s207_s0 + $0x1] sm:$0x1]   ;;  %vm27_vm4 = vcmask 425344   ;;  %vm33_vm5 = vcmask 392544  }
   0x9   :  { %s145_s0 = smov 4   ;;  %vm39_vm6 = vcmask 359744   ;;  %vm45_vm7 = vcmask 326944   ;;  %vm51_vm8 = vcmask 294144   ;;  %vm57_vm9 = vcmask 261344  }
   0xa   :  { %31 = vrot.lane.b32.xlu0 %v105_v4, %s135_s24  ;;  %37 = vrot.lane.b32.xlu1 %v106_v5, %s136_s25  ;;  %vm63_vm10 = vcmask 228544   ;;  %vm69_vm11 = vcmask 195744   ;;  %vm75_vm12 = vcmask 162944   ;;  %vm81_vm13 = vcmask 130144  }
   0xb   :  { %vm87_vm14 = vcmask 97344   ;;  %vm93_vm15 = vcmask 64544  }
   0xe   :  { %43 = vrot.lane.b32.xlu0 %v107_v7, %s137_s30  ;;  %49 = vrot.lane.b32.xlu1 %v108_v8, %s138_s2 }
  0x12   :  { %55 = vrot.lane.b32.xlu0 %v109_v9, %s139_s7  ;;  %61 = vrot.lane.b32.xlu1 %v110_v10, %s140_s8 }
  0x16   :  { %67 = vrot.lane.b32.xlu0 %v111_v11, %s141_s13  ;;  %73 = vrot.lane.b32.xlu1 %v112_v12, %s142_s14 }
  0x1a   :  { %79 = vrot.lane.b32.xlu0 %v113_v13, %s143_s19  ;;  %85 = vrot.lane.b32.xlu1 %v114_v14, %s144_s20 }
  0x1e   :  { %91 = vrot.lane.b32.xlu0 %v115_v15, %s145_s0 }
  0x74   :  { %v8_v16 = vpop.permute.xlu0 %7   ;;  %v20_v17 = vpop.permute.xlu1 %19  }
  0x75   :  { %10 = vst.msk [vmem:[#allocation0] sm:$0x1] %vm9_vm1, %v8_v16  }
  0x78   :  { %v14_v18 = vpop.permute.xlu0 %13   ;;  %v26_v19 = vpop.permute.xlu1 %25  }
  0x79   :  { %16 = vst.msk [vmem:[#allocation0] sm:$0x1] %vm15_vm2, %v14_v18  }
  0x7a   :  { %22 = vst.msk [vmem:[#allocation0] sm:$0x1] %vm21_vm3, %v20_v17  }
  0x7b   :  { %28 = vst.msk [vmem:[#allocation0] sm:$0x1] %vm27_vm4, %v26_v19  }
  0x7c   :  { %v32_v20 = vpop.permute.xlu0 %31   ;;  %v38_v21 = vpop.permute.xlu1 %37  }
  0x7d   :  { %34 = vst.msk [vmem:[#allocation0] sm:$0x1] %vm33_vm5, %v32_v20  }
  0x7e   :  { %40 = vst.msk [vmem:[#allocation0] sm:$0x1] %vm39_vm6, %v38_v21  }
  0x80   :  { %v44_v22 = vpop.permute.xlu0 %43   ;;  %v50_v23 = vpop.permute.xlu1 %49  }
  0x81   :  { %46 = vst.msk [vmem:[#allocation0] sm:$0x1] %vm45_vm7, %v44_v22  }
  0x82   :  { %52 = vst.msk [vmem:[#allocation0] sm:$0x1] %vm51_vm8, %v50_v23  }
  0x84   :  { %v56_v24 = vpop.permute.xlu0 %55   ;;  %v62_v25 = vpop.permute.xlu1 %61  }
  0x85   :  { %58 = vst.msk [vmem:[#allocation0] sm:$0x1] %vm57_vm9, %v56_v24  }
  0x86   :  { %64 = vst.msk [vmem:[#allocation0] sm:$0x1] %vm63_vm10, %v62_v25  }
  0x88   :  { %v68_v26 = vpop.permute.xlu0 %67   ;;  %v74_v27 = vpop.permute.xlu1 %73  }
  0x89   :  { %70 = vst.msk [vmem:[#allocation0] sm:$0x1] %vm69_vm11, %v68_v26  }
  0x8a   :  { %76 = vst.msk [vmem:[#allocation0] sm:$0x1] %vm75_vm12, %v74_v27  }
  0x8c   :  { %v80_v28 = vpop.permute.xlu0 %79   ;;  %v86_v29 = vpop.permute.xlu1 %85  }
  0x8d   :  { %82 = vst.msk [vmem:[#allocation0] sm:$0x1] %vm81_vm13, %v80_v28  }
  0x8e   :  { %88 = vst.msk [vmem:[#allocation0] sm:$0x1] %vm87_vm14, %v86_v29  }
  0x90   :  { %v92_v30 = vpop.permute.xlu0 %91  }
  0x91   :  { %94 = vst.msk [vmem:[#allocation0] sm:$0x1] %vm93_vm15, %v92_v30  }
  0x98   :  { %v98_v31 = vld [vmem:[#allocation0] sm:$0x1] }
  0x99   :  { %100 = vst [vmem:[%s208_s1] sm:$0x1] %v98_v31 }

// kernel: up_block_forward.4
= control target key start
LH: loop header
LB: loop body
LE: loop exit
PB: predicated region body
PF: predicated region fallthrough
CT: control target
= control target key end

     0   :  { %8 = vsyncpa [#allocation3], 0  ;;  %s1143_s0 = inlined_call_operand.hbm [shape: f32[2,8,8,8], index: 0, kind: input, shape index: {}]   ;;  %s1144_s1 = inlined_call_operand.hbm [shape: f32[8,16], index: 1, kind: input, shape index: {}]   ;;  %s1145_s2 = inlined_call_operand.hbm [shape: f32[1,16], index: 2, kind: input, shape index: {}]   ;;  %s1146_s3 = inlined_call_operand.hbm [shape: f32[2,8,2,8,8], index: 3, kind: output, shape index: {}]  }
   0x1   :  { %10 = vsyncpa [#allocation3 + $0x1], 0 }
   0x2   :  { %11 = vsyncpa [#allocation6], 0 }
   0x3   :  { %12 = vsyncpa [#allocation4], 0 }
   0x4   :  { %14 = vsyncpa [#allocation4 + $0x1], 0  ;;  %s854_s12 = smov 0   ;;  %s856_s13 = smov 0  }
   0x5   :  { %s858_s14 = smov 0   ;;  %s860_s15 = smov 0  }
   0x6   :  { %s862_s16 = smov 0   ;;  %s864_s17 = smov 0  }
   0x7 LB: > { %s510_s18 = sadd.s32 4294967295, %s823_s17   ;;  %s511_s19 = sadd.s32 4294967294, %s823_s17   ;;  %s823_s17 = sphi %s864_s17, %s20_s17   ;;  %s819_s16 = sphi %s862_s16, %s1172_s16   ;;  %s815_s15 = sphi %s860_s15, %s1171_s15   ;;  %s811_s14 = sphi %s858_s14, %s1170_s14   ;;  %s807_s13 = sphi %s856_s13, %s1169_s13   ;;  %s803_s12 = sphi %s854_s12, %s1168_s12  }
   0x8   : > { %s41_s20 = sadd.s32 1, %s811_s14  ;;  %p48_p0 = scmp.ne.s32.totalorder %s811_s14, %s807_s13 }
   0x9   : > { %p49_p1 = scmp.eq.s32.totalorder %s823_s17, 0  ;;  %p54_p2 = scmp.ne.s32.totalorder %s807_s13, %s803_s12 }
   0xa   : > { %p892_p3 = scmp.eq.s32.totalorder %s510_s18, 0  ;;  %p122_p4 = scmp.eq.s32.totalorder %s510_s18, 1 }
   0xb   : > { %p896_p5 = por %p49_p1, %p48_p0  ;;  %p128_p6 = scmp.eq.s32.totalorder %s511_s19, 1 }
   0xc   : > { %s1153_s21 = scalar_select %p892_p3, 1, 0 }
   0xd   : > { %p902_p7 = por %p892_p3, %p54_p2  ;;  %p906_p8 = por %p122_p4, %p48_p0 }
   0xe   : > { %p910_p9 = por %p128_p6, %p54_p2  ;;  %p512_p10 = scmp.ge.s32.totalorder %s823_s17, 1 }
   0xf   : > { %s1155_s23 = scalar_select %p902_p7, 1, 0 }
  0x10   : > { %s1156_s24 = scalar_select %p906_p8, 1, 0 }
  0x11   : > { %s1157_s25 = scalar_select %p910_p9, 1, 0 }
  0x12   : > { %p135_p11 = scmp.lt.s32.totalorder %s823_s17, 3  ;;  %s825_s27 = smov [#allocation5]  }
  0x13   : > { %s148_s28 = sshll.u32 %s825_s27, 4  ;;  %p592_p1 = scmp.lt.s32.totalorder %s823_s17, 2  ;;  %s149_s28 = int_to_ptr.vmem [resolvable:$true] %s148_s28 }
  0x14   : > { %p917_p13 = pnand %p512_p10, %p135_p11  ;;  %s826_s30 = smov [#allocation7]  }
  0x15   : > { %p926_p4 = pnand %p592_p1, %p896_p5  ;;  %s159_s4 = sshll.u32 %s826_s30, 4  ;;  %s936_s4 = int_to_ptr.vmem [resolvable:$true] %s159_s4 }
  0x16   : > { %s1158_s26 = scalar_select %p917_p13, 1, 0 }
  0x17   : > { %p575_p0 = pneg %p917_p13  ;;  %s651_s8 = scalar_lea.hbm %s1144_s1, 128 }
  0x18   : > { %s1159_s29 = scalar_select %p926_p4, 1, 0 }
  0x19   : > { %p932_p2 = pnand %p575_p0, %p892_p3  ;;  %p652_p5 = scmp.ne.s32.totalorder %s1144_s1, %s651_s8 }
  0x1a   : > { %p658_p1 = scmp.lt.u32.totalorder %s651_s8, %s1144_s1 }
  0x1b   : > { %p653_p6 = pneg %p932_p2 }
  0x1d   : > { %p654_p10 = pnand %p653_p6, %p652_p5 }
  0x1f   : > { %p655_p11 = pneg %p654_p10 }
  0x21   : > { %p660_p0 = pnand %p658_p1, %p655_p11 }
  0x23   : > { %663 = shalt.err (!%p660_p0)
}
  0x24   : > { %s664_s19 = scalar_lea.vmem %s149_s28, 128  ;;  %p672_p3 = scmp.lt.s32.totalorder %s149_s28, %s149_s28 }
  0x25   : > { %p665_p12 = scmp.ne.s32.totalorder %s149_s28, %s664_s19  ;;  %p673_p7 = scmp.lt.s32.totalorder %s664_s19, %s664_s19 }
  0x27   : > { %p667_p9 = pnand %p665_p12, %p653_p6  ;;  %p674_p13 = por %p673_p7, %p672_p3 }
  0x29   : > { %p668_p8 = pneg %p667_p9 }
  0x2b   : > { %p675_p4 = pnand %p674_p13, %p668_p8 }
  0x2d   : > { %678 = shalt.err (!%p675_p4)
}
  0x2e   : > { %578 = dma.hbm_to_vmem [thread:$0]  (!%p932_p2), %s1144_s1, 128, %s149_s28, [#allocation6]  }
  0x2f   : > { %s679_s7 = scalar_lea.hbm %s1145_s2, 16 }
  0x30   : > { %p680_p9 = scmp.ne.s32.totalorder %s1145_s2, %s679_s7  ;;  %p686_p8 = scmp.lt.u32.totalorder %s679_s7, %s1145_s2 }
  0x32   : > { %p682_p3 = pnand %p680_p9, %p653_p6 }
  0x34   : > { %p683_p7 = pneg %p682_p3 }
  0x36   : > { %p688_p12 = pnand %p686_p8, %p683_p7 }
  0x38   : > { %691 = shalt.err (!%p688_p12)
}
  0x39   : > { %s692_s28 = scalar_lea.vmem %s936_s4, 16  ;;  %s699_s18 = scalar_lea.vmem %s936_s4, 32 }
  0x3a   : > { %p693_p13 = scmp.ne.s32.totalorder %s936_s4, %s692_s28  ;;  %p700_p10 = scmp.lt.s32.totalorder %s936_s4, %s936_s4 }
  0x3b   : > { %p701_p11 = scmp.lt.s32.totalorder %s699_s18, %s692_s28 }
  0x3c   : > { %p695_p4 = pnand %p693_p13, %p653_p6 }
  0x3d   : > { %p702_p1 = por %p701_p11, %p700_p10 }
  0x3e   : > { %p696_p5 = pneg %p695_p4 }
  0x40   : > { %p703_p0 = pnand %p702_p1, %p696_p5 }
  0x42   : > { %706 = shalt.err (!%p703_p0)
}
  0x43   : > { %581 = dma.hbm_to_vmem [thread:$0]  (!%p932_p2), %s1145_s2, 16, %s936_s4, [#allocation6]  }
  0x44   : > { %s32_s27 = sadd.s32 1, %s819_s16  ;;  %s170_s30 = sand.u32 1, %s811_s14  }
  0x45   : > { %p34_p6 = scmp.ge.s32.totalorder %s32_s27, 2  ;;  %s516_s6 = sshll.u32 %s170_s30, 6 }
  0x46   : > { %s542_s7 = sshll.u32 %s819_s16, 10  ;;  %s174_s4 = scalar_lea.vmem [#allocation2], %s516_s6 }
  0x47   : > { %s1174_s27 = smov (%p34_p6, %s32_s27), 0  ;;  %s994_s9 = scalar_lea.hbm %s1143_s0, %s542_s7 }
  0x48   : > { %s36_s10 = ssub.s32 %s819_s16, %s1174_s27  ;;  %s183_s11 = sshll.u32 %s174_s4, 4  ;;  %s998_s11 = int_to_ptr.vmem [resolvable:$true] %s183_s11 }
  0x49   : > { %p39_p2 = scmp.eq.s32.totalorder %s36_s10, 0  ;;  %s1005_s18 = scalar_lea.sflag [#allocation3], %s170_s30 }
  0x4a   : > { %s707_s19 = scalar_lea.hbm %s994_s9, 1024  ;;  %p1161_p3 = scmp.ne.s32.totalorder %s1159_s29, 0 }
  0x4b   : > { %s1003_s28 = scalar_select %p39_p2, %s811_s14, %s41_s20  }
  0x4c   : > { %p708_p9 = scmp.ne.s32.totalorder %s994_s9, %s707_s19  ;;  %p709_p7 = pneg %p1161_p3 }
  0x4d   : > { %s712_s6 = scalar_lea.hbm %s1143_s0, 2048  ;;  %p713_p13 = scmp.lt.u32.totalorder %s994_s9, %s1143_s0 }
  0x4e   : > { %p710_p8 = pnand %p709_p7, %p708_p9  ;;  %p714_p4 = scmp.lt.u32.totalorder %s712_s6, %s707_s19 }
  0x4f   : > { %p716_p10 = scmp.lt.u32.totalorder %s707_s19, %s994_s9 }
  0x50   : > { %p711_p12 = pneg %p710_p8  ;;  %p715_p5 = por %p714_p4, %p713_p13 }
  0x52   : > { %p717_p11 = por %p716_p10, %p715_p5 }
  0x54   : > { %p718_p1 = pnand %p717_p11, %p711_p12 }
  0x56   : > { %721 = shalt.err (!%p718_p1)
}
  0x57   : > { %s722_s20 = scalar_lea.vmem %s998_s11, 1024  ;;  %s827_s30 = smov [#allocation2]  }
  0x58   : > { %p723_p0 = scmp.ne.s32.totalorder %s998_s11, %s722_s20  ;;  %s727_s10 = sshll.u32 %s827_s30, 4  ;;  %s728_s10 = int_to_ptr.vmem [resolvable:$false] %s727_s10 }
  0x59   : > { %s729_s4 = scalar_lea.vmem %s728_s10, 2048  ;;  %p730_p9 = scmp.lt.s32.totalorder %s998_s11, %s728_s10 }
  0x5a   : > { %p725_p6 = pnand %p723_p0, %p709_p7  ;;  %p731_p8 = scmp.lt.s32.totalorder %s729_s4, %s722_s20 }
  0x5c   : > { %p726_p2 = pneg %p725_p6  ;;  %p732_p13 = por %p731_p8, %p730_p9 }
  0x5e   : > { %p733_p4 = pnand %p732_p13, %p726_p2 }
  0x60   : > { %736 = shalt.err (!%p733_p4)
}
  0x61   : > { %s828_s19 = smov 128   ;;  %s829_s22 = smov 8  }
  0x62   : > { %585 = dma.hbm_to_vmem [thread:$0]  (!%p1161_p3), %s994_s9, 1024, %s998_s11, %s1005_s18, %s828_s19, %s828_s19, %s829_s22  }
  0x63   : > { %p1162_p7 = scmp.ne.s32.totalorder %s1158_s26, 0 }
  0x64   : > { %s1036_s7 = sand.u32 (!%p1162_p7), 1, %s807_s13   ;;  %p1163_p12 = scmp.ne.s32.totalorder (!%p1162_p7), %s1155_s23, 0 }
  0x65   : > { %195 = sbr.rel (%p1162_p7) target bundleno = 476 (0x1dc), region = 32  ;;  %s520_s6 = sshll.u32 (!%p1162_p7), %s1036_s7, 6 }
  0x66   : > { %s198_s5 = scalar_lea.sflag (!%p1162_p7), [#allocation3], %s1036_s7  ;;  %s201_s8 = scalar_lea.vmem (!%p1162_p7), [#allocation2], %s520_s6 }
  0x6c   : > { %790 = dma.done.wait (%p1163_p12), %s198_s5, 1024  }
  0x6d   : > { %792 = vsyncadd (%p1163_p12), %s198_s5, 4294966272  ;;  %p1164_p5 = scmp.ne.s32.totalorder %s1153_s21, 0 }
  0x6f   : > { %794 = dma.done.wait (%p1164_p5), [#allocation6], 144  }
  0x70   : > { %796 = vsyncadd (%p1164_p5), [#allocation6], 4294967152  ;;  %v247_v0 = vld [vmem:[#allocation5] sm:$0xff]  ;;  %vm269_vm0 = vcmask 1043456   ;;  %v236_v2 = vld [vmem:[%s201_s8 + $0x8] sm:$0xff]  ;;  %vm256_vm1 = vcmask 64512  }
  0x71   : > { %v235_v1 = vld [vmem:[%s201_s8] sm:$0xff]  ;;  %v248_v3 = vpack.c.bf16 %v247_v0, %v247_v0  ;;  %v237_v5 = vld [vmem:[%s201_s8 + $0x10] sm:$0xff]  ;;  %v238_v6 = vld [vmem:[%s201_s8 + $0x18] sm:$0xff]  ;;  %s523_s21 = sshll.u32 %s1036_s7, 7  ;;  %s830_s26 = smov 120  }
  0x72   : > { %v243_v4 = vpack.c.bf16 %v236_v2, %v235_v1  ;;  %v239_v7 = vld [vmem:[%s201_s8 + $0x20] sm:$0xff]  ;;  %v240_v8 = vld [vmem:[%s201_s8 + $0x28] sm:$0xff]  ;;  %v241_v9 = vld [vmem:[%s201_s8 + $0x30] sm:$0xff]  ;;  %v244_v12 = vpack.c.bf16 %v238_v6, %v237_v5  ;;  %s1053_s23 = scalar_lea.vmem [#allocation8], %s523_s21  ;;  %s543_s29 = sshll.u32 %s815_s15, 11 }
  0x73   : > { %v242_v10 = vld [vmem:[%s201_s8 + $0x38] sm:$0xff]  ;;  %561 = vmatprep.subr.msk.bf16.mxu0 %vm269_vm0, %v248_v3  ;;  %562 = vmatprep.subr.msk.bf16.mxu1 %vm269_vm0, %v248_v3  ;;  %v271_v11 = vsel %vm269_vm0, %v248_v3, 0  ;;  %v245_v13 = vpack.c.bf16 %v240_v8, %v239_v7  ;;  %v524_v15 = vld [vmem:[#allocation7] ss:$0 sm:$0xff]  ;;  %s404_s9 = sshll.u32 %s1053_s23, 4  ;;  %s1088_s20 = scalar_lea.hbm %s1146_s3, %s543_s29  ;;  %s1090_s9 = int_to_ptr.vmem [resolvable:$true] %s404_s9 }
  0x74   : > { %v246_v14 = vpack.c.bf16 %v242_v10, %v241_v9  ;;  %550 = vmatpush3.bf16.msra.mxu0 %v271_v11  ;;  %560 = vmatpush3.bf16.msra.mxu1 %v271_v11  ;;  %s388_s15 = scalar_lea.sflag [#allocation4], %s1036_s7  ;;  %s737_s30 = scalar_lea.vmem %s1090_s9, 2048 }
  0x75   : > { %551 = vmatprep.mubr.msk.bf16.mxu0 %vm256_vm1, %v243_v4  ;;  %555 = vmatprep.mubr.msk.bf16.mxu1 %vm256_vm1, %v245_v13  ;;  %p738_p3 = scmp.ne.s32.totalorder %s1090_s9, %s737_s30  ;;  %p1165_p10 = scmp.ne.s32.totalorder %s1156_s24, 0 }
  0x76   : > { %s831_s10 = smov [#allocation8]  }
  0x77   : > { %552 = vmatmul.mubr.msk.bf16.vlgmr.msra.gmra.mrb[0].mxu0 %vm256_vm1, %v244_v12  ;;  %556 = vmatmul.mubr.msk.bf16.vlgmr.msra.gmra.mrb[0].mxu1 %vm256_vm1, %v246_v14  ;;  %p739_p11 = pnand %p738_p3, %p1165_p10  ;;  %s741_s4 = sshll.u32 %s831_s10, 4  ;;  %s742_s4 = int_to_ptr.vmem [resolvable:$false] %s741_s4 }
  0x78   : > { %s743_s19 = scalar_lea.vmem %s742_s4, 4096  ;;  %p744_p0 = scmp.lt.s32.totalorder %s1090_s9, %s742_s4 }
  0x79   : > { %p740_p1 = pneg %p739_p11  ;;  %p745_p6 = scmp.lt.s32.totalorder %s743_s19, %s737_s30 }
  0x7b   : > { %p746_p2 = por %p745_p6, %p744_p0 }
  0x7d   : > { %p747_p9 = pnand %p746_p2, %p740_p1 }
 0x14a   : > { %v553_v16 = vpop.f32.mrb[0].mxu0  ;;  %v557_v17 = vpop.f32.mrb[0].mxu1 }
 0x14b   : > { %v316_v18 = vadd.f32 %v553_v16, %v524_v15  ;;  %v307_v19 = vpop.f32.mrb[1].mxu0  ;;  %v332_v20 = vadd.f32 %v557_v17, %v524_v15  ;;  %v323_v21 = vpop.f32.mrb[1].mxu1 }
 0x14c   : > { %v308_v22 = vadd.f32 %v524_v15, %v307_v19  ;;  %v554_v23 = vpop.f32.mrb[2].mxu0  ;;  %v324_v24 = vadd.f32 %v524_v15, %v323_v21  ;;  %v558_v25 = vpop.f32.mrb[2].mxu1 }
 0x14d   : > { %340 = vst.msk [vmem:[%s1053_s23 + $0x20] sm:$0xff] %vm256_vm1, %v316_v18  ;;  %344 = vst.msk [vmem:[%s1053_s23 + $0x60] sm:$0xff] %vm256_vm1, %v332_v20  ;;  %v319_v26 = vadd.f32 %v554_v23, %v524_v15  ;;  %v335_v27 = vadd.f32 %v558_v25, %v524_v15  ;;  %358 = vrot.lane.b32.xlu1 %v316_v18, %s830_s26  ;;  %v310_v28 = vpop.f32.mrb[3].mxu0  ;;  %v326_v29 = vpop.f32.mrb[3].mxu1 }
 0x14e   : > { %338 = vst.msk [vmem:[%s1053_s23] sm:$0xff] %vm256_vm1, %v308_v22  ;;  %342 = vst.msk [vmem:[%s1053_s23 + $0x40] sm:$0xff] %vm256_vm1, %v324_v24  ;;  %v311_v30 = vadd.f32 %v524_v15, %v310_v28  ;;  %v327_v31 = vadd.f32 %v524_v15, %v326_v29  ;;  %354 = vrot.lane.b32.xlu0 %v308_v22, %s830_s26 }
 0x14f   : > { %341 = vst.msk [vmem:[%s1053_s23 + $0x30] sm:$0xff] %vm256_vm1, %v319_v26  ;;  %345 = vst.msk [vmem:[%s1053_s23 + $0x70] sm:$0xff] %vm256_vm1, %v335_v27 }
 0x150   : > { %339 = vst.msk [vmem:[%s1053_s23 + $0x10] sm:$0xff] %vm256_vm1, %v311_v30  ;;  %343 = vst.msk [vmem:[%s1053_s23 + $0x50] sm:$0xff] %vm256_vm1, %v327_v31 }
 0x151   : > { %360 = vrot.lane.b32.xlu1 %v319_v26, %s830_s26 }
 0x152   : > { %362 = vrot.lane.b32.xlu0 %v324_v24, %s830_s26 }
 0x155   : > { %364 = vrot.lane.b32.xlu1 %v327_v31, %s830_s26 }
 0x156   : > { %356 = vrot.lane.b32.xlu0 %v311_v30, %s830_s26 }
 0x159   : > { %368 = vrot.lane.b32.xlu1 %v335_v27, %s830_s26 }
 0x15a   : > { %366 = vrot.lane.b32.xlu0 %v332_v20, %s830_s26 }
 0x1bf   : > { %v359_v32 = vpop.permute.xlu1 %358 }
 0x1c0   : > { %531 = vst.msk [vmem:[%s1053_s23 + $0x28] sm:$0xff] %vm256_vm1, %v359_v32  ;;  %v355_v33 = vpop.permute.xlu0 %354 }
 0x1c1   : > { %529 = vst.msk [vmem:[%s1053_s23 + $0x8] sm:$0xff] %vm256_vm1, %v355_v33 }
 0x1c3   : > { %v361_v34 = vpop.permute.xlu1 %360 }
 0x1c4   : > { %532 = vst.msk [vmem:[%s1053_s23 + $0x38] sm:$0xff] %vm256_vm1, %v361_v34  ;;  %v363_v35 = vpop.permute.xlu0 %362 }
 0x1c5   : > { %533 = vst.msk [vmem:[%s1053_s23 + $0x48] sm:$0xff] %vm256_vm1, %v363_v35 }
 0x1c7   : > { %v365_v36 = vpop.permute.xlu1 %364 }
 0x1c8   : > { %534 = vst.msk [vmem:[%s1053_s23 + $0x58] sm:$0xff] %vm256_vm1, %v365_v36  ;;  %v357_v37 = vpop.permute.xlu0 %356 }
 0x1c9   : > { %530 = vst.msk [vmem:[%s1053_s23 + $0x18] sm:$0xff] %vm256_vm1, %v357_v37 }
 0x1cb   : > { %v369_v38 = vpop.permute.xlu1 %368 }
 0x1cc   : > { %536 = vst.msk [vmem:[%s1053_s23 + $0x78] sm:$0xff] %vm256_vm1, %v369_v38  ;;  %v367_v39 = vpop.permute.xlu0 %366 }
 0x1cd   : > { %535 = vst.msk [vmem:[%s1053_s23 + $0x68] sm:$0xff] %vm256_vm1, %v367_v39 }
 0x1ce   : > { %750 = shalt.err (!%p747_p9)
}
 0x1cf   : > { %s751_s22 = scalar_lea.hbm %s1088_s20, 2048  ;;  %s755_s8 = scalar_lea.hbm %s1146_s3, 4096 }
 0x1d0   : > { %p752_p8 = scmp.ne.s32.totalorder %s1088_s20, %s751_s22  ;;  %p756_p7 = scmp.lt.u32.totalorder %s1088_s20, %s1146_s3 }
 0x1d1   : > { %p757_p12 = scmp.lt.u32.totalorder %s755_s8, %s751_s22  ;;  %p759_p3 = scmp.lt.u32.totalorder %s751_s22, %s1088_s20 }
 0x1d2   : > { %p753_p13 = pnand %p752_p8, %p1165_p10 }
 0x1d3   : > { %p758_p5 = por %p757_p12, %p756_p7 }
 0x1d4   : > { %p754_p4 = pneg %p753_p13 }
 0x1d5   : > { %p760_p11 = por %p759_p3, %p758_p5 }
 0x1d7   : > { %p761_p1 = pnand %p760_p11, %p754_p4 }
 0x1d9   : > { %764 = shalt.err (!%p761_p1)
}
 0x1da   : > { %s832_s26 = smov 128   ;;  %s833_s29 = smov 8  }
 0x1db   : > { %573 = dma.vmem_to_hbm [thread:$0]  (%p1165_p10), %s1090_s9, 2048, %s1088_s20, %s388_s15, %s832_s26, %s832_s26, %s833_s29  }
 0x1dc PF: > { %s419_s11 = sand.u32 1, %s803_s12   ;;  %p1166_p0 = scmp.ne.s32.totalorder %s1157_s25, 0 }
 0x1dd   : > { %p1167_p6 = scmp.ge.s32.totalorder %s823_s17, 2  ;;  %s420_s18 = scalar_lea.sflag [#allocation4], %s419_s11 }
 0x1df   : > { %p587_p2 = pnand %p1167_p6, %p1166_p0 }
 0x1e1   : > { %798 = dma.done.wait (!%p587_p2), %s420_s18, 2048  }
 0x1e2   : > { %800 = vsyncadd (!%p587_p2), %s420_s18, 4294965248  ;;  %s20_s17 = sadd.s32 1, %s823_s17   ;;  %s1168_s12 = smov %s807_s13 }
 0x1e3   : > { %p17_p9 = scmp.ge.s32.totalorder %s20_s17, 4   ;;  %s1169_s13 = smov %s811_s14 }
 0x1e4   : > { %s1170_s14 = smov %s1003_s28  ;;  %s1171_s15 = smov %s819_s16 }
 0x1e5   : > { %s1172_s16 = smov %s1174_s27  ;;  %19 = sbr.rel (!%p17_p9) target bundleno = 7 (0x7), region = 86 }
 0x1ec   :  { %425 = vsyncpa [#allocation3], 1 }
 0x1ed   :  { %427 = vsyncpa [#allocation3 + $0x1], 1 }
 0x1ee   :  { %428 = vsyncpa [#allocation6], 1 }
 0x1ef   :  { %429 = vsyncpa [#allocation4], 1 }
 0x1f0   :  { %431 = vsyncpa [#allocation4 + $0x1], 1 }

// kernel: up_block_forward.7
= control target key start
LH: loop header
LB: loop body
LE: loop exit
PB: predicated region body
PF: predicated region fallthrough
CT: control target
= control target key end

     0   :  { %s304_s12 = smov 0   ;;  %s321_s0 = inlined_call_operand.vmem [shape: f32[32,64], index: 0, kind: input, shape index: {}]   ;;  %s322_s1 = inlined_call_operand.vmem [shape: f32[1,64], index: 1, kind: input, shape index: {}]   ;;  %s323_s2 = inlined_call_operand.vmem [shape: f32[1,64], index: 2, kind: input, shape index: {}]   ;;  %s324_s3 = inlined_call_operand.vmem [shape: f32[32,64], index: 3, kind: output, shape index: {}]  }
   0x1 LB: > { %s255_s13 = sadd.s32 4294967295, %s282_s12   ;;  %p259_p0 = scmp.ge.s32.totalorder %s282_s12, 1  ;;  %s282_s12 = sphi %s304_s12, %s13_s12  }
   0x2   : > { %p138_p1 = scmp.lt.s32.totalorder %s282_s12, 3 }
   0x4   : > { %p139_p2 = pnand %p259_p0, %p138_p1 }
   0x5   : > { %s260_s14 = sshll.u32 (!%p139_p2), %s255_s13, 1  ;;  %v264_v0 = vld [vmem:[%s322_s1] ss:$0 sm:$0xff] (!%p139_p2)  ;;  %vm196_vm0 = vcmask (!%p139_p2), 523264  }
   0x6   : > { %142 = sbr.rel (%p139_p2) target bundleno = 24 (0x18), region = 32  ;;  %p163_p3 = scmp.lt.s32.totalorder (!%p139_p2), %s260_s14, 3  ;;  %v265_v3 = vld [vmem:[%s323_s2] ss:$0 sm:$0xff] (!%p139_p2) }
   0xd   : > { %s326_s14 = smov (!%p163_p3, %s260_s14), 3 }
   0xe   : > { %s261_s15 = sshll.u32 %s326_s14, 3 }
   0xf   : > { %s166_s20 = scalar_lea.vmem %s321_s0, %s261_s15  ;;  %s172_s25 = scalar_lea.vmem %s324_s3, %s261_s15 }
  0x10   : > { %v174_v1 = vld [vmem:[%s166_s20] sm:$0xff]  ;;  %v175_v2 = vld [vmem:[%s166_s20 + $0x8] sm:$0xff] }
  0x11   : > { %v183_v4 = vmul.f32 %v264_v0, %v174_v1  ;;  %v184_v5 = vmul.f32 %v264_v0, %v175_v2 }
  0x13   : > { %v192_v6 = vadd.f32 %v265_v3, %v183_v4  ;;  %v193_v7 = vadd.f32 %v265_v3, %v184_v5 }
  0x15   : > { %v194_v8 = vmax.f32 %v192_v6, 0.0  ;;  %v195_v9 = vmax.f32 %v193_v7, 0.0 }
  0x17   : > { %197 = vst.msk [vmem:[%s172_s25] sm:$0xff] %vm196_vm0, %v194_v8  ;;  %198 = vst.msk [vmem:[%s172_s25 + $0x8] sm:$0xff] %vm196_vm0, %v195_v9 }
  0x18 PF: > { %s13_s12 = sadd.s32 1, %s282_s12  }
  0x19   : > { %p10_p4 = scmp.ge.s32.totalorder %s13_s12, 4  }
  0x1b   :  { %12 = sbr.rel (!%p10_p4) target bundleno = 1 (0x1), region = 62 }

// kernel: up_block_forward.6
= control target key start
LH: loop header
LB: loop body
LE: loop exit
PB: predicated region body
PF: predicated region fallthrough
CT: control target
= control target key end

     0   :  { %s4905_s0 = inlined_call_operand.hbm [shape: f32[2,16,16,4], index: 0, kind: input, shape index: {}, may-alias: {0,1,2}]   ;;  %s4906_s1 = inlined_call_operand.hbm [shape: f32[2,16,16,4], index: 1, kind: input, shape index: {}, may-alias: {0,1,2}]   ;;  %s4907_s2 = inlined_call_operand.hbm [shape: f32[2,16,16,4], index: 2, kind: input, shape index: {}, may-alias: {0,1,2}]   ;;  %s4908_s3 = inlined_call_operand.hbm [shape: f32[3,12,4], index: 3, kind: input, shape index: {}]   ;;  %s4909_s4 = inlined_call_operand.hbm [shape: f32[1,4], index: 4, kind: input, shape index: {}]   ;;  %s4910_s5 = inlined_call_operand.hbm [shape: f32[1,4], index: 5, kind: input, shape index: {}]   ;;  %s4911_s6 = inlined_call_operand.hbm [shape: f32[1,4], index: 6, kind: input, shape index: {}]   ;;  %s4912_s7 = inlined_call_operand.hbm [shape: f32[2,16,16,4], index: 7, kind: output, shape index: {0}]   ;;  %s4913_s8 = inlined_call_operand.hbm [shape: f32[2,1,1,4], index: 8, kind: output, shape index: {1}]   ;;  %s4914_s9 = inlined_call_operand.hbm [shape: f32[2,1,1,4], index: 9, kind: output, shape index: {2}]  }
   0x1   :  { %4942 = sst [smem:[#allocation32_spill]] %s4906_s1 }
   0x2   :  { %4943 = sst [smem:[#allocation33_spill]] %s4908_s3 }
   0x3   :  { %4944 = sst [smem:[#allocation34_spill]] %s4910_s5 }
   0x4   :  { %4945 = sst [smem:[#allocation35_spill]] %s4912_s7 }
   0x5   :  { %4946 = sst [smem:[#allocation36_spill]] %s4913_s8 }
   0x6   :  { %4947 = sst [smem:[#allocation37_spill]] %s4914_s9 }
   0x7   :  { %15 = vsyncpa [#allocation3], 0 }
   0x8   :  { %17 = vsyncpa [#allocation3 + $0x1], 0 }
   0x9   :  { %18 = vsyncpa [#allocation6], 0 }
   0xa   :  { %20 = vsyncpa [#allocation6 + $0x1], 0 }
   0xb   :  { %21 = vsyncpa [#allocation9], 0 }
   0xc   :  { %22 = vsyncpa [#allocation12], 0 }
   0xd   :  { %23 = vsyncpa [#allocation4], 0 }
   0xe   :  { %25 = vsyncpa [#allocation4 + $0x1], 0 }
   0xf   :  { %26 = vsyncpa [#allocation16], 0 }
  0x10   :  { %28 = vsyncpa [#allocation16 + $0x1], 0  ;;  %s3599_s30 = smov 0   ;;  %s3601_s10 = smov 0  }
  0x11   :  { %s3603_s11 = smov 0   ;;  %s3605_s12 = smov 0  }
  0x12   :  { %s3607_s13 = smov 0   ;;  %s3609_s14 = smov 0  }
  0x13 LB: > { %4948 = sst [smem:[#allocation24_spill]] %s3512_s30  ;;  %s3630_s15 = sadd.s32 4294967295, %s3532_s14   ;;  %s3532_s14 = sphi %s3609_s14, %s34_s14   ;;  %s3528_s13 = sphi %s3607_s13, %s4994_s13   ;;  %s3524_s12 = sphi %s3605_s12, %s4993_s12   ;;  %s3520_s11 = sphi %s3603_s11, %s4992_s11   ;;  %s3516_s10 = sphi %s3601_s10, %s4996_s10   ;;  %s3512_s30 = sphi %s3599_s30, %s4995_s30  }
  0x14   : > { %4949 = sst [smem:[#allocation25_spill]] %s3520_s11  ;;  %s4915_s16 = sadd.s32 4294967294, %s3532_s14  }
  0x15   : > { %4950 = sst [smem:[#allocation26_spill]] %s3528_s13  ;;  %p68_p0 = scmp.ne.s32.totalorder %s3516_s10, %s3512_s30 }
  0x16   : > { %4951 = sst [smem:[#allocation27_spill]] %s3532_s14  ;;  %p4916_p1 = scmp.eq.s32.totalorder %s3630_s15, 0 }
  0x17   : > { %p256_p3 = scmp.eq.s32.totalorder %s4915_s16, 1  ;;  %p2557_p5 = scmp.ge.s32.totalorder %s3532_s14, 1 }
  0x18   : > { %p3641_p4 = por %p4916_p1, %p68_p0  ;;  %p319_p7 = scmp.lt.s32.totalorder %s3532_s14, 3 }
  0x19   : > { %p3646_p6 = por %p256_p3, %p68_p0  ;;  %s3534_s20 = smov [#allocation8]  }
  0x1a   : > { %s4952_s17 = scalar_select %p3641_p4, 1, 0 }
  0x1b   : > { %s4953_s18 = scalar_select %p3646_p6, 1, 0 }
  0x1c   : > { %p3651_p8 = pnand %p2557_p5, %p319_p7  ;;  %s331_s21 = sshll.u32 %s3534_s20, 4  ;;  %s3655_s21 = int_to_ptr.vmem [resolvable:$true] %s331_s21 }
  0x1d   : > { %4954 = sst [smem:[#allocation28_spill]] %s4953_s18  ;;  %s3535_s23 = smov [#allocation11]  }
  0x1e   : > { %s4955_s19 = scalar_select %p3651_p8, 1, 0 }
  0x1f   : > { %p2896_p9 = pneg %p3651_p8  ;;  %s356_s24 = sshll.u32 %s3535_s23, 4  ;;  %s3666_s24 = int_to_ptr.vmem [resolvable:$true] %s356_s24 }
  0x20   : > { %s4957_s3 = sld [smem:[#allocation33_spill]] }
  0x21   : > { %p3662_p11 = pnand %p2896_p9, %p4916_p1 }
  0x23   : > { %s4956_s22 = scalar_select %p3662_p11, 1, 0 }
  0x24   : > { %p3676_p13 = pneg %p3662_p11 }
  0x26   : > { %s3176_s27 = scalar_lea.hbm %s4957_s3, 768 }
  0x27   : > { %p3177_p12 = scmp.ne.s32.totalorder %s4957_s3, %s3176_s27  ;;  %p3183_p5 = scmp.lt.u32.totalorder %s3176_s27, %s4957_s3 }
  0x28   : > { %s4958_s20 = scalar_select %p3676_p13, 1, 0 }
  0x29   : > { %p3179_p0 = pnand %p3676_p13, %p3177_p12 }
  0x2b   : > { %p3180_p3 = pneg %p3179_p0 }
  0x2d   : > { %p3185_p7 = pnand %p3183_p5, %p3180_p3 }
  0x2f   : > { %3188 = shalt.err (!%p3185_p7)
}
  0x30   : > { %s3189_s25 = scalar_lea.vmem %s3655_s21, 768  ;;  %p3197_p2 = scmp.lt.s32.totalorder %s3655_s21, %s3655_s21 }
  0x31   : > { %p3190_p9 = scmp.ne.s32.totalorder %s3655_s21, %s3189_s25  ;;  %p3198_p6 = scmp.lt.s32.totalorder %s3189_s25, %s3189_s25 }
  0x33   : > { %p3192_p10 = pnand %p3190_p9, %p3676_p13  ;;  %p3199_p12 = por %p3198_p6, %p3197_p2 }
  0x35   : > { %p3193_p1 = pneg %p3192_p10 }
  0x37   : > { %p3200_p0 = pnand %p3199_p12, %p3193_p1 }
  0x39   : > { %3203 = shalt.err (!%p3200_p0)
}
  0x3a   : > { %s4921_s26 = smov 128   ;;  %s4923_s16 = smov 8  }
  0x3b   : > { %2899 = dma.hbm_to_vmem [thread:$0]  (!%p3662_p11), %s4957_s3, 768, %s3655_s21, [#allocation9], %s4921_s26, %s4921_s26, %s4923_s16  }
  0x3c   : > { %s4959_s5 = sld [smem:[#allocation34_spill]] }
  0x42   : > { %s3204_s25 = scalar_lea.hbm %s4959_s5, 16 }
  0x43   : > { %p3205_p1 = scmp.ne.s32.totalorder %s4959_s5, %s3204_s25  ;;  %p3211_p10 = scmp.lt.u32.totalorder %s3204_s25, %s4959_s5 }
  0x45   : > { %p3207_p2 = pnand %p3205_p1, %p3676_p13 }
  0x47   : > { %p3208_p6 = pneg %p3207_p2 }
  0x49   : > { %p3213_p3 = pnand %p3211_p10, %p3208_p6 }
  0x4b   : > { %3216 = shalt.err (!%p3213_p3)
}
  0x4c   : > { %s3217_s21 = scalar_lea.vmem %s3666_s24, 16  ;;  %s3224_s30 = scalar_lea.vmem %s3666_s24, 32 }
  0x4d   : > { %p3218_p5 = scmp.ne.s32.totalorder %s3666_s24, %s3217_s21  ;;  %p3225_p12 = scmp.lt.s32.totalorder %s3666_s24, %s3666_s24 }
  0x4e   : > { %p3226_p0 = scmp.lt.s32.totalorder %s3224_s30, %s3217_s21 }
  0x4f   : > { %p3220_p7 = pnand %p3218_p5, %p3676_p13 }
  0x50   : > { %p3227_p1 = por %p3226_p0, %p3225_p12 }
  0x51   : > { %p3221_p9 = pneg %p3220_p7 }
  0x53   : > { %p3228_p2 = pnand %p3227_p1, %p3221_p9 }
  0x55   : > { %3231 = shalt.err (!%p3228_p2)
}
  0x56   : > { %2905 = dma.hbm_to_vmem [thread:$0]  (!%p3662_p11), %s4959_s5, 16, %s3666_s24, [#allocation12]  }
  0x57   : > { %s46_s18 = sadd.s32 1, %s3528_s13  ;;  %s55_s27 = sadd.s32 1, %s3520_s11 }
  0x58   : > { %p48_p6 = scmp.ge.s32.totalorder %s46_s18, 2  ;;  %p62_p10 = scmp.ne.s32.totalorder %s3520_s11, %s3516_s10 }
  0x59   : > { %p63_p3 = scmp.eq.s32.totalorder %s3532_s14, 0  ;;  %p2933_p5 = scmp.lt.s32.totalorder %s3532_s14, 2 }
  0x5a   : > { %s4998_s18 = smov (%p48_p6, %s46_s18), 0  ;;  %p4961_p9 = scmp.eq.s32.totalorder %s3630_s15, 1 }
  0x5b   : > { %4960 = sst [smem:[#allocation29_spill]] %s4998_s18  ;;  %p64_p7 = por %p63_p3, %p62_p10 }
  0x5c   : > { %p3734_p12 = por %p4961_p9, %p62_p10  ;;  %s50_s29 = ssub.s32 %s3528_s13, %s4998_s18 }
  0x5d   : > { %s3741_s23 = sand.u32 1, %s3520_s11   ;;  %p53_p0 = scmp.eq.s32.totalorder %s50_s29, 0 }
  0x5e   : > { %s4962_s28 = scalar_select %p3734_p12, 1, 0 }
  0x5f   : > { %s3744_s24 = sshll.u32 %s3528_s13, 12  ;;  %p3746_p1 = pnand %p2933_p5, %p64_p7 }
  0x60   : > { %4963 = sst [smem:[#allocation30_spill]] %s4962_s28  ;;  %s402_s21 = sand.u32 1, %s3532_s14  }
  0x61   : > { %s4964_s25 = scalar_select %p3746_p1, 1, 0 }
  0x62   : > { %s3752_s30 = scalar_select %p53_p0, %s3520_s11, %s55_s27  }
  0x63   : > { %s2566_s8 = sshll.u32 %s3741_s23, 4  ;;  %s4966_s1 = sld [smem:[#allocation32_spill]] }
  0x64   : > { %4965 = sst [smem:[#allocation31_spill]] %s3752_s30  ;;  %s406_s29 = scalar_lea.vmem [#allocation5], %s2566_s8 }
  0x65   : > { %s419_s3 = sshll.u32 %s406_s29, 4  ;;  %s433_s5 = scalar_lea.vmem [#allocation7], %s2566_s8  ;;  %s3761_s3 = int_to_ptr.vmem [resolvable:$true] %s419_s3 }
  0x66   : > { %s446_s18 = sshll.u32 %s433_s5, 4  ;;  %s3765_s27 = scalar_lea.sflag [#allocation6], %s402_s21  ;;  %s3763_s18 = int_to_ptr.vmem [resolvable:$true] %s446_s18 }
  0x67   : > { %p3771_p6 = pneg %p3746_p1 }
  0x69   : > { %s3759_s16 = scalar_lea.hbm %s4966_s1, %s3744_s24  ;;  %s3237_s5 = scalar_lea.hbm %s4966_s1, 8192 }
  0x6a   : > { %s3232_s13 = scalar_lea.hbm %s3759_s16, 256  ;;  %p3238_p5 = scmp.lt.u32.totalorder %s3759_s16, %s4966_s1 }
  0x6b   : > { %p3233_p2 = scmp.ne.s32.totalorder %s3759_s16, %s3232_s13  ;;  %p3239_p7 = scmp.lt.u32.totalorder %s3237_s5, %s3232_s13 }
  0x6c   : > { %p3241_p0 = scmp.lt.u32.totalorder %s3232_s13, %s3759_s16 }
  0x6d   : > { %p3235_p10 = pnand %p3771_p6, %p3233_p2  ;;  %p3240_p9 = por %p3239_p7, %p3238_p5 }
  0x6f   : > { %p3236_p3 = pneg %p3235_p10  ;;  %p3242_p12 = por %p3241_p0, %p3240_p9 }
  0x71   : > { %p3243_p4 = pnand %p3242_p12, %p3236_p3 }
  0x73   : > { %3246 = shalt.err (!%p3243_p4)
}
  0x74   : > { %s3247_s21 = scalar_lea.vmem %s3761_s3, 256  ;;  %s3538_s9 = smov [#allocation5]  }
  0x75   : > { %p3248_p2 = scmp.ne.s32.totalorder %s3761_s3, %s3247_s21  ;;  %s3252_s8 = sshll.u32 %s3538_s9, 4  ;;  %s3253_s8 = int_to_ptr.vmem [resolvable:$false] %s3252_s8 }
  0x76   : > { %s3254_s30 = scalar_lea.vmem %s3253_s8, 512  ;;  %p3255_p11 = scmp.lt.s32.totalorder %s3761_s3, %s3253_s8 }
  0x77   : > { %p3250_p10 = pnand %p3248_p2, %p3771_p6  ;;  %p3256_p13 = scmp.lt.s32.totalorder %s3254_s30, %s3247_s21 }
  0x79   : > { %p3251_p8 = pneg %p3250_p10  ;;  %p3257_p5 = por %p3256_p13, %p3255_p11 }
  0x7b   : > { %p3258_p7 = pnand %p3257_p5, %p3251_p8 }
  0x7d   : > { %3261 = shalt.err (!%p3258_p7)
}
  0x7e   : > { %s4968_s13 = smov 8   ;;  %s4969_s5 = smov 128  }
  0x7f   : > { %2915 = dma.hbm_to_vmem [thread:$0]  (!%p3746_p1), %s3759_s16, 256, %s3761_s3, %s3765_s27, %s4969_s5, %s4969_s5, %s4968_s13  }
  0x80   : > { %s3539_s29 = smov [#allocation10]   ;;  %s3540_s9 = smov [#allocation13]  }
  0x81   : > { %s345_s1 = sshll.u32 %s3539_s29, 4  ;;  %s367_s11 = sshll.u32 %s3540_s9, 4  ;;  %s346_s1 = int_to_ptr.vmem [resolvable:$true] %s345_s1  ;;  %s3798_s11 = int_to_ptr.vmem [resolvable:$true] %s367_s11 }
  0x82   : > { %s3262_s30 = scalar_lea.hbm %s4909_s4, 16  ;;  %p4970_p8 = scmp.ne.s32.totalorder %s4958_s20, 0 }
  0x83   : > { %p3263_p4 = scmp.ne.s32.totalorder %s4909_s4, %s3262_s30  ;;  %p3269_p12 = scmp.lt.u32.totalorder %s3262_s30, %s4909_s4 }
  0x85   : > { %p3265_p11 = pnand %p3263_p4, %p4970_p8 }
  0x87   : > { %p3266_p13 = pneg %p3265_p11 }
  0x89   : > { %p3271_p3 = pnand %p3269_p12, %p3266_p13 }
  0x8b   : > { %3274 = shalt.err (!%p3271_p3)
}
  0x8c   : > { %s3275_s16 = scalar_lea.vmem %s346_s1, 16  ;;  %s3282_s29 = scalar_lea.vmem %s346_s1, 32 }
  0x8d   : > { %p3276_p9 = scmp.ne.s32.totalorder %s346_s1, %s3275_s16  ;;  %p3283_p10 = scmp.lt.s32.totalorder %s346_s1, %s346_s1 }
  0x8e   : > { %p3284_p5 = scmp.lt.s32.totalorder %s3282_s29, %s3275_s16 }
  0x8f   : > { %p3278_p0 = pnand %p3276_p9, %p4970_p8 }
  0x90   : > { %p3285_p7 = por %p3284_p5, %p3283_p10 }
  0x91   : > { %p3279_p2 = pneg %p3278_p0 }
  0x93   : > { %p3286_p1 = pnand %p3285_p7, %p3279_p2 }
  0x95   : > { %3289 = shalt.err (!%p3286_p1)
}
  0x96   : > { %p4971_p4 = scmp.ne.s32.totalorder %s4956_s22, 0  ;;  %s3290_s21 = scalar_lea.hbm %s4911_s6, 16 }
  0x97   : > { %p3291_p11 = scmp.ne.s32.totalorder %s4911_s6, %s3290_s21  ;;  %p3297_p1 = scmp.lt.u32.totalorder %s3290_s21, %s4911_s6 }
  0x98   : > { %2902 = dma.hbm_to_vmem [thread:$0]  (!%p4971_p4), %s4909_s4, 16, %s346_s1, [#allocation9]  }
  0x99   : > { %p3293_p13 = pnand %p3291_p11, %p4970_p8 }
  0x9b   : > { %p3294_p12 = pneg %p3293_p13 }
  0x9d   : > { %p3299_p3 = pnand %p3297_p1, %p3294_p12 }
  0x9f   : > { %3302 = shalt.err (!%p3299_p3)
}
  0xa0   : > { %s3303_s1 = scalar_lea.vmem %s3798_s11, 16  ;;  %s3310_s29 = scalar_lea.vmem %s3798_s11, 32 }
  0xa1   : > { %p3304_p9 = scmp.ne.s32.totalorder %s3798_s11, %s3303_s1  ;;  %p3311_p10 = scmp.lt.s32.totalorder %s3798_s11, %s3798_s11 }
  0xa2   : > { %p3312_p5 = scmp.lt.s32.totalorder %s3310_s29, %s3303_s1 }
  0xa3   : > { %p3306_p0 = pnand %p3304_p9, %p4970_p8 }
  0xa4   : > { %p3313_p7 = por %p3312_p5, %p3311_p10 }
  0xa5   : > { %p3307_p2 = pneg %p3306_p0 }
  0xa7   : > { %p3314_p11 = pnand %p3313_p7, %p3307_p2 }
  0xa9   : > { %3317 = shalt.err (!%p3314_p11)
}
  0xaa   : > { %2908 = dma.hbm_to_vmem [thread:$0]  (!%p4971_p4), %s4911_s6, 16, %s3798_s11, [#allocation12]  }
  0xab   : > { %s2563_s20 = sshll.u32 %s3741_s23, 8  ;;  %s3847_s21 = scalar_lea.hbm %s4905_s0, %s3744_s24 }
  0xac   : > { %s382_s22 = scalar_lea.vmem [#allocation2], %s2563_s20  ;;  %s2642_s30 = sadd.s32 3840, %s3744_s24 }
  0xad   : > { %s392_s8 = sshll.u32 %s382_s22, 4  ;;  %s3855_s1 = scalar_lea.hbm %s4907_s2, %s2642_s30  ;;  %s3850_s8 = int_to_ptr.vmem [resolvable:$true] %s392_s8 }
  0xae   : > { %s379_s11 = scalar_lea.sflag [#allocation3], %s3741_s23  ;;  %s3318_s29 = scalar_lea.hbm %s3847_s21, 4096 }
  0xaf   : > { %p3319_p8 = scmp.ne.s32.totalorder %s3847_s21, %s3318_s29  ;;  %s3323_s7 = scalar_lea.hbm %s4905_s0, 8192 }
  0xb0   : > { %p3324_p12 = scmp.lt.u32.totalorder %s3847_s21, %s4905_s0  ;;  %p3325_p1 = scmp.lt.u32.totalorder %s3323_s7, %s3318_s29 }
  0xb1   : > { %p3321_p4 = pnand %p3319_p8, %p3771_p6  ;;  %p3327_p9 = scmp.lt.u32.totalorder %s3318_s29, %s3847_s21 }
  0xb2   : > { %p3326_p3 = por %p3325_p1, %p3324_p12 }
  0xb3   : > { %p3322_p13 = pneg %p3321_p4 }
  0xb4   : > { %p3328_p0 = por %p3327_p9, %p3326_p3 }
  0xb6   : > { %p3329_p2 = pnand %p3328_p0, %p3322_p13 }
  0xb8   : > { %3332 = shalt.err (!%p3329_p2)
}
  0xb9   : > { %s3333_s24 = scalar_lea.vmem %s3850_s8, 4096  ;;  %s3541_s22 = smov [#allocation2]  }
  0xba   : > { %p3334_p10 = scmp.ne.s32.totalorder %s3850_s8, %s3333_s24  ;;  %s3338_s30 = sshll.u32 %s3541_s22, 4  ;;  %s3339_s30 = int_to_ptr.vmem [resolvable:$false] %s3338_s30 }
  0xbb   : > { %s3340_s3 = scalar_lea.vmem %s3339_s30, 8192  ;;  %p3341_p11 = scmp.lt.s32.totalorder %s3850_s8, %s3339_s30 }
  0xbc   : > { %p3336_p5 = pnand %p3334_p10, %p3771_p6  ;;  %p3342_p8 = scmp.lt.s32.totalorder %s3340_s3, %s3333_s24 }
  0xbe   : > { %p3337_p7 = pneg %p3336_p5  ;;  %p3343_p4 = por %p3342_p8, %p3341_p11 }
  0xc0   : > { %p3344_p12 = pnand %p3343_p4, %p3337_p7 }
  0xc2   : > { %3347 = shalt.err (!%p3344_p12)
}
  0xc3   : > { %p4972_p13 = scmp.ne.s32.totalorder %s4964_s25, 0  ;;  %s3348_s16 = scalar_lea.hbm %s3855_s1, 256 }
  0xc4   : > { %p3349_p1 = scmp.ne.s32.totalorder %s3855_s1, %s3348_s16  ;;  %s3353_s28 = scalar_lea.hbm %s4907_s2, 8192 }
  0xc5   : > { %2912 = dma.hbm_to_vmem [thread:$0]  (!%p4972_p13), %s3847_s21, 4096, %s3850_s8, %s379_s11, %s4969_s5, %s4969_s5, %s4968_s13  }
  0xc6   : > { %p3351_p3 = pnand %p3349_p1, %p3771_p6  ;;  %p3354_p0 = scmp.lt.u32.totalorder %s3855_s1, %s4907_s2 }
  0xc7   : > { %p3355_p2 = scmp.lt.u32.totalorder %s3353_s28, %s3348_s16  ;;  %p3357_p5 = scmp.lt.u32.totalorder %s3348_s16, %s3855_s1 }
  0xc8   : > { %p3352_p9 = pneg %p3351_p3 }
  0xc9   : > { %p3356_p10 = por %p3355_p2, %p3354_p0 }
  0xcb   : > { %p3358_p7 = por %p3357_p5, %p3356_p10 }
  0xcd   : > { %p3359_p11 = pnand %p3358_p7, %p3352_p9 }
  0xcf   : > { %3362 = shalt.err (!%p3359_p11)
}
  0xd0   : > { %s3363_s23 = scalar_lea.vmem %s3763_s18, 256  ;;  %s3542_s21 = smov [#allocation7]  }
  0xd1   : > { %p3364_p8 = scmp.ne.s32.totalorder %s3763_s18, %s3363_s23  ;;  %s3368_s8 = sshll.u32 %s3542_s21, 4  ;;  %s3369_s8 = int_to_ptr.vmem [resolvable:$false] %s3368_s8 }
  0xd2   : > { %s3370_s11 = scalar_lea.vmem %s3369_s8, 512  ;;  %p3371_p1 = scmp.lt.s32.totalorder %s3763_s18, %s3369_s8 }
  0xd3   : > { %p3366_p4 = pnand %p3364_p8, %p3771_p6  ;;  %p3372_p3 = scmp.lt.s32.totalorder %s3370_s11, %s3363_s23 }
  0xd5   : > { %p3367_p12 = pneg %p3366_p4  ;;  %p3373_p0 = por %p3372_p3, %p3371_p1 }
  0xd7   : > { %p3374_p2 = pnand %p3373_p0, %p3367_p12 }
  0xd9   : > { %3377 = shalt.err (!%p3374_p2)
}
  0xda   : > { %2918 = dma.hbm_to_vmem [thread:$0]  (!%p4972_p13), %s3855_s1, 256, %s3763_s18, %s3765_s27, %s4969_s5, %s4969_s5, %s4968_s13  }
  0xdb   : > { %p4973_p6 = scmp.ne.s32.totalorder %s4955_s19, 0 }
  0xdc   : > { %s3912_s26 = sand.u32 (!%p4973_p6), 1, %s3516_s10   ;;  %p4974_p9 = scmp.ne.s32.totalorder (!%p4973_p6), %s4952_s17, 0 }
  0xdd   : > { %458 = sbr.rel (%p4973_p6) target bundleno = 783 (0x30f), region = 48  ;;  %s2573_s9 = sshll.u32 (!%p4973_p6), %s3912_s26, 8 }
  0xde   : > { %s461_s24 = scalar_lea.sflag (!%p4973_p6), [#allocation3], %s3912_s26  ;;  %s3918_s25 = scalar_lea.vmem (!%p4973_p6), [#allocation2], %s2573_s9 }
  0xe4   : > { %3487 = dma.done.wait (%p4974_p9), %s461_s24, 4096  }
  0xe5   : > { %3489 = vsyncadd (%p4974_p9), %s461_s24, 4294963200  ;;  %s469_s19 = sand.u32 1, %s3630_s15   ;;  %s2574_s18 = sshll.u32 %s3912_s26, 4 }
  0xe6   : > { %s470_s27 = scalar_lea.sflag [#allocation6], %s469_s19  ;;  %s473_s13 = scalar_lea.vmem [#allocation5], %s2574_s18 }
  0xe7   : > { %3491 = dma.done.wait (%p4974_p9), %s470_s27, 512  }
  0xe8   : > { %3493 = vsyncadd (%p4974_p9), %s470_s27, 4294966784  ;;  %s3932_s5 = scalar_lea.vmem [#allocation7], %s2574_s18  ;;  %p4975_p13 = scmp.eq.s32.totalorder %s3630_s15, 0 }
  0xea   : > { %3495 = dma.done.wait (%p4975_p13), [#allocation9], 784   ;;  %p4976_p10 = pmov %p4975_p13 }
  0xec   : > { %3497 = vsyncadd (%p4976_p10), [#allocation9], 4294966512  ;;  %p4977_p5 = pmov %p4976_p10 }
  0xee   : > { %3499 = dma.done.wait (%p4977_p5), [#allocation12], 32   ;;  %p4978_p7 = pmov %p4977_p5 }
  0xef   : > { %v570_v0 = vld [vmem:[%s3918_s25 + $0x10] sm:$0xff]  ;;  %v571_v1 = vld [vmem:[%s3918_s25 + $0x18] sm:$0xff]  ;;  %v568_v6 = vld [vmem:[%s3918_s25] sm:$0xff]  ;;  %vm768_vm0 = vcmask 1040384   ;;  %vm945_vm1 = vcmask 1046528   ;;  %vm1122_vm2 = vcmask 1045504  }
  0xf0   : > { %3501 = vsyncadd (%p4978_p7), [#allocation12], 4294967264  ;;  %v3944_v2 = vld [vmem:[#allocation10] ss:$0 sm:$0xff]  ;;  %v3946_v3 = vld [vmem:[#allocation11] ss:$0 sm:$0xff] }
  0xf1   : > { %v614_v4 = vmul.f32 %v3944_v2, %v570_v0  ;;  %v615_v5 = vmul.f32 %v3944_v2, %v571_v1  ;;  %v569_v7 = vld [vmem:[%s3918_s25 + $0x8] sm:$0xff]  ;;  %v612_v8 = vmul.f32 %v3944_v2, %v568_v6  ;;  %v600_v10 = vld [vmem:[%s473_s13] sm:$0xff]  ;;  %v575_v17 = vld [vmem:[%s3918_s25 + $0x38] sm:$0xff]  ;;  %s3543_s17 = smov 4   ;;  %s3544_s1 = smov 8   ;;  %vm1299_vm3 = vcmask 31744  }
  0xf2   : > { %v613_v9 = vmul.f32 %v3944_v2, %v569_v7  ;;  %v601_v11 = vld [vmem:[%s473_s13 + $0x8] sm:$0xff]  ;;  %v574_v12 = vld [vmem:[%s3918_s25 + $0x30] sm:$0xff]  ;;  %v714_v15 = vmul.f32 %v3944_v2, %v600_v10  ;;  %v619_v21 = vmul.f32 %v3944_v2, %v575_v17  ;;  %vm1332_vm4 = vcmask 64512   ;;  %s4607_s22 = scalar_lea.vmem [#allocation14], %s2573_s9  ;;  %s2643_s30 = sshll.u32 %s3524_s12, 12 }
  0xf3   : > { %v652_v13 = vadd.f32 %v3946_v3, %v614_v4  ;;  %v653_v14 = vadd.f32 %v3946_v3, %v615_v5  ;;  %v715_v16 = vmul.f32 %v3944_v2, %v601_v11  ;;  %v650_v18 = vadd.f32 %v3946_v3, %v612_v8  ;;  %s2298_s3 = sshll.u32 %s4607_s22, 4  ;;  %s4979_s14 = sld [smem:[#allocation35_spill]]  ;;  %s4770_s3 = int_to_ptr.vmem [resolvable:$true] %s2298_s3 }
  0xf4   : > { %v651_v19 = vadd.f32 %v3946_v3, %v613_v9  ;;  %v618_v20 = vmul.f32 %v3944_v2, %v574_v12  ;;  %v716_v24 = vadd.f32 %v3946_v3, %v714_v15  ;;  %v3970_v29 = vadd.f32 %v3946_v3, %v619_v21  ;;  %v573_v21 = vld [vmem:[%s3918_s25 + $0x28] sm:$0xff]  ;;  %s4981_s20 = sld [smem:[#allocation30_spill]]  ;;  %s2274_s23 = scalar_lea.sflag [#allocation4], %s3912_s26 }
  0xf5   : > { %v684_v22 = vmax.f32 %v652_v13, 0.0  ;;  %v685_v23 = vmax.f32 %v653_v14, 0.0  ;;  %v717_v25 = vadd.f32 %v3946_v3, %v715_v16  ;;  %v682_v26 = vmax.f32 %v650_v18, 0.0  ;;  %v572_v16 = vld [vmem:[%s3918_s25 + $0x20] sm:$0xff]  ;;  %s3378_s21 = scalar_lea.vmem %s4770_s3, 4096  ;;  %s3545_s8 = smov [#allocation14]  }
  0xf6   : > { %v683_v27 = vmax.f32 %v651_v19, 0.0  ;;  %v3967_v28 = vadd.f32 %v3946_v3, %v618_v20  ;;  %v718_v32 = vmax.f32 %v716_v24, 0.0  ;;  %v689_v37 = vmax.f32 %v3970_v29, 0.0  ;;  %p3379_p11 = scmp.ne.s32.totalorder %s4770_s3, %s3378_s21  ;;  %s3382_s11 = sshll.u32 %s3545_s8, 4  ;;  %s3383_s11 = int_to_ptr.vmem [resolvable:$false] %s3382_s11 }
  0xf7   : > { %v775_v30 = vrot.slane %v684_v22, 7  ;;  %v776_v31 = vrot.slane %v685_v23, 7  ;;  %v719_v33 = vmax.f32 %v717_v25, 0.0  ;;  %v772_v34 = vrot.slane %v682_v26, 7  ;;  %v578_v22 = vld [vmem:[%s3918_s25 + $0x50] sm:$0xff]  ;;  %v579_v23 = vld [vmem:[%s3918_s25 + $0x58] sm:$0xff]  ;;  %p3385_p1 = scmp.lt.s32.totalorder %s4770_s3, %s3383_s11 }
  0xf8   : > { %v773_v35 = vrot.slane %v683_v27, 7  ;;  %v688_v36 = vmax.f32 %v3967_v28, 0.0  ;;  %v727_v41 = vmul.f32 0.0, %v718_v32  ;;  %vm1417_vm5 = vcmask 97280   ;;  %s3384_s9 = scalar_lea.vmem %s3383_s11, 8192 }
  0xf9   : > { %v3975_v38 = vsel %vm768_vm0, %v775_v30, %v776_v31  ;;  %v3978_v39 = vsel %vm768_vm0, 0.0, %v775_v30  ;;  %v897_v40 = vsel %vm768_vm0, %v776_v31, 0.0  ;;  %v3987_v47 = vsel %vm768_vm0, 0.0, %v772_v34  ;;  %s4980_s28 = smov %s4979_s14  ;;  %s4764_s7 = scalar_lea.hbm %s4979_s14, %s2643_s30 }
  0xfa   : > { %v956_v42 = vrot.slane %v3978_v39, 1  ;;  %v957_v43 = vrot.slane %v3975_v38, 1  ;;  %v959_v44 = vrot.slane %v897_v40, 1  ;;  %v1136_v45 = vrot.slane %v897_v40, 2  ;;  %p4982_p8 = scmp.ne.s32.totalorder %s4981_s20, 0  ;;  %p3386_p3 = scmp.lt.s32.totalorder %s3384_s9, %s3378_s21 }
  0xfb   : > { %v3984_v46 = vsel %vm768_vm0, %v772_v34, %v773_v35  ;;  %v896_v48 = vsel %vm768_vm0, %v773_v35, 0.0  ;;  %v728_v49 = vmul.f32 0.0, %v719_v33  ;;  %v951_v52 = vrot.slane %v3987_v47, 1 }
  0xfc   : > { %v958_v50 = vsel %vm945_vm1, %v956_v42, %v957_v43  ;;  %v960_v51 = vsel %vm945_vm1, %v957_v43, %v959_v44  ;;  %v952_v53 = vrot.slane %v3984_v46, 1  ;;  %v954_v55 = vrot.slane %v896_v48, 1  ;;  %p3380_p4 = pnand %p3379_p11, %p4982_p8  ;;  %p3387_p0 = por %p3386_p3, %p3385_p1 }
  0xfd   : > { %v3001_v54 = vpack.i.bf16 %v960_v51, %v958_v50  ;;  %v1131_v56 = vrot.slane %v896_v48, 2  ;;  %v769_v57 = vrot.slane %v727_v41, 7  ;;  %v770_v59 = vrot.slane %v728_v49, 7 }
  0xfe   : > { %v953_v58 = vsel %vm945_vm1, %v951_v52, %v952_v53  ;;  %v1133_v60 = vrot.slane %v3978_v39, 2  ;;  %v1134_v61 = vrot.slane %v3975_v38, 2  ;;  %v955_v62 = vsel %vm945_vm1, %v952_v53, %v954_v55  ;;  %p3381_p12 = pneg %p3380_p4 }
  0xff   : > { %3002 = vrot.lane.b32.xlu1 %v3001_v54, %s3543_s17  ;;  %v4000_v63 = vsel %vm768_vm0, 0.0, %v769_v57  ;;  %v1128_v0 = vrot.slane %v3987_v47, 2  ;;  %v1129_v1 = vrot.slane %v3984_v46, 2  ;;  %v2996_v4 = vpack.i.bf16 %v955_v62, %v953_v58  ;;  %v582_v58 = vld [vmem:[%s3918_s25 + $0x70] sm:$0xff] }
 0x100   : > { %v4005_v5 = vsel %vm768_vm0, %v769_v57, %v770_v59  ;;  %v895_v6 = vsel %vm768_vm0, %v770_v59, 0.0  ;;  %v1123_v7 = vrot.slane %v4000_v63, 2  ;;  %v946_v10 = vrot.slane %v4000_v63, 1  ;;  %v577_v57 = vld [vmem:[%s3918_s25 + $0x48] sm:$0xff]  ;;  %p3388_p2 = pnand %p3387_p0, %p3381_p12 }
 0x101   : > { %v1124_v8 = vrot.slane %v4005_v5, 2  ;;  %v1126_v9 = vrot.slane %v895_v6, 2  ;;  %v947_v11 = vrot.slane %v4005_v5, 1  ;;  %2997 = vrot.lane.b32.xlu0 %v2996_v4, %s3543_s17  ;;  %v949_v12 = vrot.slane %v895_v6, 1 }
 0x102   : > { %v1135_v13 = vsel %vm1122_vm2, %v1133_v60, %v1134_v61  ;;  %v1137_v14 = vsel %vm1122_vm2, %v1134_v61, %v1136_v45  ;;  %v1130_v15 = vsel %vm1122_vm2, %v1128_v0, %v1129_v1  ;;  %v1132_v26 = vsel %vm1122_vm2, %v1129_v1, %v1131_v56  ;;  %v576_v56 = vld [vmem:[%s3918_s25 + $0x40] sm:$0xff] }
 0x103   : > { %v1125_v17 = vsel %vm1122_vm2, %v1123_v7, %v1124_v8  ;;  %v1127_v18 = vsel %vm1122_vm2, %v1124_v8, %v1126_v9  ;;  %v948_v19 = vsel %vm945_vm1, %v946_v10, %v947_v11  ;;  %v3021_v20 = vpack.i.bf16 %v1137_v14, %v1135_v13 }
 0x104   : > { %v3016_v24 = vpack.i.bf16 %v1127_v18, %v1125_v17  ;;  %v950_v25 = vsel %vm945_vm1, %v947_v11, %v949_v12  ;;  %v781_v27 = vrot.slane %v688_v36, 7  ;;  %v3011_v29 = vpack.i.bf16 %v1132_v26, %v1130_v15 }
 0x105   : > { %v3006_v28 = vpack.i.bf16 %v950_v25, %v948_v19  ;;  %v782_v30 = vrot.slane %v689_v37, 7  ;;  %v616_v31 = vmul.f32 %v3944_v2, %v572_v16  ;;  %v617_v33 = vmul.f32 %v3944_v2, %v573_v21 }
 0x106   : > { %3017 = vrot.lane.b32.xlu1 %v3016_v24, %s3544_s1  ;;  %v4028_v32 = vsel %vm768_vm0, 0.0, %v781_v27  ;;  %v622_v34 = vmul.f32 %v3944_v2, %v578_v22  ;;  %v623_v35 = vmul.f32 %v3944_v2, %v579_v23  ;;  %v620_v8 = vmul.f32 %v3944_v2, %v576_v56 }
 0x107   : > { %3007 = vrot.lane.b32.xlu0 %v3006_v28, %s3543_s17  ;;  %v4035_v36 = vsel %vm768_vm0, %v781_v27, %v782_v30  ;;  %v899_v37 = vsel %vm768_vm0, %v782_v30, 0.0  ;;  %v966_v40 = vrot.slane %v4028_v32, 1  ;;  %v654_v41 = vadd.f32 %v3946_v3, %v616_v31  ;;  %v583_v31 = vld [vmem:[%s3918_s25 + $0x78] sm:$0xff] }
 0x108   : > { %v967_v42 = vrot.slane %v4035_v36, 1  ;;  %v969_v43 = vrot.slane %v899_v37, 1  ;;  %v655_v44 = vadd.f32 %v3946_v3, %v617_v33  ;;  %v1143_v45 = vrot.slane %v4028_v32, 2 }
 0x109   : > { %v686_v48 = vmax.f32 %v654_v41, 0.0  ;;  %v1144_v49 = vrot.slane %v4035_v36, 2  ;;  %v1146_v50 = vrot.slane %v899_v37, 2  ;;  %v660_v51 = vadd.f32 %v3946_v3, %v622_v34 }
 0x10a   : > { %3022 = vrot.lane.b32.xlu1 %v3021_v20, %s3544_s1  ;;  %v968_v52 = vsel %vm945_vm1, %v966_v40, %v967_v42  ;;  %v970_v53 = vsel %vm945_vm1, %v967_v42, %v969_v43  ;;  %v687_v54 = vmax.f32 %v655_v44, 0.0  ;;  %v661_v55 = vadd.f32 %v3946_v3, %v623_v35 }
 0x10b   : > { %3012 = vrot.lane.b32.xlu0 %v3011_v29, %s3544_s1  ;;  %v3031_v59 = vpack.i.bf16 %v970_v53, %v968_v52  ;;  %v778_v60 = vrot.slane %v686_v48, 7  ;;  %v1145_v61 = vsel %vm1122_vm2, %v1143_v45, %v1144_v49  ;;  %v1147_v62 = vsel %vm1122_vm2, %v1144_v49, %v1146_v50 }
 0x10c   : > { %v779_v0 = vrot.slane %v687_v54, 7  ;;  %v3041_v1 = vpack.i.bf16 %v1147_v62, %v1145_v61  ;;  %v692_v4 = vmax.f32 %v660_v51, 0.0  ;;  %v693_v6 = vmax.f32 %v661_v55, 0.0 }
 0x10d   : > { %v4056_v7 = vsel %vm768_vm0, 0.0, %v778_v60  ;;  %v621_v9 = vmul.f32 %v3944_v2, %v577_v57  ;;  %v626_v10 = vmul.f32 %v3944_v2, %v582_v58  ;;  %v658_v21 = vadd.f32 %v3946_v3, %v620_v8  ;;  %v580_v58 = vld [vmem:[%s3918_s25 + $0x60] sm:$0xff] }
 0x10e   : > { %3032 = vrot.lane.b32.xlu1 %v3031_v59, %s3543_s17  ;;  %v4063_v11 = vsel %vm768_vm0, %v778_v60, %v779_v0  ;;  %v898_v12 = vsel %vm768_vm0, %v779_v0, 0.0  ;;  %v961_v13 = vrot.slane %v4056_v7, 1  ;;  %v1138_v14 = vrot.slane %v4056_v7, 2  ;;  %v581_v0 = vld [vmem:[%s3918_s25 + $0x68] sm:$0xff] }
 0x10f   : > { %v962_v15 = vrot.slane %v4063_v11, 1  ;;  %v964_v16 = vrot.slane %v898_v12, 1  ;;  %v1139_v17 = vrot.slane %v4063_v11, 2  ;;  %v1141_v18 = vrot.slane %v898_v12, 2 }
 0x110   : > { %v787_v19 = vrot.slane %v692_v4, 7  ;;  %v788_v20 = vrot.slane %v693_v6, 7  ;;  %v659_v22 = vadd.f32 %v3946_v3, %v621_v9  ;;  %v690_v37 = vmax.f32 %v658_v21, 0.0 }
 0x111   : > { %v963_v23 = vsel %vm945_vm1, %v961_v13, %v962_v15  ;;  %v965_v24 = vsel %vm945_vm1, %v962_v15, %v964_v16  ;;  %v1140_v25 = vsel %vm1122_vm2, %v1138_v14, %v1139_v17  ;;  %v1142_v26 = vsel %vm1122_vm2, %v1139_v17, %v1141_v18  ;;  %v586_v14 = vld [vmem:[%s3918_s25 + $0x90] sm:$0xff] }
 0x112   : > { %v3026_v27 = vpack.i.bf16 %v965_v24, %v963_v23  ;;  %3042 = vrot.lane.b32.xlu1 %v3041_v1, %s3544_s1  ;;  %v3036_v28 = vpack.i.bf16 %v1142_v26, %v1140_v25  ;;  %v4078_v29 = vsel %vm768_vm0, %v787_v19, %v788_v20  ;;  %v4081_v30 = vsel %vm768_vm0, 0.0, %v787_v19  ;;  %v587_v19 = vld [vmem:[%s3918_s25 + $0x98] sm:$0xff] }
 0x113   : > { %v901_v33 = vsel %vm768_vm0, %v788_v20, 0.0  ;;  %v976_v34 = vrot.slane %v4081_v30, 1  ;;  %v977_v35 = vrot.slane %v4078_v29, 1  ;;  %v691_v41 = vmax.f32 %v659_v22, 0.0 }
 0x114   : > { %3027 = vrot.lane.b32.xlu0 %v3026_v27, %s3543_s17  ;;  %v979_v40 = vrot.slane %v901_v33, 1  ;;  %v1153_v42 = vrot.slane %v4081_v30, 2  ;;  %v1154_v43 = vrot.slane %v4078_v29, 2  ;;  %v784_v45 = vrot.slane %v690_v37, 7 }
 0x115   : > { %v978_v44 = vsel %vm945_vm1, %v976_v34, %v977_v35  ;;  %v1156_v48 = vrot.slane %v901_v33, 2  ;;  %v627_v49 = vmul.f32 %v3944_v2, %v583_v31  ;;  %v785_v51 = vrot.slane %v691_v41, 7 }
 0x116   : > { %v980_v50 = vsel %vm945_vm1, %v977_v35, %v979_v40  ;;  %v1155_v52 = vsel %vm1122_vm2, %v1153_v42, %v1154_v43  ;;  %v664_v53 = vadd.f32 %v3946_v3, %v626_v10  ;;  %v4096_v55 = vsel %vm768_vm0, 0.0, %v784_v45 }
 0x117   : > { %v3051_v54 = vpack.i.bf16 %v980_v50, %v978_v44  ;;  %v1157_v56 = vsel %vm1122_vm2, %v1154_v43, %v1156_v48  ;;  %v665_v57 = vadd.f32 %v3946_v3, %v627_v49  ;;  %v4103_v59 = vsel %vm768_vm0, %v784_v45, %v785_v51 }
 0x118   : > { %3037 = vrot.lane.b32.xlu0 %v3036_v28, %s3544_s1  ;;  %v900_v60 = vsel %vm768_vm0, %v785_v51, 0.0  ;;  %v971_v61 = vrot.slane %v4096_v55, 1  ;;  %v3061_v62 = vpack.i.bf16 %v1157_v56, %v1155_v52  ;;  %v972_v1 = vrot.slane %v4103_v59, 1 }
 0x119   : > { %3052 = vrot.lane.b32.xlu1 %v3051_v54, %s3543_s17  ;;  %v974_v4 = vrot.slane %v900_v60, 1  ;;  %v1148_v6 = vrot.slane %v4096_v55, 2  ;;  %v1149_v8 = vrot.slane %v4103_v59, 2  ;;  %v1151_v9 = vrot.slane %v900_v60, 2 }
 0x11a   : > { %v696_v10 = vmax.f32 %v664_v53, 0.0  ;;  %v697_v12 = vmax.f32 %v665_v57, 0.0  ;;  %v624_v13 = vmul.f32 %v3944_v2, %v580_v58  ;;  %v973_v15 = vsel %vm945_vm1, %v971_v61, %v972_v1 }
 0x11b   : > { %v975_v16 = vsel %vm945_vm1, %v972_v1, %v974_v4  ;;  %v1150_v17 = vsel %vm1122_vm2, %v1148_v6, %v1149_v8  ;;  %v625_v18 = vmul.f32 %v3944_v2, %v581_v0  ;;  %v1152_v21 = vsel %vm1122_vm2, %v1149_v8, %v1151_v9  ;;  %v585_v0 = vld [vmem:[%s3918_s25 + $0x88] sm:$0xff] }
 0x11c   : > { %v3046_v20 = vpack.i.bf16 %v975_v16, %v973_v15  ;;  %v793_v22 = vrot.slane %v696_v10, 7  ;;  %v794_v23 = vrot.slane %v697_v12, 7  ;;  %v3056_v24 = vpack.i.bf16 %v1152_v21, %v1150_v17 }
 0x11d   : > { %3062 = vrot.lane.b32.xlu1 %v3061_v62, %s3544_s1  ;;  %v662_v25 = vadd.f32 %v3946_v3, %v624_v13  ;;  %v663_v26 = vadd.f32 %v3946_v3, %v625_v18  ;;  %v630_v27 = vmul.f32 %v3944_v2, %v586_v14  ;;  %v631_v34 = vmul.f32 %v3944_v2, %v587_v19  ;;  %v584_v62 = vld [vmem:[%s3918_s25 + $0x80] sm:$0xff] }
 0x11e   : > { %3047 = vrot.lane.b32.xlu0 %v3046_v20, %s3543_s17  ;;  %v4126_v28 = vsel %vm768_vm0, %v793_v22, %v794_v23  ;;  %v4129_v31 = vsel %vm768_vm0, 0.0, %v793_v22  ;;  %v903_v33 = vsel %vm768_vm0, %v794_v23, 0.0  ;;  %v628_v16 = vmul.f32 %v3944_v2, %v584_v62  ;;  %v590_v22 = vld [vmem:[%s3918_s25 + $0xb0] sm:$0xff]  ;;  %v591_v23 = vld [vmem:[%s3918_s25 + $0xb8] sm:$0xff] }
 0x11f   : > { %v986_v35 = vrot.slane %v4129_v31, 1  ;;  %v987_v37 = vrot.slane %v4126_v28, 1  ;;  %v989_v40 = vrot.slane %v903_v33, 1  ;;  %v694_v41 = vmax.f32 %v662_v25, 0.0 }
 0x120   : > { %v695_v42 = vmax.f32 %v663_v26, 0.0  ;;  %v1163_v43 = vrot.slane %v4129_v31, 2  ;;  %v1164_v44 = vrot.slane %v4126_v28, 2  ;;  %v1166_v45 = vrot.slane %v903_v33, 2 }
 0x121   : > { %v988_v48 = vsel %vm945_vm1, %v986_v35, %v987_v37  ;;  %v990_v49 = vsel %vm945_vm1, %v987_v37, %v989_v40  ;;  %v790_v50 = vrot.slane %v694_v41, 7  ;;  %v668_v51 = vadd.f32 %v3946_v3, %v630_v27 }
 0x122   : > { %3057 = vrot.lane.b32.xlu0 %v3056_v24, %s3544_s1  ;;  %v3071_v52 = vpack.i.bf16 %v990_v49, %v988_v48  ;;  %v791_v53 = vrot.slane %v695_v42, 7  ;;  %v1165_v54 = vsel %vm1122_vm2, %v1163_v43, %v1164_v44  ;;  %v1167_v56 = vsel %vm1122_vm2, %v1164_v44, %v1166_v45 }
 0x123   : > { %v4144_v57 = vsel %vm768_vm0, 0.0, %v790_v50  ;;  %v3081_v58 = vpack.i.bf16 %v1167_v56, %v1165_v54  ;;  %v669_v60 = vadd.f32 %v3946_v3, %v631_v34  ;;  %v700_v61 = vmax.f32 %v668_v51, 0.0 }
 0x124   : > { %3072 = vrot.lane.b32.xlu1 %v3071_v52, %s3543_s17  ;;  %v4151_v1 = vsel %vm768_vm0, %v790_v50, %v791_v53  ;;  %v902_v4 = vsel %vm768_vm0, %v791_v53, 0.0  ;;  %v981_v6 = vrot.slane %v4144_v57, 1  ;;  %v1158_v8 = vrot.slane %v4144_v57, 2 }
 0x125   : > { %v982_v9 = vrot.slane %v4151_v1, 1  ;;  %v984_v10 = vrot.slane %v902_v4, 1  ;;  %v1159_v12 = vrot.slane %v4151_v1, 2  ;;  %v1161_v13 = vrot.slane %v902_v4, 2 }
 0x126   : > { %v701_v14 = vmax.f32 %v669_v60, 0.0  ;;  %v799_v15 = vrot.slane %v700_v61, 7  ;;  %v629_v17 = vmul.f32 %v3944_v2, %v585_v0  ;;  %v666_v34 = vadd.f32 %v3946_v3, %v628_v16 }
 0x127   : > { %v983_v18 = vsel %vm945_vm1, %v981_v6, %v982_v9  ;;  %v985_v19 = vsel %vm945_vm1, %v982_v9, %v984_v10  ;;  %v1160_v20 = vsel %vm1122_vm2, %v1158_v8, %v1159_v12  ;;  %v1162_v21 = vsel %vm1122_vm2, %v1159_v12, %v1161_v13  ;;  %v588_v12 = vld [vmem:[%s3918_s25 + $0xa0] sm:$0xff]  ;;  %v589_v13 = vld [vmem:[%s3918_s25 + $0xa8] sm:$0xff] }
 0x128   : > { %v3066_v24 = vpack.i.bf16 %v985_v19, %v983_v18  ;;  %3082 = vrot.lane.b32.xlu1 %v3081_v58, %s3544_s1  ;;  %v3076_v25 = vpack.i.bf16 %v1162_v21, %v1160_v20  ;;  %v800_v26 = vrot.slane %v701_v14, 7  ;;  %v4168_v27 = vsel %vm768_vm0, 0.0, %v799_v15 }
 0x129   : > { %v996_v33 = vrot.slane %v4168_v27, 1  ;;  %v667_v35 = vadd.f32 %v3946_v3, %v629_v17  ;;  %v1173_v37 = vrot.slane %v4168_v27, 2  ;;  %v634_v42 = vmul.f32 %v3944_v2, %v590_v22 }
 0x12a   : > { %3067 = vrot.lane.b32.xlu0 %v3066_v24, %s3543_s17  ;;  %v4176_v40 = vsel %vm768_vm0, %v799_v15, %v800_v26  ;;  %v905_v41 = vsel %vm768_vm0, %v800_v26, 0.0  ;;  %v635_v43 = vmul.f32 %v3944_v2, %v591_v23  ;;  %v698_v48 = vmax.f32 %v666_v34, 0.0 }
 0x12b   : > { %v997_v44 = vrot.slane %v4176_v40, 1  ;;  %v999_v45 = vrot.slane %v905_v41, 1  ;;  %v699_v49 = vmax.f32 %v667_v35, 0.0  ;;  %v1174_v50 = vrot.slane %v4176_v40, 2 }
 0x12c   : > { %v1176_v51 = vrot.slane %v905_v41, 2  ;;  %v672_v52 = vadd.f32 %v3946_v3, %v634_v42  ;;  %v673_v53 = vadd.f32 %v3946_v3, %v635_v43  ;;  %v796_v58 = vrot.slane %v698_v48, 7 }
 0x12d   : > { %v998_v54 = vsel %vm945_vm1, %v996_v33, %v997_v44  ;;  %v1000_v56 = vsel %vm945_vm1, %v997_v44, %v999_v45  ;;  %v797_v60 = vrot.slane %v699_v49, 7  ;;  %v1175_v62 = vsel %vm1122_vm2, %v1173_v37, %v1174_v50  ;;  %v594_v44 = vld [vmem:[%s3918_s25 + $0xd0] sm:$0xff]  ;;  %v595_v45 = vld [vmem:[%s3918_s25 + $0xd8] sm:$0xff] }
 0x12e   : > { %3077 = vrot.lane.b32.xlu0 %v3076_v25, %s3544_s1  ;;  %v3091_v61 = vpack.i.bf16 %v1000_v56, %v998_v54  ;;  %v1177_v0 = vsel %vm1122_vm2, %v1174_v50, %v1176_v51  ;;  %v704_v4 = vmax.f32 %v672_v52, 0.0  ;;  %v4194_v8 = vsel %vm768_vm0, 0.0, %v796_v58 }
 0x12f   : > { %v4191_v6 = vsel %vm768_vm0, %v796_v58, %v797_v60  ;;  %v904_v9 = vsel %vm768_vm0, %v797_v60, 0.0  ;;  %v3101_v10 = vpack.i.bf16 %v1177_v0, %v1175_v62  ;;  %v991_v14 = vrot.slane %v4194_v8, 1 }
 0x130   : > { %3092 = vrot.lane.b32.xlu1 %v3091_v61, %s3543_s17  ;;  %v992_v15 = vrot.slane %v4191_v6, 1  ;;  %v994_v16 = vrot.slane %v904_v9, 1  ;;  %v1168_v17 = vrot.slane %v4194_v8, 2  ;;  %v1169_v18 = vrot.slane %v4191_v6, 2 }
 0x131   : > { %v1171_v19 = vrot.slane %v904_v9, 2  ;;  %v705_v20 = vmax.f32 %v673_v53, 0.0  ;;  %v805_v21 = vrot.slane %v704_v4, 7  ;;  %v632_v24 = vmul.f32 %v3944_v2, %v588_v12 }
 0x132   : > { %v993_v22 = vsel %vm945_vm1, %v991_v14, %v992_v15  ;;  %v995_v23 = vsel %vm945_vm1, %v992_v15, %v994_v16  ;;  %v633_v25 = vmul.f32 %v3944_v2, %v589_v13  ;;  %v1170_v33 = vsel %vm1122_vm2, %v1168_v17, %v1169_v18 }
 0x133   : > { %v3086_v26 = vpack.i.bf16 %v995_v23, %v993_v22  ;;  %v1172_v34 = vsel %vm1122_vm2, %v1169_v18, %v1171_v19  ;;  %v806_v35 = vrot.slane %v705_v20, 7  ;;  %v4212_v41 = vsel %vm768_vm0, 0.0, %v805_v21  ;;  %v592_v20 = vld [vmem:[%s3918_s25 + $0xc0] sm:$0xff] }
 0x134   : > { %3102 = vrot.lane.b32.xlu1 %v3101_v10, %s3544_s1  ;;  %v3096_v37 = vpack.i.bf16 %v1172_v34, %v1170_v33  ;;  %v670_v42 = vadd.f32 %v3946_v3, %v632_v24  ;;  %v671_v43 = vadd.f32 %v3946_v3, %v633_v25  ;;  %v1006_v50 = vrot.slane %v4212_v41, 1 }
 0x135   : > { %3087 = vrot.lane.b32.xlu0 %v3086_v26, %s3543_s17  ;;  %v4220_v48 = vsel %vm768_vm0, %v805_v21, %v806_v35  ;;  %v907_v49 = vsel %vm768_vm0, %v806_v35, 0.0  ;;  %v1183_v51 = vrot.slane %v4212_v41, 2  ;;  %v638_v61 = vmul.f32 %v3944_v2, %v594_v44  ;;  %v593_v21 = vld [vmem:[%s3918_s25 + $0xc8] sm:$0xff] }
 0x136   : > { %v1007_v52 = vrot.slane %v4220_v48, 1  ;;  %v1009_v53 = vrot.slane %v907_v49, 1  ;;  %v702_v54 = vmax.f32 %v670_v42, 0.0  ;;  %v703_v56 = vmax.f32 %v671_v43, 0.0 }
 0x137   : > { %v1184_v58 = vrot.slane %v4220_v48, 2  ;;  %v1186_v60 = vrot.slane %v907_v49, 2  ;;  %v639_v62 = vmul.f32 %v3944_v2, %v595_v45  ;;  %v676_v15 = vadd.f32 %v3946_v3, %v638_v61  ;;  %v596_v45 = vld [vmem:[%s3918_s25 + $0xe0] sm:$0xff]  ;;  %v597_v49 = vld [vmem:[%s3918_s25 + $0xe8] sm:$0xff] }
 0x138   : > { %v1008_v0 = vsel %vm945_vm1, %v1006_v50, %v1007_v52  ;;  %v1010_v4 = vsel %vm945_vm1, %v1007_v52, %v1009_v53  ;;  %v802_v9 = vrot.slane %v702_v54, 7  ;;  %v803_v10 = vrot.slane %v703_v56, 7  ;;  %v598_v50 = vld [vmem:[%s3918_s25 + $0xf0] sm:$0xff]  ;;  %v599_v56 = vld [vmem:[%s3918_s25 + $0xf8] sm:$0xff] }
 0x139   : > { %3097 = vrot.lane.b32.xlu0 %v3096_v37, %s3544_s1  ;;  %v3111_v12 = vpack.i.bf16 %v1010_v4, %v1008_v0  ;;  %v1185_v13 = vsel %vm1122_vm2, %v1183_v51, %v1184_v58  ;;  %v1187_v14 = vsel %vm1122_vm2, %v1184_v58, %v1186_v60  ;;  %v677_v34 = vadd.f32 %v3946_v3, %v639_v62 }
 0x13a   : > { %v4236_v16 = vsel %vm768_vm0, %v802_v9, %v803_v10  ;;  %v4239_v17 = vsel %vm768_vm0, 0.0, %v802_v9  ;;  %v906_v18 = vsel %vm768_vm0, %v803_v10, 0.0  ;;  %v3121_v19 = vpack.i.bf16 %v1187_v14, %v1185_v13 }
 0x13b   : > { %3112 = vrot.lane.b32.xlu1 %v3111_v12, %s3543_s17  ;;  %v1001_v22 = vrot.slane %v4239_v17, 1  ;;  %v1002_v23 = vrot.slane %v4236_v16, 1  ;;  %v1004_v24 = vrot.slane %v906_v18, 1  ;;  %v1178_v25 = vrot.slane %v4239_v17, 2 }
 0x13c   : > { %v1179_v26 = vrot.slane %v4236_v16, 2  ;;  %v1181_v33 = vrot.slane %v906_v18, 2  ;;  %v708_v35 = vmax.f32 %v676_v15, 0.0  ;;  %v636_v43 = vmul.f32 %v3944_v2, %v592_v20 }
 0x13d   : > { %v1003_v37 = vsel %vm945_vm1, %v1001_v22, %v1002_v23  ;;  %v1005_v42 = vsel %vm945_vm1, %v1002_v23, %v1004_v24  ;;  %v637_v44 = vmul.f32 %v3944_v2, %v593_v21  ;;  %v709_v54 = vmax.f32 %v677_v34, 0.0 }
 0x13e   : > { %v3106_v51 = vpack.i.bf16 %v1005_v42, %v1003_v37  ;;  %v1180_v52 = vsel %vm1122_vm2, %v1178_v25, %v1179_v26  ;;  %v1182_v53 = vsel %vm1122_vm2, %v1179_v26, %v1181_v33  ;;  %v811_v60 = vrot.slane %v708_v35, 7 }
 0x13f   : > { %3122 = vrot.lane.b32.xlu1 %v3121_v19, %s3544_s1  ;;  %v3116_v58 = vpack.i.bf16 %v1182_v53, %v1180_v52  ;;  %v674_v61 = vadd.f32 %v3946_v3, %v636_v43  ;;  %v675_v62 = vadd.f32 %v3946_v3, %v637_v44  ;;  %v812_v0 = vrot.slane %v709_v54, 7 }
 0x140   : > { %3107 = vrot.lane.b32.xlu0 %v3106_v51, %s3543_s17  ;;  %v640_v4 = vmul.f32 %v3944_v2, %v596_v45  ;;  %v641_v9 = vmul.f32 %v3944_v2, %v597_v49  ;;  %v642_v10 = vmul.f32 %v3944_v2, %v598_v50  ;;  %v4268_v12 = vsel %vm768_vm0, 0.0, %v811_v60 }
 0x141   : > { %v706_v13 = vmax.f32 %v674_v61, 0.0  ;;  %v707_v14 = vmax.f32 %v675_v62, 0.0  ;;  %v643_v15 = vmul.f32 %v3944_v2, %v599_v56  ;;  %v4272_v18 = vsel %vm768_vm0, %v811_v60, %v812_v0 }
 0x142   : > { %v909_v19 = vsel %vm768_vm0, %v812_v0, 0.0  ;;  %v1016_v20 = vrot.slane %v4268_v12, 1  ;;  %v1193_v21 = vrot.slane %v4268_v12, 2  ;;  %v1017_v22 = vrot.slane %v4272_v18, 1 }
 0x143   : > { %v1019_v23 = vrot.slane %v909_v19, 1  ;;  %v808_v24 = vrot.slane %v706_v13, 7  ;;  %v809_v25 = vrot.slane %v707_v14, 7  ;;  %v1194_v26 = vrot.slane %v4272_v18, 2  ;;  %v602_v14 = vld [vmem:[%s3932_s5] sm:$0xff] }
 0x144   : > { %3117 = vrot.lane.b32.xlu0 %v3116_v58, %s3544_s1  ;;  %v1196_v33 = vrot.slane %v909_v19, 2  ;;  %v678_v34 = vadd.f32 %v3946_v3, %v640_v4  ;;  %v679_v35 = vadd.f32 %v3946_v3, %v641_v9  ;;  %v1018_v37 = vsel %vm945_vm1, %v1016_v20, %v1017_v22  ;;  %v603_v19 = vld [vmem:[%s3932_s5 + $0x8] sm:$0xff] }
 0x145   : > { %v1020_v42 = vsel %vm945_vm1, %v1017_v22, %v1019_v23  ;;  %v4285_v43 = vsel %vm768_vm0, %v808_v24, %v809_v25  ;;  %v4288_v44 = vsel %vm768_vm0, 0.0, %v808_v24  ;;  %v908_v49 = vsel %vm768_vm0, %v809_v25, 0.0 }
 0x146   : > { %v3131_v45 = vpack.i.bf16 %v1020_v42, %v1018_v37  ;;  %v1011_v50 = vrot.slane %v4288_v44, 1  ;;  %v1012_v51 = vrot.slane %v4285_v43, 1  ;;  %v1014_v52 = vrot.slane %v908_v49, 1 }
 0x147   : > { %v1195_v53 = vsel %vm1122_vm2, %v1193_v21, %v1194_v26  ;;  %v1197_v54 = vsel %vm1122_vm2, %v1194_v26, %v1196_v33  ;;  %v1188_v56 = vrot.slane %v4288_v44, 2  ;;  %v1189_v61 = vrot.slane %v4285_v43, 2 }
 0x148   : > { %3132 = vrot.lane.b32.xlu1 %v3131_v45, %s3543_s17  ;;  %v1013_v58 = vsel %vm945_vm1, %v1011_v50, %v1012_v51  ;;  %v3141_v60 = vpack.i.bf16 %v1197_v54, %v1195_v53  ;;  %v1191_v62 = vrot.slane %v908_v49, 2  ;;  %v1015_v0 = vsel %vm945_vm1, %v1012_v51, %v1014_v52 }
 0x149   : > { %v710_v4 = vmax.f32 %v678_v34, 0.0  ;;  %v711_v9 = vmax.f32 %v679_v35, 0.0  ;;  %v680_v13 = vadd.f32 %v3946_v3, %v642_v10  ;;  %v3126_v20 = vpack.i.bf16 %v1015_v0, %v1013_v58 }
 0x14a   : > { %v1190_v21 = vsel %vm1122_vm2, %v1188_v56, %v1189_v61  ;;  %v1192_v22 = vsel %vm1122_vm2, %v1189_v61, %v1191_v62  ;;  %v681_v23 = vadd.f32 %v3946_v3, %v643_v15  ;;  %v720_v10 = vmul.f32 %v3944_v2, %v602_v14  ;;  %v1414_v14 = vld [vmem:[#allocation8 + $0x10] sm:$0xff] }
 0x14b   : > { %v814_v24 = vrot.slane %v710_v4, 7  ;;  %v815_v25 = vrot.slane %v711_v9, 7  ;;  %v712_v26 = vmax.f32 %v680_v13, 0.0  ;;  %3127 = vrot.lane.b32.xlu0 %v3126_v20, %s3543_s17  ;;  %v3136_v33 = vpack.i.bf16 %v1192_v22, %v1190_v21 }
 0x14c   : > { %3142 = vrot.lane.b32.xlu1 %v3141_v60, %s3544_s1  ;;  %v713_v34 = vmax.f32 %v681_v23, 0.0  ;;  %v721_v35 = vmul.f32 %v3944_v2, %v603_v19  ;;  %v1415_v19 = vld [vmem:[#allocation8 + $0x18] sm:$0xf] }
 0x14d   : > { %v4311_v37 = vsel %vm768_vm0, %v814_v24, %v815_v25  ;;  %v4314_v42 = vsel %vm768_vm0, 0.0, %v814_v24  ;;  %v910_v15 = vsel %vm768_vm0, %v815_v25, 0.0  ;;  %v817_v45 = vrot.slane %v712_v26, 7 }
 0x14e   : > { %v1021_v49 = vrot.slane %v4314_v42, 1  ;;  %v1022_v50 = vrot.slane %v4311_v37, 1  ;;  %v1024_v51 = vrot.slane %v910_v15, 1  ;;  %v1198_v52 = vrot.slane %v4314_v42, 2 }
 0x14f   : > { %v1199_v53 = vrot.slane %v4311_v37, 2  ;;  %v1201_v54 = vrot.slane %v910_v15, 2  ;;  %v818_v2 = vrot.slane %v713_v34, 7  ;;  %v4322_v56 = vsel %vm768_vm0, 0.0, %v817_v45  ;;  %3137 = vrot.lane.b32.xlu0 %v3136_v33, %s3544_s1  ;;  %v1381_v34 = vld [vmem:[#allocation8] sm:$0xff] }
 0x150   : > { %v1023_v58 = vsel %vm945_vm1, %v1021_v49, %v1022_v50  ;;  %v1025_v60 = vsel %vm945_vm1, %v1022_v50, %v1024_v51  ;;  %v1386_v61 = vrot.slane %v4322_v56, 1  ;;  %v1397_v62 = vrot.slane %v4322_v56, 2  ;;  %v1382_v15 = vld [vmem:[#allocation8 + $0x8] sm:$0xf]  ;;  %v1827_v51 = vld [vmem:[#allocation8 + $0x20] sm:$0xff] }
 0x151   : > { %v3146_v0 = vpack.i.bf16 %v1025_v60, %v1023_v58  ;;  %v1200_v4 = vsel %vm1122_vm2, %v1198_v52, %v1199_v53  ;;  %v1202_v9 = vsel %vm1122_vm2, %v1199_v53, %v1201_v54  ;;  %v4332_v13 = vsel %vm768_vm0, %v817_v45, %v818_v2  ;;  %v1828_v52 = vld [vmem:[#allocation8 + $0x28] sm:$0xf] }
 0x152   : > { %v3151_v20 = vpack.i.bf16 %v1202_v9, %v1200_v4  ;;  %v911_v21 = vsel %vm768_vm0, %v818_v2, 0.0  ;;  %v1387_v22 = vrot.slane %v4332_v13, 1  ;;  %v1398_v23 = vrot.slane %v4332_v13, 2 }
 0x153   : > { %v1389_v24 = vrot.slane %v911_v21, 1  ;;  %v1400_v25 = vrot.slane %v911_v21, 2  ;;  %v722_v26 = vadd.f32 %v3946_v3, %v720_v10  ;;  %v723_v33 = vadd.f32 %v3946_v3, %v721_v35  ;;  %3147 = vrot.lane.b32.xlu0 %v3146_v0, %s3543_s17 }
 0x154   : > { %3152 = vrot.lane.b32.xlu1 %v3151_v20, %s3544_s1  ;;  %v1388_v45 = vsel %vm945_vm1, %v1386_v61, %v1387_v22  ;;  %v1399_v49 = vsel %vm1122_vm2, %v1397_v62, %v1398_v23  ;;  %v1416_v50 = vpack.c.bf16 %v1415_v19, %v1414_v14  ;;  %v1383_v58 = vpack.c.bf16 %v1382_v15, %v1381_v34 }
 0x155   : > { %v1390_v53 = vsel %vm945_vm1, %v1387_v22, %v1389_v24  ;;  %v1401_v54 = vsel %vm1122_vm2, %v1398_v23, %v1400_v25  ;;  %v724_v10 = vmax.f32 %v722_v26, 0.0  ;;  %v725_v2 = vmax.f32 %v723_v33, 0.0 }
 0x156   : > { %v3156_v3 = vpack.i.bf16 %v1390_v53, %v1388_v45  ;;  %v3161_v35 = vpack.i.bf16 %v1401_v54, %v1399_v49  ;;  %2864 = vmatprep.subr.msk.bf16.mxu1 %vm1122_vm2, %v1416_v50  ;;  %v1467_v60 = vsel %vm1122_vm2, %v1416_v50, 0  ;;  %v4347_v62 = vpack.c.bf16 %v1828_v52, %v1827_v51  ;;  %2865 = vmatprep.subr.msk.bf16.mxu0 %vm1122_vm2, %v1383_v58 }
 0x157   : > { %v730_v0 = vmul.f32 0.0, %v724_v10  ;;  %v731_v61 = vmul.f32 0.0, %v725_v2  ;;  %2697 = vmatpush3.bf16.msra.mxu1 %v1467_v60  ;;  %v4352_v4 = vsel %vm1122_vm2, %v1383_v58, 0 }
 0x158   : > { %3157 = vrot.lane.b32.xlu0 %v3156_v3, %s3543_s17  ;;  %3162 = vrot.lane.b32.xlu1 %v3161_v35, %s3544_s1 }
 0x159   : > { %v820_v9 = vrot.slane %v730_v0, 7  ;;  %v821_v14 = vrot.slane %v731_v61, 7  ;;  %2866 = vmatprep.subr.msk.bf16.mxu1 %vm1122_vm2, %v1383_v58  ;;  %2731 = vmatpush3.bf16.msra.mxu0 %v4352_v4 }
 0x15a   : > { %2867 = vmatprep.subr.msk.bf16.mxu0 %vm1122_vm2, %v4347_v62 }
 0x15b   : > { %v4358_v19 = vsel %vm768_vm0, %v820_v9, %v821_v14  ;;  %v4361_v20 = vsel %vm768_vm0, 0.0, %v820_v9  ;;  %v912_v21 = vsel %vm768_vm0, %v821_v14, 0.0 }
 0x15c   : > { %v1799_v22 = vrot.slane %v4361_v20, 1  ;;  %v1800_v23 = vrot.slane %v4358_v19, 1  ;;  %v1802_v24 = vrot.slane %v912_v21, 1  ;;  %v1810_v25 = vrot.slane %v4361_v20, 2 }
 0x15d   : > { %v1811_v26 = vrot.slane %v4358_v19, 2  ;;  %v1813_v33 = vrot.slane %v912_v21, 2 }
 0x15e   : > { %v1801_v34 = vsel %vm945_vm1, %v1799_v22, %v1800_v23  ;;  %v1803_v15 = vsel %vm945_vm1, %v1800_v23, %v1802_v24 }
 0x15f   : > { %v3166_v45 = vpack.i.bf16 %v1803_v15, %v1801_v34  ;;  %v1812_v49 = vsel %vm1122_vm2, %v1810_v25, %v1811_v26  ;;  %v1814_v50 = vsel %vm1122_vm2, %v1811_v26, %v1813_v33 }
 0x160   : > { %v3171_v51 = vpack.i.bf16 %v1814_v50, %v1812_v49 }
 0x161   : > { %3167 = vrot.lane.b32.xlu0 %v3166_v45, %s3543_s17 }
 0x162   : > { %3172 = vrot.lane.b32.xlu1 %v3171_v51, %s3544_s1 }
 0x171   : > { %v3003_v52 = vpop.permute.xlu1 %3002 }
 0x172   : > { %v3005_v54 = vunpack.i.h.bf16 %v3003_v52  ;;  %v3004_v58 = vunpack.i.l.bf16 %v3003_v52 }
 0x173   : > { %v2998_v53 = vpop.permute.xlu0 %2997 }
 0x174   : > { %v3000_v61 = vunpack.i.h.bf16 %v2998_v53  ;;  %v2999_v9 = vunpack.i.l.bf16 %v2998_v53  ;;  %v1305_v14 = vsel %vm1299_vm3, %v3975_v38, %v3005_v54  ;;  %v1304_v15 = vsel %vm1299_vm3, %v3978_v39, %v3004_v58 }
 0x176   : > { %v1303_v51 = vsel %vm1299_vm3, %v3984_v46, %v3000_v61 }
 0x178   : > { %v3018_v10 = vpop.permute.xlu1 %3017 }
 0x179   : > { %v3020_v2 = vunpack.i.h.bf16 %v3018_v10  ;;  %v3019_v3 = vunpack.i.l.bf16 %v3018_v10  ;;  %v3008_v35 = vpop.permute.xlu0 %3007 }
 0x17a   : > { %v3010_v60 = vunpack.i.h.bf16 %v3008_v35  ;;  %v3009_v0 = vunpack.i.l.bf16 %v3008_v35 }
 0x17c   : > { %v3023_v21 = vpop.permute.xlu1 %3022  ;;  %v1300_v22 = vsel %vm1299_vm3, %v4000_v63, %v3009_v0  ;;  %v1301_v23 = vsel %vm1299_vm3, %v4005_v5, %v3010_v60  ;;  %v1302_v5 = vsel %vm1299_vm3, %v3987_v47, %v2999_v9 }
 0x17d   : > { %v3025_v24 = vunpack.i.h.bf16 %v3023_v21  ;;  %v3024_v25 = vunpack.i.l.bf16 %v3023_v21  ;;  %v3013_v26 = vpop.permute.xlu0 %3012  ;;  %v1333_v33 = vsel %vm1332_vm4, %v1300_v22, %v3019_v3  ;;  %v1334_v34 = vsel %vm1332_vm4, %v1301_v23, %v3020_v2 }
 0x17e   : > { %v3015_v45 = vunpack.i.h.bf16 %v3013_v26  ;;  %v3014_v38 = vunpack.i.l.bf16 %v3013_v26  ;;  %v1365_v49 = vpack.c.bf16 %v1334_v34, %v1333_v33  ;;  %v1834_v2 = vsel %vm1122_vm2, %v4347_v62, 0 }
 0x17f   : > { %v1337_v50 = vsel %vm1332_vm4, %v1304_v15, %v3024_v25  ;;  %v1338_v63 = vsel %vm1332_vm4, %v1305_v14, %v3025_v24 }
 0x180   : > { %v4392_v52 = vpack.c.bf16 %v1338_v63, %v1337_v50  ;;  %2732 = vmatprep.mubr.msk.bf16.mxu0 %vm1417_vm5, %v1365_v49  ;;  %v3033_v53 = vpop.permute.xlu1 %3032  ;;  %v1335_v39 = vsel %vm1332_vm4, %v1302_v5, %v3014_v38  ;;  %v1336_v54 = vsel %vm1332_vm4, %v1303_v51, %v3015_v45 }
 0x181   : > { %v1366_v10 = vpack.c.bf16 %v1336_v54, %v1335_v39  ;;  %v3035_v47 = vunpack.i.h.bf16 %v3033_v53  ;;  %v3034_v3 = vunpack.i.l.bf16 %v3033_v53 }
 0x183   : > { %2698 = vmatprep.mubr.msk.bf16.mxu1 %vm1417_vm5, %v1366_v10  ;;  %2733 = vmatmul.mubr.msk.bf16.vlgmr.msra.gmra.mrb[0].mxu0 %vm1417_vm5, %v1366_v10  ;;  %v1309_v61 = vsel %vm1299_vm3, %v4035_v36, %v3035_v47  ;;  %v1308_v9 = vsel %vm1299_vm3, %v4028_v32, %v3034_v3 }
 0x184   : > { %2699 = vmatmul.mubr.msk.bf16.vlgmr.msra.gmra.mrb[0].mxu1 %vm1417_vm5, %v4392_v52  ;;  %2736 = vmatprep.mubr.msk.bf16.mxu0 %vm1417_vm5, %v4392_v52  ;;  %v3043_v46 = vpop.permute.xlu1 %3042 }
 0x185   : > { %2799 = vmatpush3.bf16.msra.mxu1 %v4352_v4  ;;  %2765 = vmatpush3.bf16.msra.mxu0 %v1834_v2  ;;  %v3045_v58 = vunpack.i.h.bf16 %v3043_v46  ;;  %v3044_v60 = vunpack.i.l.bf16 %v3043_v46 }
 0x186   : > { %v3028_v35 = vpop.permute.xlu0 %3027 }
 0x187   : > { %v3030_v62 = vunpack.i.h.bf16 %v3028_v35  ;;  %v3029_v0 = vunpack.i.l.bf16 %v3028_v35  ;;  %v1341_v14 = vsel %vm1332_vm4, %v1308_v9, %v3044_v60  ;;  %v1342_v21 = vsel %vm1332_vm4, %v1309_v61, %v3045_v58 }
 0x188   : > { %v4416_v33 = vpack.c.bf16 %v1342_v21, %v1341_v14 }
 0x189   : > { %v1307_v25 = vsel %vm1299_vm3, %v4063_v11, %v3030_v62  ;;  %v1306_v26 = vsel %vm1299_vm3, %v4056_v7, %v3029_v0 }
 0x18a   : > { %v3038_v22 = vpop.permute.xlu0 %3037 }
 0x18b   : > { %v3040_v23 = vunpack.i.h.bf16 %v3038_v22  ;;  %v3039_v24 = vunpack.i.l.bf16 %v3038_v22  ;;  %v3053_v4 = vpop.permute.xlu1 %3052 }
 0x18c   : > { %v3055_v15 = vunpack.i.h.bf16 %v3053_v4  ;;  %v3054_v45 = vunpack.i.l.bf16 %v3053_v4 }
 0x18d   : > { %v1339_v36 = vsel %vm1332_vm4, %v1306_v26, %v3039_v24  ;;  %v1340_v32 = vsel %vm1332_vm4, %v1307_v25, %v3040_v23 }
 0x18e   : > { %v4420_v34 = vpack.c.bf16 %v1340_v32, %v1339_v36  ;;  %v1313_v5 = vsel %vm1299_vm3, %v4078_v29, %v3055_v15  ;;  %v1312_v51 = vsel %vm1299_vm3, %v4081_v30, %v3054_v45 }
 0x18f   : > { %v3063_v38 = vpop.permute.xlu1 %3062 }
 0x190   : > { %v3048_v49 = vpop.permute.xlu0 %3047  ;;  %2702 = vmatprep.mubr.msk.bf16.mxu1 %vm1417_vm5, %v4420_v34  ;;  %2737 = vmatmul.mubr.msk.bf16.gmra.mrb[4].mxu0 %vm1417_vm5, %v4420_v34  ;;  %v3065_v11 = vunpack.i.h.bf16 %v3063_v38  ;;  %v3064_v7 = vunpack.i.l.bf16 %v3063_v38 }
 0x191   : > { %2703 = vmatmul.mubr.msk.bf16.gmra.mrb[4].mxu1 %vm1417_vm5, %v4416_v33  ;;  %2740 = vmatprep.mubr.msk.bf16.mxu0 %vm1417_vm5, %v4416_v33  ;;  %v3050_v50 = vunpack.i.h.bf16 %v3048_v49  ;;  %v3049_v63 = vunpack.i.l.bf16 %v3048_v49 }
 0x192   : > { %v1345_v53 = vsel %vm1332_vm4, %v1312_v51, %v3064_v7  ;;  %v1346_v39 = vsel %vm1332_vm4, %v1313_v5, %v3065_v11 }
 0x193   : > { %v1311_v46 = vsel %vm1299_vm3, %v4103_v59, %v3050_v50  ;;  %v1310_v47 = vsel %vm1299_vm3, %v4096_v55, %v3049_v63  ;;  %v4440_v35 = vpack.c.bf16 %v1346_v39, %v1345_v53 }
 0x194   : > { %v3058_v54 = vpop.permute.xlu0 %3057 }
 0x195   : > { %v3060_v10 = vunpack.i.h.bf16 %v3058_v54  ;;  %v3059_v2 = vunpack.i.l.bf16 %v3058_v54 }
 0x196   : > { %v3073_v3 = vpop.permute.xlu1 %3072 }
 0x197   : > { %v1343_v29 = vsel %vm1332_vm4, %v1310_v47, %v3059_v2  ;;  %v1344_v30 = vsel %vm1332_vm4, %v1311_v46, %v3060_v10  ;;  %v3075_v59 = vunpack.i.h.bf16 %v3073_v3  ;;  %v3074_v62 = vunpack.i.l.bf16 %v3073_v3 }
 0x198   : > { %v4444_v58 = vpack.c.bf16 %v1344_v30, %v1343_v29 }
 0x199   : > { %v1317_v21 = vsel %vm1299_vm3, %v4126_v28, %v3075_v59  ;;  %v1316_v22 = vsel %vm1299_vm3, %v4129_v31, %v3074_v62 }
 0x19a   : > { %2706 = vmatprep.mubr.msk.bf16.mxu1 %vm1417_vm5, %v4444_v58  ;;  %2741 = vmatmul.mubr.msk.bf16.gmra.mrb[8].mxu0 %vm1417_vm5, %v4444_v58  ;;  %v3083_v60 = vpop.permute.xlu1 %3082 }
 0x19b   : > { %2707 = vmatmul.mubr.msk.bf16.gmra.mrb[8].mxu1 %vm1417_vm5, %v4440_v35  ;;  %2744 = vmatprep.mubr.msk.bf16.mxu0 %vm1417_vm5, %v4440_v35  ;;  %v3085_v0 = vunpack.i.h.bf16 %v3083_v60  ;;  %v3084_v61 = vunpack.i.l.bf16 %v3083_v60 }
 0x19c   : > { %v3068_v55 = vpop.permute.xlu0 %3067 }
 0x19d   : > { %v3070_v9 = vunpack.i.h.bf16 %v3068_v55  ;;  %v3069_v14 = vunpack.i.l.bf16 %v3068_v55  ;;  %v1349_v23 = vsel %vm1332_vm4, %v1316_v22, %v3084_v61  ;;  %v1350_v24 = vsel %vm1332_vm4, %v1317_v21, %v3085_v0 }
 0x19e   : > { %v4464_v45 = vpack.c.bf16 %v1350_v24, %v1349_v23 }
 0x19f   : > { %v1315_v36 = vsel %vm1299_vm3, %v4151_v1, %v3070_v9  ;;  %v1314_v32 = vsel %vm1299_vm3, %v4144_v57, %v3069_v14 }
 0x1a0   : > { %v3078_v4 = vpop.permute.xlu0 %3077 }
 0x1a1   : > { %v3080_v25 = vunpack.i.h.bf16 %v3078_v4  ;;  %v3079_v26 = vunpack.i.l.bf16 %v3078_v4 }
 0x1a2   : > { %v3093_v15 = vpop.permute.xlu1 %3092 }
 0x1a3   : > { %v1347_v28 = vsel %vm1332_vm4, %v1314_v32, %v3079_v26  ;;  %v1348_v31 = vsel %vm1332_vm4, %v1315_v36, %v3080_v25  ;;  %v3095_v49 = vunpack.i.h.bf16 %v3093_v15  ;;  %v3094_v11 = vunpack.i.l.bf16 %v3093_v15 }
 0x1a4   : > { %v1372_v38 = vpack.c.bf16 %v1348_v31, %v1347_v28 }
 0x1a5   : > { %v1321_v51 = vsel %vm1299_vm3, %v4176_v40, %v3095_v49  ;;  %v1320_v53 = vsel %vm1299_vm3, %v4168_v27, %v3094_v11 }
 0x1a6   : > { %2710 = vmatprep.mubr.msk.bf16.mxu1 %vm1417_vm5, %v1372_v38  ;;  %2745 = vmatmul.mubr.msk.bf16.gmra.mrb[12].mxu0 %vm1417_vm5, %v1372_v38  ;;  %v3103_v7 = vpop.permute.xlu1 %3102 }
 0x1a7   : > { %v3088_v50 = vpop.permute.xlu0 %3087  ;;  %2711 = vmatmul.mubr.msk.bf16.gmra.mrb[12].mxu1 %vm1417_vm5, %v4464_v45  ;;  %2766 = vmatprep.mubr.msk.bf16.mxu0 %vm1417_vm5, %v4392_v52  ;;  %v3105_v57 = vunpack.i.h.bf16 %v3103_v7  ;;  %v3104_v1 = vunpack.i.l.bf16 %v3103_v7 }
 0x1a8   : > { %v3090_v63 = vunpack.i.h.bf16 %v3088_v50  ;;  %v3089_v5 = vunpack.i.l.bf16 %v3088_v50 }
 0x1a9   : > { %v1353_v39 = vsel %vm1332_vm4, %v1320_v53, %v3104_v1  ;;  %v1354_v54 = vsel %vm1332_vm4, %v1321_v51, %v3105_v57 }
 0x1aa   : > { %v1319_v52 = vsel %vm1299_vm3, %v4191_v6, %v3090_v63  ;;  %v1318_v47 = vsel %vm1299_vm3, %v4194_v8, %v3089_v5  ;;  %v4484_v29 = vpack.c.bf16 %v1354_v54, %v1353_v39 }
 0x1ab   : > { %v3098_v10 = vpop.permute.xlu0 %3097 }
 0x1ac   : > { %v3100_v2 = vunpack.i.h.bf16 %v3098_v10  ;;  %v3099_v46 = vunpack.i.l.bf16 %v3098_v10 }
 0x1ad   : > { %v3113_v3 = vpop.permute.xlu1 %3112 }
 0x1ae   : > { %v1351_v40 = vsel %vm1332_vm4, %v1318_v47, %v3099_v46  ;;  %v1352_v27 = vsel %vm1332_vm4, %v1319_v52, %v3100_v2  ;;  %2767 = vmatmul.mubr.msk.bf16.vlgmr.msra.gmra.mrb[0].mxu0 %vm1417_vm5, %v4420_v34  ;;  %v3115_v60 = vunpack.i.h.bf16 %v3113_v3  ;;  %v3114_v6 = vunpack.i.l.bf16 %v3113_v3 }
 0x1af   : > { %v4490_v30 = vpack.c.bf16 %v1352_v27, %v1351_v40  ;;  %2770 = vmatprep.mubr.msk.bf16.mxu0 %vm1417_vm5, %v4416_v33 }
 0x1b0   : > { %v1325_v34 = vsel %vm1299_vm3, %v4220_v48, %v3115_v60  ;;  %v1324_v33 = vsel %vm1299_vm3, %v4212_v41, %v3114_v6 }
 0x1b1   : > { %2714 = vmatprep.mubr.msk.bf16.mxu1 %vm1417_vm5, %v4490_v30  ;;  %v3123_v8 = vpop.permute.xlu1 %3122 }
 0x1b2   : > { %v3108_v59 = vpop.permute.xlu0 %3107  ;;  %2715 = vmatmul.mubr.msk.bf16.gmra.mrb[16].mxu1 %vm1417_vm5, %v4484_v29  ;;  %v3125_v62 = vunpack.i.h.bf16 %v3123_v8  ;;  %v3124_v55 = vunpack.i.l.bf16 %v3123_v8 }
 0x1b3   : > { %v3110_v0 = vunpack.i.h.bf16 %v3108_v59  ;;  %v3109_v61 = vunpack.i.l.bf16 %v3108_v59 }
 0x1b4   : > { %v1357_v9 = vsel %vm1332_vm4, %v1324_v33, %v3124_v55  ;;  %v1358_v14 = vsel %vm1332_vm4, %v1325_v34, %v3125_v62 }
 0x1b5   : > { %v1323_v24 = vsel %vm1299_vm3, %v4236_v16, %v3110_v0  ;;  %v1322_v48 = vsel %vm1299_vm3, %v4239_v17, %v3109_v61  ;;  %v4512_v41 = vpack.c.bf16 %v1358_v14, %v1357_v9 }
 0x1b6   : > { %v3118_v21 = vpop.permute.xlu0 %3117  ;;  %2771 = vmatmul.mubr.msk.bf16.gmra.mrb[4].mxu0 %vm1417_vm5, %v4444_v58 }
 0x1b7   : > { %v3120_v22 = vunpack.i.h.bf16 %v3118_v21  ;;  %v3119_v23 = vunpack.i.l.bf16 %v3118_v21  ;;  %2774 = vmatprep.mubr.msk.bf16.mxu0 %vm1417_vm5, %v4440_v35 }
 0x1b9   : > { %v1355_v4 = vsel %vm1332_vm4, %v1322_v48, %v3119_v23  ;;  %v1356_v25 = vsel %vm1332_vm4, %v1323_v24, %v3120_v22 }
 0x1ba   : > { %v4516_v26 = vpack.c.bf16 %v1356_v25, %v1355_v4  ;;  %v3133_v58 = vpop.permute.xlu1 %3132 }
 0x1bb   : > { %v3135_v36 = vunpack.i.h.bf16 %v3133_v58  ;;  %v3134_v35 = vunpack.i.l.bf16 %v3133_v58 }
 0x1bc   : > { %2718 = vmatprep.mubr.msk.bf16.mxu1 %vm1417_vm5, %v4516_v26 }
 0x1bd   : > { %2719 = vmatmul.mubr.msk.bf16.gmra.mrb[20].mxu1 %vm1417_vm5, %v4512_v41  ;;  %v3128_v16 = vpop.permute.xlu0 %3127  ;;  %v1329_v49 = vsel %vm1299_vm3, %v4272_v18, %v3135_v36  ;;  %v1328_v11 = vsel %vm1299_vm3, %v4268_v12, %v3134_v35 }
 0x1be   : > { %v3143_v32 = vpop.permute.xlu1 %3142  ;;  %2775 = vmatmul.mubr.msk.bf16.gmra.mrb[8].mxu0 %vm1417_vm5, %v1372_v38  ;;  %v3130_v28 = vunpack.i.h.bf16 %v3128_v16  ;;  %v3129_v31 = vunpack.i.l.bf16 %v3128_v16 }
 0x1bf   : > { %v3145_v17 = vunpack.i.h.bf16 %v3143_v32  ;;  %v3144_v15 = vunpack.i.l.bf16 %v3143_v32  ;;  %2778 = vmatprep.mubr.msk.bf16.mxu0 %vm1417_vm5, %v4464_v45 }
 0x1c0   : > { %v1327_v63 = vsel %vm1299_vm3, %v4285_v43, %v3130_v28  ;;  %v1326_v5 = vsel %vm1299_vm3, %v4288_v44, %v3129_v31  ;;  %v4601_v31 = vld [vmem:[#allocation13] ss:$0 sm:$0xff] }
 0x1c1   : > { %v1361_v7 = vsel %vm1332_vm4, %v1328_v11, %v3144_v15  ;;  %v1362_v50 = vsel %vm1332_vm4, %v1329_v49, %v3145_v17  ;;  %v3138_v57 = vpop.permute.xlu0 %3137 }
 0x1c2   : > { %v3140_v1 = vunpack.i.h.bf16 %v3138_v57  ;;  %v3139_v38 = vunpack.i.l.bf16 %v3138_v57  ;;  %v1379_v51 = vpack.c.bf16 %v1362_v50, %v1361_v7 }
 0x1c4   : > { %v1359_v53 = vsel %vm1332_vm4, %v1326_v5, %v3139_v38  ;;  %v1360_v18 = vsel %vm1332_vm4, %v1327_v63, %v3140_v1 }
 0x1c5   : > { %v1378_v39 = vpack.c.bf16 %v1360_v18, %v1359_v53  ;;  %v3148_v12 = vpop.permute.xlu0 %3147 }
 0x1c6   : > { %v3153_v54 = vpop.permute.xlu1 %3152  ;;  %2779 = vmatmul.mubr.msk.bf16.gmra.mrb[12].mxu0 %vm1417_vm5, %v4490_v30  ;;  %v3150_v10 = vunpack.i.h.bf16 %v3148_v12  ;;  %v3149_v2 = vunpack.i.l.bf16 %v3148_v12 }
 0x1c7   : > { %v3155_v46 = vunpack.i.h.bf16 %v3153_v54  ;;  %v3154_v52 = vunpack.i.l.bf16 %v3153_v54  ;;  %2782 = vmatprep.mubr.msk.bf16.mxu0 %vm1417_vm5, %v4484_v29  ;;  %2722 = vmatprep.mubr.msk.bf16.mxu1 %vm1417_vm5, %v1378_v39 }
 0x1c8   : > { %v1331_v43 = vsel %vm1299_vm3, %v4311_v37, %v3150_v10  ;;  %v1330_v44 = vsel %vm1299_vm3, %v4314_v42, %v3149_v2  ;;  %2723 = vmatmul.mubr.msk.bf16.gmra.mrb[24].mxu1 %vm1417_vm5, %v1379_v51 }
 0x1c9   : > { %v1363_v47 = vsel %vm1332_vm4, %v1330_v44, %v3154_v52  ;;  %v1364_v3 = vsel %vm1332_vm4, %v1331_v43, %v3155_v46 }
 0x1ca   : > { %v3158_v40 = vpop.permute.xlu0 %3157  ;;  %v3163_v27 = vpop.permute.xlu1 %3162  ;;  %v1380_v60 = vpack.c.bf16 %v1364_v3, %v1363_v47 }
 0x1cb   : > { %v3160_v6 = vunpack.i.h.bf16 %v3158_v40  ;;  %v3159_v8 = vunpack.i.l.bf16 %v3158_v40  ;;  %v3165_v59 = vunpack.i.h.bf16 %v3163_v27  ;;  %v3164_v62 = vunpack.i.l.bf16 %v3163_v27 }
 0x1cc   : > { %2726 = vmatprep.mubr.msk.bf16.mxu1 %vm1417_vm5, %v1380_v60 }
 0x1cd   : > { %v1409_v55 = vsel %vm1299_vm3, %v4332_v13, %v3160_v6  ;;  %v1408_v37 = vsel %vm1299_vm3, %v4322_v56, %v3159_v8 }
 0x1ce   : > { %v1410_v42 = vsel %vm1332_vm4, %v1408_v37, %v3164_v62  ;;  %v1411_v0 = vsel %vm1332_vm4, %v1409_v55, %v3165_v59  ;;  %2783 = vmatmul.mubr.msk.bf16.gmra.mrb[16].mxu0 %vm1417_vm5, %v4516_v26 }
 0x1cf   : > { %v1412_v61 = vpack.c.bf16 %v1411_v0, %v1410_v42  ;;  %2786 = vmatprep.mubr.msk.bf16.mxu0 %vm1417_vm5, %v4512_v41 }
 0x1d1   : > { %2727 = vmatmul.mubr.msk.bf16.gmra.mrb[28].mxu1 %vm1417_vm5, %v1412_v61 }
 0x1d2   : > { %2748 = vmatprep.mubr.msk.bf16.mxu1 %vm1417_vm5, %v4464_v45 }
 0x1d3   : > { %v3168_v13 = vpop.permute.xlu0 %3167 }
 0x1d4   : > { %v3170_v56 = vunpack.i.h.bf16 %v3168_v13  ;;  %v3169_v34 = vunpack.i.l.bf16 %v3168_v13  ;;  %v3173_v33 = vpop.permute.xlu1 %3172 }
 0x1d5   : > { %v3175_v9 = vunpack.i.h.bf16 %v3173_v33  ;;  %v3174_v14 = vunpack.i.l.bf16 %v3173_v33 }
 0x1d6   : > { %2787 = vmatmul.mubr.msk.bf16.gmra.mrb[20].mxu0 %vm1417_vm5, %v1378_v39  ;;  %v1822_v21 = vsel %vm1299_vm3, %v4358_v19, %v3170_v56  ;;  %v1821_v45 = vsel %vm1299_vm3, %v4361_v20, %v3169_v34 }
 0x1d7   : > { %2790 = vmatprep.mubr.msk.bf16.mxu0 %vm1417_vm5, %v1379_v51  ;;  %v1823_v22 = vsel %vm1332_vm4, %v1821_v45, %v3174_v14  ;;  %v1824_v23 = vsel %vm1332_vm4, %v1822_v21, %v3175_v9 }
 0x1d9   : > { %2749 = vmatmul.mubr.msk.bf16.vlgmr.msra.gmra.mrb[16].mxu1 %vm1417_vm5, %v4490_v30 }
 0x1da   : > { %2752 = vmatprep.mubr.msk.bf16.mxu1 %vm1417_vm5, %v4484_v29  ;;  %v1825_v29 = vpack.c.bf16 %v1824_v23, %v1823_v22 }
 0x1de   : > { %2791 = vmatmul.mubr.msk.bf16.gmra.mrb[24].mxu0 %vm1417_vm5, %v1380_v60 }
 0x1df   : > { %2794 = vmatprep.mubr.msk.bf16.mxu0 %vm1417_vm5, %v1412_v61 }
 0x1e1   : > { %2753 = vmatmul.mubr.msk.bf16.gmra.mrb[20].mxu1 %vm1417_vm5, %v4516_v26 }
 0x1e2   : > { %2756 = vmatprep.mubr.msk.bf16.mxu1 %vm1417_vm5, %v4512_v41 }
 0x1e6   : > { %2795 = vmatmul.mubr.msk.bf16.gmra.mrb[28].mxu0 %vm1417_vm5, %v1825_v29 }
 0x1e9   : > { %2757 = vmatmul.mubr.msk.bf16.gmra.mrb[24].mxu1 %vm1417_vm5, %v1378_v39 }
 0x1ea   : > { %2760 = vmatprep.mubr.msk.bf16.mxu1 %vm1417_vm5, %v1379_v51 }
 0x1f1   : > { %2761 = vmatmul.mubr.msk.bf16.gmra.mrb[28].mxu1 %vm1417_vm5, %v1380_v60 }
 0x257   : > { %v2700_v19 = vpop.f32.mrb[0].mxu1 }
 0x258   : > { %v1503_v20 = vpop.f32.mrb[1].mxu1 }
 0x259   : > { %v2701_v30 = vpop.f32.mrb[2].mxu1 }
 0x25a   : > { %v1506_v24 = vpop.f32.mrb[3].mxu1 }
 0x264   : > { %v2704_v48 = vpop.f32.mrb[4].mxu1 }
 0x265   : > { %v1519_v4 = vpop.f32.mrb[5].mxu1 }
 0x266   : > { %v2705_v25 = vpop.f32.mrb[6].mxu1 }
 0x267   : > { %v1522_v26 = vpop.f32.mrb[7].mxu1 }
 0x26e   : > { %v4585_v58 = vpop.f32.mrb[8].mxu1 }
 0x26f   : > { %v4587_v41 = vpop.f32.mrb[9].mxu1 }
 0x270   : > { %v4589_v36 = vpop.f32.mrb[10].mxu1 }
 0x271   : > { %v4591_v35 = vpop.f32.mrb[11].mxu1 }
 0x27a   : > { %v4593_v16 = vpop.f32.mrb[12].mxu1 }
 0x27b   : > { %v4595_v32 = vpop.f32.mrb[13].mxu1 }
 0x27c   : > { %v4597_v17 = vpop.f32.mrb[14].mxu1 }
 0x27d   : > { %v4599_v15 = vpop.f32.mrb[15].mxu1 }
 0x281   : > { %v2768_v28 = vpop.f32.mrb[0].mxu0 }
 0x282   : > { %v2800_v49 = vadd.f32 %v2768_v28, %v2700_v19  ;;  %v1870_v11 = vpop.f32.mrb[1].mxu0 }
 0x283   : > { %v2801_v7 = vadd.f32 %v1870_v11, %v1503_v20  ;;  %v2769_v50 = vpop.f32.mrb[2].mxu0 }
 0x284   : > { %v2038_v57 = vadd.f32 %v2800_v49, %v4601_v31  ;;  %v2802_v1 = vadd.f32 %v2769_v50, %v2701_v30  ;;  %v1873_v38 = vpop.f32.mrb[3].mxu0 }
 0x285   : > { %v2036_v63 = vadd.f32 %v2801_v7, %v4601_v31  ;;  %v2803_v5 = vadd.f32 %v1873_v38, %v1506_v24 }
 0x286   : > { %2070 = vst.msk [vmem:[%s4607_s22 + $0x10] sm:$0xff] %vm1299_vm3, %v2038_v57  ;;  %v2039_v51 = vadd.f32 %v2802_v1, %v4601_v31  ;;  %v2173_v39 = vmul.f32 %v2038_v57, %v2038_v57  ;;  %v2103_v47 = vsel %vm1299_vm3, %v2038_v57, 0.0 }
 0x287   : > { %2068 = vst.msk [vmem:[%s4607_s22] sm:$0xff] %vm1299_vm3, %v2036_v63  ;;  %v2171_v53 = vmul.f32 %v2036_v63, %v2036_v63  ;;  %v2037_v18 = vadd.f32 %v2803_v5, %v4601_v31  ;;  %v2100_v12 = vsel %vm1299_vm3, %v2036_v63, 0.0 }
 0x288   : > { %2071 = vst.msk [vmem:[%s4607_s22 + $0x18] sm:$0xff] %vm1299_vm3, %v2039_v51  ;;  %v2174_v46 = vmul.f32 %v2039_v51, %v2039_v51  ;;  %v2206_v37 = vsel %vm1299_vm3, %v2173_v39, 0.0  ;;  %v2105_v42 = vsel %vm1299_vm3, %v2039_v51, 0.0 }
 0x289   : > { %2069 = vst.msk [vmem:[%s4607_s22 + $0x8] sm:$0xff] %vm1299_vm3, %v2037_v18  ;;  %v2101_v54 = vsel %vm1299_vm3, %v2037_v18, 0.0  ;;  %v2172_v10 = vmul.f32 %v2037_v18, %v2037_v18  ;;  %v2772_v2 = vpop.f32.mrb[4].mxu0  ;;  %v2203_v3 = vsel %vm1299_vm3, %v2171_v53, 0.0 }
 0x28a   : > { %v2102_v52 = vadd.f32 %v2101_v54, %v2100_v12  ;;  %v2804_v43 = vadd.f32 %v2772_v2, %v2704_v48  ;;  %v1886_v44 = vpop.f32.mrb[5].mxu0  ;;  %v2208_v13 = vsel %vm1299_vm3, %v2174_v46, 0.0 }
 0x28b   : > { %v2204_v40 = vsel %vm1299_vm3, %v2172_v10, 0.0  ;;  %v2805_v27 = vadd.f32 %v1886_v44, %v1519_v4  ;;  %v2773_v60 = vpop.f32.mrb[6].mxu0 }
 0x28c   : > { %v2104_v6 = vadd.f32 %v2103_v47, %v2102_v52  ;;  %v2205_v8 = vadd.f32 %v2204_v40, %v2203_v3  ;;  %v2042_v59 = vadd.f32 %v2804_v43, %v4601_v31  ;;  %v2806_v62 = vadd.f32 %v2773_v60, %v2705_v25  ;;  %v1889_v55 = vpop.f32.mrb[7].mxu0 }
 0x28d   : > { %v2040_v0 = vadd.f32 %v2805_v27, %v4601_v31  ;;  %v2807_v61 = vadd.f32 %v1889_v55, %v1522_v26 }
 0x28e   : > { %v2207_v56 = vadd.f32 %v2206_v37, %v2205_v8  ;;  %2074 = vst.msk [vmem:[%s4607_s22 + $0x30] sm:$0xff] %vm1299_vm3, %v2042_v59  ;;  %v2106_v34 = vadd.f32 %v2105_v42, %v2104_v6  ;;  %v2043_v14 = vadd.f32 %v2806_v62, %v4601_v31  ;;  %v2177_v23 = vmul.f32 %v2042_v59, %v2042_v59 }
 0x28f   : > { %2072 = vst.msk [vmem:[%s4607_s22 + $0x20] sm:$0xff] %vm1299_vm3, %v2040_v0  ;;  %v2107_v33 = vsel %vm1299_vm3, %v2040_v0, 0.0  ;;  %v2175_v9 = vmul.f32 %v2040_v0, %v2040_v0  ;;  %v2041_v21 = vadd.f32 %v2807_v61, %v4601_v31  ;;  %v2111_v26 = vsel %vm1299_vm3, %v2042_v59, 0.0 }
 0x290   : > { %v2108_v45 = vadd.f32 %v2107_v33, %v2106_v34  ;;  %v2209_v22 = vadd.f32 %v2208_v13, %v2207_v56  ;;  %2075 = vst.msk [vmem:[%s4607_s22 + $0x38] sm:$0xff] %vm1299_vm3, %v2043_v14  ;;  %v2178_v28 = vmul.f32 %v2043_v14, %v2043_v14 }
 0x291   : > { %v2210_v29 = vsel %vm1299_vm3, %v2175_v9, 0.0  ;;  %2073 = vst.msk [vmem:[%s4607_s22 + $0x28] sm:$0xff] %vm1299_vm3, %v2041_v21  ;;  %v2109_v19 = vsel %vm1299_vm3, %v2041_v21, 0.0  ;;  %v2776_v20 = vpop.f32.mrb[8].mxu0  ;;  %v2176_v48 = vmul.f32 %v2041_v21, %v2041_v21 }
 0x292   : > { %v2211_v30 = vadd.f32 %v2210_v29, %v2209_v22  ;;  %v2110_v24 = vadd.f32 %v2109_v19, %v2108_v45  ;;  %v2808_v4 = vadd.f32 %v2776_v20, %v4585_v58  ;;  %v1902_v25 = vpop.f32.mrb[9].mxu0  ;;  %v2113_v58 = vsel %vm1299_vm3, %v2043_v14, 0.0 }
 0x293   : > { %v2809_v49 = vadd.f32 %v1902_v25, %v4587_v41  ;;  %v2777_v11 = vpop.f32.mrb[10].mxu0  ;;  %v2212_v50 = vsel %vm1299_vm3, %v2176_v48, 0.0  ;;  %v2214_v41 = vsel %vm1299_vm3, %v2177_v23, 0.0  ;;  %v2216_v10 = vsel %vm1299_vm3, %v2178_v28, 0.0 }
 0x294   : > { %v2112_v7 = vadd.f32 %v2111_v26, %v2110_v24  ;;  %v2046_v57 = vadd.f32 %v2808_v4, %v4601_v31  ;;  %v2810_v1 = vadd.f32 %v2777_v11, %v4589_v36  ;;  %v1905_v38 = vpop.f32.mrb[11].mxu0  ;;  %v2213_v63 = vadd.f32 %v2212_v50, %v2211_v30 }
 0x295   : > { %v2044_v5 = vadd.f32 %v2809_v49, %v4601_v31  ;;  %v2811_v51 = vadd.f32 %v1905_v38, %v4591_v35 }
 0x296   : > { %2078 = vst.msk [vmem:[%s4607_s22 + $0x50] sm:$0xff] %vm1299_vm3, %v2046_v57  ;;  %v2114_v53 = vadd.f32 %v2113_v58, %v2112_v7  ;;  %v2047_v18 = vadd.f32 %v2810_v1, %v4601_v31  ;;  %v2215_v39 = vadd.f32 %v2214_v41, %v2213_v63  ;;  %v2181_v47 = vmul.f32 %v2046_v57, %v2046_v57 }
 0x297   : > { %2076 = vst.msk [vmem:[%s4607_s22 + $0x40] sm:$0xff] %vm1299_vm3, %v2044_v5  ;;  %v2115_v36 = vsel %vm1299_vm3, %v2044_v5, 0.0  ;;  %v2179_v12 = vmul.f32 %v2044_v5, %v2044_v5  ;;  %v2045_v54 = vadd.f32 %v2811_v51, %v4601_v31  ;;  %v2119_v60 = vsel %vm1299_vm3, %v2046_v57, 0.0 }
 0x298   : > { %v2116_v2 = vadd.f32 %v2115_v36, %v2114_v53  ;;  %2079 = vst.msk [vmem:[%s4607_s22 + $0x58] sm:$0xff] %vm1299_vm3, %v2047_v18  ;;  %v2217_v35 = vadd.f32 %v2216_v10, %v2215_v39  ;;  %v2182_v55 = vmul.f32 %v2047_v18, %v2047_v18 }
 0x299   : > { %v2218_v46 = vsel %vm1299_vm3, %v2179_v12, 0.0  ;;  %2077 = vst.msk [vmem:[%s4607_s22 + $0x48] sm:$0xff] %vm1299_vm3, %v2045_v54  ;;  %v2117_v52 = vsel %vm1299_vm3, %v2045_v54, 0.0  ;;  %v2180_v43 = vmul.f32 %v2045_v54, %v2045_v54  ;;  %v2780_v44 = vpop.f32.mrb[12].mxu0 }
 0x29a   : > { %v2118_v3 = vadd.f32 %v2117_v52, %v2116_v2  ;;  %v2812_v40 = vadd.f32 %v2780_v44, %v4593_v16  ;;  %v1918_v27 = vpop.f32.mrb[13].mxu0  ;;  %v2219_v6 = vadd.f32 %v2218_v46, %v2217_v35  ;;  %v2121_v16 = vsel %vm1299_vm3, %v2047_v18, 0.0 }
 0x29b   : > { %v2220_v8 = vsel %vm1299_vm3, %v2180_v43, 0.0  ;;  %v2813_v59 = vadd.f32 %v1918_v27, %v4595_v32  ;;  %v2781_v62 = vpop.f32.mrb[14].mxu0  ;;  %v2222_v32 = vsel %vm1299_vm3, %v2181_v47, 0.0  ;;  %v2224_v22 = vsel %vm1299_vm3, %v2182_v55, 0.0 }
 0x29c   : > { %v2120_v37 = vadd.f32 %v2119_v60, %v2118_v3  ;;  %v2050_v42 = vadd.f32 %v2812_v40, %v4601_v31  ;;  %v2814_v0 = vadd.f32 %v2781_v62, %v4597_v17  ;;  %v1921_v61 = vpop.f32.mrb[15].mxu0  ;;  %v2221_v13 = vadd.f32 %v2220_v8, %v2219_v6 }
 0x29d   : > { %v2048_v56 = vadd.f32 %v2813_v59, %v4601_v31  ;;  %v2815_v34 = vadd.f32 %v1921_v61, %v4599_v15 }
 0x29e   : > { %2082 = vst.msk [vmem:[%s4607_s22 + $0x70] sm:$0xff] %vm1299_vm3, %v2050_v42  ;;  %v2122_v33 = vadd.f32 %v2121_v16, %v2120_v37  ;;  %v2051_v9 = vadd.f32 %v2814_v0, %v4601_v31  ;;  %v2223_v14 = vadd.f32 %v2222_v32, %v2221_v13  ;;  %v2185_v24 = vmul.f32 %v2050_v42, %v2050_v42 }
 0x29f   : > { %2080 = vst.msk [vmem:[%s4607_s22 + $0x60] sm:$0xff] %vm1299_vm3, %v2048_v56  ;;  %v2123_v17 = vsel %vm1299_vm3, %v2048_v56, 0.0  ;;  %v2183_v21 = vmul.f32 %v2048_v56, %v2048_v56  ;;  %v2049_v45 = vadd.f32 %v2815_v34, %v4601_v31  ;;  %v2127_v25 = vsel %vm1299_vm3, %v2050_v42, 0.0 }
 0x2a0   : > { %v2124_v23 = vadd.f32 %v2123_v17, %v2122_v33  ;;  %2083 = vst.msk [vmem:[%s4607_s22 + $0x78] sm:$0xff] %vm1299_vm3, %v2051_v9  ;;  %v2225_v15 = vadd.f32 %v2224_v22, %v2223_v14  ;;  %v2186_v11 = vmul.f32 %v2051_v9, %v2051_v9  ;;  %v2129_v57 = vsel %vm1299_vm3, %v2051_v9, 0.0 }
 0x2a1   : > { %v2226_v29 = vsel %vm1299_vm3, %v2183_v21, 0.0  ;;  %2081 = vst.msk [vmem:[%s4607_s22 + $0x68] sm:$0xff] %vm1299_vm3, %v2049_v45  ;;  %v2125_v19 = vsel %vm1299_vm3, %v2049_v45, 0.0  ;;  %v2184_v20 = vmul.f32 %v2049_v45, %v2049_v45  ;;  %v2784_v30 = vpop.f32.mrb[16].mxu0  ;;  %v2230_v38 = vsel %vm1299_vm3, %v2185_v24, 0.0 }
 0x2a2   : > { %v2126_v48 = vadd.f32 %v2125_v19, %v2124_v23  ;;  %v1934_v4 = vpop.f32.mrb[17].mxu0  ;;  %v2227_v26 = vadd.f32 %v2226_v29, %v2225_v15  ;;  %v2232_v5 = vsel %vm1299_vm3, %v2186_v11, 0.0 }
 0x2a3   : > { %v2228_v28 = vsel %vm1299_vm3, %v2184_v20, 0.0  ;;  %v2785_v49 = vpop.f32.mrb[18].mxu0 }
 0x2a4   : > { %v2128_v7 = vadd.f32 %v2127_v25, %v2126_v48  ;;  %v1937_v50 = vpop.f32.mrb[19].mxu0  ;;  %v2229_v1 = vadd.f32 %v2228_v28, %v2227_v26 }
 0x2a6   : > { %v2130_v58 = vadd.f32 %v2129_v57, %v2128_v7  ;;  %v2231_v63 = vadd.f32 %v2230_v38, %v2229_v1 }
 0x2a8   : > { %v2233_v51 = vadd.f32 %v2232_v5, %v2231_v63 }
 0x2a9   : > { %v2788_v41 = vpop.f32.mrb[20].mxu0 }
 0x2aa   : > { %v1950_v53 = vpop.f32.mrb[21].mxu0 }
 0x2ab   : > { %v2789_v18 = vpop.f32.mrb[22].mxu0 }
 0x2ac   : > { %v2750_v39 = vpop.f32.mrb[16].mxu1  ;;  %v1953_v36 = vpop.f32.mrb[23].mxu0 }
 0x2ad   : > { %v2816_v12 = vadd.f32 %v2784_v30, %v2750_v39  ;;  %v1734_v54 = vpop.f32.mrb[17].mxu1 }
 0x2ae   : > { %v2817_v10 = vadd.f32 %v1934_v4, %v1734_v54  ;;  %v2751_v2 = vpop.f32.mrb[18].mxu1 }
 0x2af   : > { %v2054_v35 = vadd.f32 %v2816_v12, %v4601_v31  ;;  %v2818_v46 = vadd.f32 %v2785_v49, %v2751_v2  ;;  %v1737_v52 = vpop.f32.mrb[19].mxu1 }
 0x2b0   : > { %v2052_v43 = vadd.f32 %v2817_v10, %v4601_v31  ;;  %v2819_v44 = vadd.f32 %v1937_v50, %v1737_v52 }
 0x2b1   : > { %2086 = vst.msk [vmem:[%s4607_s22 + $0x90] sm:$0xff] %vm1299_vm3, %v2054_v35  ;;  %v2055_v47 = vadd.f32 %v2818_v46, %v4601_v31  ;;  %v2792_v3 = vpop.f32.mrb[24].mxu0  ;;  %v2189_v62 = vmul.f32 %v2054_v35, %v2054_v35  ;;  %v2135_v33 = vsel %vm1299_vm3, %v2054_v35, 0.0 }
 0x2b2   : > { %2084 = vst.msk [vmem:[%s4607_s22 + $0x80] sm:$0xff] %vm1299_vm3, %v2052_v43  ;;  %v2131_v40 = vsel %vm1299_vm3, %v2052_v43, 0.0  ;;  %v2187_v27 = vmul.f32 %v2052_v43, %v2052_v43  ;;  %v2053_v60 = vadd.f32 %v2819_v44, %v4601_v31  ;;  %v1966_v6 = vpop.f32.mrb[25].mxu0 }
 0x2b3   : > { %v2132_v8 = vadd.f32 %v2131_v40, %v2130_v58  ;;  %2087 = vst.msk [vmem:[%s4607_s22 + $0x98] sm:$0xff] %vm1299_vm3, %v2055_v47  ;;  %v2793_v59 = vpop.f32.mrb[26].mxu0  ;;  %v2190_v13 = vmul.f32 %v2055_v47, %v2055_v47  ;;  %v2238_v29 = vsel %vm1299_vm3, %v2189_v62, 0.0  ;;  %v2137_v19 = vsel %vm1299_vm3, %v2055_v47, 0.0 }
 0x2b4   : > { %v2234_v55 = vsel %vm1299_vm3, %v2187_v27, 0.0  ;;  %2085 = vst.msk [vmem:[%s4607_s22 + $0x88] sm:$0xff] %vm1299_vm3, %v2053_v60  ;;  %v2133_v37 = vsel %vm1299_vm3, %v2053_v60, 0.0  ;;  %v2188_v42 = vmul.f32 %v2053_v60, %v2053_v60  ;;  %v2754_v0 = vpop.f32.mrb[20].mxu1  ;;  %v1969_v61 = vpop.f32.mrb[27].mxu0 }
 0x2b5   : > { %v2235_v16 = vadd.f32 %v2234_v55, %v2233_v51  ;;  %v2134_v56 = vadd.f32 %v2133_v37, %v2132_v8  ;;  %v2820_v34 = vadd.f32 %v2788_v41, %v2754_v0  ;;  %v1750_v32 = vpop.f32.mrb[21].mxu1  ;;  %v2240_v24 = vsel %vm1299_vm3, %v2190_v13, 0.0 }
 0x2b6   : > { %v2236_v9 = vsel %vm1299_vm3, %v2188_v42, 0.0  ;;  %v2821_v14 = vadd.f32 %v1950_v53, %v1750_v32  ;;  %v2755_v17 = vpop.f32.mrb[22].mxu1 }
 0x2b7   : > { %v2136_v21 = vadd.f32 %v2135_v33, %v2134_v56  ;;  %v2237_v45 = vadd.f32 %v2236_v9, %v2235_v16  ;;  %v2058_v22 = vadd.f32 %v2820_v34, %v4601_v31  ;;  %v2822_v23 = vadd.f32 %v2789_v18, %v2755_v17  ;;  %v1753_v15 = vpop.f32.mrb[23].mxu1 }
 0x2b8   : > { %v2056_v20 = vadd.f32 %v2821_v14, %v4601_v31  ;;  %v2823_v30 = vadd.f32 %v1953_v36, %v1753_v15 }
 0x2b9   : > { %v2239_v48 = vadd.f32 %v2238_v29, %v2237_v45  ;;  %2090 = vst.msk [vmem:[%s4607_s22 + $0xb0] sm:$0xff] %vm1299_vm3, %v2058_v22  ;;  %v2138_v4 = vadd.f32 %v2137_v19, %v2136_v21  ;;  %v2796_v25 = vpop.f32.mrb[28].mxu0  ;;  %v2059_v49 = vadd.f32 %v2822_v23, %v4601_v31  ;;  %v2193_v38 = vmul.f32 %v2058_v22, %v2058_v22 }
 0x2ba   : > { %2088 = vst.msk [vmem:[%s4607_s22 + $0xa0] sm:$0xff] %vm1299_vm3, %v2056_v20  ;;  %v2139_v26 = vsel %vm1299_vm3, %v2056_v20, 0.0  ;;  %v2191_v28 = vmul.f32 %v2056_v20, %v2056_v20  ;;  %v2057_v11 = vadd.f32 %v2823_v30, %v4601_v31  ;;  %v1982_v7 = vpop.f32.mrb[29].mxu0  ;;  %v2143_v12 = vsel %vm1299_vm3, %v2058_v22, 0.0 }
 0x2bb   : > { %v2140_v50 = vadd.f32 %v2139_v26, %v2138_v4  ;;  %v2241_v57 = vadd.f32 %v2240_v24, %v2239_v48  ;;  %v2797_v1 = vpop.f32.mrb[30].mxu0  ;;  %2091 = vst.msk [vmem:[%s4607_s22 + $0xb8] sm:$0xff] %vm1299_vm3, %v2059_v49  ;;  %v2194_v54 = vmul.f32 %v2059_v49, %v2059_v49  ;;  %v2145_v47 = vsel %vm1299_vm3, %v2059_v49, 0.0 }
 0x2bc   : > { %v2242_v58 = vsel %vm1299_vm3, %v2191_v28, 0.0  ;;  %2089 = vst.msk [vmem:[%s4607_s22 + $0xa8] sm:$0xff] %vm1299_vm3, %v2057_v11  ;;  %v2141_v63 = vsel %vm1299_vm3, %v2057_v11, 0.0  ;;  %v2758_v5 = vpop.f32.mrb[24].mxu1  ;;  %v1985_v51 = vpop.f32.mrb[31].mxu0  ;;  %v2192_v18 = vmul.f32 %v2057_v11, %v2057_v11  ;;  %v2246_v60 = vsel %vm1299_vm3, %v2193_v38, 0.0 }
 0x2bd   : > { %v2243_v41 = vadd.f32 %v2242_v58, %v2241_v57  ;;  %v2142_v53 = vadd.f32 %v2141_v63, %v2140_v50  ;;  %v2824_v39 = vadd.f32 %v2792_v3, %v2758_v5  ;;  %v1766_v36 = vpop.f32.mrb[25].mxu1  ;;  %v2248_v42 = vsel %vm1299_vm3, %v2194_v54, 0.0 }
 0x2be   : > { %v2825_v10 = vadd.f32 %v1966_v6, %v1766_v36  ;;  %v2759_v2 = vpop.f32.mrb[26].mxu1  ;;  %v2244_v46 = vsel %vm1299_vm3, %v2192_v18, 0.0 }
 0x2bf   : > { %v2144_v35 = vadd.f32 %v2143_v12, %v2142_v53  ;;  %v2062_v52 = vadd.f32 %v2824_v39, %v4601_v31  ;;  %v2826_v43 = vadd.f32 %v2793_v59, %v2759_v2  ;;  %v1769_v44 = vpop.f32.mrb[27].mxu1  ;;  %v2245_v40 = vadd.f32 %v2244_v46, %v2243_v41 }
 0x2c0   : > { %v2060_v3 = vadd.f32 %v2825_v10, %v4601_v31  ;;  %v2827_v27 = vadd.f32 %v1969_v61, %v1769_v44 }
 0x2c1   : > { %2094 = vst.msk [vmem:[%s4607_s22 + $0xd0] sm:$0xff] %vm1299_vm3, %v2062_v52  ;;  %v2146_v6 = vadd.f32 %v2145_v47, %v2144_v35  ;;  %v2063_v8 = vadd.f32 %v2826_v43, %v4601_v31  ;;  %v2247_v62 = vadd.f32 %v2246_v60, %v2245_v40  ;;  %v2197_v32 = vmul.f32 %v2062_v52, %v2062_v52 }
 0x2c2   : > { %2092 = vst.msk [vmem:[%s4607_s22 + $0xc0] sm:$0xff] %vm1299_vm3, %v2060_v3  ;;  %v2147_v59 = vsel %vm1299_vm3, %v2060_v3, 0.0  ;;  %v2195_v55 = vmul.f32 %v2060_v3, %v2060_v3  ;;  %v2061_v37 = vadd.f32 %v2827_v27, %v4601_v31  ;;  %v2151_v17 = vsel %vm1299_vm3, %v2062_v52, 0.0 }
 0x2c3   : > { %v2148_v0 = vadd.f32 %v2147_v59, %v2146_v6  ;;  %2095 = vst.msk [vmem:[%s4607_s22 + $0xd8] sm:$0xff] %vm1299_vm3, %v2063_v8  ;;  %v2249_v61 = vadd.f32 %v2248_v42, %v2247_v62  ;;  %v2198_v15 = vmul.f32 %v2063_v8, %v2063_v8  ;;  %v2153_v24 = vsel %vm1299_vm3, %v2063_v8, 0.0 }
 0x2c4   : > { %v2250_v16 = vsel %vm1299_vm3, %v2195_v55, 0.0  ;;  %2093 = vst.msk [vmem:[%s4607_s22 + $0xc8] sm:$0xff] %vm1299_vm3, %v2061_v37  ;;  %v2149_v13 = vsel %vm1299_vm3, %v2061_v37, 0.0  ;;  %v2196_v56 = vmul.f32 %v2061_v37, %v2061_v37  ;;  %v2762_v34 = vpop.f32.mrb[28].mxu1  ;;  %v2254_v26 = vsel %vm1299_vm3, %v2197_v32, 0.0 }
 0x2c5   : > { %v2150_v33 = vadd.f32 %v2149_v13, %v2148_v0  ;;  %v2828_v9 = vadd.f32 %v2796_v25, %v2762_v34  ;;  %v1782_v14 = vpop.f32.mrb[29].mxu1  ;;  %v2251_v21 = vadd.f32 %v2250_v16, %v2249_v61 }
 0x2c6   : > { %v2252_v45 = vsel %vm1299_vm3, %v2196_v56, 0.0  ;;  %v2829_v22 = vadd.f32 %v1982_v7, %v1782_v14  ;;  %v2763_v23 = vpop.f32.mrb[30].mxu1 }
 0x2c7   : > { %v2152_v29 = vadd.f32 %v2151_v17, %v2150_v33  ;;  %v2066_v19 = vadd.f32 %v2828_v9, %v4601_v31  ;;  %v2830_v20 = vadd.f32 %v2797_v1, %v2763_v23  ;;  %v1785_v30 = vpop.f32.mrb[31].mxu1  ;;  %v2253_v48 = vadd.f32 %v2252_v45, %v2251_v21 }
 0x2c8   : > { %v2064_v4 = vadd.f32 %v2829_v22, %v4601_v31  ;;  %v2831_v25 = vadd.f32 %v1985_v51, %v1785_v30  ;;  %v2256_v1 = vsel %vm1299_vm3, %v2198_v15, 0.0 }
 0x2c9   : > { %2098 = vst.msk [vmem:[%s4607_s22 + $0xf0] sm:$0xff] %vm1299_vm3, %v2066_v19  ;;  %v2154_v28 = vadd.f32 %v2153_v24, %v2152_v29  ;;  %v2067_v49 = vadd.f32 %v2830_v20, %v4601_v31  ;;  %v2255_v11 = vadd.f32 %v2254_v26, %v2253_v48  ;;  %v2201_v41 = vmul.f32 %v2066_v19, %v2066_v19 }
 0x2ca   : > { %2096 = vst.msk [vmem:[%s4607_s22 + $0xe0] sm:$0xff] %vm1299_vm3, %v2064_v4  ;;  %v2155_v7 = vsel %vm1299_vm3, %v2064_v4, 0.0  ;;  %v2199_v50 = vmul.f32 %v2064_v4, %v2064_v4  ;;  %v2065_v57 = vadd.f32 %v2831_v25, %v4601_v31 }
 0x2cb   : > { %v2156_v38 = vadd.f32 %v2155_v7, %v2154_v28  ;;  %2099 = vst.msk [vmem:[%s4607_s22 + $0xf8] sm:$0xff] %vm1299_vm3, %v2067_v49  ;;  %v2257_v58 = vadd.f32 %v2256_v1, %v2255_v11 }
 0x2cc   : > { %v2258_v63 = vsel %vm1299_vm3, %v2199_v50, 0.0  ;;  %2097 = vst.msk [vmem:[%s4607_s22 + $0xe8] sm:$0xff] %vm1299_vm3, %v2065_v57  ;;  %v2157_v5 = vsel %vm1299_vm3, %v2065_v57, 0.0  ;;  %v2200_v51 = vmul.f32 %v2065_v57, %v2065_v57 }
 0x2cd   : > { %v2158_v31 = vadd.f32 %v2157_v5, %v2156_v38 }
 0x2ce   : > { %3391 = shalt.err (!%p3388_p2)
}
 0x2cf   : > { %s3392_s24 = scalar_lea.hbm %s4764_s7, 4096  ;;  %s3396_s27 = scalar_lea.hbm %s4980_s28, 8192 }
 0x2d0   : > { %p3393_p6 = scmp.ne.s32.totalorder %s4764_s7, %s3392_s24  ;;  %p3397_p10 = scmp.lt.u32.totalorder %s4764_s7, %s4980_s28 }
 0x2d1   : > { %p3398_p5 = scmp.lt.u32.totalorder %s3396_s27, %s3392_s24  ;;  %p3400_p11 = scmp.lt.u32.totalorder %s3392_s24, %s4764_s7 }
 0x2d2   : > { %p3394_p9 = pnand %p3393_p6, %p4982_p8 }
 0x2d3   : > { %p3399_p7 = por %p3398_p5, %p3397_p10 }
 0x2d4   : > { %p3395_p13 = pneg %p3394_p9 }
 0x2d5   : > { %p3401_p4 = por %p3400_p11, %p3399_p7 }
 0x2d7   : > { %p3402_p12 = pnand %p3401_p4, %p3395_p13 }
 0x2d9   : > { %3405 = shalt.err (!%p3402_p12)
}
 0x2da   : > { %s3546_s17 = smov 128   ;;  %v2159_v53 = vsel %vm1299_vm3, %v2066_v19, 0.0  ;;  %v2259_v18 = vadd.f32 %v2258_v63, %v2257_v58  ;;  %v2260_v39 = vsel %vm1299_vm3, %v2200_v51, 0.0  ;;  %v2202_v36 = vmul.f32 %v2067_v49, %v2067_v49  ;;  %s544_s22 = scalar_lea.vmem [#allocation15], %s3912_s26 }
 0x2db   : > { %2890 = dma.vmem_to_hbm [thread:$0]  (%p4982_p8), %s4770_s3, 4096, %s4764_s7, %s2274_s23, %s3546_s17, %s3546_s17, %s3544_s1   ;;  %v2160_v12 = vadd.f32 %v2159_v53, %v2158_v31  ;;  %v2161_v54 = vsel %vm1299_vm3, %v2067_v49, 0.0  ;;  %v2262_v2 = vsel %vm1299_vm3, %v2201_v41, 0.0  ;;  %vm2169_vm6 = vcmask 24576  }
 0x2dc   : > { %v2261_v10 = vadd.f32 %v2260_v39, %v2259_v18  ;;  %v2264_v52 = vsel %vm1299_vm3, %v2202_v36, 0.0  ;;  %s2635_s1 = sshll.u32 %s3524_s12, 4  ;;  %s2315_s30 = sshll.u32 %s544_s22, 4  ;;  %s4819_s30 = int_to_ptr.vmem [resolvable:$true] %s2315_s30 }
 0x2dd   : > { %v2162_v35 = vadd.f32 %v2161_v54, %v2160_v12  ;;  %s550_s3 = scalar_lea.vmem [#allocation17], %s3912_s26  ;;  %s4983_s7 = sld [smem:[#allocation36_spill]] }
 0x2de   : > { %v2263_v46 = vadd.f32 %v2262_v2, %v2261_v10  ;;  %s2329_s16 = sshll.u32 %s550_s3, 4  ;;  %s4984_s8 = sld [smem:[#allocation37_spill]]  ;;  %s4827_s16 = int_to_ptr.vmem [resolvable:$true] %s2329_s16 }
 0x2df   : > { %v2163_v43 = vrot.slane %v2162_v35, 4  ;;  %s4831_s9 = scalar_lea.sflag [#allocation16], %s469_s19  ;;  %s3406_s24 = scalar_lea.vmem %s4819_s30, 16 }
 0x2e0   : > { %v2265_v44 = vadd.f32 %v2264_v52, %v2263_v46  ;;  %p3407_p1 = scmp.ne.s32.totalorder %s4819_s30, %s3406_s24  ;;  %s3547_s25 = smov [#allocation15]  }
 0x2e1   : > { %v2164_v47 = vadd.f32 %v2163_v43, %v2162_v35  ;;  %s3410_s18 = sshll.u32 %s3547_s25, 4  ;;  %s3411_s18 = int_to_ptr.vmem [resolvable:$false] %s3410_s18 }
 0x2e2   : > { %v2266_v40 = vrot.slane %v2265_v44, 4  ;;  %p3408_p3 = pnand %p3407_p1, %p4982_p8  ;;  %s3412_s27 = scalar_lea.vmem %s3411_s18, 32 }
 0x2e3   : > { %v2165_v3 = vrot.slane %v2164_v47, 2  ;;  %s4817_s23 = scalar_lea.hbm %s4983_s7, %s2635_s1  ;;  %p3413_p2 = scmp.lt.s32.totalorder %s4819_s30, %s3411_s18 }
 0x2e4   : > { %v2267_v27 = vadd.f32 %v2266_v40, %v2265_v44  ;;  %s4825_s11 = scalar_lea.hbm %s4984_s8, %s2635_s1  ;;  %p3409_p0 = pneg %p3408_p3 }
 0x2e5   : > { %v2166_v60 = vadd.f32 %v2165_v3, %v2164_v47  ;;  %p3414_p6 = scmp.lt.s32.totalorder %s3412_s27, %s3406_s24 }
 0x2e6   : > { %v2268_v6 = vrot.slane %v2267_v27, 2 }
 0x2e7   : > { %v2167_v8 = vrot.slane %v2166_v60, 1  ;;  %p3415_p9 = por %p3414_p6, %p3413_p2 }
 0x2e8   : > { %v2269_v62 = vadd.f32 %v2268_v6, %v2267_v27 }
 0x2e9   : > { %v2168_v59 = vadd.f32 %v2167_v8, %v2166_v60  ;;  %p3416_p13 = pnand %p3415_p9, %p3409_p0 }
 0x2ea   : > { %v2270_v55 = vrot.slane %v2269_v62, 1 }
 0x2eb   : > { %2170 = vst.msk [vmem:[%s544_s22] sm:$0x1] %vm2169_vm6, %v2168_v59 }
 0x2ec   : > { %3419 = shalt.err (!%p3416_p13)
}
 0x2ed   : > { %s3420_s15 = scalar_lea.hbm %s4817_s23, 16  ;;  %s3424_s5 = scalar_lea.hbm %s4983_s7, 32 }
 0x2ee   : > { %p3421_p10 = scmp.ne.s32.totalorder %s4817_s23, %s3420_s15  ;;  %p3425_p11 = scmp.lt.u32.totalorder %s4817_s23, %s4983_s7 }
 0x2ef   : > { %p3426_p4 = scmp.lt.u32.totalorder %s3424_s5, %s3420_s15  ;;  %p3428_p1 = scmp.lt.u32.totalorder %s3420_s15, %s4817_s23 }
 0x2f0   : > { %p3422_p5 = pnand %p3421_p10, %p4982_p8 }
 0x2f1   : > { %p3427_p12 = por %p3426_p4, %p3425_p11 }
 0x2f2   : > { %p3423_p7 = pneg %p3422_p5 }
 0x2f3   : > { %p3429_p3 = por %p3428_p1, %p3427_p12 }
 0x2f5   : > { %p3430_p0 = pnand %p3429_p3, %p3423_p7 }
 0x2f7   : > { %3433 = shalt.err (!%p3430_p0)
}
 0x2f8   : > { %2891 = dma.vmem_to_hbm [thread:$0]  (%p4982_p8), %s4819_s30, 16, %s4817_s23, %s4831_s9   ;;  %v2271_v37 = vadd.f32 %v2270_v55, %v2269_v62 }
 0x2f9   : > { %s3434_s22 = scalar_lea.vmem %s4827_s16, 16  ;;  %s3548_s29 = smov [#allocation17]  }
 0x2fa   : > { %2272 = vst.msk [vmem:[%s550_s3] sm:$0x1] %vm2169_vm6, %v2271_v37  ;;  %p3435_p2 = scmp.ne.s32.totalorder %s4827_s16, %s3434_s22  ;;  %s3438_s14 = sshll.u32 %s3548_s29, 4  ;;  %s3439_s14 = int_to_ptr.vmem [resolvable:$false] %s3438_s14 }
 0x2fb   : > { %s3440_s12 = scalar_lea.vmem %s3439_s14, 32  ;;  %p3441_p13 = scmp.lt.s32.totalorder %s4827_s16, %s3439_s14 }
 0x2fc   : > { %p3436_p6 = pnand %p3435_p2, %p4982_p8  ;;  %p3442_p10 = scmp.lt.s32.totalorder %s3440_s12, %s3434_s22 }
 0x2fe   : > { %p3437_p9 = pneg %p3436_p6  ;;  %p3443_p5 = por %p3442_p10, %p3441_p13 }
 0x300   : > { %p3444_p7 = pnand %p3443_p5, %p3437_p9 }
 0x302   : > { %3447 = shalt.err (!%p3444_p7)
}
 0x303   : > { %s3448_s26 = scalar_lea.hbm %s4825_s11, 16  ;;  %s3452_s23 = scalar_lea.hbm %s4984_s8, 32 }
 0x304   : > { %p3449_p11 = scmp.ne.s32.totalorder %s4825_s11, %s3448_s26  ;;  %p3453_p1 = scmp.lt.u32.totalorder %s4825_s11, %s4984_s8 }
 0x305   : > { %p3454_p3 = scmp.lt.u32.totalorder %s3452_s23, %s3448_s26  ;;  %p3456_p2 = scmp.lt.u32.totalorder %s3448_s26, %s4825_s11 }
 0x306   : > { %p3450_p4 = pnand %p3449_p11, %p4982_p8 }
 0x307   : > { %p3455_p0 = por %p3454_p3, %p3453_p1 }
 0x308   : > { %p3451_p12 = pneg %p3450_p4 }
 0x309   : > { %p3457_p6 = por %p3456_p2, %p3455_p0 }
 0x30b   : > { %p3458_p9 = pnand %p3457_p6, %p3451_p12 }
 0x30d   : > { %3461 = shalt.err (!%p3458_p9)
}
 0x30e   : > { %2892 = dma.vmem_to_hbm [thread:$0]  (%p4982_p8), %s4827_s16, 16, %s4825_s11, %s4831_s9  }
 0x30f PF: > { %s4985_s25 = sld [smem:[#allocation24_spill]]  ;;  %s4986_s18 = sld [smem:[#allocation28_spill]] }
 0x310   : > { %s4987_s27 = sld [smem:[#allocation27_spill]] }
 0x315   : > { %s2341_s15 = sand.u32 1, %s4985_s25   ;;  %p4988_p13 = scmp.ne.s32.totalorder %s4986_s18, 0 }
 0x316   : > { %p4989_p10 = scmp.ge.s32.totalorder %s4987_s27, 2  ;;  %s2342_s19 = scalar_lea.sflag [#allocation4], %s2341_s15 }
 0x318   : > { %p2920_p5 = pnand %p4989_p10, %p4988_p13 }
 0x31a   : > { %3503 = dma.done.wait (!%p2920_p5), %s2342_s19, 4096  }
 0x31b   : > { %3505 = vsyncadd (!%p2920_p5), %s2342_s19, 4294963200  ;;  %s4990_s13 = sadd.s32 4294967294, %s4987_s27  }
 0x31c   : > { %s2350_s5 = sand.u32 1, %s4990_s13  }
 0x31d   : > { %s2351_s17 = scalar_lea.sflag [#allocation16], %s2350_s5 }
 0x31e   : > { %3507 = dma.done.wait (!%p2920_p5), %s2351_s17, 32  }
 0x31f   : > { %3509 = vsyncadd (!%p2920_p5), %s2351_s17, 4294967264  ;;  %s34_s14 = sadd.s32 1, %s4987_s27   ;;  %s4991_s20 = sld [smem:[#allocation25_spill]] }
 0x320   : > { %p31_p8 = scmp.ge.s32.totalorder %s34_s14, 4   ;;  %s4992_s11 = sld [smem:[#allocation31_spill]] }
 0x321   : > { %s4993_s12 = sld [smem:[#allocation26_spill]]  ;;  %s4994_s13 = sld [smem:[#allocation29_spill]] }
 0x322   : > { %s4995_s30 = smov %s3516_s10  ;;  %33 = sbr.rel (!%p31_p8) target bundleno = 19 (0x13), region = 167 }
 0x325   : > { %s4996_s10 = smov %s4991_s20 }
 0x329   :  { %2363 = vsyncpa [#allocation3], 1 }
 0x32a   :  { %2365 = vsyncpa [#allocation3 + $0x1], 1 }
 0x32b   :  { %2366 = vsyncpa [#allocation6], 1 }
 0x32c   :  { %2368 = vsyncpa [#allocation6 + $0x1], 1 }
 0x32d   :  { %2369 = vsyncpa [#allocation9], 1 }
 0x32e   :  { %2370 = vsyncpa [#allocation12], 1 }
 0x32f   :  { %2371 = vsyncpa [#allocation4], 1 }
 0x330   :  { %2373 = vsyncpa [#allocation4 + $0x1], 1 }
 0x331   :  { %2374 = vsyncpa [#allocation16], 1 }
 0x332   :  { %2376 = vsyncpa [#allocation16 + $0x1], 1 }

// kernel: up_block_forward.5
= control target key start
LH: loop header
LB: loop body
LE: loop exit
PB: predicated region body
PF: predicated region fallthrough
CT: control target
= control target key end

     0   :  { %s7684_s0 = inlined_call_operand.hbm [shape: f32[2,16,16,4], index: 0, kind: input, shape index: {}, may-alias: {0,1,2}]   ;;  %s7685_s1 = inlined_call_operand.hbm [shape: f32[2,16,16,4], index: 1, kind: input, shape index: {}, may-alias: {0,1,2}]   ;;  %s7686_s2 = inlined_call_operand.hbm [shape: f32[2,16,16,4], index: 2, kind: input, shape index: {}, may-alias: {0,1,2}]   ;;  %s7687_s3 = inlined_call_operand.hbm [shape: f32[3,12,4], index: 3, kind: input, shape index: {}]   ;;  %s7688_s4 = inlined_call_operand.hbm [shape: f32[2,16,16,4], index: 4, kind: input, shape index: {}, may-alias: {4,5,6}]   ;;  %s7689_s5 = inlined_call_operand.hbm [shape: f32[2,16,16,4], index: 5, kind: input, shape index: {}, may-alias: {4,5,6}]   ;;  %s7690_s6 = inlined_call_operand.hbm [shape: f32[2,16,16,4], index: 6, kind: input, shape index: {}, may-alias: {4,5,6}]   ;;  %s7691_s7 = inlined_call_operand.hbm [shape: f32[3,12,4], index: 7, kind: input, shape index: {}]   ;;  %s7692_s8 = inlined_call_operand.hbm [shape: f32[1,4], index: 8, kind: input, shape index: {}]   ;;  %s7693_s9 = inlined_call_operand.hbm [shape: f32[2,16,16,4], index: 9, kind: output, shape index: {0}]   ;;  %s7694_s10 = inlined_call_operand.hbm [shape: f32[2,1,1,4], index: 10, kind: output, shape index: {1}]   ;;  %s7695_s11 = inlined_call_operand.hbm [shape: f32[2,1,1,4], index: 11, kind: output, shape index: {2}]  }
   0x1   :  { %7755 = sst [smem:[#allocation65_spill]] %s7684_s0 }
   0x2   :  { %7756 = sst [smem:[#allocation66_spill]] %s7685_s1 }
   0x3   :  { %7757 = sst [smem:[#allocation67_spill]] %s7686_s2 }
   0x4   :  { %7758 = sst [smem:[#allocation68_spill]] %s7691_s7 }
   0x5   :  { %7759 = sst [smem:[#allocation69_spill]] %s7693_s9 }
   0x6   :  { %7760 = sst [smem:[#allocation70_spill]] %s7694_s10 }
   0x7   :  { %7761 = sst [smem:[#allocation71_spill]] %s7695_s11 }
   0x8   :  { %17 = vsyncpa [#allocation3], 0 }
   0x9   :  { %19 = vsyncpa [#allocation3 + $0x1], 0 }
   0xa   :  { %20 = vsyncpa [#allocation6], 0 }
   0xb   :  { %22 = vsyncpa [#allocation6 + $0x1], 0 }
   0xc   :  { %23 = vsyncpa [#allocation9], 0 }
   0xd   :  { %24 = vsyncpa [#allocation4], 0 }
   0xe   :  { %26 = vsyncpa [#allocation4 + $0x1], 0 }
   0xf   :  { %27 = vsyncpa [#allocation17], 0 }
  0x10   :  { %29 = vsyncpa [#allocation17 + $0x1], 0  ;;  %s5716_s17 = smov 0   ;;  %s5718_s18 = smov 0  }
  0x11   :  { %s5720_s19 = smov 0   ;;  %s5722_s20 = smov 0  }
  0x12   :  { %s5724_s21 = smov 0   ;;  %s5726_s22 = smov 0  }
  0x13 LB: > { %7762 = sst [smem:[#allocation29_spill]] %s5617_s17  ;;  %s5747_s23 = sadd.s32 4294967295, %s5637_s22   ;;  %s5637_s22 = sphi %s5726_s22, %s35_s22   ;;  %s5633_s21 = sphi %s5724_s21, %s7878_s21   ;;  %s5629_s20 = sphi %s5722_s20, %s7877_s20   ;;  %s5625_s19 = sphi %s5720_s19, %s7876_s19   ;;  %s5621_s18 = sphi %s5718_s18, %s7875_s18   ;;  %s5617_s17 = sphi %s5716_s17, %s7874_s17  }
  0x14   : > { %7763 = sst [smem:[#allocation30_spill]] %s5621_s18  ;;  %s7696_s24 = sadd.s32 4294967294, %s5637_s22  }
  0x15   : > { %7764 = sst [smem:[#allocation31_spill]] %s5625_s19  ;;  %p69_p0 = scmp.ne.s32.totalorder %s5621_s18, %s5617_s17 }
  0x16   : > { %7765 = sst [smem:[#allocation32_spill]] %s5629_s20  ;;  %p7699_p1 = scmp.eq.s32.totalorder %s5747_s23, 0 }
  0x17   : > { %7766 = sst [smem:[#allocation33_spill]] %s5633_s21  ;;  %p336_p3 = scmp.eq.s32.totalorder %s7696_s24, 1 }
  0x18   : > { %7767 = sst [smem:[#allocation34_spill]] %s5637_s22  ;;  %p5758_p4 = por %p7699_p1, %p69_p0 }
  0x19   : > { %p4089_p5 = scmp.ge.s32.totalorder %s5637_s22, 1  ;;  %p5763_p6 = por %p336_p3, %p69_p0 }
  0x1a   : > { %s7768_s25 = scalar_select %p5758_p4, 1, 0 }
  0x1b   : > { %s7770_s26 = scalar_select %p5763_p6, 1, 0 }
  0x1c   : > { %7769 = sst [smem:[#allocation35_spill]] %s7768_s25  ;;  %p399_p7 = scmp.lt.s32.totalorder %s5637_s22, 3 }
  0x1d   : > { %7771 = sst [smem:[#allocation36_spill]] %s7770_s26  ;;  %s5639_s28 = smov [#allocation13]  }
  0x1e   : > { %p5768_p8 = pnand %p4089_p5, %p399_p7  ;;  %s424_s29 = sshll.u32 %s5639_s28, 4  ;;  %s425_s29 = int_to_ptr.vmem [resolvable:$true] %s424_s29 }
  0x1f   : > { %s47_s12 = sadd.s32 1, %s5633_s21  ;;  %s7774_s7 = sld [smem:[#allocation68_spill]] }
  0x20   : > { %s7772_s27 = scalar_select %p5768_p8, 1, 0 }
  0x21   : > { %p4740_p10 = pneg %p5768_p8 }
  0x23   : > { %p5777_p11 = pnand %p4740_p10, %p7699_p1 }
  0x25   : > { %s7773_s30 = scalar_select %p5777_p11, 1, 0 }
  0x26   : > { %s5203_s15 = scalar_lea.hbm %s7774_s7, 768  ;;  %p5790_p13 = pneg %p5777_p11 }
  0x27   : > { %p5204_p12 = scmp.ne.s32.totalorder %s7774_s7, %s5203_s15  ;;  %p5210_p5 = scmp.lt.u32.totalorder %s5203_s15, %s7774_s7 }
  0x28   : > { %s7775_s26 = scalar_select %p5790_p13, 1, 0 }
  0x29   : > { %p5206_p0 = pnand %p5790_p13, %p5204_p12 }
  0x2b   : > { %p5207_p3 = pneg %p5206_p0 }
  0x2d   : > { %p5212_p7 = pnand %p5210_p5, %p5207_p3 }
  0x2f   : > { %5215 = shalt.err (!%p5212_p7)
}
  0x30   : > { %s5216_s13 = scalar_lea.vmem %s425_s29, 768  ;;  %p5224_p2 = scmp.lt.s32.totalorder %s425_s29, %s425_s29 }
  0x31   : > { %p5217_p10 = scmp.ne.s32.totalorder %s425_s29, %s5216_s13  ;;  %p5225_p6 = scmp.lt.s32.totalorder %s5216_s13, %s5216_s13 }
  0x33   : > { %p5219_p9 = pnand %p5217_p10, %p5790_p13  ;;  %p5226_p4 = por %p5225_p6, %p5224_p2 }
  0x35   : > { %p5220_p1 = pneg %p5219_p9 }
  0x37   : > { %p5227_p8 = pnand %p5226_p4, %p5220_p1 }
  0x39   : > { %5230 = shalt.err (!%p5227_p8)
}
  0x3a   : > { %s7702_s24 = smov 128   ;;  %s7704_s17 = smov 8  }
  0x3b   : > { %4746 = dma.hbm_to_vmem [thread:$0]  (!%p5777_p11), %s7774_s7, 768, %s425_s29, [#allocation6], %s7702_s24, %s7702_s24, %s7704_s17  }
  0x3c   : > { %p49_p1 = scmp.ge.s32.totalorder %s47_s12, 2  ;;  %s56_s16 = sadd.s32 1, %s5625_s19 }
  0x3d   : > { %p63_p2 = scmp.ne.s32.totalorder %s5625_s19, %s5621_s18  ;;  %p64_p4 = scmp.eq.s32.totalorder %s5637_s22, 0 }
  0x3e   : > { %s7880_s12 = smov (%p49_p1, %s47_s12), 0  ;;  %p7778_p8 = scmp.eq.s32.totalorder %s5747_s23, 1 }
  0x3f   : > { %7776 = sst [smem:[#allocation37_spill]] %s7880_s12  ;;  %p5815_p6 = por %p64_p4, %p63_p2 }
  0x40   : > { %p5821_p9 = por %p7778_p8, %p63_p2  ;;  %s51_s14 = ssub.s32 %s5633_s21, %s7880_s12 }
  0x41   : > { %p4782_p12 = scmp.lt.s32.totalorder %s5637_s22, 2  ;;  %p54_p0 = scmp.eq.s32.totalorder %s51_s14, 0 }
  0x42   : > { %s7779_s13 = scalar_select %p5821_p9, 1, 0 }
  0x43   : > { %s451_s15 = sand.u32 1, %s5625_s19   ;;  %s5836_s7 = sshll.u32 %s5633_s21, 12 }
  0x44   : > { %7780 = sst [smem:[#allocation38_spill]] %s7779_s13  ;;  %s5833_s17 = sshll.u32 %s451_s15, 8 }
  0x45   : > { %s5831_s24 = scalar_select %p54_p0, %s5625_s19, %s56_s16  }
  0x46   : > { %s7782_s0 = sld [smem:[#allocation65_spill]]  ;;  %s453_s14 = scalar_lea.vmem [#allocation2], %s5833_s17 }
  0x47   : > { %7781 = sst [smem:[#allocation39_spill]] %s5831_s24  ;;  %s463_s29 = sshll.u32 %s453_s14, 4  ;;  %s5851_s29 = int_to_ptr.vmem [resolvable:$true] %s463_s29 }
  0x48   : > { %p5847_p3 = pnand %p4782_p12, %p5815_p6  ;;  %s5853_s12 = sshll.u32 %s451_s15, 4 }
  0x49   : > { %s7784_s21 = sand.u32 1, %s5637_s22  }
  0x4a   : > { %s7783_s16 = scalar_select %p5847_p3, 1, 0 }
  0x4b   : > { %s5857_s10 = scalar_lea.sflag [#allocation3], %s7784_s21  ;;  %p5863_p7 = pneg %p5847_p3 }
  0x4c   : > { %s5842_s9 = scalar_lea.hbm %s7782_s0, %s5836_s7  ;;  %s5236_s19 = scalar_lea.hbm %s7782_s0, 8192 }
  0x4d   : > { %s5231_s11 = scalar_lea.hbm %s5842_s9, 4096  ;;  %p5237_p2 = scmp.lt.u32.totalorder %s5842_s9, %s7782_s0 }
  0x4e   : > { %p5232_p5 = scmp.ne.s32.totalorder %s5842_s9, %s5231_s11  ;;  %p5238_p4 = scmp.lt.u32.totalorder %s5236_s19, %s5231_s11 }
  0x4f   : > { %p5240_p8 = scmp.lt.u32.totalorder %s5231_s11, %s5842_s9 }
  0x50   : > { %p5234_p10 = pnand %p5863_p7, %p5232_p5  ;;  %p5239_p6 = por %p5238_p4, %p5237_p2 }
  0x52   : > { %p5235_p1 = pneg %p5234_p10  ;;  %p5241_p12 = por %p5240_p8, %p5239_p6 }
  0x54   : > { %p5242_p0 = pnand %p5241_p12, %p5235_p1 }
  0x56   : > { %5245 = shalt.err (!%p5242_p0)
}
  0x57   : > { %s5246_s21 = scalar_lea.vmem %s5851_s29, 4096  ;;  %s5642_s28 = smov [#allocation2]  }
  0x58   : > { %p5247_p5 = scmp.ne.s32.totalorder %s5851_s29, %s5246_s21  ;;  %s5251_s14 = sshll.u32 %s5642_s28, 4  ;;  %s5252_s14 = int_to_ptr.vmem [resolvable:$false] %s5251_s14 }
  0x59   : > { %s5253_s13 = scalar_lea.vmem %s5252_s14, 8192  ;;  %p5254_p11 = scmp.lt.s32.totalorder %s5851_s29, %s5252_s14 }
  0x5a   : > { %p5249_p10 = pnand %p5247_p5, %p5863_p7  ;;  %p5255_p13 = scmp.lt.s32.totalorder %s5253_s13, %s5246_s21 }
  0x5c   : > { %p5250_p9 = pneg %p5249_p10  ;;  %p5256_p2 = por %p5255_p13, %p5254_p11 }
  0x5e   : > { %p5257_p4 = pnand %p5256_p2, %p5250_p9 }
  0x60   : > { %5260 = shalt.err (!%p5257_p4)
}
  0x61   : > { %s7786_s19 = smov 8   ;;  %s7787_s11 = smov 128  }
  0x62   : > { %4753 = dma.hbm_to_vmem [thread:$0]  (!%p5847_p3), %s5842_s9, 4096, %s5851_s29, %s5857_s10, %s7787_s11, %s7787_s11, %s7786_s19  }
  0x63   : > { %s531_s15 = scalar_lea.vmem [#allocation10], %s5833_s17  ;;  %s7788_s1 = sld [smem:[#allocation66_spill]] }
  0x64   : > { %s541_s28 = sshll.u32 %s531_s15, 4  ;;  %s477_s0 = scalar_lea.vmem [#allocation5], %s5853_s12  ;;  %s5897_s28 = int_to_ptr.vmem [resolvable:$true] %s541_s28 }
  0x65   : > { %s490_s20 = sshll.u32 %s477_s0, 4  ;;  %s7789_s25 = sand.u32 1, %s5637_s22   ;;  %s5900_s20 = int_to_ptr.vmem [resolvable:$true] %s490_s20 }
  0x66   : > { %s5904_s18 = scalar_lea.sflag [#allocation6], %s7789_s25 }
  0x69   : > { %s5895_s13 = scalar_lea.hbm %s7788_s1, %s5836_s7  ;;  %s5266_s15 = scalar_lea.hbm %s7788_s1, 8192 }
  0x6a   : > { %s5261_s9 = scalar_lea.hbm %s5895_s13, 256  ;;  %p5267_p1 = scmp.lt.u32.totalorder %s5895_s13, %s7788_s1 }
  0x6b   : > { %p5262_p11 = scmp.ne.s32.totalorder %s5895_s13, %s5261_s9  ;;  %p5268_p6 = scmp.lt.u32.totalorder %s5266_s15, %s5261_s9 }
  0x6c   : > { %p5270_p12 = scmp.lt.u32.totalorder %s5261_s9, %s5895_s13 }
  0x6d   : > { %p5264_p13 = pnand %p5262_p11, %p5863_p7  ;;  %p5269_p8 = por %p5268_p6, %p5267_p1 }
  0x6f   : > { %p5265_p9 = pneg %p5264_p13  ;;  %p5271_p0 = por %p5270_p12, %p5269_p8 }
  0x71   : > { %p5272_p5 = pnand %p5271_p0, %p5265_p9 }
  0x73   : > { %5275 = shalt.err (!%p5272_p5)
}
  0x74   : > { %s5276_s0 = scalar_lea.vmem %s5900_s20, 256  ;;  %s5643_s25 = smov [#allocation5]  }
  0x75   : > { %p5277_p10 = scmp.ne.s32.totalorder %s5900_s20, %s5276_s0  ;;  %s5281_s17 = sshll.u32 %s5643_s25, 4  ;;  %s5282_s17 = int_to_ptr.vmem [resolvable:$false] %s5281_s17 }
  0x76   : > { %s5283_s29 = scalar_lea.vmem %s5282_s17, 512  ;;  %p5284_p11 = scmp.lt.s32.totalorder %s5900_s20, %s5282_s17 }
  0x77   : > { %p5279_p2 = pnand %p5277_p10, %p5863_p7  ;;  %p5285_p13 = scmp.lt.s32.totalorder %s5283_s29, %s5276_s0 }
  0x79   : > { %p5280_p4 = pneg %p5279_p2  ;;  %p5286_p1 = por %p5285_p13, %p5284_p11 }
  0x7b   : > { %p5287_p6 = pnand %p5286_p1, %p5280_p4 }
  0x7d   : > { %5290 = shalt.err (!%p5287_p6)
}
  0x7e   : > { %4756 = dma.hbm_to_vmem [thread:$0]  (!%p5847_p3), %s5895_s13, 256, %s5900_s20, %s5904_s18, %s7787_s11, %s7787_s11, %s7786_s19  }
  0x7f   : > { %s5644_s9 = smov [#allocation8]   ;;  %s7727_s21 = sadd.s32 3840, %s5836_s7 }
  0x80   : > { %s411_s15 = sshll.u32 %s5644_s9, 4  ;;  %s5291_s25 = scalar_lea.hbm %s7687_s3, 768  ;;  %s412_s15 = int_to_ptr.vmem [resolvable:$true] %s411_s15 }
  0x81   : > { %p5292_p9 = scmp.ne.s32.totalorder %s7687_s3, %s5291_s25  ;;  %p7790_p8 = scmp.ne.s32.totalorder %s7775_s26, 0 }
  0x82   : > { %p5298_p5 = scmp.lt.u32.totalorder %s5291_s25, %s7687_s3 }
  0x83   : > { %p5294_p12 = pnand %p5292_p9, %p7790_p8 }
  0x85   : > { %p5295_p0 = pneg %p5294_p12 }
  0x87   : > { %p5300_p10 = pnand %p5298_p5, %p5295_p0 }
  0x89   : > { %5303 = shalt.err (!%p5300_p10)
}
  0x8a   : > { %s5304_s20 = scalar_lea.vmem %s412_s15, 768  ;;  %p5312_p13 = scmp.lt.s32.totalorder %s412_s15, %s412_s15 }
  0x8b   : > { %p5305_p2 = scmp.ne.s32.totalorder %s412_s15, %s5304_s20  ;;  %p5313_p1 = scmp.lt.s32.totalorder %s5304_s20, %s5304_s20 }
  0x8d   : > { %p5307_p4 = pnand %p5305_p2, %p7790_p8  ;;  %p5314_p6 = por %p5313_p1, %p5312_p13 }
  0x8f   : > { %p5308_p11 = pneg %p5307_p4 }
  0x91   : > { %p5315_p3 = pnand %p5314_p6, %p5308_p11 }
  0x93   : > { %5318 = shalt.err (!%p5315_p3)
}
  0x94   : > { %p7791_p9 = scmp.ne.s32.totalorder %s7773_s30, 0  ;;  %s7792_s2 = sld [smem:[#allocation67_spill]] }
  0x95   : > { %s504_s0 = scalar_lea.vmem [#allocation7], %s5853_s12  ;;  %s5967_s20 = scalar_lea.hbm %s7688_s4, %s5836_s7 }
  0x96   : > { %4743 = dma.hbm_to_vmem [thread:$0]  (!%p7791_p9), %s7687_s3, 768, %s412_s15, [#allocation9], %s7787_s11, %s7787_s11, %s7786_s19  }
  0x97   : > { %s517_s25 = sshll.u32 %s504_s0, 4  ;;  %s5961_s25 = int_to_ptr.vmem [resolvable:$true] %s517_s25 }
  0x9a   : > { %s5958_s14 = scalar_lea.hbm %s7792_s2, %s7727_s21  ;;  %s5324_s13 = scalar_lea.hbm %s7792_s2, 8192 }
  0x9b   : > { %s5319_s15 = scalar_lea.hbm %s5958_s14, 256  ;;  %p5325_p5 = scmp.lt.u32.totalorder %s5958_s14, %s7792_s2 }
  0x9c   : > { %p5320_p3 = scmp.ne.s32.totalorder %s5958_s14, %s5319_s15  ;;  %p5326_p10 = scmp.lt.u32.totalorder %s5324_s13, %s5319_s15 }
  0x9d   : > { %p5328_p4 = scmp.lt.u32.totalorder %s5319_s15, %s5958_s14 }
  0x9e   : > { %p5322_p12 = pnand %p5320_p3, %p5863_p7  ;;  %p5327_p2 = por %p5326_p10, %p5325_p5 }
  0xa0   : > { %p5323_p0 = pneg %p5322_p12  ;;  %p5329_p11 = por %p5328_p4, %p5327_p2 }
  0xa2   : > { %p5330_p13 = pnand %p5329_p11, %p5323_p0 }
  0xa4   : > { %5333 = shalt.err (!%p5330_p13)
}
  0xa5   : > { %s5334_s0 = scalar_lea.vmem %s5961_s25, 256  ;;  %s5645_s17 = smov [#allocation7]  }
  0xa6   : > { %p5335_p1 = scmp.ne.s32.totalorder %s5961_s25, %s5334_s0  ;;  %s5339_s29 = sshll.u32 %s5645_s17, 4  ;;  %s5340_s29 = int_to_ptr.vmem [resolvable:$false] %s5339_s29 }
  0xa7   : > { %s5341_s21 = scalar_lea.vmem %s5340_s29, 512  ;;  %p5342_p12 = scmp.lt.s32.totalorder %s5961_s25, %s5340_s29 }
  0xa8   : > { %p5337_p6 = pnand %p5335_p1, %p5863_p7  ;;  %p5343_p9 = scmp.lt.s32.totalorder %s5341_s21, %s5334_s0 }
  0xaa   : > { %p5338_p3 = pneg %p5337_p6  ;;  %p5344_p5 = por %p5343_p9, %p5342_p12 }
  0xac   : > { %p5345_p10 = pnand %p5344_p5, %p5338_p3 }
  0xae   : > { %5348 = shalt.err (!%p5345_p10)
}
  0xaf   : > { %p7793_p0 = scmp.ne.s32.totalorder %s7783_s16, 0  ;;  %s5349_s15 = scalar_lea.hbm %s5967_s20, 4096 }
  0xb0   : > { %p5350_p2 = scmp.ne.s32.totalorder %s5967_s20, %s5349_s15  ;;  %s5354_s13 = scalar_lea.hbm %s7688_s4, 8192 }
  0xb1   : > { %4759 = dma.hbm_to_vmem [thread:$0]  (!%p7793_p0), %s5958_s14, 256, %s5961_s25, %s5904_s18, %s7787_s11, %s7787_s11, %s7786_s19  }
  0xb2   : > { %p5352_p9 = pnand %p5350_p2, %p5863_p7  ;;  %p5355_p11 = scmp.lt.u32.totalorder %s5967_s20, %s7688_s4 }
  0xb3   : > { %p5356_p13 = scmp.lt.u32.totalorder %s5354_s13, %s5349_s15  ;;  %p5358_p6 = scmp.lt.u32.totalorder %s5349_s15, %s5967_s20 }
  0xb4   : > { %p5353_p4 = pneg %p5352_p9 }
  0xb5   : > { %p5357_p1 = por %p5356_p13, %p5355_p11 }
  0xb7   : > { %p5359_p3 = por %p5358_p6, %p5357_p1 }
  0xb9   : > { %p5360_p12 = pnand %p5359_p3, %p5353_p4 }
  0xbb   : > { %5363 = shalt.err (!%p5360_p12)
}
  0xbc   : > { %s5364_s14 = scalar_lea.vmem %s5897_s28, 4096  ;;  %s5646_s25 = smov [#allocation10]  }
  0xbd   : > { %p5365_p5 = scmp.ne.s32.totalorder %s5897_s28, %s5364_s14  ;;  %s5369_s17 = sshll.u32 %s5646_s25, 4  ;;  %s5370_s17 = int_to_ptr.vmem [resolvable:$false] %s5369_s17 }
  0xbe   : > { %s5371_s29 = scalar_lea.vmem %s5370_s17, 8192  ;;  %p5372_p9 = scmp.lt.s32.totalorder %s5897_s28, %s5370_s17 }
  0xbf   : > { %p5367_p10 = pnand %p5365_p5, %p5863_p7  ;;  %p5373_p8 = scmp.lt.s32.totalorder %s5371_s29, %s5364_s14 }
  0xc1   : > { %p5368_p2 = pneg %p5367_p10  ;;  %p5374_p11 = por %p5373_p8, %p5372_p9 }
  0xc3   : > { %p5375_p13 = pnand %p5374_p11, %p5368_p2 }
  0xc5   : > { %5378 = shalt.err (!%p5375_p13)
}
  0xc6   : > { %4762 = dma.hbm_to_vmem [thread:$0]  (!%p7793_p0), %s5967_s20, 4096, %s5897_s28, %s5857_s10, %s7787_s11, %s7787_s11, %s7786_s19  }
  0xc7   : > { %s5647_s21 = smov [#allocation14]   ;;  %s6023_s13 = scalar_lea.hbm %s7689_s5, %s5836_s7 }
  0xc8   : > { %s438_s15 = sshll.u32 %s5647_s21, 4  ;;  %s555_s9 = scalar_lea.vmem [#allocation11], %s5853_s12  ;;  %s439_s15 = int_to_ptr.vmem [resolvable:$true] %s438_s15 }
  0xc9   : > { %s568_s0 = sshll.u32 %s555_s9, 4  ;;  %s5379_s17 = scalar_lea.hbm %s7692_s8, 16  ;;  %s6044_s0 = int_to_ptr.vmem [resolvable:$true] %s568_s0 }
  0xca   : > { %p5380_p8 = scmp.ne.s32.totalorder %s7692_s8, %s5379_s17  ;;  %p7794_p4 = scmp.ne.s32.totalorder %s7775_s26, 0 }
  0xcb   : > { %p5386_p3 = scmp.lt.u32.totalorder %s5379_s17, %s7692_s8 }
  0xcc   : > { %p5382_p1 = pnand %p5380_p8, %p7794_p4 }
  0xce   : > { %p5383_p6 = pneg %p5382_p1 }
  0xd0   : > { %p5388_p12 = pnand %p5386_p3, %p5383_p6 }
  0xd2   : > { %5391 = shalt.err (!%p5388_p12)
}
  0xd3   : > { %s5392_s21 = scalar_lea.vmem %s439_s15, 16  ;;  %s5399_s1 = scalar_lea.vmem %s439_s15, 32 }
  0xd4   : > { %p5393_p5 = scmp.ne.s32.totalorder %s439_s15, %s5392_s21  ;;  %p5400_p9 = scmp.lt.s32.totalorder %s439_s15, %s439_s15 }
  0xd5   : > { %p5401_p11 = scmp.lt.s32.totalorder %s5399_s1, %s5392_s21 }
  0xd6   : > { %p5395_p10 = pnand %p5393_p5, %p7794_p4 }
  0xd7   : > { %p5402_p13 = por %p5401_p11, %p5400_p9 }
  0xd8   : > { %p5396_p2 = pneg %p5395_p10 }
  0xda   : > { %p5403_p0 = pnand %p5402_p13, %p5396_p2 }
  0xdc   : > { %5406 = shalt.err (!%p5403_p0)
}
  0xdd   : > { %p7795_p8 = scmp.ne.s32.totalorder %s7773_s30, 0  ;;  %s5407_s26 = scalar_lea.hbm %s6023_s13, 256 }
  0xde   : > { %p5408_p4 = scmp.ne.s32.totalorder %s6023_s13, %s5407_s26  ;;  %s5412_s30 = scalar_lea.hbm %s7689_s5, 8192 }
  0xdf   : > { %4749 = dma.hbm_to_vmem [thread:$0]  (!%p7795_p8), %s7692_s8, 16, %s439_s15, [#allocation9]  }
  0xe0   : > { %p5410_p1 = pnand %p5408_p4, %p5863_p7  ;;  %p5413_p0 = scmp.lt.u32.totalorder %s6023_s13, %s7689_s5 }
  0xe1   : > { %p5414_p3 = scmp.lt.u32.totalorder %s5412_s30, %s5407_s26  ;;  %p5416_p5 = scmp.lt.u32.totalorder %s5407_s26, %s6023_s13 }
  0xe2   : > { %p5411_p6 = pneg %p5410_p1 }
  0xe3   : > { %p5415_p12 = por %p5414_p3, %p5413_p0 }
  0xe5   : > { %p5417_p10 = por %p5416_p5, %p5415_p12 }
  0xe7   : > { %p5418_p2 = pnand %p5417_p10, %p5411_p6 }
  0xe9   : > { %5421 = shalt.err (!%p5418_p2)
}
  0xea   : > { %s5422_s15 = scalar_lea.vmem %s6044_s0, 256  ;;  %s5648_s29 = smov [#allocation11]  }
  0xeb   : > { %p5423_p9 = scmp.ne.s32.totalorder %s6044_s0, %s5422_s15  ;;  %s5427_s28 = sshll.u32 %s5648_s29, 4  ;;  %s5428_s28 = int_to_ptr.vmem [resolvable:$false] %s5427_s28 }
  0xec   : > { %s5429_s20 = scalar_lea.vmem %s5428_s28, 512  ;;  %p5430_p8 = scmp.lt.s32.totalorder %s6044_s0, %s5428_s28 }
  0xed   : > { %p5425_p11 = pnand %p5423_p9, %p5863_p7  ;;  %p5431_p4 = scmp.lt.s32.totalorder %s5429_s20, %s5422_s15 }
  0xef   : > { %p5426_p13 = pneg %p5425_p11  ;;  %p5432_p1 = por %p5431_p4, %p5430_p8 }
  0xf1   : > { %p5433_p0 = pnand %p5432_p1, %p5426_p13 }
  0xf3   : > { %5436 = shalt.err (!%p5433_p0)
}
  0xf4   : > { %p7796_p6 = scmp.ne.s32.totalorder %s7783_s16, 0  ;;  %s7797_s21 = sadd.s32 3840, %s5836_s7 }
  0xf5   : > { %s6076_s22 = scalar_lea.hbm %s7690_s6, %s7797_s21  ;;  %s582_s26 = scalar_lea.vmem [#allocation12], %s5853_s12 }
  0xf6   : > { %4765 = dma.hbm_to_vmem [thread:$0]  (!%p7796_p6), %s6023_s13, 256, %s6044_s0, %s5904_s18, %s7787_s11, %s7787_s11, %s7786_s19  }
  0xf7   : > { %s595_s9 = sshll.u32 %s582_s26, 4  ;;  %s5437_s14 = scalar_lea.hbm %s6076_s22, 256  ;;  %s6079_s9 = int_to_ptr.vmem [resolvable:$true] %s595_s9 }
  0xf8   : > { %p5438_p3 = scmp.ne.s32.totalorder %s6076_s22, %s5437_s14  ;;  %s5442_s13 = scalar_lea.hbm %s7690_s6, 8192 }
  0xf9   : > { %p5443_p10 = scmp.lt.u32.totalorder %s6076_s22, %s7690_s6  ;;  %p5444_p2 = scmp.lt.u32.totalorder %s5442_s13, %s5437_s14 }
  0xfa   : > { %p5440_p12 = pnand %p5438_p3, %p5863_p7  ;;  %p5446_p11 = scmp.lt.u32.totalorder %s5437_s14, %s6076_s22 }
  0xfb   : > { %p5445_p9 = por %p5444_p2, %p5443_p10 }
  0xfc   : > { %p5441_p5 = pneg %p5440_p12 }
  0xfd   : > { %p5447_p13 = por %p5446_p11, %p5445_p9 }
  0xff   : > { %p5448_p8 = pnand %p5447_p13, %p5441_p5 }
 0x101   : > { %5451 = shalt.err (!%p5448_p8)
}
 0x102   : > { %s5452_s12 = scalar_lea.vmem %s6079_s9, 256  ;;  %s5649_s25 = smov [#allocation12]  }
 0x103   : > { %p5453_p4 = scmp.ne.s32.totalorder %s6079_s9, %s5452_s12  ;;  %s5457_s17 = sshll.u32 %s5649_s25, 4  ;;  %s5458_s17 = int_to_ptr.vmem [resolvable:$false] %s5457_s17 }
 0x104   : > { %s5459_s15 = scalar_lea.vmem %s5458_s17, 512  ;;  %p5460_p3 = scmp.lt.s32.totalorder %s6079_s9, %s5458_s17 }
 0x105   : > { %p5455_p1 = pnand %p5453_p4, %p5863_p7  ;;  %p5461_p12 = scmp.lt.s32.totalorder %s5459_s15, %s5452_s12 }
 0x107   : > { %p5456_p0 = pneg %p5455_p1  ;;  %p5462_p10 = por %p5461_p12, %p5460_p3 }
 0x109   : > { %p5463_p2 = pnand %p5462_p10, %p5456_p0 }
 0x10b   : > { %5466 = shalt.err (!%p5463_p2)
}
 0x10c   : > { %4768 = dma.hbm_to_vmem [thread:$0]  (!%p7796_p6), %s6076_s22, 256, %s6079_s9, %s5857_s10, %s7787_s11, %s7787_s11, %s7786_s19  }
 0x10d   : > { %p7798_p7 = scmp.ne.s32.totalorder %s7772_s27, 0 }
 0x10f   : > { %607 = sbr.rel (%p7798_p7) target bundleno = 993 (0x3e1), region = 56 }
 0x116   : > { %s7799_s24 = sld [smem:[#allocation30_spill]]  ;;  %s6109_s28 = sand.u32 1, %s5747_s23  }
 0x117   : > { %s7800_s29 = sld [smem:[#allocation35_spill]]  ;;  %s610_s21 = scalar_lea.sflag [#allocation3], %s6109_s28 }
 0x11c   : > { %s6112_s20 = sand.u32 1, %s7799_s24  }
 0x11d   : > { %s6115_s16 = sshll.u32 %s6112_s20, 8  ;;  %p7801_p5 = scmp.ne.s32.totalorder %s7800_s29, 0 }
 0x11e   : > { %s6119_s1 = scalar_lea.vmem [#allocation2], %s6115_s16 }
 0x11f   : > { %5576 = dma.done.wait (%p7801_p5), %s610_s21, 4096  }
 0x120   : > { %5578 = vsyncadd (%p7801_p5), %s610_s21, 4294963200  ;;  %s6126_s27 = sshll.u32 %s6112_s20, 4  ;;  %s619_s10 = scalar_lea.sflag [#allocation6], %s6109_s28 }
 0x121   : > { %s622_s19 = scalar_lea.vmem [#allocation5], %s6126_s27 }
 0x122   : > { %5580 = dma.done.wait (%p7801_p5), %s619_s10, 512  }
 0x123   : > { %5582 = vsyncadd (%p7801_p5), %s619_s10, 4294966784  ;;  %s631_s11 = scalar_lea.vmem [#allocation7], %s6126_s27  ;;  %p7802_p6 = scmp.eq.s32.totalorder %s5747_s23, 0 }
 0x125   : > { %5584 = dma.done.wait (%p7802_p6), [#allocation9], 768   ;;  %p7803_p9 = pmov %p7802_p6 }
 0x126   : > { %s6140_s2 = scalar_lea.vmem [#allocation10], %s6115_s16 }
 0x127   : > { %5586 = vsyncadd (%p7803_p9), [#allocation9], 4294966528 }
 0x128   : > { %5588 = dma.done.wait (%p7801_p5), %s610_s21, 4096  }
 0x129   : > { %5590 = vsyncadd (%p7801_p5), %s610_s21, 4294963200  ;;  %s653_s22 = scalar_lea.vmem [#allocation11], %s6126_s27 }
 0x12a   : > { %5592 = dma.done.wait (%p7801_p5), %s619_s10, 256  }
 0x12b   : > { %5594 = vsyncadd (%p7801_p5), %s619_s10, 4294967040  ;;  %s662_s26 = scalar_lea.vmem [#allocation12], %s6126_s27 }
 0x12c   : > { %5596 = dma.done.wait (%p7801_p5), %s610_s21, 256  }
 0x12d   : > { %5598 = vsyncadd (%p7801_p5), %s610_s21, 4294967040  ;;  %p7804_p11 = pmov %p7802_p6 }
 0x12e   : > { %p7805_p13 = pmov %p7802_p6 }
 0x12f   : > { %5600 = dma.done.wait (%p7804_p11), [#allocation6], 768  }
 0x130   : > { %5602 = vsyncadd (%p7805_p13), [#allocation6], 4294966528  ;;  %p7806_p8 = pmov %p7802_p6 }
 0x131   : > { %p7807_p4 = pmov %p7802_p6 }
 0x132   : > { %5604 = dma.done.wait (%p7806_p8), [#allocation9], 16  }
 0x133   : > { %5606 = vsyncadd (%p7807_p4), [#allocation9], 4294967280  ;;  %v770_v0 = vld [vmem:[%s6119_s1 + $0x10] sm:$0xff]  ;;  %v771_v1 = vld [vmem:[%s6119_s1 + $0x18] sm:$0xff]  ;;  %vm846_vm0 = vcmask 1040384   ;;  %vm1023_vm1 = vcmask 1046528  }
 0x134   : > { %v768_v2 = vld [vmem:[%s6119_s1] sm:$0xff]  ;;  %v853_v3 = vrot.slane %v770_v0, 7  ;;  %v854_v4 = vrot.slane %v771_v1, 7  ;;  %v769_v5 = vld [vmem:[%s6119_s1 + $0x8] sm:$0xff]  ;;  %v2107_v7 = vld [vmem:[%s6140_s2] sm:$0xff]  ;;  %vm1200_vm2 = vcmask 1045504  }
 0x135   : > { %v850_v6 = vrot.slane %v768_v2, 7  ;;  %v2108_v8 = vld [vmem:[%s6140_s2 + $0x8] sm:$0xff]  ;;  %v851_v9 = vrot.slane %v769_v5, 7  ;;  %v2186_v10 = vrot.slane %v2107_v7, 7  ;;  %s5650_s23 = smov 4   ;;  %v2109_v40 = vld [vmem:[%s6140_s2 + $0x10] sm:$0xff] }
 0x136   : > { %v2187_v11 = vrot.slane %v2108_v8, 7  ;;  %v6171_v12 = vsel %vm846_vm0, %v853_v3, %v854_v4  ;;  %v6174_v13 = vsel %vm846_vm0, 0.0, %v853_v3  ;;  %v975_v14 = vsel %vm846_vm0, %v854_v4, 0.0  ;;  %v2110_v41 = vld [vmem:[%s6140_s2 + $0x18] sm:$0xff]  ;;  %s5651_s9 = smov 8   ;;  %v772_v58 = vld [vmem:[%s6119_s1 + $0x20] sm:$0xff] }
 0x137   : > { %v6178_v15 = vsel %vm846_vm0, 0.0, %v850_v6  ;;  %v1034_v16 = vrot.slane %v6174_v13, 1  ;;  %v1035_v17 = vrot.slane %v6171_v12, 1  ;;  %v1037_v18 = vrot.slane %v975_v14, 1  ;;  %v773_v59 = vld [vmem:[%s6119_s1 + $0x28] sm:$0xff]  ;;  %v2139_v60 = vld [vmem:[%s653_s22] sm:$0xff] }
 0x138   : > { %v1214_v19 = vrot.slane %v975_v14, 2  ;;  %v6183_v20 = vsel %vm846_vm0, %v850_v6, %v851_v9  ;;  %v974_v21 = vsel %vm846_vm0, %v851_v9, 0.0  ;;  %v1029_v22 = vrot.slane %v6178_v15, 1  ;;  %v2140_v1 = vld [vmem:[%s653_s22 + $0x8] sm:$0xff]  ;;  %v774_v2 = vld [vmem:[%s6119_s1 + $0x30] sm:$0xff]  ;;  %s7395_s14 = scalar_lea.vmem [#allocation15], %s6115_s16 }
 0x139   : > { %v1206_v23 = vrot.slane %v6178_v15, 2  ;;  %v1036_v24 = vsel %vm1023_vm1, %v1034_v16, %v1035_v17  ;;  %v1038_v25 = vsel %vm1023_vm1, %v1035_v17, %v1037_v18  ;;  %v1030_v26 = vrot.slane %v6183_v20, 1  ;;  %v775_v3 = vld [vmem:[%s6119_s1 + $0x38] sm:$0xff]  ;;  %s7862_s18 = sld [smem:[#allocation32_spill]]  ;;  %s3771_s13 = sshll.u32 %s7395_s14, 4  ;;  %s7550_s13 = int_to_ptr.vmem [resolvable:$true] %s3771_s13 }
 0x13a   : > { %v1032_v27 = vrot.slane %v974_v21, 1  ;;  %v4848_v28 = vpack.i.bf16 %v1038_v25, %v1036_v24  ;;  %v1209_v29 = vrot.slane %v974_v21, 2  ;;  %v1207_v30 = vrot.slane %v6183_v20, 2  ;;  %s7863_s12 = sld [smem:[#allocation69_spill]]  ;;  %s7864_s17 = sld [smem:[#allocation38_spill]] }
 0x13b   : > { %v6193_v31 = vsel %vm846_vm0, %v2186_v10, %v2187_v11  ;;  %v1031_v32 = vsel %vm1023_vm1, %v1029_v22, %v1030_v26  ;;  %v6198_v34 = vsel %vm846_vm0, 0.0, %v2186_v10  ;;  %v2310_v35 = vsel %vm846_vm0, %v2187_v11, 0.0  ;;  %s3747_s15 = scalar_lea.sflag [#allocation4], %s6112_s20  ;;  %s5467_s24 = scalar_lea.vmem %s7550_s13, 4096 }
 0x13c   : > { %v1033_v33 = vsel %vm1023_vm1, %v1030_v26, %v1032_v27  ;;  %4849 = vrot.lane.b32.xlu1 %v4848_v28, %s5650_s23  ;;  %v1208_v37 = vsel %vm1200_vm2, %v1206_v23, %v1207_v30  ;;  %v1210_v38 = vsel %vm1200_vm2, %v1207_v30, %v1209_v29  ;;  %v2364_v39 = vrot.slane %v6198_v34, 1  ;;  %p5468_p1 = scmp.ne.s32.totalorder %s7550_s13, %s5467_s24  ;;  %s5652_s29 = smov [#allocation15]  }
 0x13d   : > { %v4843_v36 = vpack.i.bf16 %v1033_v33, %v1031_v32  ;;  %v4853_v42 = vpack.i.bf16 %v1210_v38, %v1208_v37  ;;  %v2365_v43 = vrot.slane %v6193_v31, 1  ;;  %v2367_v44 = vrot.slane %v2310_v35, 1  ;;  %s5471_s16 = sshll.u32 %s5652_s29, 4  ;;  %s5472_s16 = int_to_ptr.vmem [resolvable:$false] %s5471_s16 }
 0x13e   : > { %v2540_v45 = vrot.slane %v6198_v34, 2  ;;  %v2541_v46 = vrot.slane %v6193_v31, 2  ;;  %v2543_v47 = vrot.slane %v2310_v35, 2  ;;  %v1211_v48 = vrot.slane %v6174_v13, 2  ;;  %s5473_s21 = scalar_lea.vmem %s5472_s16, 8192  ;;  %p5474_p10 = scmp.lt.s32.totalorder %s7550_s13, %s5472_s16 }
 0x13f   : > { %4844 = vrot.lane.b32.xlu0 %v4843_v36, %s5650_s23  ;;  %v1212_v49 = vrot.slane %v6171_v12, 2  ;;  %v2366_v50 = vsel %vm1023_vm1, %v2364_v39, %v2365_v43  ;;  %v2368_v51 = vsel %vm1023_vm1, %v2365_v43, %v2367_v44  ;;  %v2189_v52 = vrot.slane %v2109_v40, 7  ;;  %s4235_s7 = sshll.u32 %s7862_s18, 12  ;;  %p5475_p2 = scmp.lt.s32.totalorder %s5473_s21, %s5467_s24 }
 0x140   : > { %v2190_v53 = vrot.slane %v2110_v41, 7  ;;  %4854 = vrot.lane.b32.xlu1 %v4853_v42, %s5651_s9  ;;  %v4858_v54 = vpack.i.bf16 %v2368_v51, %v2366_v50  ;;  %v2542_v55 = vsel %vm1200_vm2, %v2540_v45, %v2541_v46  ;;  %v2544_v56 = vsel %vm1200_vm2, %v2541_v46, %v2543_v47  ;;  %s7544_s25 = scalar_lea.hbm %s7863_s12, %s4235_s7  ;;  %p7865_p0 = scmp.ne.s32.totalorder %s7864_s17, 0 }
 0x141   : > { %v1213_v57 = vsel %vm1200_vm2, %v1211_v48, %v1212_v49  ;;  %v4868_v61 = vpack.i.bf16 %v2544_v56, %v2542_v55  ;;  %v1215_v62 = vsel %vm1200_vm2, %v1212_v49, %v1214_v19  ;;  %v6228_v0 = vsel %vm846_vm0, 0.0, %v2189_v52  ;;  %p5476_p7 = por %p5475_p2, %p5474_p10 }
 0x142   : > { %v6225_v63 = vsel %vm846_vm0, %v2189_v52, %v2190_v53  ;;  %v4863_v4 = vpack.i.bf16 %v1215_v62, %v1213_v57  ;;  %v6236_v5 = vsel %vm846_vm0, %v2190_v53, 0.0  ;;  %v2369_v6 = vrot.slane %v6228_v0, 1  ;;  %p5469_p3 = pnand %p5468_p1, %p7865_p0 }
 0x143   : > { %4859 = vrot.lane.b32.xlu0 %v4858_v54, %s5650_s23  ;;  %v2370_v7 = vrot.slane %v6225_v63, 1  ;;  %v2372_v8 = vrot.slane %v6236_v5, 1  ;;  %v856_v9 = vrot.slane %v772_v58, 7  ;;  %v857_v10 = vrot.slane %v773_v59, 7  ;;  %v2111_v54 = vld [vmem:[%s6140_s2 + $0x20] sm:$0xff]  ;;  %v2112_v59 = vld [vmem:[%s6140_s2 + $0x28] sm:$0xff] }
 0x144   : > { %v2143_v11 = vmul.f32 0.0, %v2139_v60  ;;  %4869 = vrot.lane.b32.xlu1 %v4868_v61, %s5651_s9  ;;  %v2144_v16 = vmul.f32 0.0, %v2140_v1  ;;  %v859_v17 = vrot.slane %v774_v2, 7  ;;  %v860_v18 = vrot.slane %v775_v3, 7  ;;  %p5470_p12 = pneg %p5469_p3 }
 0x145   : > { %v2371_v14 = vsel %vm1023_vm1, %v2369_v6, %v2370_v7  ;;  %v2373_v19 = vsel %vm1023_vm1, %v2370_v7, %v2372_v8  ;;  %v6245_v21 = vsel %vm846_vm0, %v856_v9, %v857_v10  ;;  %v6248_v22 = vsel %vm846_vm0, 0.0, %v856_v9 }
 0x146   : > { %v976_v23 = vsel %vm846_vm0, %v857_v10, 0.0  ;;  %v4878_v24 = vpack.i.bf16 %v2373_v19, %v2371_v14  ;;  %v1039_v25 = vrot.slane %v6248_v22, 1  ;;  %v1040_v26 = vrot.slane %v6245_v21, 1  ;;  %p5477_p5 = pnand %p5476_p7, %p5470_p12 }
 0x147   : > { %4864 = vrot.lane.b32.xlu0 %v4863_v4, %s5651_s9  ;;  %v1042_v27 = vrot.slane %v976_v23, 1  ;;  %v2183_v28 = vrot.slane %v2143_v11, 7  ;;  %v2184_v29 = vrot.slane %v2144_v16, 7  ;;  %v1216_v30 = vrot.slane %v6248_v22, 2 }
 0x148   : > { %v1217_v32 = vrot.slane %v6245_v21, 2  ;;  %4879 = vrot.lane.b32.xlu1 %v4878_v24, %s5650_s23  ;;  %v1041_v33 = vsel %vm1023_vm1, %v1039_v25, %v1040_v26  ;;  %v1219_v36 = vrot.slane %v976_v23, 2  ;;  %v6260_v37 = vsel %vm846_vm0, %v859_v17, %v860_v18  ;;  %v2114_v25 = vld [vmem:[%s6140_s2 + $0x38] sm:$0xff] }
 0x149   : > { %v1043_v35 = vsel %vm1023_vm1, %v1040_v26, %v1042_v27  ;;  %v6263_v39 = vsel %vm846_vm0, %v2183_v28, %v2184_v29  ;;  %v6266_v40 = vsel %vm846_vm0, 0.0, %v2183_v28  ;;  %v2309_v41 = vsel %vm846_vm0, %v2184_v29, 0.0 }
 0x14a   : > { %v4873_v38 = vpack.i.bf16 %v1043_v35, %v1041_v33  ;;  %v2535_v42 = vrot.slane %v6266_v40, 2  ;;  %v2536_v43 = vrot.slane %v6263_v39, 2  ;;  %v2538_v44 = vrot.slane %v2309_v41, 2 }
 0x14b   : > { %v2359_v45 = vrot.slane %v6266_v40, 1  ;;  %v2360_v46 = vrot.slane %v6263_v39, 1  ;;  %v2362_v47 = vrot.slane %v2309_v41, 1  ;;  %v1218_v48 = vsel %vm1200_vm2, %v1216_v30, %v1217_v32 }
 0x14c   : > { %4874 = vrot.lane.b32.xlu0 %v4873_v38, %s5650_s23  ;;  %v1220_v49 = vsel %vm1200_vm2, %v1217_v32, %v1219_v36  ;;  %v2537_v50 = vsel %vm1200_vm2, %v2535_v42, %v2536_v43  ;;  %v2539_v51 = vsel %vm1200_vm2, %v2536_v43, %v2538_v44  ;;  %v6279_v53 = vsel %vm846_vm0, 0.0, %v859_v17  ;;  %v776_v43 = vld [vmem:[%s6119_s1 + $0x40] sm:$0xff] }
 0x14d   : > { %v4898_v52 = vpack.i.bf16 %v1220_v49, %v1218_v48  ;;  %v4893_v55 = vpack.i.bf16 %v2539_v51, %v2537_v50  ;;  %v2361_v56 = vsel %vm1023_vm1, %v2359_v45, %v2360_v46  ;;  %v2363_v57 = vsel %vm1023_vm1, %v2360_v46, %v2362_v47  ;;  %v777_v48 = vld [vmem:[%s6119_s1 + $0x48] sm:$0xff]  ;;  %v778_v49 = vld [vmem:[%s6119_s1 + $0x50] sm:$0xff]  ;;  %v779_v50 = vld [vmem:[%s6119_s1 + $0x58] sm:$0xff] }
 0x14e   : > { %v977_v58 = vsel %vm846_vm0, %v860_v18, 0.0  ;;  %v4883_v60 = vpack.i.bf16 %v2363_v57, %v2361_v56  ;;  %v1044_v61 = vrot.slane %v6279_v53, 1  ;;  %v1045_v62 = vrot.slane %v6260_v37, 1 }
 0x14f   : > { %v1047_v1 = vrot.slane %v977_v58, 1  ;;  %4894 = vrot.lane.b32.xlu1 %v4893_v55, %s5651_s9  ;;  %v2545_v2 = vrot.slane %v6228_v0, 2  ;;  %v2546_v3 = vrot.slane %v6225_v63, 2  ;;  %v2548_v4 = vrot.slane %v6236_v5, 2  ;;  %v2113_v5 = vld [vmem:[%s6140_s2 + $0x30] sm:$0xff] }
 0x150   : > { %v2192_v6 = vrot.slane %v2111_v54, 7  ;;  %4884 = vrot.lane.b32.xlu0 %v4883_v60, %s5650_s23  ;;  %v1046_v7 = vsel %vm1023_vm1, %v1044_v61, %v1045_v62  ;;  %v2193_v9 = vrot.slane %v2112_v59, 7  ;;  %v1221_v10 = vrot.slane %v6279_v53, 2 }
 0x151   : > { %v1048_v8 = vsel %vm1023_vm1, %v1045_v62, %v1047_v1  ;;  %v2547_v14 = vsel %vm1200_vm2, %v2545_v2, %v2546_v3  ;;  %v2549_v16 = vsel %vm1200_vm2, %v2546_v3, %v2548_v4  ;;  %v1222_v32 = vrot.slane %v6260_v37, 2 }
 0x152   : > { %v4888_v11 = vpack.i.bf16 %v1048_v8, %v1046_v7  ;;  %v6299_v17 = vsel %vm846_vm0, 0.0, %v2192_v6  ;;  %v4908_v18 = vpack.i.bf16 %v2549_v16, %v2547_v14  ;;  %v6303_v19 = vsel %vm846_vm0, %v2192_v6, %v2193_v9 }
 0x153   : > { %v2312_v23 = vsel %vm846_vm0, %v2193_v9, 0.0  ;;  %v2374_v24 = vrot.slane %v6299_v17, 1  ;;  %4899 = vrot.lane.b32.xlu1 %v4898_v52, %s5651_s9  ;;  %v2375_v26 = vrot.slane %v6303_v19, 1  ;;  %v2550_v28 = vrot.slane %v6299_v17, 2 }
 0x154   : > { %v2377_v27 = vrot.slane %v2312_v23, 1  ;;  %v2551_v29 = vrot.slane %v6303_v19, 2  ;;  %4889 = vrot.lane.b32.xlu0 %v4888_v11, %s5650_s23  ;;  %v2553_v30 = vrot.slane %v2312_v23, 2  ;;  %v1224_v33 = vrot.slane %v977_v58, 2 }
 0x155   : > { %v2195_v35 = vrot.slane %v2113_v5, 7  ;;  %v2376_v36 = vsel %vm1023_vm1, %v2374_v24, %v2375_v26  ;;  %v2196_v42 = vrot.slane %v2114_v25, 7  ;;  %v1223_v46 = vsel %vm1200_vm2, %v1221_v10, %v1222_v32 }
 0x156   : > { %v2378_v38 = vsel %vm1023_vm1, %v2375_v26, %v2377_v27  ;;  %v2552_v41 = vsel %vm1200_vm2, %v2550_v28, %v2551_v29  ;;  %v2554_v45 = vsel %vm1200_vm2, %v2551_v29, %v2553_v30  ;;  %v1225_v47 = vsel %vm1200_vm2, %v1222_v32, %v1224_v33  ;;  %v2115_v30 = vld [vmem:[%s6140_s2 + $0x40] sm:$0xff]  ;;  %v2116_v32 = vld [vmem:[%s6140_s2 + $0x48] sm:$0xff] }
 0x157   : > { %v4903_v44 = vpack.i.bf16 %v2378_v38, %v2376_v36  ;;  %4909 = vrot.lane.b32.xlu1 %v4908_v18, %s5651_s9  ;;  %v4918_v51 = vpack.i.bf16 %v2554_v45, %v2552_v41  ;;  %v4913_v52 = vpack.i.bf16 %v1225_v47, %v1223_v46  ;;  %v6326_v54 = vsel %vm846_vm0, %v2195_v35, %v2196_v42 }
 0x158   : > { %v6329_v55 = vsel %vm846_vm0, 0.0, %v2195_v35  ;;  %v2313_v56 = vsel %vm846_vm0, %v2196_v42, 0.0  ;;  %v2380_v58 = vrot.slane %v6326_v54, 1  ;;  %v862_v59 = vrot.slane %v776_v43, 7 }
 0x159   : > { %4904 = vrot.lane.b32.xlu0 %v4903_v44, %s5650_s23  ;;  %v2379_v57 = vrot.slane %v6329_v55, 1  ;;  %v2382_v60 = vrot.slane %v2313_v56, 1  ;;  %v863_v61 = vrot.slane %v777_v48, 7  ;;  %v865_v62 = vrot.slane %v778_v49, 7 }
 0x15a   : > { %v866_v1 = vrot.slane %v779_v50, 7  ;;  %v6337_v3 = vsel %vm846_vm0, 0.0, %v862_v59  ;;  %v2555_v4 = vrot.slane %v6329_v55, 2  ;;  %v2556_v6 = vrot.slane %v6326_v54, 2 }
 0x15b   : > { %v2381_v2 = vsel %vm1023_vm1, %v2379_v57, %v2380_v58  ;;  %4919 = vrot.lane.b32.xlu1 %v4918_v51, %s5651_s9  ;;  %v2383_v7 = vsel %vm1023_vm1, %v2380_v58, %v2382_v60  ;;  %v6344_v8 = vsel %vm846_vm0, %v862_v59, %v863_v61  ;;  %v978_v9 = vsel %vm846_vm0, %v863_v61, 0.0  ;;  %v2117_v60 = vld [vmem:[%s6140_s2 + $0x50] sm:$0xff]  ;;  %v2118_v61 = vld [vmem:[%s6140_s2 + $0x58] sm:$0xff] }
 0x15c   : > { %v1049_v10 = vrot.slane %v6337_v3, 1  ;;  %v4928_v11 = vpack.i.bf16 %v2383_v7, %v2381_v2  ;;  %v1050_v14 = vrot.slane %v6344_v8, 1  ;;  %v1052_v16 = vrot.slane %v978_v9, 1 }
 0x15d   : > { %4914 = vrot.lane.b32.xlu0 %v4913_v52, %s5651_s9  ;;  %v1226_v5 = vrot.slane %v6337_v3, 2  ;;  %v1227_v18 = vrot.slane %v6344_v8, 2  ;;  %v1229_v23 = vrot.slane %v978_v9, 2  ;;  %v6353_v24 = vsel %vm846_vm0, %v865_v62, %v866_v1 }
 0x15e   : > { %v6356_v25 = vsel %vm846_vm0, 0.0, %v865_v62  ;;  %v1051_v26 = vsel %vm1023_vm1, %v1049_v10, %v1050_v14  ;;  %v1053_v27 = vsel %vm1023_vm1, %v1050_v14, %v1052_v16  ;;  %v979_v28 = vsel %vm846_vm0, %v866_v1, 0.0 }
 0x15f   : > { %v1054_v29 = vrot.slane %v6356_v25, 1  ;;  %4929 = vrot.lane.b32.xlu1 %v4928_v11, %s5650_s23  ;;  %v4923_v33 = vpack.i.bf16 %v1053_v27, %v1051_v26  ;;  %v1228_v35 = vsel %vm1200_vm2, %v1226_v5, %v1227_v18  ;;  %v1230_v36 = vsel %vm1200_vm2, %v1227_v18, %v1229_v23  ;;  %v780_v18 = vld [vmem:[%s6119_s1 + $0x60] sm:$0xff] }
 0x160   : > { %v1055_v38 = vrot.slane %v6353_v24, 1  ;;  %v4938_v41 = vpack.i.bf16 %v1230_v36, %v1228_v35  ;;  %v1057_v42 = vrot.slane %v979_v28, 1  ;;  %v2557_v43 = vsel %vm1200_vm2, %v2555_v4, %v2556_v6 }
 0x161   : > { %v2558_v44 = vrot.slane %v2313_v56, 2  ;;  %4924 = vrot.lane.b32.xlu0 %v4923_v33, %s5650_s23  ;;  %v2198_v46 = vrot.slane %v2115_v30, 7  ;;  %v2199_v47 = vrot.slane %v2116_v32, 7  ;;  %v1231_v48 = vrot.slane %v6356_v25, 2  ;;  %v782_v30 = vld [vmem:[%s6119_s1 + $0x70] sm:$0xff]  ;;  %v783_v32 = vld [vmem:[%s6119_s1 + $0x78] sm:$0xff] }
 0x162   : > { %v1056_v45 = vsel %vm1023_vm1, %v1054_v29, %v1055_v38  ;;  %v1058_v49 = vsel %vm1023_vm1, %v1055_v38, %v1057_v42  ;;  %v1232_v51 = vrot.slane %v6353_v24, 2  ;;  %v1234_v52 = vrot.slane %v979_v28, 2  ;;  %v781_v29 = vld [vmem:[%s6119_s1 + $0x68] sm:$0xff] }
 0x163   : > { %v2559_v50 = vsel %vm1200_vm2, %v2556_v6, %v2558_v44  ;;  %4939 = vrot.lane.b32.xlu1 %v4938_v41, %s5651_s9  ;;  %v4933_v57 = vpack.i.bf16 %v1058_v49, %v1056_v45  ;;  %v6377_v58 = vsel %vm846_vm0, %v2198_v46, %v2199_v47  ;;  %v6380_v59 = vsel %vm846_vm0, 0.0, %v2198_v46 }
 0x164   : > { %v4948_v56 = vpack.i.bf16 %v2559_v50, %v2557_v43  ;;  %v2314_v62 = vsel %vm846_vm0, %v2199_v47, 0.0  ;;  %v2384_v1 = vrot.slane %v6380_v59, 1  ;;  %v2385_v2 = vrot.slane %v6377_v58, 1 }
 0x165   : > { %v2560_v4 = vrot.slane %v6380_v59, 2  ;;  %4934 = vrot.lane.b32.xlu0 %v4933_v57, %s5650_s23  ;;  %v2387_v6 = vrot.slane %v2314_v62, 1  ;;  %v2561_v7 = vrot.slane %v6377_v58, 2  ;;  %v2563_v9 = vrot.slane %v2314_v62, 2 }
 0x166   : > { %v1233_v10 = vsel %vm1200_vm2, %v1231_v48, %v1232_v51  ;;  %v2386_v11 = vsel %vm1023_vm1, %v2384_v1, %v2385_v2  ;;  %v1235_v14 = vsel %vm1200_vm2, %v1232_v51, %v1234_v52  ;;  %v2201_v16 = vrot.slane %v2117_v60, 7 }
 0x167   : > { %v2202_v5 = vrot.slane %v2118_v61, 7  ;;  %4949 = vrot.lane.b32.xlu1 %v4948_v56, %s5651_s9  ;;  %v2388_v23 = vsel %vm1023_vm1, %v2385_v2, %v2387_v6  ;;  %v2562_v26 = vsel %vm1200_vm2, %v2560_v4, %v2561_v7  ;;  %v2564_v27 = vsel %vm1200_vm2, %v2561_v7, %v2563_v9 }
 0x168   : > { %v4953_v28 = vpack.i.bf16 %v1235_v14, %v1233_v10  ;;  %v4943_v33 = vpack.i.bf16 %v2388_v23, %v2386_v11  ;;  %v4958_v35 = vpack.i.bf16 %v2564_v27, %v2562_v26  ;;  %v6405_v38 = vsel %vm846_vm0, 0.0, %v2201_v16  ;;  %v2120_v23 = vld [vmem:[%s6140_s2 + $0x68] sm:$0xff] }
 0x169   : > { %v6402_v36 = vsel %vm846_vm0, %v2201_v16, %v2202_v5  ;;  %v2315_v41 = vsel %vm846_vm0, %v2202_v5, 0.0  ;;  %v2389_v42 = vrot.slane %v6405_v38, 1  ;;  %v868_v44 = vrot.slane %v780_v18, 7  ;;  %v2119_v18 = vld [vmem:[%s6140_s2 + $0x60] sm:$0xff] }
 0x16a   : > { %v2390_v43 = vrot.slane %v6402_v36, 1  ;;  %4944 = vrot.lane.b32.xlu0 %v4943_v33, %s5650_s23  ;;  %v2392_v45 = vrot.slane %v2315_v41, 1  ;;  %v869_v46 = vrot.slane %v781_v29, 7  ;;  %v871_v47 = vrot.slane %v782_v30, 7 }
 0x16b   : > { %v872_v48 = vrot.slane %v783_v32, 7  ;;  %4959 = vrot.lane.b32.xlu1 %v4958_v35, %s5651_s9  ;;  %v6414_v50 = vsel %vm846_vm0, 0.0, %v868_v44  ;;  %v2565_v51 = vrot.slane %v6405_v38, 2  ;;  %v2566_v52 = vrot.slane %v6402_v36, 2 }
 0x16c   : > { %v2391_v49 = vsel %vm1023_vm1, %v2389_v42, %v2390_v43  ;;  %v2393_v57 = vsel %vm1023_vm1, %v2390_v43, %v2392_v45  ;;  %v6420_v56 = vsel %vm846_vm0, %v868_v44, %v869_v46  ;;  %v980_v60 = vsel %vm846_vm0, %v869_v46, 0.0 }
 0x16d   : > { %v1059_v61 = vrot.slane %v6414_v50, 1  ;;  %v4968_v62 = vpack.i.bf16 %v2393_v57, %v2391_v49  ;;  %v1060_v1 = vrot.slane %v6420_v56, 1  ;;  %v1062_v2 = vrot.slane %v980_v60, 1 }
 0x16e   : > { %v1236_v4 = vrot.slane %v6414_v50, 2  ;;  %4954 = vrot.lane.b32.xlu0 %v4953_v28, %s5651_s9  ;;  %v1237_v6 = vrot.slane %v6420_v56, 2  ;;  %v1239_v7 = vrot.slane %v980_v60, 2  ;;  %v6429_v9 = vsel %vm846_vm0, %v871_v47, %v872_v48 }
 0x16f   : > { %v6432_v10 = vsel %vm846_vm0, 0.0, %v871_v47  ;;  %4969 = vrot.lane.b32.xlu1 %v4968_v62, %s5650_s23  ;;  %v1061_v11 = vsel %vm1023_vm1, %v1059_v61, %v1060_v1  ;;  %v1063_v14 = vsel %vm1023_vm1, %v1060_v1, %v1062_v2  ;;  %v981_v16 = vsel %vm846_vm0, %v872_v48, 0.0  ;;  %v2121_v61 = vld [vmem:[%s6140_s2 + $0x70] sm:$0xff]  ;;  %v2122_v62 = vld [vmem:[%s6140_s2 + $0x78] sm:$0xff] }
 0x170   : > { %v1064_v5 = vrot.slane %v6432_v10, 1  ;;  %v4963_v26 = vpack.i.bf16 %v1063_v14, %v1061_v11  ;;  %v1238_v27 = vsel %vm1200_vm2, %v1236_v4, %v1237_v6  ;;  %v1240_v28 = vsel %vm1200_vm2, %v1237_v6, %v1239_v7 }
 0x171   : > { %v1065_v29 = vrot.slane %v6429_v9, 1  ;;  %v4978_v30 = vpack.i.bf16 %v1240_v28, %v1238_v27  ;;  %v1067_v32 = vrot.slane %v981_v16, 1  ;;  %v2567_v33 = vsel %vm1200_vm2, %v2565_v51, %v2566_v52 }
 0x172   : > { %v2568_v35 = vrot.slane %v2315_v41, 2  ;;  %4964 = vrot.lane.b32.xlu0 %v4963_v26, %s5650_s23  ;;  %v2204_v43 = vrot.slane %v2119_v18, 7  ;;  %v2205_v44 = vrot.slane %v2120_v23, 7  ;;  %v1241_v45 = vrot.slane %v6432_v10, 2  ;;  %v784_v26 = vld [vmem:[%s6119_s1 + $0x80] sm:$0xff] }
 0x173   : > { %v1066_v42 = vsel %vm1023_vm1, %v1064_v5, %v1065_v29  ;;  %4979 = vrot.lane.b32.xlu1 %v4978_v30, %s5651_s9  ;;  %v1068_v46 = vsel %vm1023_vm1, %v1065_v29, %v1067_v32  ;;  %v1242_v48 = vrot.slane %v6429_v9, 2  ;;  %v1244_v49 = vrot.slane %v981_v16, 2  ;;  %v785_v32 = vld [vmem:[%s6119_s1 + $0x88] sm:$0xff] }
 0x174   : > { %v2569_v47 = vsel %vm1200_vm2, %v2566_v52, %v2568_v35  ;;  %v4973_v51 = vpack.i.bf16 %v1068_v46, %v1066_v42  ;;  %v6453_v57 = vsel %vm846_vm0, %v2204_v43, %v2205_v44  ;;  %v6456_v60 = vsel %vm846_vm0, 0.0, %v2204_v43  ;;  %v787_v35 = vld [vmem:[%s6119_s1 + $0x98] sm:$0xff] }
 0x175   : > { %v4988_v41 = vpack.i.bf16 %v2569_v47, %v2567_v33  ;;  %v2316_v1 = vsel %vm846_vm0, %v2205_v44, 0.0  ;;  %v2394_v2 = vrot.slane %v6456_v60, 1  ;;  %v2395_v52 = vrot.slane %v6453_v57, 1  ;;  %v786_v33 = vld [vmem:[%s6119_s1 + $0x90] sm:$0xff] }
 0x176   : > { %v2570_v4 = vrot.slane %v6456_v60, 2  ;;  %4974 = vrot.lane.b32.xlu0 %v4973_v51, %s5650_s23  ;;  %v2397_v6 = vrot.slane %v2316_v1, 1  ;;  %v2571_v7 = vrot.slane %v6453_v57, 2  ;;  %v2573_v11 = vrot.slane %v2316_v1, 2 }
 0x177   : > { %v1243_v14 = vsel %vm1200_vm2, %v1241_v45, %v1242_v48  ;;  %4989 = vrot.lane.b32.xlu1 %v4988_v41, %s5651_s9  ;;  %v2396_v16 = vsel %vm1023_vm1, %v2394_v2, %v2395_v52  ;;  %v1245_v5 = vsel %vm1200_vm2, %v1242_v48, %v1244_v49  ;;  %v2207_v18 = vrot.slane %v2121_v61, 7 }
 0x178   : > { %v2208_v23 = vrot.slane %v2122_v62, 7  ;;  %v2398_v27 = vsel %vm1023_vm1, %v2395_v52, %v2397_v6  ;;  %v2572_v28 = vsel %vm1200_vm2, %v2570_v4, %v2571_v7  ;;  %v2574_v29 = vsel %vm1200_vm2, %v2571_v7, %v2573_v11 }
 0x179   : > { %v4993_v30 = vpack.i.bf16 %v1245_v5, %v1243_v14  ;;  %v4983_v42 = vpack.i.bf16 %v2398_v27, %v2396_v16  ;;  %v4998_v43 = vpack.i.bf16 %v2574_v29, %v2572_v28  ;;  %v6481_v45 = vsel %vm846_vm0, 0.0, %v2207_v18 }
 0x17a   : > { %v6478_v44 = vsel %vm846_vm0, %v2207_v18, %v2208_v23  ;;  %7808 = vst [vmem:[#allocation40_spill] sm:$0xff] %v6481_v45  ;;  %v2317_v46 = vsel %vm846_vm0, %v2208_v23, 0.0  ;;  %v2399_v47 = vrot.slane %v6481_v45, 1  ;;  %v874_v49 = vrot.slane %v784_v26, 7 }
 0x17b   : > { %v2400_v48 = vrot.slane %v6478_v44, 1  ;;  %4984 = vrot.lane.b32.xlu0 %v4983_v42, %s5650_s23  ;;  %4999 = vrot.lane.b32.xlu1 %v4998_v43, %s5651_s9  ;;  %v2402_v51 = vrot.slane %v2317_v46, 1  ;;  %v875_v41 = vrot.slane %v785_v32, 7  ;;  %v877_v61 = vrot.slane %v786_v33, 7  ;;  %v2124_v43 = vld [vmem:[%s6140_s2 + $0x88] sm:$0xff] }
 0x17c   : > { %v878_v62 = vrot.slane %v787_v35, 7  ;;  %v6490_v2 = vsel %vm846_vm0, 0.0, %v874_v49  ;;  %v2575_v52 = vrot.slane %v6481_v45, 2  ;;  %v2576_v4 = vrot.slane %v6478_v44, 2 }
 0x17d   : > { %v2401_v1 = vsel %vm1023_vm1, %v2399_v47, %v2400_v48  ;;  %v2403_v6 = vsel %vm1023_vm1, %v2400_v48, %v2402_v51  ;;  %v6496_v7 = vsel %vm846_vm0, %v874_v49, %v875_v41  ;;  %v982_v11 = vsel %vm846_vm0, %v875_v41, 0.0 }
 0x17e   : > { %v1069_v14 = vrot.slane %v6490_v2, 1  ;;  %v5008_v16 = vpack.i.bf16 %v2403_v6, %v2401_v1  ;;  %v1070_v5 = vrot.slane %v6496_v7, 1  ;;  %v1072_v18 = vrot.slane %v982_v11, 1 }
 0x17f   : > { %v1246_v23 = vrot.slane %v6490_v2, 2  ;;  %4994 = vrot.lane.b32.xlu0 %v4993_v30, %s5651_s9  ;;  %v1247_v26 = vrot.slane %v6496_v7, 2  ;;  %v1249_v27 = vrot.slane %v982_v11, 2  ;;  %v6505_v28 = vsel %vm846_vm0, %v877_v61, %v878_v62  ;;  %v2123_v30 = vld [vmem:[%s6140_s2 + $0x80] sm:$0xff] }
 0x180   : > { %7809 = vst [vmem:[#allocation41_spill] sm:$0xff] %v6505_v28  ;;  %v6508_v29 = vsel %vm846_vm0, 0.0, %v877_v61  ;;  %5009 = vrot.lane.b32.xlu1 %v5008_v16, %s5650_s23  ;;  %v1071_v32 = vsel %vm1023_vm1, %v1069_v14, %v1070_v5  ;;  %v1073_v33 = vsel %vm1023_vm1, %v1070_v5, %v1072_v18  ;;  %v983_v35 = vsel %vm846_vm0, %v878_v62, 0.0 }
 0x181   : > { %7810 = vst [vmem:[#allocation42_spill] sm:$0xff] %v6508_v29  ;;  %v1074_v42 = vrot.slane %v6508_v29, 1  ;;  %v5003_v47 = vpack.i.bf16 %v1073_v33, %v1071_v32  ;;  %v1248_v48 = vsel %vm1200_vm2, %v1246_v23, %v1247_v26  ;;  %v1250_v49 = vsel %vm1200_vm2, %v1247_v26, %v1249_v27  ;;  %v2125_v33 = vld [vmem:[%s6140_s2 + $0x90] sm:$0xff] }
 0x182   : > { %v1075_v51 = vrot.slane %v6505_v28, 1  ;;  %v5018_v41 = vpack.i.bf16 %v1250_v49, %v1248_v48  ;;  %v1077_v61 = vrot.slane %v983_v35, 1  ;;  %v2577_v1 = vsel %vm1200_vm2, %v2575_v52, %v2576_v4 }
 0x183   : > { %v2578_v6 = vrot.slane %v2317_v46, 2  ;;  %5004 = vrot.lane.b32.xlu0 %v5003_v47, %s5650_s23  ;;  %v2210_v11 = vrot.slane %v2123_v30, 7  ;;  %v2211_v14 = vrot.slane %v2124_v43, 7  ;;  %v1251_v16 = vrot.slane %v6508_v29, 2  ;;  %v791_v29 = vld [vmem:[%s6119_s1 + $0xb8] sm:$0xff] }
 0x184   : > { %v1076_v62 = vsel %vm1023_vm1, %v1074_v42, %v1075_v51  ;;  %5019 = vrot.lane.b32.xlu1 %v5018_v41, %s5651_s9  ;;  %v1078_v5 = vsel %vm1023_vm1, %v1075_v51, %v1077_v61  ;;  %v1252_v23 = vrot.slane %v6505_v28, 2  ;;  %v1254_v52 = vrot.slane %v983_v35, 2  ;;  %v2126_v42 = vld [vmem:[%s6140_s2 + $0x98] sm:$0xff] }
 0x185   : > { %v2579_v18 = vsel %vm1200_vm2, %v2576_v4, %v2578_v6  ;;  %v5013_v26 = vpack.i.bf16 %v1078_v5, %v1076_v62  ;;  %v6529_v27 = vsel %vm846_vm0, %v2210_v11, %v2211_v14  ;;  %v6532_v32 = vsel %vm846_vm0, 0.0, %v2210_v11  ;;  %v788_v62 = vld [vmem:[%s6119_s1 + $0xa0] sm:$0xff] }
 0x186   : > { %v5028_v46 = vpack.i.bf16 %v2579_v18, %v2577_v1  ;;  %7811 = vst [vmem:[#allocation43_spill] sm:$0xff] %v6529_v27  ;;  %7812 = vst [vmem:[#allocation44_spill] sm:$0xff] %v6532_v32  ;;  %v2318_v30 = vsel %vm846_vm0, %v2211_v14, 0.0  ;;  %v2404_v43 = vrot.slane %v6532_v32, 1  ;;  %v2405_v4 = vrot.slane %v6529_v27, 1 }
 0x187   : > { %v2580_v47 = vrot.slane %v6532_v32, 2  ;;  %5014 = vrot.lane.b32.xlu0 %v5013_v26, %s5650_s23  ;;  %v2407_v35 = vrot.slane %v2318_v30, 1  ;;  %v2581_v48 = vrot.slane %v6529_v27, 2  ;;  %v2583_v49 = vrot.slane %v2318_v30, 2  ;;  %v789_v26 = vld [vmem:[%s6119_s1 + $0xa8] sm:$0xff]  ;;  %v790_v30 = vld [vmem:[%s6119_s1 + $0xb0] sm:$0xff] }
 0x188   : > { %v1253_v51 = vsel %vm1200_vm2, %v1251_v16, %v1252_v23  ;;  %5029 = vrot.lane.b32.xlu1 %v5028_v46, %s5651_s9  ;;  %v2406_v41 = vsel %vm1023_vm1, %v2404_v43, %v2405_v4  ;;  %v1255_v61 = vsel %vm1200_vm2, %v1252_v23, %v1254_v52  ;;  %v2213_v1 = vrot.slane %v2125_v33, 7 }
 0x189   : > { %v2214_v6 = vrot.slane %v2126_v42, 7  ;;  %v2408_v11 = vsel %vm1023_vm1, %v2405_v4, %v2407_v35  ;;  %v2582_v14 = vsel %vm1200_vm2, %v2580_v47, %v2581_v48  ;;  %v2584_v5 = vsel %vm1200_vm2, %v2581_v48, %v2583_v49 }
 0x18a   : > { %v5033_v18 = vpack.i.bf16 %v1255_v61, %v1253_v51  ;;  %v5023_v16 = vpack.i.bf16 %v2408_v11, %v2406_v41  ;;  %v5038_v28 = vpack.i.bf16 %v2584_v5, %v2582_v14  ;;  %v6557_v23 = vsel %vm846_vm0, 0.0, %v2213_v1 }
 0x18b   : > { %v6554_v46 = vsel %vm846_vm0, %v2213_v1, %v2214_v6  ;;  %7814 = vst [vmem:[#allocation46_spill] sm:$0xff] %v6557_v23  ;;  %v2319_v52 = vsel %vm846_vm0, %v2214_v6, 0.0  ;;  %v2409_v33 = vrot.slane %v6557_v23, 1  ;;  %v880_v43 = vrot.slane %v788_v62, 7 }
 0x18c   : > { %7813 = vst [vmem:[#allocation45_spill] sm:$0xff] %v6554_v46  ;;  %v2410_v42 = vrot.slane %v6554_v46, 1  ;;  %5024 = vrot.lane.b32.xlu0 %v5023_v16, %s5650_s23  ;;  %5039 = vrot.lane.b32.xlu1 %v5038_v28, %s5651_s9  ;;  %v2412_v4 = vrot.slane %v2319_v52, 1  ;;  %v881_v47 = vrot.slane %v789_v26, 7  ;;  %v883_v35 = vrot.slane %v790_v30, 7 }
 0x18d   : > { %v884_v48 = vrot.slane %v791_v29, 7  ;;  %v6566_v51 = vsel %vm846_vm0, 0.0, %v880_v43  ;;  %v2585_v41 = vrot.slane %v6557_v23, 2  ;;  %v2586_v61 = vrot.slane %v6554_v46, 2 }
 0x18e   : > { %v2411_v49 = vsel %vm1023_vm1, %v2409_v33, %v2410_v42  ;;  %7815 = vst [vmem:[#allocation47_spill] sm:$0xff] %v6566_v51  ;;  %v2413_v1 = vsel %vm1023_vm1, %v2410_v42, %v2412_v4  ;;  %v6572_v6 = vsel %vm846_vm0, %v880_v43, %v881_v47  ;;  %v984_v28 = vsel %vm846_vm0, %v881_v47, 0.0 }
 0x18f   : > { %7816 = vst [vmem:[#allocation48_spill] sm:$0xff] %v6572_v6  ;;  %v1079_v62 = vrot.slane %v6566_v51, 1  ;;  %v5048_v29 = vpack.i.bf16 %v2413_v1, %v2411_v49  ;;  %v1080_v11 = vrot.slane %v6572_v6, 1  ;;  %v1082_v14 = vrot.slane %v984_v28, 1  ;;  %v2128_v49 = vld [vmem:[%s6140_s2 + $0xa8] sm:$0xff] }
 0x190   : > { %v1256_v5 = vrot.slane %v6566_v51, 2  ;;  %5034 = vrot.lane.b32.xlu0 %v5033_v18, %s5651_s9  ;;  %v1257_v26 = vrot.slane %v6572_v6, 2  ;;  %v1259_v30 = vrot.slane %v984_v28, 2  ;;  %v6581_v16 = vsel %vm846_vm0, %v883_v35, %v884_v48  ;;  %v2127_v18 = vld [vmem:[%s6140_s2 + $0xa0] sm:$0xff] }
 0x191   : > { %7817 = vst [vmem:[#allocation49_spill] sm:$0xff] %v6581_v16  ;;  %v6584_v33 = vsel %vm846_vm0, 0.0, %v883_v35  ;;  %5049 = vrot.lane.b32.xlu1 %v5048_v29, %s5650_s23  ;;  %v1081_v42 = vsel %vm1023_vm1, %v1079_v62, %v1080_v11  ;;  %v1083_v43 = vsel %vm1023_vm1, %v1080_v11, %v1082_v14  ;;  %v985_v4 = vsel %vm846_vm0, %v884_v48, 0.0 }
 0x192   : > { %7818 = vst [vmem:[#allocation50_spill] sm:$0xff] %v6584_v33  ;;  %v1084_v47 = vrot.slane %v6584_v33, 1  ;;  %v5043_v1 = vpack.i.bf16 %v1083_v43, %v1081_v42  ;;  %v1258_v28 = vsel %vm1200_vm2, %v1256_v5, %v1257_v26  ;;  %v1260_v23 = vsel %vm1200_vm2, %v1257_v26, %v1259_v30 }
 0x193   : > { %v1085_v35 = vrot.slane %v6581_v16, 1  ;;  %v5058_v46 = vpack.i.bf16 %v1260_v23, %v1258_v28  ;;  %v1087_v51 = vrot.slane %v985_v4, 1  ;;  %v2587_v29 = vsel %vm1200_vm2, %v2585_v41, %v2586_v61 }
 0x194   : > { %v2588_v62 = vrot.slane %v2319_v52, 2  ;;  %5044 = vrot.lane.b32.xlu0 %v5043_v1, %s5650_s23  ;;  %v2216_v11 = vrot.slane %v2127_v18, 7  ;;  %v2217_v14 = vrot.slane %v2128_v49, 7  ;;  %v1261_v42 = vrot.slane %v6584_v33, 2  ;;  %v2129_v18 = vld [vmem:[%s6140_s2 + $0xb0] sm:$0xff]  ;;  %v2130_v49 = vld [vmem:[%s6140_s2 + $0xb8] sm:$0xff] }
 0x195   : > { %v1086_v48 = vsel %vm1023_vm1, %v1084_v47, %v1085_v35  ;;  %5059 = vrot.lane.b32.xlu1 %v5058_v46, %s5651_s9  ;;  %v1088_v5 = vsel %vm1023_vm1, %v1085_v35, %v1087_v51  ;;  %v1262_v26 = vrot.slane %v6581_v16, 2  ;;  %v1264_v41 = vrot.slane %v985_v4, 2 }
 0x196   : > { %v2589_v23 = vsel %vm1200_vm2, %v2586_v61, %v2588_v62  ;;  %v5053_v30 = vpack.i.bf16 %v1088_v5, %v1086_v48  ;;  %v6605_v43 = vsel %vm846_vm0, %v2216_v11, %v2217_v14  ;;  %v6608_v47 = vsel %vm846_vm0, 0.0, %v2216_v11  ;;  %v792_v5 = vld [vmem:[%s6119_s1 + $0xc0] sm:$0xff] }
 0x197   : > { %v5068_v52 = vpack.i.bf16 %v2589_v23, %v2587_v29  ;;  %7819 = vst [vmem:[#allocation51_spill] sm:$0xff] %v6605_v43  ;;  %7820 = vst [vmem:[#allocation52_spill] sm:$0xff] %v6608_v47  ;;  %v2320_v46 = vsel %vm846_vm0, %v2217_v14, 0.0  ;;  %v2414_v51 = vrot.slane %v6608_v47, 1  ;;  %v2415_v61 = vrot.slane %v6605_v43, 1 }
 0x198   : > { %v2590_v1 = vrot.slane %v6608_v47, 2  ;;  %5054 = vrot.lane.b32.xlu0 %v5053_v30, %s5650_s23  ;;  %v2417_v4 = vrot.slane %v2320_v46, 1  ;;  %v2591_v28 = vrot.slane %v6605_v43, 2  ;;  %v2593_v35 = vrot.slane %v2320_v46, 2  ;;  %v793_v47 = vld [vmem:[%s6119_s1 + $0xc8] sm:$0xff]  ;;  %v794_v46 = vld [vmem:[%s6119_s1 + $0xd0] sm:$0xff] }
 0x199   : > { %v1263_v29 = vsel %vm1200_vm2, %v1261_v42, %v1262_v26  ;;  %5069 = vrot.lane.b32.xlu1 %v5068_v52, %s5651_s9  ;;  %v2416_v62 = vsel %vm1023_vm1, %v2414_v51, %v2415_v61  ;;  %v1265_v48 = vsel %vm1200_vm2, %v1262_v26, %v1264_v41  ;;  %v2219_v11 = vrot.slane %v2129_v18, 7  ;;  %v795_v43 = vld [vmem:[%s6119_s1 + $0xd8] sm:$0xff] }
 0x19a   : > { %v2220_v14 = vrot.slane %v2130_v49, 7  ;;  %v2418_v23 = vsel %vm1023_vm1, %v2415_v61, %v2417_v4  ;;  %v2592_v30 = vsel %vm1200_vm2, %v2590_v1, %v2591_v28  ;;  %v2594_v33 = vsel %vm1200_vm2, %v2591_v28, %v2593_v35 }
 0x19b   : > { %v5073_v16 = vpack.i.bf16 %v1265_v48, %v1263_v29  ;;  %v5063_v42 = vpack.i.bf16 %v2418_v23, %v2416_v62  ;;  %v5078_v6 = vpack.i.bf16 %v2594_v33, %v2592_v30  ;;  %v6633_v26 = vsel %vm846_vm0, 0.0, %v2219_v11 }
 0x19c   : > { %v6630_v52 = vsel %vm846_vm0, %v2219_v11, %v2220_v14  ;;  %7822 = vst [vmem:[#allocation54_spill] sm:$0xff] %v6633_v26  ;;  %v2321_v41 = vsel %vm846_vm0, %v2220_v14, 0.0  ;;  %v2419_v18 = vrot.slane %v6633_v26, 1  ;;  %v886_v51 = vrot.slane %v792_v5, 7 }
 0x19d   : > { %7821 = vst [vmem:[#allocation53_spill] sm:$0xff] %v6630_v52  ;;  %v2420_v49 = vrot.slane %v6630_v52, 1  ;;  %5064 = vrot.lane.b32.xlu0 %v5063_v42, %s5650_s23  ;;  %5079 = vrot.lane.b32.xlu1 %v5078_v6, %s5651_s9  ;;  %v2422_v61 = vrot.slane %v2321_v41, 1  ;;  %v887_v1 = vrot.slane %v793_v47, 7  ;;  %v889_v33 = vrot.slane %v794_v46, 7 }
 0x19e   : > { %v890_v4 = vrot.slane %v795_v43, 7  ;;  %v6642_v35 = vsel %vm846_vm0, 0.0, %v886_v51  ;;  %v2595_v29 = vrot.slane %v6633_v26, 2  ;;  %v2596_v62 = vrot.slane %v6630_v52, 2 }
 0x19f   : > { %v2421_v28 = vsel %vm1023_vm1, %v2419_v18, %v2420_v49  ;;  %7823 = vst [vmem:[#allocation55_spill] sm:$0xff] %v6642_v35  ;;  %v2423_v48 = vsel %vm1023_vm1, %v2420_v49, %v2422_v61  ;;  %v6648_v11 = vsel %vm846_vm0, %v886_v51, %v887_v1  ;;  %v986_v6 = vsel %vm846_vm0, %v887_v1, 0.0 }
 0x1a0   : > { %7824 = vst [vmem:[#allocation56_spill] sm:$0xff] %v6648_v11  ;;  %v1089_v47 = vrot.slane %v6642_v35, 1  ;;  %v5088_v43 = vpack.i.bf16 %v2423_v48, %v2421_v28  ;;  %v1090_v14 = vrot.slane %v6648_v11, 1  ;;  %v1092_v5 = vrot.slane %v986_v6, 1  ;;  %v2132_v28 = vld [vmem:[%s6140_s2 + $0xc8] sm:$0xff] }
 0x1a1   : > { %v1266_v23 = vrot.slane %v6642_v35, 2  ;;  %5074 = vrot.lane.b32.xlu0 %v5073_v16, %s5651_s9  ;;  %v1267_v30 = vrot.slane %v6648_v11, 2  ;;  %v1269_v46 = vrot.slane %v986_v6, 2  ;;  %v6657_v42 = vsel %vm846_vm0, %v889_v33, %v890_v4  ;;  %v2131_v16 = vld [vmem:[%s6140_s2 + $0xc0] sm:$0xff] }
 0x1a2   : > { %7825 = vst [vmem:[#allocation57_spill] sm:$0xff] %v6657_v42  ;;  %v6660_v18 = vsel %vm846_vm0, 0.0, %v889_v33  ;;  %5089 = vrot.lane.b32.xlu1 %v5088_v43, %s5650_s23  ;;  %v1091_v49 = vsel %vm1023_vm1, %v1089_v47, %v1090_v14  ;;  %v1093_v51 = vsel %vm1023_vm1, %v1090_v14, %v1092_v5  ;;  %v987_v61 = vsel %vm846_vm0, %v890_v4, 0.0 }
 0x1a3   : > { %7826 = vst [vmem:[#allocation58_spill] sm:$0xff] %v6660_v18  ;;  %v1094_v1 = vrot.slane %v6660_v18, 1  ;;  %v5083_v48 = vpack.i.bf16 %v1093_v51, %v1091_v49  ;;  %v1268_v6 = vsel %vm1200_vm2, %v1266_v23, %v1267_v30  ;;  %v1270_v26 = vsel %vm1200_vm2, %v1267_v30, %v1269_v46 }
 0x1a4   : > { %v1095_v33 = vrot.slane %v6657_v42, 1  ;;  %v5098_v52 = vpack.i.bf16 %v1270_v26, %v1268_v6  ;;  %v1097_v35 = vrot.slane %v987_v61, 1  ;;  %v2597_v43 = vsel %vm1200_vm2, %v2595_v29, %v2596_v62 }
 0x1a5   : > { %v2598_v47 = vrot.slane %v2321_v41, 2  ;;  %5084 = vrot.lane.b32.xlu0 %v5083_v48, %s5650_s23  ;;  %v2222_v14 = vrot.slane %v2131_v16, 7  ;;  %v2223_v5 = vrot.slane %v2132_v28, 7  ;;  %v1271_v49 = vrot.slane %v6660_v18, 2  ;;  %v2133_v16 = vld [vmem:[%s6140_s2 + $0xd0] sm:$0xff]  ;;  %v2134_v28 = vld [vmem:[%s6140_s2 + $0xd8] sm:$0xff] }
 0x1a6   : > { %v1096_v4 = vsel %vm1023_vm1, %v1094_v1, %v1095_v33  ;;  %5099 = vrot.lane.b32.xlu1 %v5098_v52, %s5651_s9  ;;  %v1098_v23 = vsel %vm1023_vm1, %v1095_v33, %v1097_v35  ;;  %v1272_v30 = vrot.slane %v6657_v42, 2  ;;  %v1274_v29 = vrot.slane %v987_v61, 2 }
 0x1a7   : > { %v2599_v26 = vsel %vm1200_vm2, %v2596_v62, %v2598_v47  ;;  %v5093_v46 = vpack.i.bf16 %v1098_v23, %v1096_v4  ;;  %v6681_v51 = vsel %vm846_vm0, %v2222_v14, %v2223_v5  ;;  %v6684_v1 = vsel %vm846_vm0, 0.0, %v2222_v14  ;;  %v796_v23 = vld [vmem:[%s6119_s1 + $0xe0] sm:$0xff] }
 0x1a8   : > { %v5108_v41 = vpack.i.bf16 %v2599_v26, %v2597_v43  ;;  %7827 = vst [vmem:[#allocation59_spill] sm:$0xff] %v6681_v51  ;;  %7828 = vst [vmem:[#allocation60_spill] sm:$0xff] %v6684_v1  ;;  %v2322_v52 = vsel %vm846_vm0, %v2223_v5, 0.0  ;;  %v2424_v35 = vrot.slane %v6684_v1, 1  ;;  %v2425_v62 = vrot.slane %v6681_v51, 1 }
 0x1a9   : > { %v2600_v48 = vrot.slane %v6684_v1, 2  ;;  %5094 = vrot.lane.b32.xlu0 %v5093_v46, %s5650_s23  ;;  %v2427_v61 = vrot.slane %v2322_v52, 1  ;;  %v2601_v6 = vrot.slane %v6681_v51, 2  ;;  %v2603_v33 = vrot.slane %v2322_v52, 2  ;;  %v797_v1 = vld [vmem:[%s6119_s1 + $0xe8] sm:$0xff]  ;;  %v798_v52 = vld [vmem:[%s6119_s1 + $0xf0] sm:$0xff] }
 0x1aa   : > { %v1273_v43 = vsel %vm1200_vm2, %v1271_v49, %v1272_v30  ;;  %5109 = vrot.lane.b32.xlu1 %v5108_v41, %s5651_s9  ;;  %v2426_v47 = vsel %vm1023_vm1, %v2424_v35, %v2425_v62  ;;  %v1275_v4 = vsel %vm1200_vm2, %v1272_v30, %v1274_v29  ;;  %v2225_v14 = vrot.slane %v2133_v16, 7 }
 0x1ab   : > { %v2226_v5 = vrot.slane %v2134_v28, 7  ;;  %v2428_v26 = vsel %vm1023_vm1, %v2425_v62, %v2427_v61  ;;  %v2602_v46 = vsel %vm1200_vm2, %v2600_v48, %v2601_v6  ;;  %v2604_v18 = vsel %vm1200_vm2, %v2601_v6, %v2603_v33 }
 0x1ac   : > { %v5113_v42 = vpack.i.bf16 %v1275_v4, %v1273_v43  ;;  %v5103_v51 = vpack.i.bf16 %v2428_v26, %v2426_v47  ;;  %v5118_v49 = vpack.i.bf16 %v2604_v18, %v2602_v46  ;;  %v6708_v35 = vsel %vm846_vm0, 0.0, %v2225_v14  ;;  %v799_v4 = vld [vmem:[%s6119_s1 + $0xf8] sm:$0xff] }
 0x1ad   : > { %v6705_v41 = vsel %vm846_vm0, %v2225_v14, %v2226_v5  ;;  %7830 = vst [vmem:[#allocation62_spill] sm:$0xff] %v6708_v35  ;;  %v6711_v30 = vsel %vm846_vm0, %v2226_v5, 0.0  ;;  %v2429_v29 = vrot.slane %v6708_v35, 1  ;;  %v892_v28 = vrot.slane %v796_v23, 7 }
 0x1ae   : > { %7829 = vst [vmem:[#allocation61_spill] sm:$0xff] %v6705_v41  ;;  %v2430_v16 = vrot.slane %v6705_v41, 1  ;;  %5104 = vrot.lane.b32.xlu0 %v5103_v51, %s5650_s23  ;;  %5119 = vrot.lane.b32.xlu1 %v5118_v49, %s5651_s9  ;;  %v2432_v18 = vrot.slane %v6711_v30, 1  ;;  %v893_v62 = vrot.slane %v797_v1, 7  ;;  %vm1377_vm3 = vcmask 31744   ;;  %v4850_v48 = vpop.permute.xlu1 %4849 }
 0x1af   : > { %v895_v61 = vrot.slane %v798_v52, 7  ;;  %v6720_v33 = vsel %vm846_vm0, 0.0, %v892_v28  ;;  %v4852_v43 = vunpack.i.h.bf16 %v4850_v48  ;;  %v4851_v47 = vunpack.i.l.bf16 %v4850_v48 }
 0x1b0   : > { %v2431_v6 = vsel %vm1023_vm1, %v2429_v29, %v2430_v16  ;;  %7831 = vst [vmem:[#allocation63_spill] sm:$0xff] %v6720_v33  ;;  %v2433_v14 = vsel %vm1023_vm1, %v2430_v16, %v2432_v18  ;;  %v6725_v51 = vsel %vm846_vm0, %v892_v28, %v893_v62  ;;  %v988_v5 = vsel %vm846_vm0, %v893_v62, 0.0  ;;  %v2135_v16 = vld [vmem:[%s6140_s2 + $0xe0] sm:$0xff] }
 0x1b1   : > { %7832 = vst [vmem:[#allocation64_spill] sm:$0xff] %v6725_v51  ;;  %v1099_v1 = vrot.slane %v6720_v33, 1  ;;  %v6729_v23 = vpop.permute.xlu0 %4844  ;;  %v5128_v26 = vpack.i.bf16 %v2433_v14, %v2431_v6  ;;  %v1100_v46 = vrot.slane %v6725_v51, 1  ;;  %v1102_v52 = vrot.slane %v988_v5, 1 }
 0x1b2   : > { %v6734_v49 = vsel %vm1377_vm3, %v6171_v12, %v4852_v43  ;;  %5114 = vrot.lane.b32.xlu0 %v5113_v42, %s5651_s9  ;;  %v6739_v29 = vsel %vm1377_vm3, %v6174_v13, %v4851_v47  ;;  %v896_v18 = vrot.slane %v799_v4, 7  ;;  %v6743_v62 = vpop.permute.xlu1 %4854  ;;  %v6749_v6 = vsel %vm846_vm0, 0.0, %v895_v61 }
 0x1b3   : > { %5129 = vrot.lane.b32.xlu1 %v5128_v26, %s5650_s23  ;;  %v1101_v48 = vsel %vm1023_vm1, %v1099_v1, %v1100_v46  ;;  %v1103_v12 = vsel %vm1023_vm1, %v1100_v46, %v1102_v52  ;;  %v1276_v13 = vrot.slane %v6720_v33, 2  ;;  %v1464_v4 = vrot.slane %v6749_v6, 1 }
 0x1b4   : > { %v5123_v42 = vpack.i.bf16 %v1103_v12, %v1101_v48  ;;  %v6753_v43 = vsel %vm846_vm0, %v895_v61, %v896_v18  ;;  %v6756_v47 = vsel %vm846_vm0, %v896_v18, 0.0  ;;  %v1277_v46 = vrot.slane %v6725_v51, 2  ;;  %v2136_v51 = vld [vmem:[%s6140_s2 + $0xe8] sm:$0xff] }
 0x1b5   : > { %v4860_v14 = vpop.permute.xlu0 %4859  ;;  %v1465_v1 = vrot.slane %v6753_v43, 1  ;;  %v1467_v26 = vrot.slane %v6756_v47, 1  ;;  %v1279_v52 = vrot.slane %v988_v5, 2  ;;  %v2605_v61 = vrot.slane %v6708_v35, 2 }
 0x1b6   : > { %5124 = vrot.lane.b32.xlu0 %v5123_v42, %s5650_s23  ;;  %v4862_v12 = vunpack.i.h.bf16 %v4860_v14  ;;  %v4861_v18 = vunpack.i.l.bf16 %v4860_v14  ;;  %v4870_v28 = vpop.permute.xlu1 %4869  ;;  %v1278_v32 = vsel %vm1200_vm2, %v1276_v13, %v1277_v46  ;;  %vm1410_vm4 = vcmask 64512  }
 0x1b7   : > { %v1466_v33 = vsel %vm1023_vm1, %v1464_v4, %v1465_v1  ;;  %v1468_v11 = vsel %vm1023_vm1, %v1465_v1, %v1467_v26  ;;  %v1280_v27 = vsel %vm1200_vm2, %v1277_v46, %v1279_v52  ;;  %v2606_v4 = vrot.slane %v6705_v41, 2  ;;  %v1492_v46 = vld [vmem:[#allocation8 + $0x10] sm:$0xff]  ;;  %v1493_v52 = vld [vmem:[#allocation8 + $0x18] sm:$0xf] }
 0x1b8   : > { %v5138_v5 = vpack.i.bf16 %v1468_v11, %v1466_v33  ;;  %v5133_v45 = vpack.i.bf16 %v1280_v27, %v1278_v32  ;;  %v2714_v42 = vsel %vm1377_vm3, %v6193_v31, %v4862_v12  ;;  %v2713_v48 = vsel %vm1377_vm3, %v6198_v34, %v4861_v18 }
 0x1b9   : > { %v4865_v14 = vpop.permute.xlu0 %4864  ;;  %v2608_v1 = vrot.slane %v6711_v30, 2  ;;  %v2228_v26 = vrot.slane %v2135_v16, 7  ;;  %v2229_v11 = vrot.slane %v2136_v51, 7  ;;  %v4872_v27 = vunpack.i.h.bf16 %v4870_v28 }
 0x1ba   : > { %5139 = vrot.lane.b32.xlu1 %v5138_v5, %s5650_s23  ;;  %5134 = vrot.lane.b32.xlu0 %v5133_v45, %s5651_s9  ;;  %v4871_v32 = vunpack.i.l.bf16 %v4870_v28  ;;  %v2607_v31 = vsel %vm1200_vm2, %v2605_v61, %v2606_v4  ;;  %v4867_v13 = vunpack.i.h.bf16 %v4865_v14  ;;  %v6785_v30 = vpop.permute.xlu1 %4879  ;;  %vm1495_vm5 = vcmask 97280  }
 0x1bb   : > { %v2609_v34 = vsel %vm1200_vm2, %v2606_v4, %v2608_v1  ;;  %v6783_v33 = vsel %vm846_vm0, 0.0, %v2228_v26  ;;  %v6788_v12 = vsel %vm846_vm0, %v2228_v26, %v2229_v11  ;;  %v2324_v45 = vsel %vm846_vm0, %v2229_v11, 0.0 }
 0x1bc   : > { %v5148_v16 = vpack.i.bf16 %v2609_v34, %v2607_v31  ;;  %v2434_v51 = vrot.slane %v6783_v33, 1  ;;  %v2435_v28 = vrot.slane %v6788_v12, 1  ;;  %v2437_v61 = vrot.slane %v2324_v45, 1 }
 0x1bd   : > { %v2745_v18 = vsel %vm1410_vm4, %v2713_v48, %v4871_v32  ;;  %v2746_v5 = vsel %vm1410_vm4, %v2714_v42, %v4872_v27  ;;  %v1416_v26 = vsel %vm1410_vm4, %v6734_v49, %v4867_v13  ;;  %v4866_v31 = vunpack.i.l.bf16 %v4865_v14 }
 0x1be   : > { %v4875_v4 = vpop.permute.xlu0 %4874  ;;  %5149 = vrot.lane.b32.xlu1 %v5148_v16, %s5651_s9  ;;  %v6796_v1 = vpack.c.bf16 %v2746_v5, %v2745_v18  ;;  %v1494_v34 = vpack.c.bf16 %v1493_v52, %v1492_v46  ;;  %v2436_v11 = vsel %vm1023_vm1, %v2434_v51, %v2435_v28  ;;  %v2438_v35 = vsel %vm1023_vm1, %v2435_v28, %v2437_v61 }
 0x1bf   : > { %v2610_v41 = vrot.slane %v6783_v33, 2  ;;  %v2611_v48 = vrot.slane %v6788_v12, 2  ;;  %v5143_v32 = vpack.i.bf16 %v2438_v35, %v2436_v11  ;;  %v1415_v42 = vsel %vm1410_vm4, %v6739_v29, %v4866_v31  ;;  %v800_v31 = vld [vmem:[%s622_s19] sm:$0xff] }
 0x1c0   : > { %4704 = vmatprep.subr.msk.bf16.mxu1 %vm1200_vm2, %v1494_v34  ;;  %v2613_v27 = vrot.slane %v2324_v45, 2  ;;  %v1475_v16 = vrot.slane %v6749_v6, 2  ;;  %v6808_v49 = vpack.c.bf16 %v1416_v26, %v1415_v42  ;;  %v1476_v13 = vrot.slane %v6753_v43, 2 }
 0x1c1   : > { %v2612_v14 = vsel %vm1200_vm2, %v2610_v41, %v2611_v48  ;;  %v1478_v46 = vrot.slane %v6756_v47, 2  ;;  %v6813_v52 = vpop.permute.xlu1 %4894  ;;  %5144 = vrot.lane.b32.xlu0 %v5143_v32, %s5650_s23  ;;  %v7833_v29 = vunpack.i.l.bf16 %v6729_v23  ;;  %v7834_v51 = vunpack.i.h.bf16 %v6729_v23  ;;  %v801_v32 = vld [vmem:[%s622_s19 + $0x8] sm:$0xff] }
 0x1c2   : > { %v2614_v35 = vsel %vm1200_vm2, %v2611_v48, %v2613_v27  ;;  %v6825_v28 = vpop.permute.xlu0 %4884  ;;  %v1477_v61 = vsel %vm1200_vm2, %v1475_v16, %v1476_v13  ;;  %v7835_v5 = vunpack.i.l.bf16 %v6743_v62  ;;  %v7836_v23 = vunpack.i.h.bf16 %v6743_v62 }
 0x1c3   : > { %v1380_v45 = vsel %vm1377_vm3, %v6178_v15, %v7833_v29  ;;  %v1381_v41 = vsel %vm1377_vm3, %v6183_v20, %v7834_v51  ;;  %v5158_v47 = vpack.i.bf16 %v2614_v35, %v2612_v14  ;;  %v1479_v18 = vsel %vm1200_vm2, %v1476_v13, %v1478_v46  ;;  %v2791_v13 = vld [vmem:[#allocation13] sm:$0xff]  ;;  %v2792_v46 = vld [vmem:[#allocation13 + $0x8] sm:$0xf] }
 0x1c4   : > { %v1413_v26 = vsel %vm1410_vm4, %v1380_v45, %v7835_v5  ;;  %v5153_v15 = vpack.i.bf16 %v1479_v18, %v1477_v61  ;;  %v1414_v11 = vsel %vm1410_vm4, %v1381_v41, %v7836_v23  ;;  %v1545_v20 = vsel %vm1200_vm2, %v1494_v34, 0 }
 0x1c5   : > { %v4882_v48 = vunpack.i.h.bf16 %v6785_v30  ;;  %5159 = vrot.lane.b32.xlu1 %v5158_v47, %s5651_s9  ;;  %v6842_v42 = vpack.c.bf16 %v1414_v11, %v1413_v26  ;;  %4341 = vmatpush3.bf16.msra.mxu1 %v1545_v20  ;;  %v4881_v27 = vunpack.i.l.bf16 %v6785_v30  ;;  %v4877_v16 = vunpack.i.h.bf16 %v4875_v4  ;;  %v4900_v62 = vpop.permute.xlu1 %4899 }
 0x1c6   : > { %v4876_v14 = vunpack.i.l.bf16 %v4875_v4  ;;  %5154 = vrot.lane.b32.xlu0 %v5153_v15, %s5651_s9  ;;  %v4897_v35 = vunpack.i.h.bf16 %v6813_v52  ;;  %v4896_v29 = vunpack.i.l.bf16 %v6813_v52  ;;  %v805_v45 = vmul.f32 0.0, %v800_v31  ;;  %v4890_v51 = vpop.permute.xlu0 %4889 }
 0x1c7   : > { %v2716_v34 = vsel %vm1377_vm3, %v6225_v63, %v4882_v48  ;;  %4342 = vmatprep.mubr.msk.bf16.mxu1 %vm1495_vm5, %v6842_v42  ;;  %v2715_v30 = vsel %vm1377_vm3, %v6228_v0, %v4881_v27  ;;  %v1385_v4 = vsel %vm1377_vm3, %v6245_v21, %v4877_v16  ;;  %v806_v47 = vmul.f32 0.0, %v801_v32 }
 0x1c8   : > { %v1384_v41 = vsel %vm1377_vm3, %v6248_v22, %v4876_v14  ;;  %4343 = vmatmul.mubr.msk.bf16.vlgmr.msra.gmra.mrb[0].mxu1 %vm1495_vm5, %v6808_v49  ;;  %v847_v63 = vrot.slane %v805_v45, 7  ;;  %v4887_v52 = vunpack.i.h.bf16 %v6825_v28  ;;  %v4886_v61 = vunpack.i.l.bf16 %v6825_v28 }
 0x1c9   : > { %v2793_v18 = vpack.c.bf16 %v2792_v46, %v2791_v13  ;;  %v848_v5 = vrot.slane %v806_v47, 7  ;;  %v4902_v26 = vunpack.i.h.bf16 %v4900_v62  ;;  %v4901_v31 = vunpack.i.l.bf16 %v4900_v62  ;;  %v4910_v15 = vpop.permute.xlu1 %4909 }
 0x1ca   : > { %v4892_v0 = vunpack.i.h.bf16 %v4890_v51  ;;  %v6863_v21 = vsel %vm846_vm0, 0.0, %v847_v63  ;;  %v4891_v22 = vunpack.i.l.bf16 %v4890_v51  ;;  %v2711_v11 = vsel %vm1377_vm3, %v6266_v40, %v4886_v61 }
 0x1cb   : > { %4707 = vmatprep.subr.msk.bf16.mxu0 %vm1200_vm2, %v2793_v18  ;;  %v2843_v23 = vsel %vm1200_vm2, %v2793_v18, 0  ;;  %v4905_v20 = vpop.permute.xlu0 %4904  ;;  %v6870_v28 = vsel %vm846_vm0, %v847_v63, %v848_v5  ;;  %v973_v48 = vsel %vm846_vm0, %v848_v5, 0.0  ;;  %v1024_v32 = vrot.slane %v6863_v21, 1 }
 0x1cc   : > { %v1201_v27 = vrot.slane %v6863_v21, 2  ;;  %4443 = vmatpush3.bf16.msra.mxu0 %v2843_v23  ;;  %v1025_v16 = vrot.slane %v6870_v28, 1  ;;  %v1027_v14 = vrot.slane %v973_v48, 1  ;;  %v1202_v13 = vrot.slane %v6870_v28, 2 }
 0x1cd   : > { %v1204_v46 = vrot.slane %v973_v48, 2  ;;  %v1417_v62 = vsel %vm1410_vm4, %v1384_v41, %v4901_v31  ;;  %v1418_v40 = vsel %vm1410_vm4, %v1385_v4, %v4902_v26  ;;  %v1387_v45 = vsel %vm1377_vm3, %v6260_v37, %v4892_v0  ;;  %v4920_v47 = vpop.permute.xlu1 %4919 }
 0x1ce   : > { %v1386_v51 = vsel %vm1377_vm3, %v6279_v53, %v4891_v22  ;;  %v1026_v63 = vsel %vm1023_vm1, %v1024_v32, %v1025_v16  ;;  %v1028_v61 = vsel %vm1023_vm1, %v1025_v16, %v1027_v14  ;;  %v1203_v18 = vsel %vm1200_vm2, %v1201_v27, %v1202_v13 }
 0x1cf   : > { %v1205_v5 = vsel %vm1200_vm2, %v1202_v13, %v1204_v46  ;;  %v4915_v23 = vpop.permute.xlu0 %4914  ;;  %v5163_v48 = vpack.i.bf16 %v1028_v61, %v1026_v63  ;;  %v6887_v31 = vpack.c.bf16 %v1418_v40, %v1417_v62  ;;  %v2712_v37 = vsel %vm1377_vm3, %v6263_v39, %v4887_v52  ;;  %v1460_v63 = vld [vmem:[#allocation8 + $0x8] sm:$0xf] }
 0x1d0   : > { %v5168_v41 = vpack.i.bf16 %v1205_v5, %v1203_v18  ;;  %v2743_v4 = vsel %vm1410_vm4, %v2711_v11, %v4896_v29  ;;  %v2744_v53 = vsel %vm1410_vm4, %v2712_v37, %v4897_v35  ;;  %v4912_v26 = vunpack.i.h.bf16 %v4910_v15  ;;  %v3068_v5 = vld [vmem:[#allocation13 + $0x10] sm:$0xff]  ;;  %v3069_v37 = vld [vmem:[#allocation13 + $0x18] sm:$0xf] }
 0x1d1   : > { %v4911_v0 = vunpack.i.l.bf16 %v4910_v15  ;;  %5164 = vrot.lane.b32.xlu0 %v5163_v48, %s5650_s23  ;;  %v2775_v22 = vpack.c.bf16 %v2744_v53, %v2743_v4  ;;  %v4907_v32 = vunpack.i.h.bf16 %v4905_v20  ;;  %v4906_v27 = vunpack.i.l.bf16 %v4905_v20  ;;  %v4930_v14 = vpop.permute.xlu1 %4929  ;;  %4346 = vmatprep.mubr.msk.bf16.mxu1 %vm1495_vm5, %v6887_v31  ;;  %v2137_v4 = vld [vmem:[%s6140_s2 + $0xf0] sm:$0xff]  ;;  %v2138_v53 = vld [vmem:[%s6140_s2 + $0xf8] sm:$0xff] }
 0x1d2   : > { %5169 = vrot.lane.b32.xlu1 %v5168_v41, %s5651_s9  ;;  %v4922_v16 = vunpack.i.h.bf16 %v4920_v47  ;;  %v2748_v46 = vsel %vm1410_vm4, %v2716_v34, %v4912_v26  ;;  %v4921_v39 = vunpack.i.l.bf16 %v4920_v47  ;;  %v4917_v35 = vunpack.i.h.bf16 %v4915_v23  ;;  %v1459_v47 = vld [vmem:[#allocation8] sm:$0xff] }
 0x1d3   : > { %v2747_v13 = vsel %vm1410_vm4, %v2715_v30, %v4911_v0  ;;  %4444 = vmatprep.mubr.msk.bf16.mxu0 %vm1495_vm5, %v2775_v22  ;;  %v2718_v52 = vsel %vm1377_vm3, %v6303_v19, %v4907_v32  ;;  %v2717_v15 = vsel %vm1377_vm3, %v6299_v17, %v4906_v27  ;;  %v4916_v11 = vunpack.i.l.bf16 %v4915_v23  ;;  %v4925_v20 = vpop.permute.xlu0 %4924 }
 0x1d4   : > { %v6900_v29 = vpack.c.bf16 %v2748_v46, %v2747_v13  ;;  %4445 = vmatmul.mubr.msk.bf16.vlgmr.msra.gmra.mrb[0].mxu0 %vm1495_vm5, %v6796_v1  ;;  %v2749_v34 = vsel %vm1410_vm4, %v2717_v15, %v4921_v39  ;;  %v2750_v30 = vsel %vm1410_vm4, %v2718_v52, %v4922_v16  ;;  %v1420_v62 = vsel %vm1410_vm4, %v1387_v45, %v4917_v35 }
 0x1d5   : > { %v4932_v40 = vunpack.i.h.bf16 %v4930_v14  ;;  %v1419_v19 = vsel %vm1410_vm4, %v1386_v51, %v4916_v11  ;;  %v4931_v17 = vunpack.i.l.bf16 %v4930_v14  ;;  %v4927_v61 = vunpack.i.h.bf16 %v4925_v20  ;;  %v4940_v18 = vpop.permute.xlu1 %4939 }
 0x1d6   : > { %4448 = vmatprep.mubr.msk.bf16.mxu0 %vm1495_vm5, %v6900_v29  ;;  %v6914_v23 = vpack.c.bf16 %v1420_v62, %v1419_v19  ;;  %v4926_v48 = vunpack.i.l.bf16 %v4925_v20  ;;  %v4942_v41 = vunpack.i.h.bf16 %v4940_v18  ;;  %v6918_v45 = vpack.c.bf16 %v2750_v30, %v2749_v34 }
 0x1d7   : > { %v1389_v26 = vsel %vm1377_vm3, %v6344_v8, %v4927_v61  ;;  %v4941_v51 = vunpack.i.l.bf16 %v4940_v18  ;;  %v4935_v0 = vpop.permute.xlu0 %4934  ;;  %v1461_v22 = vpack.c.bf16 %v1460_v63, %v1459_v47  ;;  %v2720_v32 = vsel %vm1377_vm3, %v6326_v54, %v4932_v40 }
 0x1d8   : > { %v2719_v27 = vsel %vm1377_vm3, %v6329_v55, %v4931_v17  ;;  %v1388_v16 = vsel %vm1377_vm3, %v6337_v3, %v4926_v48  ;;  %4347 = vmatmul.mubr.msk.bf16.gmra.mrb[4].mxu1 %vm1495_vm5, %v6914_v23  ;;  %v1422_v14 = vsel %vm1410_vm4, %v1389_v26, %v4942_v41  ;;  %v3070_v46 = vpack.c.bf16 %v3069_v37, %v3068_v5 }
 0x1d9   : > { %v1421_v13 = vsel %vm1410_vm4, %v1388_v16, %v4941_v51  ;;  %v4950_v8 = vpop.permute.xlu1 %4949  ;;  %4705 = vmatprep.subr.msk.bf16.mxu1 %vm1200_vm2, %v1461_v22  ;;  %v2231_v39 = vrot.slane %v2137_v4, 7  ;;  %v2232_v35 = vrot.slane %v2138_v53, 7  ;;  %v4937_v52 = vunpack.i.h.bf16 %v4935_v0 }
 0x1da   : > { %v6933_v54 = vpack.c.bf16 %v1422_v14, %v1421_v13  ;;  %v4936_v55 = vunpack.i.l.bf16 %v4935_v0  ;;  %v4952_v15 = vunpack.i.h.bf16 %v4950_v8  ;;  %v4951_v11 = vunpack.i.l.bf16 %v4950_v8  ;;  %4708 = vmatprep.subr.msk.bf16.mxu0 %vm1200_vm2, %v3070_v46 }
 0x1db   : > { %v6937_v3 = vsel %vm846_vm0, %v2231_v39, %v2232_v35  ;;  %v6940_v20 = vsel %vm846_vm0, 0.0, %v2231_v39  ;;  %v2325_v34 = vsel %vm846_vm0, %v2232_v35, 0.0 }
 0x1dc   : > { %4449 = vmatmul.mubr.msk.bf16.gmra.mrb[4].mxu0 %vm1495_vm5, %v6918_v45  ;;  %v2752_v30 = vsel %vm1410_vm4, %v2720_v32, %v4952_v15  ;;  %v4945_v62 = vpop.permute.xlu0 %4944  ;;  %4350 = vmatprep.mubr.msk.bf16.mxu1 %vm1495_vm5, %v6933_v54  ;;  %v3040_v40 = vrot.slane %v6940_v20, 1  ;;  %v3041_v47 = vrot.slane %v6937_v3, 1  ;;  %v3043_v63 = vrot.slane %v2325_v34, 1  ;;  %v2141_v15 = vld [vmem:[%s662_s26] sm:$0xff] }
 0x1dd   : > { %v2751_v19 = vsel %vm1410_vm4, %v2719_v27, %v4951_v11  ;;  %v4947_v17 = vunpack.i.h.bf16 %v4945_v62  ;;  %v4946_v61 = vunpack.i.l.bf16 %v4945_v62  ;;  %v4960_v18 = vpop.permute.xlu1 %4959  ;;  %v3051_v5 = vrot.slane %v6940_v20, 2 }
 0x1de   : > { %v6952_v48 = vpack.c.bf16 %v2752_v30, %v2751_v19  ;;  %v4962_v41 = vunpack.i.h.bf16 %v4960_v18  ;;  %v4961_v37 = vunpack.i.l.bf16 %v4960_v18  ;;  %v3042_v4 = vsel %vm1023_vm1, %v3040_v40, %v3041_v47  ;;  %v2142_v40 = vld [vmem:[%s662_s26 + $0x8] sm:$0xff] }
 0x1df   : > { %v2722_v53 = vsel %vm1377_vm3, %v6377_v58, %v4947_v17  ;;  %v2721_v26 = vsel %vm1377_vm3, %v6380_v59, %v4946_v61  ;;  %v3044_v51 = vsel %vm1023_vm1, %v3041_v47, %v3043_v63  ;;  %v3052_v0 = vrot.slane %v6937_v3, 2  ;;  %v802_v47 = vld [vmem:[%s631_s11] sm:$0xff] }
 0x1e0   : > { %v2753_v32 = vsel %vm1410_vm4, %v2721_v26, %v4961_v37  ;;  %v2754_v27 = vsel %vm1410_vm4, %v2722_v53, %v4962_v41  ;;  %v4955_v16 = vpop.permute.xlu0 %4954  ;;  %4452 = vmatprep.mubr.msk.bf16.mxu0 %vm1495_vm5, %v6952_v48  ;;  %v5173_v14 = vpack.i.bf16 %v3044_v51, %v3042_v4  ;;  %v3054_v13 = vrot.slane %v2325_v34, 2 }
 0x1e1   : > { %v6965_v58 = vpack.c.bf16 %v2754_v27, %v2753_v32  ;;  %v4957_v8 = vunpack.i.h.bf16 %v4955_v16  ;;  %v4956_v59 = vunpack.i.l.bf16 %v4955_v16  ;;  %v4970_v39 = vpop.permute.xlu1 %4969  ;;  %v3053_v35 = vsel %vm1200_vm2, %v3051_v5, %v3052_v0 }
 0x1e2   : > { %v1391_v11 = vsel %vm1377_vm3, %v6353_v24, %v4937_v52  ;;  %v1390_v30 = vsel %vm1377_vm3, %v6356_v25, %v4936_v55  ;;  %5174 = vrot.lane.b32.xlu0 %v5173_v14, %s5650_s23  ;;  %v3055_v34 = vsel %vm1200_vm2, %v3052_v0, %v3054_v13  ;;  %v1712_v62 = vsel %vm1200_vm2, %v1461_v22, 0  ;;  %v803_v25 = vld [vmem:[%s631_s11 + $0x8] sm:$0xff] }
 0x1e3   : > { %v1423_v63 = vsel %vm1410_vm4, %v1390_v30, %v4956_v59  ;;  %v1424_v19 = vsel %vm1410_vm4, %v1391_v11, %v4957_v8  ;;  %v5178_v17 = vpack.i.bf16 %v3055_v34, %v3053_v35  ;;  %4375 = vmatpush3.bf16.msra.mxu1 %v1712_v62  ;;  %v3075_v24 = vsel %vm1200_vm2, %v3070_v46, 0 }
 0x1e4   : > { %v6986_v52 = vpack.c.bf16 %v1424_v19, %v1423_v63  ;;  %v4972_v55 = vunpack.i.h.bf16 %v4970_v39  ;;  %v4971_v61 = vunpack.i.l.bf16 %v4970_v39  ;;  %v4965_v18 = vpop.permute.xlu0 %4964  ;;  %4453 = vmatmul.mubr.msk.bf16.gmra.mrb[8].mxu0 %vm1495_vm5, %v6965_v58  ;;  %v2145_v22 = vmul.f32 0.0, %v2141_v15 }
 0x1e5   : > { %v4967_v5 = vunpack.i.h.bf16 %v4965_v18  ;;  %v4966_v41 = vunpack.i.l.bf16 %v4965_v18  ;;  %v4980_v37 = vpop.permute.xlu1 %4979  ;;  %5179 = vrot.lane.b32.xlu1 %v5178_v17, %s5651_s9  ;;  %4477 = vmatpush3.bf16.msra.mxu0 %v3075_v24  ;;  %v2146_v4 = vmul.f32 0.0, %v2142_v40  ;;  %v808_v53 = vmul.f32 0.0, %v802_v47 }
 0x1e6   : > { %4351 = vmatmul.mubr.msk.bf16.gmra.mrb[8].mxu1 %vm1495_vm5, %v6986_v52  ;;  %v4982_v46 = vunpack.i.h.bf16 %v4980_v37  ;;  %v4981_v26 = vunpack.i.l.bf16 %v4980_v37  ;;  %v2234_v51 = vrot.slane %v2145_v22, 7  ;;  %v809_v0 = vmul.f32 0.0, %v803_v25 }
 0x1e7   : > { %v1393_v32 = vsel %vm1377_vm3, %v6420_v56, %v4967_v5  ;;  %v1392_v27 = vsel %vm1377_vm3, %v6414_v50, %v4966_v41  ;;  %v2235_v16 = vrot.slane %v2146_v4, 7  ;;  %v898_v14 = vrot.slane %v808_v53, 7 }
 0x1e8   : > { %v1425_v13 = vsel %vm1410_vm4, %v1392_v27, %v4981_v26  ;;  %v1426_v8 = vsel %vm1410_vm4, %v1393_v32, %v4982_v46  ;;  %v4975_v59 = vpop.permute.xlu0 %4974  ;;  %v7000_v39 = vsel %vm846_vm0, 0.0, %v2234_v51  ;;  %v899_v35 = vrot.slane %v809_v0, 7 }
 0x1e9   : > { %v2724_v15 = vsel %vm1377_vm3, %v6402_v36, %v4972_v55  ;;  %v2723_v56 = vsel %vm1377_vm3, %v6405_v38, %v4971_v61  ;;  %v7006_v11 = vpack.c.bf16 %v1426_v8, %v1425_v13  ;;  %v4990_v50 = vpop.permute.xlu1 %4989  ;;  %v7009_v30 = vsel %vm846_vm0, %v2234_v51, %v2235_v16 }
 0x1ea   : > { %v4992_v34 = vunpack.i.h.bf16 %v4990_v50  ;;  %v4991_v62 = vunpack.i.l.bf16 %v4990_v50  ;;  %v2326_v40 = vsel %vm846_vm0, %v2235_v16, 0.0  ;;  %v3272_v47 = vrot.slane %v7000_v39, 1 }
 0x1eb   : > { %v4977_v63 = vunpack.i.h.bf16 %v4975_v59  ;;  %v4976_v19 = vunpack.i.l.bf16 %v4975_v59  ;;  %4354 = vmatprep.mubr.msk.bf16.mxu1 %vm1495_vm5, %v7006_v11  ;;  %v3273_v36 = vrot.slane %v7009_v30, 1  ;;  %v3275_v38 = vrot.slane %v2326_v40, 1 }
 0x1ec   : > { %v2755_v17 = vsel %vm1410_vm4, %v2723_v56, %v4991_v62  ;;  %v2756_v24 = vsel %vm1410_vm4, %v2724_v15, %v4992_v34  ;;  %v7019_v25 = vsel %vm846_vm0, %v898_v14, %v899_v35  ;;  %v7022_v55 = vsel %vm846_vm0, 0.0, %v898_v14 }
 0x1ed   : > { %v7024_v61 = vpack.c.bf16 %v2756_v24, %v2755_v17  ;;  %v4985_v18 = vpop.permute.xlu0 %4984  ;;  %v5000_v22 = vpop.permute.xlu1 %4999  ;;  %v3274_v5 = vsel %vm1023_vm1, %v3272_v47, %v3273_v36  ;;  %v3276_v41 = vsel %vm1023_vm1, %v3273_v36, %v3275_v38  ;;  %v7029_v37 = vsel %vm846_vm0, %v899_v35, 0.0 }
 0x1ee   : > { %v4987_v4 = vunpack.i.h.bf16 %v4985_v18  ;;  %v4986_v53 = vunpack.i.l.bf16 %v4985_v18  ;;  %v5002_v46 = vunpack.i.h.bf16 %v5000_v22  ;;  %v5001_v26 = vunpack.i.l.bf16 %v5000_v22 }
 0x1ef   : > { %4456 = vmatprep.mubr.msk.bf16.mxu0 %vm1495_vm5, %v7024_v61  ;;  %v5188_v51 = vpack.i.bf16 %v3276_v41, %v3274_v5  ;;  %v1877_v0 = vrot.slane %v7022_v55, 1  ;;  %v1878_v32 = vrot.slane %v7019_v25, 1  ;;  %v1880_v27 = vrot.slane %v7029_v37, 1 }
 0x1f0   : > { %v2726_v16 = vsel %vm1377_vm3, %v6453_v57, %v4987_v4  ;;  %v2725_v14 = vsel %vm1377_vm3, %v6456_v60, %v4986_v53  ;;  %v3283_v13 = vrot.slane %v7000_v39, 2  ;;  %v3284_v8 = vrot.slane %v7009_v30, 2  ;;  %v3300_v53 = vld [vmem:[#allocation13 + $0x20] sm:$0xff] }
 0x1f1   : > { %v2757_v59 = vsel %vm1410_vm4, %v2725_v14, %v5001_v26  ;;  %v2758_v35 = vsel %vm1410_vm4, %v2726_v16, %v5002_v46  ;;  %v4995_v15 = vpop.permute.xlu0 %4994  ;;  %5189 = vrot.lane.b32.xlu1 %v5188_v51, %s5650_s23  ;;  %v1879_v56 = vsel %vm1023_vm1, %v1877_v0, %v1878_v32  ;;  %v1881_v50 = vsel %vm1023_vm1, %v1878_v32, %v1880_v27  ;;  %v3301_v46 = vld [vmem:[#allocation13 + $0x28] sm:$0xf] }
 0x1f2   : > { %v7047_v34 = vpack.c.bf16 %v2758_v35, %v2757_v59  ;;  %v4997_v57 = vunpack.i.h.bf16 %v4995_v15  ;;  %v4996_v62 = vunpack.i.l.bf16 %v4995_v15  ;;  %v5010_v60 = vpop.permute.xlu1 %5009  ;;  %v5183_v47 = vpack.i.bf16 %v1881_v50, %v1879_v56 }
 0x1f3   : > { %v1395_v36 = vsel %vm1377_vm3, %v6429_v9, %v4977_v63  ;;  %v1394_v38 = vsel %vm1377_vm3, %v6432_v10, %v4976_v19  ;;  %v3285_v17 = vsel %vm1200_vm2, %v3283_v13, %v3284_v8  ;;  %v3286_v24 = vrot.slane %v2326_v40, 2  ;;  %v1905_v9 = vld [vmem:[#allocation8 + $0x20] sm:$0xff]  ;;  %v1906_v63 = vld [vmem:[#allocation8 + $0x28] sm:$0xf] }
 0x1f4   : > { %v1427_v18 = vsel %vm1410_vm4, %v1394_v38, %v4996_v62  ;;  %v1428_v22 = vsel %vm1410_vm4, %v1395_v36, %v4997_v57  ;;  %4457 = vmatmul.mubr.msk.bf16.gmra.mrb[12].mxu0 %vm1495_vm5, %v7047_v34  ;;  %5184 = vrot.lane.b32.xlu0 %v5183_v47, %s5650_s23  ;;  %v1888_v5 = vrot.slane %v7022_v55, 2  ;;  %v1889_v41 = vrot.slane %v7019_v25, 2 }
 0x1f5   : > { %v7061_v4 = vpack.c.bf16 %v1428_v22, %v1427_v18  ;;  %v5012_v10 = vunpack.i.h.bf16 %v5010_v60  ;;  %v5005_v19 = vpop.permute.xlu0 %5004  ;;  %v3287_v40 = vsel %vm1200_vm2, %v3284_v8, %v3286_v24  ;;  %v1891_v13 = vrot.slane %v7029_v37, 2 }
 0x1f6   : > { %v5007_v26 = vunpack.i.h.bf16 %v5005_v19  ;;  %v5006_v51 = vunpack.i.l.bf16 %v5005_v19  ;;  %v5020_v0 = vpop.permute.xlu1 %5019  ;;  %v5198_v32 = vpack.i.bf16 %v3287_v40, %v3285_v17  ;;  %v1890_v27 = vsel %vm1200_vm2, %v1888_v5, %v1889_v41  ;;  %v7837_v17 = vld [vmem:[#allocation40_spill] sm:$0xff] }
 0x1f7   : > { %4355 = vmatmul.mubr.msk.bf16.gmra.mrb[12].mxu1 %vm1495_vm5, %v7061_v4  ;;  %v5022_v16 = vunpack.i.h.bf16 %v5020_v0  ;;  %v5021_v14 = vunpack.i.l.bf16 %v5020_v0  ;;  %v7068_v59 = vpack.c.bf16 %v1906_v63, %v1905_v9  ;;  %v5011_v35 = vunpack.i.l.bf16 %v5010_v60 }
 0x1f8   : > { %v1397_v8 = vsel %vm1377_vm3, %v6496_v7, %v5007_v26  ;;  %v1396_v15 = vsel %vm1377_vm3, %v6490_v2, %v5006_v51  ;;  %5199 = vrot.lane.b32.xlu1 %v5198_v32, %s5651_s9  ;;  %v7075_v56 = vpack.c.bf16 %v3301_v46, %v3300_v53  ;;  %v1892_v37 = vsel %vm1200_vm2, %v1889_v41, %v1891_v13  ;;  %v7838_v46 = vld [vmem:[#allocation43_spill] sm:$0xff]  ;;  %v7839_v51 = vld [vmem:[#allocation44_spill] sm:$0xff] }
 0x1f9   : > { %v1429_v50 = vsel %vm1410_vm4, %v1396_v15, %v5021_v14  ;;  %v1430_v57 = vsel %vm1410_vm4, %v1397_v8, %v5022_v16  ;;  %v5015_v62 = vpop.permute.xlu0 %5014  ;;  %4706 = vmatprep.subr.msk.bf16.mxu1 %vm1200_vm2, %v7068_v59  ;;  %v5193_v47 = vpack.i.bf16 %v1892_v37, %v1890_v27  ;;  %v2728_v38 = vsel %vm1377_vm3, %v6478_v44, %v5012_v10  ;;  %v7840_v15 = vld [vmem:[#allocation41_spill] sm:$0xff] }
 0x1fa   : > { %v7082_v60 = vpack.c.bf16 %v1430_v57, %v1429_v50  ;;  %v5030_v7 = vpop.permute.xlu1 %5029  ;;  %4709 = vmatprep.subr.msk.bf16.mxu0 %vm1200_vm2, %v7075_v56  ;;  %v2727_v24 = vsel %vm1377_vm3, %v7837_v17, %v5011_v35  ;;  %v5017_v10 = vunpack.i.h.bf16 %v5015_v62  ;;  %v5016_v53 = vunpack.i.l.bf16 %v5015_v62  ;;  %v7841_v57 = vld [vmem:[#allocation42_spill] sm:$0xff] }
 0x1fb   : > { %v5032_v2 = vunpack.i.h.bf16 %v5030_v7  ;;  %v5031_v36 = vunpack.i.l.bf16 %v5030_v7  ;;  %5194 = vrot.lane.b32.xlu0 %v5193_v47, %s5651_s9 }
 0x1fc   : > { %4358 = vmatprep.mubr.msk.bf16.mxu1 %vm1495_vm5, %v7082_v60  ;;  %v1399_v50 = vsel %vm1377_vm3, %v7840_v15, %v5017_v10  ;;  %v1398_v62 = vsel %vm1377_vm3, %v7841_v57, %v5016_v53 }
 0x1fd   : > { %v2759_v18 = vsel %vm1410_vm4, %v2727_v24, %v5031_v36  ;;  %v2760_v22 = vsel %vm1410_vm4, %v2728_v38, %v5032_v2 }
 0x1fe   : > { %v7095_v5 = vpack.c.bf16 %v2760_v22, %v2759_v18  ;;  %v5025_v41 = vpop.permute.xlu0 %5024  ;;  %v5040_v9 = vpop.permute.xlu1 %5039 }
 0x1ff   : > { %v5027_v63 = vunpack.i.h.bf16 %v5025_v41  ;;  %v5026_v19 = vunpack.i.l.bf16 %v5025_v41  ;;  %v5042_v40 = vunpack.i.h.bf16 %v5040_v9  ;;  %v5041_v44 = vunpack.i.l.bf16 %v5040_v9  ;;  %v7842_v9 = vld [vmem:[#allocation48_spill] sm:$0xff] }
 0x200   : > { %4460 = vmatprep.mubr.msk.bf16.mxu0 %vm1495_vm5, %v7095_v5 }
 0x201   : > { %v2730_v26 = vsel %vm1377_vm3, %v7838_v46, %v5027_v63  ;;  %v2729_v0 = vsel %vm1377_vm3, %v7839_v51, %v5026_v19  ;;  %v7843_v19 = vld [vmem:[#allocation47_spill] sm:$0xff] }
 0x202   : > { %v2761_v32 = vsel %vm1410_vm4, %v2729_v0, %v5041_v44  ;;  %v2762_v27 = vsel %vm1410_vm4, %v2730_v26, %v5042_v40  ;;  %v5035_v16 = vpop.permute.xlu0 %5034 }
 0x203   : > { %v7105_v14 = vpack.c.bf16 %v2762_v27, %v2761_v32  ;;  %v5037_v13 = vunpack.i.h.bf16 %v5035_v16  ;;  %v5036_v35 = vunpack.i.l.bf16 %v5035_v16  ;;  %v5050_v8 = vpop.permute.xlu1 %5049  ;;  %v7844_v32 = vld [vmem:[#allocation45_spill] sm:$0xff]  ;;  %v7845_v16 = vld [vmem:[#allocation46_spill] sm:$0xff] }
 0x204   : > { %v5052_v22 = vunpack.i.h.bf16 %v5050_v8  ;;  %v5051_v41 = vunpack.i.l.bf16 %v5050_v8 }
 0x205   : > { %v1431_v37 = vsel %vm1410_vm4, %v1398_v62, %v5036_v35  ;;  %v1432_v7 = vsel %vm1410_vm4, %v1399_v50, %v5037_v13  ;;  %4461 = vmatmul.mubr.msk.bf16.gmra.mrb[16].mxu0 %vm1495_vm5, %v7105_v14 }
 0x206   : > { %v7115_v47 = vpack.c.bf16 %v1432_v7, %v1431_v37  ;;  %v5045_v2 = vpop.permute.xlu0 %5044  ;;  %v2732_v27 = vsel %vm1377_vm3, %v7844_v32, %v5052_v22  ;;  %v2731_v13 = vsel %vm1377_vm3, %v7845_v16, %v5051_v41 }
 0x207   : > { %v5047_v36 = vunpack.i.h.bf16 %v5045_v2  ;;  %v5046_v38 = vunpack.i.l.bf16 %v5045_v2  ;;  %v5060_v17 = vpop.permute.xlu1 %5059 }
 0x208   : > { %4359 = vmatmul.mubr.msk.bf16.gmra.mrb[16].mxu1 %vm1495_vm5, %v7115_v47  ;;  %v5062_v24 = vunpack.i.h.bf16 %v5060_v17  ;;  %v5061_v18 = vunpack.i.l.bf16 %v5060_v17  ;;  %v7846_v17 = vld [vmem:[#allocation51_spill] sm:$0xff] }
 0x209   : > { %v1401_v63 = vsel %vm1377_vm3, %v7842_v9, %v5047_v36  ;;  %v1400_v40 = vsel %vm1377_vm3, %v7843_v19, %v5046_v38 }
 0x20a   : > { %v1433_v44 = vsel %vm1410_vm4, %v1400_v40, %v5061_v18  ;;  %v1434_v10 = vsel %vm1410_vm4, %v1401_v63, %v5062_v24  ;;  %v5055_v53 = vpop.permute.xlu0 %5054  ;;  %v7847_v18 = vld [vmem:[#allocation52_spill] sm:$0xff] }
 0x20b   : > { %v7125_v46 = vpack.c.bf16 %v1434_v10, %v1433_v44  ;;  %v5070_v26 = vpop.permute.xlu1 %5069  ;;  %v5057_v36 = vunpack.i.h.bf16 %v5055_v53  ;;  %v5056_v38 = vunpack.i.l.bf16 %v5055_v53  ;;  %v7848_v53 = vld [vmem:[#allocation49_spill] sm:$0xff] }
 0x20c   : > { %v5072_v51 = vunpack.i.h.bf16 %v5070_v26  ;;  %v5071_v0 = vunpack.i.l.bf16 %v5070_v26 }
 0x20d   : > { %4362 = vmatprep.mubr.msk.bf16.mxu1 %vm1495_vm5, %v7125_v46  ;;  %v1403_v26 = vsel %vm1377_vm3, %v7848_v53, %v5057_v36 }
 0x20e   : > { %v2763_v35 = vsel %vm1410_vm4, %v2731_v13, %v5071_v0  ;;  %v2764_v8 = vsel %vm1410_vm4, %v2732_v27, %v5072_v51  ;;  %v7849_v51 = vld [vmem:[#allocation50_spill] sm:$0xff] }
 0x20f   : > { %v7135_v15 = vpack.c.bf16 %v2764_v8, %v2763_v35  ;;  %v5065_v50 = vpop.permute.xlu0 %5064  ;;  %v5080_v57 = vpop.permute.xlu1 %5079  ;;  %v1402_v0 = vsel %vm1377_vm3, %v7849_v51, %v5056_v38  ;;  %v7851_v38 = vld [vmem:[#allocation55_spill] sm:$0xff] }
 0x210   : > { %v5067_v62 = vunpack.i.h.bf16 %v5065_v50  ;;  %v5066_v37 = vunpack.i.l.bf16 %v5065_v50  ;;  %v5082_v7 = vunpack.i.h.bf16 %v5080_v57  ;;  %v5081_v2 = vunpack.i.l.bf16 %v5080_v57 }
 0x211   : > { %4464 = vmatprep.mubr.msk.bf16.mxu0 %vm1495_vm5, %v7135_v15 }
 0x212   : > { %v2734_v24 = vsel %vm1377_vm3, %v7846_v17, %v5067_v62  ;;  %v2733_v22 = vsel %vm1377_vm3, %v7847_v18, %v5066_v37 }
 0x213   : > { %v2765_v41 = vsel %vm1410_vm4, %v2733_v22, %v5081_v2  ;;  %v2766_v9 = vsel %vm1410_vm4, %v2734_v24, %v5082_v7  ;;  %v5075_v63 = vpop.permute.xlu0 %5074  ;;  %v7850_v2 = vld [vmem:[#allocation56_spill] sm:$0xff] }
 0x214   : > { %v7145_v19 = vpack.c.bf16 %v2766_v9, %v2765_v41  ;;  %v5077_v40 = vunpack.i.h.bf16 %v5075_v63  ;;  %v5076_v44 = vunpack.i.l.bf16 %v5075_v63  ;;  %v5090_v10 = vpop.permute.xlu1 %5089 }
 0x215   : > { %v5092_v37 = vunpack.i.h.bf16 %v5090_v10  ;;  %v5091_v7 = vunpack.i.l.bf16 %v5090_v10  ;;  %v7853_v10 = vld [vmem:[#allocation54_spill] sm:$0xff] }
 0x216   : > { %v1435_v32 = vsel %vm1410_vm4, %v1402_v0, %v5076_v44  ;;  %v1436_v27 = vsel %vm1410_vm4, %v1403_v26, %v5077_v40  ;;  %4465 = vmatmul.mubr.msk.bf16.gmra.mrb[20].mxu0 %vm1495_vm5, %v7145_v19  ;;  %v7852_v44 = vld [vmem:[#allocation53_spill] sm:$0xff] }
 0x217   : > { %v7155_v16 = vpack.c.bf16 %v1436_v27, %v1435_v32  ;;  %v5085_v13 = vpop.permute.xlu0 %5084  ;;  %v2736_v53 = vsel %vm1377_vm3, %v7852_v44, %v5092_v37  ;;  %v2735_v26 = vsel %vm1377_vm3, %v7853_v10, %v5091_v7  ;;  %v7854_v7 = vld [vmem:[#allocation59_spill] sm:$0xff]  ;;  %v7856_v44 = vld [vmem:[#allocation57_spill] sm:$0xff] }
 0x218   : > { %v5087_v35 = vunpack.i.h.bf16 %v5085_v13  ;;  %v5086_v8 = vunpack.i.l.bf16 %v5085_v13  ;;  %v5100_v50 = vpop.permute.xlu1 %5099 }
 0x219   : > { %4363 = vmatmul.mubr.msk.bf16.gmra.mrb[20].mxu1 %vm1495_vm5, %v7155_v16  ;;  %v5102_v57 = vunpack.i.h.bf16 %v5100_v50  ;;  %v5101_v62 = vunpack.i.l.bf16 %v5100_v50 }
 0x21a   : > { %v1405_v36 = vsel %vm1377_vm3, %v7850_v2, %v5087_v35  ;;  %v1404_v17 = vsel %vm1377_vm3, %v7851_v38, %v5086_v8 }
 0x21b   : > { %v1437_v24 = vsel %vm1410_vm4, %v1404_v17, %v5101_v62  ;;  %v1438_v18 = vsel %vm1410_vm4, %v1405_v36, %v5102_v57  ;;  %v5095_v22 = vpop.permute.xlu0 %5094  ;;  %v7855_v36 = vld [vmem:[#allocation60_spill] sm:$0xff] }
 0x21c   : > { %v7165_v41 = vpack.c.bf16 %v1438_v18, %v1437_v24  ;;  %v5110_v9 = vpop.permute.xlu1 %5109  ;;  %v5097_v62 = vunpack.i.h.bf16 %v5095_v22  ;;  %v5096_v37 = vunpack.i.l.bf16 %v5095_v22 }
 0x21d   : > { %v5112_v63 = vunpack.i.h.bf16 %v5110_v9  ;;  %v5111_v40 = vunpack.i.l.bf16 %v5110_v9 }
 0x21e   : > { %4366 = vmatprep.mubr.msk.bf16.mxu1 %vm1495_vm5, %v7165_v41  ;;  %v1407_v22 = vsel %vm1377_vm3, %v7856_v44, %v5097_v62 }
 0x21f   : > { %v2767_v51 = vsel %vm1410_vm4, %v2735_v26, %v5111_v40  ;;  %v2768_v0 = vsel %vm1410_vm4, %v2736_v53, %v5112_v63  ;;  %v7857_v53 = vld [vmem:[#allocation58_spill] sm:$0xff] }
 0x220   : > { %v7175_v32 = vpack.c.bf16 %v2768_v0, %v2767_v51  ;;  %v5105_v27 = vpop.permute.xlu0 %5104  ;;  %v5120_v13 = vpop.permute.xlu1 %5119  ;;  %v1406_v10 = vsel %vm1377_vm3, %v7857_v53, %v5096_v37 }
 0x221   : > { %v5107_v35 = vunpack.i.h.bf16 %v5105_v27  ;;  %v5106_v8 = vunpack.i.l.bf16 %v5105_v27  ;;  %v5122_v50 = vunpack.i.h.bf16 %v5120_v13  ;;  %v5121_v57 = vunpack.i.l.bf16 %v5120_v13 }
 0x222   : > { %4468 = vmatprep.mubr.msk.bf16.mxu0 %vm1495_vm5, %v7175_v32 }
 0x223   : > { %v2738_v2 = vsel %vm1377_vm3, %v7854_v7, %v5107_v35  ;;  %v2737_v38 = vsel %vm1377_vm3, %v7855_v36, %v5106_v8  ;;  %v7858_v36 = vld [vmem:[#allocation64_spill] sm:$0xff] }
 0x224   : > { %v2769_v17 = vsel %vm1410_vm4, %v2737_v38, %v5121_v57  ;;  %v2770_v24 = vsel %vm1410_vm4, %v2738_v2, %v5122_v50  ;;  %v5115_v18 = vpop.permute.xlu0 %5114 }
 0x225   : > { %v7185_v9 = vpack.c.bf16 %v2770_v24, %v2769_v17  ;;  %v5117_v63 = vunpack.i.h.bf16 %v5115_v18  ;;  %v5116_v40 = vunpack.i.l.bf16 %v5115_v18  ;;  %v5130_v26 = vpop.permute.xlu1 %5129  ;;  %v7859_v17 = vld [vmem:[#allocation63_spill] sm:$0xff] }
 0x226   : > { %v5132_v7 = vunpack.i.h.bf16 %v5130_v26  ;;  %v5131_v2 = vunpack.i.l.bf16 %v5130_v26 }
 0x227   : > { %v1439_v51 = vsel %vm1410_vm4, %v1406_v10, %v5116_v40  ;;  %v1440_v0 = vsel %vm1410_vm4, %v1407_v22, %v5117_v63  ;;  %4469 = vmatmul.mubr.msk.bf16.gmra.mrb[24].mxu0 %vm1495_vm5, %v7185_v9  ;;  %v7860_v10 = vld [vmem:[#allocation61_spill] sm:$0xff] }
 0x228   : > { %v7195_v27 = vpack.c.bf16 %v1440_v0, %v1439_v51  ;;  %v5125_v13 = vpop.permute.xlu0 %5124  ;;  %v2740_v51 = vsel %vm1377_vm3, %v7860_v10, %v5132_v7  ;;  %v7861_v0 = vld [vmem:[#allocation62_spill] sm:$0xff] }
 0x229   : > { %v5127_v35 = vunpack.i.h.bf16 %v5125_v13  ;;  %v5126_v8 = vunpack.i.l.bf16 %v5125_v13  ;;  %v2739_v26 = vsel %vm1377_vm3, %v7861_v0, %v5131_v2 }
 0x22a   : > { %4367 = vmatmul.mubr.msk.bf16.gmra.mrb[24].mxu1 %vm1495_vm5, %v7195_v27 }
 0x22b   : > { %v1409_v38 = vsel %vm1377_vm3, %v7858_v36, %v5127_v35  ;;  %v1408_v24 = vsel %vm1377_vm3, %v7859_v17, %v5126_v8 }
 0x22c   : > { %v5140_v50 = vpop.permute.xlu1 %5139  ;;  %v5135_v57 = vpop.permute.xlu0 %5134 }
 0x22d   : > { %v5137_v62 = vunpack.i.h.bf16 %v5135_v57  ;;  %v5136_v37 = vunpack.i.l.bf16 %v5135_v57  ;;  %v5142_v36 = vunpack.i.h.bf16 %v5140_v50 }
 0x22f   : > { %v1441_v18 = vsel %vm1410_vm4, %v1408_v24, %v5136_v37  ;;  %v1442_v63 = vsel %vm1410_vm4, %v1409_v38, %v5137_v62  ;;  %v5141_v38 = vunpack.i.l.bf16 %v5140_v50 }
 0x230   : > { %v7205_v40 = vpack.c.bf16 %v1442_v63, %v1441_v18  ;;  %v5150_v44 = vpop.permute.xlu1 %5149 }
 0x231   : > { %v5152_v22 = vunpack.i.h.bf16 %v5150_v44  ;;  %v5151_v53 = vunpack.i.l.bf16 %v5150_v44  ;;  %v1486_v50 = vsel %vm1377_vm3, %v6749_v6, %v5141_v38 }
 0x232   : > { %4370 = vmatprep.mubr.msk.bf16.mxu1 %vm1495_vm5, %v7205_v40 }
 0x233   : > { %v2771_v13 = vsel %vm1410_vm4, %v2739_v26, %v5151_v53  ;;  %v2772_v35 = vsel %vm1410_vm4, %v2740_v51, %v5152_v22  ;;  %v5145_v57 = vpop.permute.xlu0 %5144  ;;  %v1487_v53 = vsel %vm1377_vm3, %v6753_v43, %v5142_v36 }
 0x234   : > { %v7215_v8 = vpack.c.bf16 %v2772_v35, %v2771_v13  ;;  %v5147_v62 = vunpack.i.h.bf16 %v5145_v57  ;;  %v5146_v37 = vunpack.i.l.bf16 %v5145_v57 }
 0x236   : > { %4472 = vmatprep.mubr.msk.bf16.mxu0 %vm1495_vm5, %v7215_v8  ;;  %v2742_v18 = vsel %vm1377_vm3, %v6788_v12, %v5147_v62  ;;  %v2741_v63 = vsel %vm1377_vm3, %v6783_v33, %v5146_v37  ;;  %v3307_v33 = vsel %vm1200_vm2, %v7075_v56, 0 }
 0x237   : > { %v5160_v7 = vpop.permute.xlu1 %5159 }
 0x238   : > { %v5162_v17 = vunpack.i.h.bf16 %v5160_v7  ;;  %v5161_v2 = vunpack.i.l.bf16 %v5160_v7  ;;  %v5155_v24 = vpop.permute.xlu0 %5154 }
 0x239   : > { %v5157_v44 = vunpack.i.h.bf16 %v5155_v24  ;;  %v5156_v22 = vunpack.i.l.bf16 %v5155_v24 }
 0x23a   : > { %v2773_v10 = vsel %vm1410_vm4, %v2741_v63, %v5161_v2  ;;  %v2774_v51 = vsel %vm1410_vm4, %v2742_v18, %v5162_v17  ;;  %v1912_v17 = vsel %vm1200_vm2, %v7068_v59, 0 }
 0x23b   : > { %v7229_v0 = vpack.c.bf16 %v2774_v51, %v2773_v10  ;;  %v1489_v26 = vsel %vm1410_vm4, %v1487_v53, %v5157_v44  ;;  %v1488_v12 = vsel %vm1410_vm4, %v1486_v50, %v5156_v22 }
 0x23c   : > { %v7233_v13 = vpack.c.bf16 %v1489_v26, %v1488_v12 }
 0x23d   : > { %4473 = vmatmul.mubr.msk.bf16.gmra.mrb[28].mxu0 %vm1495_vm5, %v7229_v0 }
 0x23e   : > { %4371 = vmatmul.mubr.msk.bf16.gmra.mrb[28].mxu1 %vm1495_vm5, %v7233_v13  ;;  %4478 = vmatprep.mubr.msk.bf16.mxu0 %vm1495_vm5, %v6796_v1 }
 0x243   : > { %v5165_v6 = vpop.permute.xlu0 %5164 }
 0x244   : > { %v5170_v43 = vpop.permute.xlu1 %5169  ;;  %v5167_v35 = vunpack.i.h.bf16 %v5165_v6  ;;  %v5166_v57 = vunpack.i.l.bf16 %v5165_v6 }
 0x245   : > { %v5172_v62 = vunpack.i.h.bf16 %v5170_v43  ;;  %v5171_v37 = vunpack.i.l.bf16 %v5170_v43  ;;  %4479 = vmatmul.mubr.msk.bf16.vlgmr.msra.gmra.mrb[0].mxu0 %vm1495_vm5, %v6900_v29 }
 0x246   : > { %v1379_v36 = vsel %vm1377_vm3, %v6870_v28, %v5167_v35  ;;  %v1378_v38 = vsel %vm1377_vm3, %v6863_v21, %v5166_v57  ;;  %4511 = vmatpush3.bf16.msra.mxu0 %v3307_v33  ;;  %4482 = vmatprep.mubr.msk.bf16.mxu0 %vm1495_vm5, %v6918_v45 }
 0x247   : > { %v1411_v1 = vsel %vm1410_vm4, %v1378_v38, %v5171_v37  ;;  %v1412_v56 = vsel %vm1410_vm4, %v1379_v36, %v5172_v62 }
 0x248   : > { %v1443_v7 = vpack.c.bf16 %v1412_v56, %v1411_v1 }
 0x24a   : > { %4376 = vmatprep.mubr.msk.bf16.mxu1 %vm1495_vm5, %v1443_v7 }
 0x24b   : > { %4377 = vmatmul.mubr.msk.bf16.vlgmr.msra.gmra.mrb[0].mxu1 %vm1495_vm5, %v6842_v42 }
 0x24c   : > { %4409 = vmatpush3.bf16.msra.mxu1 %v1912_v17  ;;  %4380 = vmatprep.mubr.msk.bf16.mxu1 %vm1495_vm5, %v6808_v49 }
 0x24d   : > { %4483 = vmatmul.mubr.msk.bf16.gmra.mrb[4].mxu0 %vm1495_vm5, %v6952_v48 }
 0x24e   : > { %4486 = vmatprep.mubr.msk.bf16.mxu0 %vm1495_vm5, %v6965_v58 }
 0x253   : > { %4381 = vmatmul.mubr.msk.bf16.gmra.mrb[4].mxu1 %vm1495_vm5, %v6887_v31 }
 0x254   : > { %4384 = vmatprep.mubr.msk.bf16.mxu1 %vm1495_vm5, %v6914_v23  ;;  %v5175_v42 = vpop.permute.xlu0 %5174 }
 0x255   : > { %4487 = vmatmul.mubr.msk.bf16.gmra.mrb[8].mxu0 %vm1495_vm5, %v7024_v61  ;;  %v5177_v21 = vunpack.i.h.bf16 %v5175_v42  ;;  %v5176_v28 = vunpack.i.l.bf16 %v5175_v42 }
 0x256   : > { %4490 = vmatprep.mubr.msk.bf16.mxu0 %vm1495_vm5, %v7047_v34 }
 0x257   : > { %v5180_v59 = vpop.permute.xlu1 %5179  ;;  %v3063_v18 = vsel %vm1377_vm3, %v6937_v3, %v5177_v21  ;;  %v3062_v63 = vsel %vm1377_vm3, %v6940_v20, %v5176_v28 }
 0x258   : > { %v5182_v2 = vunpack.i.h.bf16 %v5180_v59  ;;  %v5181_v24 = vunpack.i.l.bf16 %v5180_v59 }
 0x25a   : > { %v3064_v44 = vsel %vm1410_vm4, %v3062_v63, %v5181_v24  ;;  %v3065_v22 = vsel %vm1410_vm4, %v3063_v18, %v5182_v2 }
 0x25b   : > { %4385 = vmatmul.mubr.msk.bf16.gmra.mrb[8].mxu1 %vm1495_vm5, %v6933_v54  ;;  %v3066_v53 = vpack.c.bf16 %v3065_v22, %v3064_v44 }
 0x25c   : > { %4388 = vmatprep.mubr.msk.bf16.mxu1 %vm1495_vm5, %v6986_v52 }
 0x25d   : > { %4491 = vmatmul.mubr.msk.bf16.gmra.mrb[12].mxu0 %vm1495_vm5, %v7095_v5 }
 0x25e   : > { %4494 = vmatprep.mubr.msk.bf16.mxu0 %vm1495_vm5, %v7105_v14 }
 0x263   : > { %4389 = vmatmul.mubr.msk.bf16.gmra.mrb[12].mxu1 %vm1495_vm5, %v7006_v11 }
 0x264   : > { %4392 = vmatprep.mubr.msk.bf16.mxu1 %vm1495_vm5, %v7061_v4 }
 0x265   : > { %4495 = vmatmul.mubr.msk.bf16.gmra.mrb[16].mxu0 %vm1495_vm5, %v7135_v15 }
 0x266   : > { %4498 = vmatprep.mubr.msk.bf16.mxu0 %vm1495_vm5, %v7145_v19 }
 0x26b   : > { %4393 = vmatmul.mubr.msk.bf16.gmra.mrb[16].mxu1 %vm1495_vm5, %v7082_v60 }
 0x26c   : > { %4396 = vmatprep.mubr.msk.bf16.mxu1 %vm1495_vm5, %v7115_v47 }
 0x26d   : > { %4499 = vmatmul.mubr.msk.bf16.gmra.mrb[20].mxu0 %vm1495_vm5, %v7175_v32 }
 0x26e   : > { %4502 = vmatprep.mubr.msk.bf16.mxu0 %vm1495_vm5, %v7185_v9 }
 0x273   : > { %4397 = vmatmul.mubr.msk.bf16.gmra.mrb[20].mxu1 %vm1495_vm5, %v7125_v46 }
 0x274   : > { %4400 = vmatprep.mubr.msk.bf16.mxu1 %vm1495_vm5, %v7155_v16 }
 0x275   : > { %4503 = vmatmul.mubr.msk.bf16.gmra.mrb[24].mxu0 %vm1495_vm5, %v7215_v8 }
 0x276   : > { %4506 = vmatprep.mubr.msk.bf16.mxu0 %vm1495_vm5, %v7229_v0 }
 0x27b   : > { %4401 = vmatmul.mubr.msk.bf16.gmra.mrb[24].mxu1 %vm1495_vm5, %v7165_v41 }
 0x27c   : > { %4404 = vmatprep.mubr.msk.bf16.mxu1 %vm1495_vm5, %v7195_v27 }
 0x27d   : > { %4507 = vmatmul.mubr.msk.bf16.gmra.mrb[28].mxu0 %vm1495_vm5, %v3066_v53 }
 0x27e   : > { %4512 = vmatprep.mubr.msk.bf16.mxu0 %vm1495_vm5, %v6900_v29 }
 0x283   : > { %4405 = vmatmul.mubr.msk.bf16.gmra.mrb[28].mxu1 %vm1495_vm5, %v7205_v40 }
 0x284   : > { %4410 = vmatprep.mubr.msk.bf16.mxu1 %vm1495_vm5, %v6808_v49  ;;  %v5190_v49 = vpop.permute.xlu1 %5189 }
 0x285   : > { %4513 = vmatmul.mubr.msk.bf16.vlgmr.msra.gmra.mrb[0].mxu0 %vm1495_vm5, %v6918_v45  ;;  %v5191_v29 = vunpack.i.l.bf16 %v5190_v49 }
 0x286   : > { %4516 = vmatprep.mubr.msk.bf16.mxu0 %vm1495_vm5, %v6952_v48 }
 0x287   : > { %v3294_v48 = vsel %vm1377_vm3, %v7000_v39, %v5191_v29 }
 0x288   : > { %v5200_v45 = vpop.permute.xlu1 %5199 }
 0x289   : > { %v5201_v3 = vunpack.i.l.bf16 %v5200_v45 }
 0x28b   : > { %4411 = vmatmul.mubr.msk.bf16.vlgmr.msra.gmra.mrb[0].mxu1 %vm1495_vm5, %v6887_v31  ;;  %v5192_v31 = vunpack.i.h.bf16 %v5190_v49 }
 0x28c   : > { %4414 = vmatprep.mubr.msk.bf16.mxu1 %vm1495_vm5, %v6914_v23  ;;  %v5185_v23 = vpop.permute.xlu0 %5184 }
 0x28d   : > { %4517 = vmatmul.mubr.msk.bf16.gmra.mrb[4].mxu0 %vm1495_vm5, %v6965_v58  ;;  %v3295_v20 = vsel %vm1377_vm3, %v7009_v30, %v5192_v31  ;;  %v5187_v58 = vunpack.i.h.bf16 %v5185_v23 }
 0x28e   : > { %4520 = vmatprep.mubr.msk.bf16.mxu0 %vm1495_vm5, %v7024_v61  ;;  %v3296_v61 = vsel %vm1410_vm4, %v3294_v48, %v5201_v3 }
 0x28f   : > { %v1900_v30 = vsel %vm1377_vm3, %v7019_v25, %v5187_v58 }
 0x293   : > { %4415 = vmatmul.mubr.msk.bf16.gmra.mrb[4].mxu1 %vm1495_vm5, %v6933_v54  ;;  %v5202_v54 = vunpack.i.h.bf16 %v5200_v45 }
 0x294   : > { %4418 = vmatprep.mubr.msk.bf16.mxu1 %vm1495_vm5, %v6986_v52  ;;  %v5186_v52 = vunpack.i.l.bf16 %v5185_v23 }
 0x295   : > { %4521 = vmatmul.mubr.msk.bf16.gmra.mrb[8].mxu0 %vm1495_vm5, %v7047_v34  ;;  %v3297_v34 = vsel %vm1410_vm4, %v3295_v20, %v5202_v54 }
 0x296   : > { %4524 = vmatprep.mubr.msk.bf16.mxu0 %vm1495_vm5, %v7095_v5  ;;  %v1899_v39 = vsel %vm1377_vm3, %v7022_v55, %v5186_v52  ;;  %v3298_v5 = vpack.c.bf16 %v3297_v34, %v3296_v61 }
 0x29b   : > { %4419 = vmatmul.mubr.msk.bf16.gmra.mrb[8].mxu1 %vm1495_vm5, %v7006_v11  ;;  %v5195_v11 = vpop.permute.xlu0 %5194 }
 0x29c   : > { %4422 = vmatprep.mubr.msk.bf16.mxu1 %vm1495_vm5, %v7061_v4  ;;  %v5197_v4 = vunpack.i.h.bf16 %v5195_v11 }
 0x29d   : > { %4525 = vmatmul.mubr.msk.bf16.gmra.mrb[12].mxu0 %vm1495_vm5, %v7105_v14 }
 0x29e   : > { %4528 = vmatprep.mubr.msk.bf16.mxu0 %vm1495_vm5, %v7135_v15 }
 0x2a3   : > { %4423 = vmatmul.mubr.msk.bf16.gmra.mrb[12].mxu1 %vm1495_vm5, %v7082_v60  ;;  %v5196_v60 = vunpack.i.l.bf16 %v5195_v11 }
 0x2a4   : > { %4426 = vmatprep.mubr.msk.bf16.mxu1 %vm1495_vm5, %v7115_v47  ;;  %v1902_v47 = vsel %vm1410_vm4, %v1900_v30, %v5197_v4 }
 0x2a5   : > { %4529 = vmatmul.mubr.msk.bf16.gmra.mrb[16].mxu0 %vm1495_vm5, %v7145_v19  ;;  %v1901_v14 = vsel %vm1410_vm4, %v1899_v39, %v5196_v60 }
 0x2a6   : > { %4532 = vmatprep.mubr.msk.bf16.mxu0 %vm1495_vm5, %v7175_v32 }
 0x2ab   : > { %4427 = vmatmul.mubr.msk.bf16.gmra.mrb[16].mxu1 %vm1495_vm5, %v7125_v46  ;;  %v1903_v46 = vpack.c.bf16 %v1902_v47, %v1901_v14 }
 0x2ac   : > { %4430 = vmatprep.mubr.msk.bf16.mxu1 %vm1495_vm5, %v7155_v16 }
 0x2ad   : > { %4533 = vmatmul.mubr.msk.bf16.gmra.mrb[20].mxu0 %vm1495_vm5, %v7185_v9 }
 0x2ae   : > { %4536 = vmatprep.mubr.msk.bf16.mxu0 %vm1495_vm5, %v7215_v8 }
 0x2b3   : > { %4431 = vmatmul.mubr.msk.bf16.gmra.mrb[20].mxu1 %vm1495_vm5, %v7165_v41  ;;  %v7390_v41 = vld [vmem:[#allocation14] ss:$0 sm:$0xff] }
 0x2b4   : > { %4434 = vmatprep.mubr.msk.bf16.mxu1 %vm1495_vm5, %v7195_v27 }
 0x2b5   : > { %4537 = vmatmul.mubr.msk.bf16.gmra.mrb[24].mxu0 %vm1495_vm5, %v7229_v0 }
 0x2b6   : > { %4540 = vmatprep.mubr.msk.bf16.mxu0 %vm1495_vm5, %v3066_v53 }
 0x2bb   : > { %4435 = vmatmul.mubr.msk.bf16.gmra.mrb[24].mxu1 %vm1495_vm5, %v7205_v40 }
 0x2bc   : > { %4438 = vmatprep.mubr.msk.bf16.mxu1 %vm1495_vm5, %v7233_v13 }
 0x2bd   : > { %4541 = vmatmul.mubr.msk.bf16.gmra.mrb[28].mxu0 %vm1495_vm5, %v3298_v5 }
 0x2c3   : > { %4439 = vmatmul.mubr.msk.bf16.gmra.mrb[28].mxu1 %vm1495_vm5, %v1903_v46 }
 0x358   : > { %v4514_v25 = vpop.f32.mrb[0].mxu0 }
 0x359   : > { %v3343_v15 = vpop.f32.mrb[1].mxu0 }
 0x35a   : > { %v4515_v19 = vpop.f32.mrb[2].mxu0 }
 0x35b   : > { %v3346_v55 = vpop.f32.mrb[3].mxu0 }
 0x35e   : > { %v4412_v16 = vpop.f32.mrb[0].mxu1 }
 0x35f   : > { %v4544_v32 = vadd.f32 %v4514_v25, %v4412_v16  ;;  %v1948_v9 = vpop.f32.mrb[1].mxu1 }
 0x360   : > { %v4545_v27 = vadd.f32 %v3343_v15, %v1948_v9  ;;  %v4413_v40 = vpop.f32.mrb[2].mxu1  ;;  %v4518_v8 = vpop.f32.mrb[4].mxu0 }
 0x361   : > { %v3511_v50 = vadd.f32 %v4544_v32, %v7390_v41  ;;  %v4546_v10 = vadd.f32 %v4515_v19, %v4413_v40  ;;  %v1951_v51 = vpop.f32.mrb[3].mxu1  ;;  %v3359_v0 = vpop.f32.mrb[5].mxu0 }
 0x362   : > { %v3509_v26 = vadd.f32 %v4545_v27, %v7390_v41  ;;  %v4547_v12 = vadd.f32 %v3346_v55, %v1951_v51  ;;  %v4519_v13 = vpop.f32.mrb[6].mxu0 }
 0x363   : > { %3543 = vst.msk [vmem:[%s7395_s14 + $0x10] sm:$0xff] %vm1377_vm3, %v3511_v50  ;;  %v3512_v6 = vadd.f32 %v4546_v10, %v7390_v41  ;;  %v3362_v43 = vpop.f32.mrb[7].mxu0  ;;  %v3646_v57 = vmul.f32 %v3511_v50, %v3511_v50  ;;  %v3576_v42 = vsel %vm1377_vm3, %v3511_v50, 0.0 }
 0x364   : > { %3541 = vst.msk [vmem:[%s7395_s14] sm:$0xff] %vm1377_vm3, %v3509_v26  ;;  %v3644_v33 = vmul.f32 %v3509_v26, %v3509_v26  ;;  %v3510_v35 = vadd.f32 %v4547_v12, %v7390_v41  ;;  %v3573_v62 = vsel %vm1377_vm3, %v3509_v26, 0.0 }
 0x365   : > { %3544 = vst.msk [vmem:[%s7395_s14 + $0x18] sm:$0xff] %vm1377_vm3, %v3512_v6  ;;  %v3647_v1 = vmul.f32 %v3512_v6, %v3512_v6  ;;  %v3679_v31 = vsel %vm1377_vm3, %v3646_v57, 0.0  ;;  %v3578_v29 = vsel %vm1377_vm3, %v3512_v6, 0.0 }
 0x366   : > { %3542 = vst.msk [vmem:[%s7395_s14 + $0x8] sm:$0xff] %vm1377_vm3, %v3510_v35  ;;  %v3574_v37 = vsel %vm1377_vm3, %v3510_v35, 0.0  ;;  %v3645_v36 = vmul.f32 %v3510_v35, %v3510_v35  ;;  %v4416_v38 = vpop.f32.mrb[4].mxu1  ;;  %v3676_v21 = vsel %vm1377_vm3, %v3644_v33, 0.0 }
 0x367   : > { %v3575_v56 = vadd.f32 %v3574_v37, %v3573_v62  ;;  %v4548_v7 = vadd.f32 %v4518_v8, %v4416_v38  ;;  %v1964_v17 = vpop.f32.mrb[5].mxu1  ;;  %v3681_v3 = vsel %vm1377_vm3, %v3647_v1, 0.0 }
 0x368   : > { %v3677_v28 = vsel %vm1377_vm3, %v3645_v36, 0.0  ;;  %v4549_v59 = vadd.f32 %v3359_v0, %v1964_v17  ;;  %v4417_v2 = vpop.f32.mrb[6].mxu1  ;;  %v4522_v24 = vpop.f32.mrb[8].mxu0 }
 0x369   : > { %v3577_v18 = vadd.f32 %v3576_v42, %v3575_v56  ;;  %v3678_v63 = vadd.f32 %v3677_v28, %v3676_v21  ;;  %v3515_v44 = vadd.f32 %v4548_v7, %v7390_v41  ;;  %v4550_v22 = vadd.f32 %v4519_v13, %v4417_v2  ;;  %v1967_v53 = vpop.f32.mrb[7].mxu1  ;;  %v3375_v49 = vpop.f32.mrb[9].mxu0 }
 0x36a   : > { %v3513_v23 = vadd.f32 %v4549_v59, %v7390_v41  ;;  %v4551_v45 = vadd.f32 %v3362_v43, %v1967_v53  ;;  %v4523_v54 = vpop.f32.mrb[10].mxu0 }
 0x36b   : > { %v3680_v20 = vadd.f32 %v3679_v31, %v3678_v63  ;;  %3547 = vst.msk [vmem:[%s7395_s14 + $0x30] sm:$0xff] %vm1377_vm3, %v3515_v44  ;;  %v3579_v48 = vadd.f32 %v3578_v29, %v3577_v18  ;;  %v3378_v58 = vpop.f32.mrb[11].mxu0  ;;  %v3516_v61 = vadd.f32 %v4550_v22, %v7390_v41  ;;  %v3650_v30 = vmul.f32 %v3515_v44, %v3515_v44 }
 0x36c   : > { %3545 = vst.msk [vmem:[%s7395_s14 + $0x20] sm:$0xff] %vm1377_vm3, %v3513_v23  ;;  %v3580_v52 = vsel %vm1377_vm3, %v3513_v23, 0.0  ;;  %v3648_v11 = vmul.f32 %v3513_v23, %v3513_v23  ;;  %v3514_v34 = vadd.f32 %v4551_v45, %v7390_v41  ;;  %v3584_v55 = vsel %vm1377_vm3, %v3515_v44, 0.0 }
 0x36d   : > { %v3581_v4 = vadd.f32 %v3580_v52, %v3579_v48  ;;  %v3682_v60 = vadd.f32 %v3681_v3, %v3680_v20  ;;  %3548 = vst.msk [vmem:[%s7395_s14 + $0x38] sm:$0xff] %vm1377_vm3, %v3516_v61  ;;  %v3651_v16 = vmul.f32 %v3516_v61, %v3516_v61  ;;  %v3586_v26 = vsel %vm1377_vm3, %v3516_v61, 0.0 }
 0x36e   : > { %v3683_v39 = vsel %vm1377_vm3, %v3648_v11, 0.0  ;;  %3546 = vst.msk [vmem:[%s7395_s14 + $0x28] sm:$0xff] %vm1377_vm3, %v3514_v34  ;;  %v3582_v5 = vsel %vm1377_vm3, %v3514_v34, 0.0  ;;  %v4420_v14 = vpop.f32.mrb[8].mxu1  ;;  %v3649_v25 = vmul.f32 %v3514_v34, %v3514_v34  ;;  %v3687_v33 = vsel %vm1377_vm3, %v3650_v30, 0.0 }
 0x36f   : > { %v3684_v47 = vadd.f32 %v3683_v39, %v3682_v60  ;;  %v3583_v46 = vadd.f32 %v3582_v5, %v3581_v4  ;;  %v4552_v15 = vadd.f32 %v4522_v24, %v4420_v14  ;;  %v1980_v19 = vpop.f32.mrb[9].mxu1  ;;  %v3689_v56 = vsel %vm1377_vm3, %v3651_v16, 0.0 }
 0x370   : > { %v4553_v32 = vadd.f32 %v3375_v49, %v1980_v19  ;;  %v4421_v9 = vpop.f32.mrb[10].mxu1  ;;  %v4526_v27 = vpop.f32.mrb[12].mxu0  ;;  %v3685_v8 = vsel %vm1377_vm3, %v3649_v25, 0.0 }
 0x371   : > { %v3585_v40 = vadd.f32 %v3584_v55, %v3583_v46  ;;  %v3519_v50 = vadd.f32 %v4552_v15, %v7390_v41  ;;  %v4554_v10 = vadd.f32 %v4523_v54, %v4421_v9  ;;  %v1983_v51 = vpop.f32.mrb[11].mxu1  ;;  %v3391_v0 = vpop.f32.mrb[13].mxu0  ;;  %v3686_v12 = vadd.f32 %v3685_v8, %v3684_v47 }
 0x372   : > { %v3517_v13 = vadd.f32 %v4553_v32, %v7390_v41  ;;  %v4555_v6 = vadd.f32 %v3378_v58, %v1983_v51  ;;  %v4527_v43 = vpop.f32.mrb[14].mxu0 }
 0x373   : > { %3551 = vst.msk [vmem:[%s7395_s14 + $0x50] sm:$0xff] %vm1377_vm3, %v3519_v50  ;;  %v3587_v35 = vadd.f32 %v3586_v26, %v3585_v40  ;;  %v3520_v57 = vadd.f32 %v4554_v10, %v7390_v41  ;;  %v3394_v62 = vpop.f32.mrb[15].mxu0  ;;  %v3688_v37 = vadd.f32 %v3687_v33, %v3686_v12  ;;  %v3654_v2 = vmul.f32 %v3519_v50, %v3519_v50 }
 0x374   : > { %3549 = vst.msk [vmem:[%s7395_s14 + $0x40] sm:$0xff] %vm1377_vm3, %v3517_v13  ;;  %v3588_v36 = vsel %vm1377_vm3, %v3517_v13, 0.0  ;;  %v3652_v38 = vmul.f32 %v3517_v13, %v3517_v13  ;;  %v3518_v1 = vadd.f32 %v4555_v6, %v7390_v41  ;;  %v3592_v44 = vsel %vm1377_vm3, %v3519_v50, 0.0 }
 0x375   : > { %v3589_v7 = vadd.f32 %v3588_v36, %v3587_v35  ;;  %3552 = vst.msk [vmem:[%s7395_s14 + $0x58] sm:$0xff] %vm1377_vm3, %v3520_v57  ;;  %v3690_v17 = vadd.f32 %v3689_v56, %v3688_v37  ;;  %v3655_v23 = vmul.f32 %v3520_v57, %v3520_v57  ;;  %v3594_v58 = vsel %vm1377_vm3, %v3520_v57, 0.0 }
 0x376   : > { %v3691_v42 = vsel %vm1377_vm3, %v3652_v38, 0.0  ;;  %3550 = vst.msk [vmem:[%s7395_s14 + $0x48] sm:$0xff] %vm1377_vm3, %v3518_v1  ;;  %v3590_v21 = vsel %vm1377_vm3, %v3518_v1, 0.0  ;;  %v3653_v28 = vmul.f32 %v3518_v1, %v3518_v1  ;;  %v4424_v59 = vpop.f32.mrb[12].mxu1  ;;  %v3695_v4 = vsel %vm1377_vm3, %v3654_v2, 0.0 }
 0x377   : > { %v3591_v24 = vadd.f32 %v3590_v21, %v3589_v7  ;;  %v4556_v18 = vadd.f32 %v4526_v27, %v4424_v59  ;;  %v1996_v63 = vpop.f32.mrb[13].mxu1  ;;  %v3692_v22 = vadd.f32 %v3691_v42, %v3690_v17  ;;  %v3697_v25 = vsel %vm1377_vm3, %v3655_v23, 0.0 }
 0x378   : > { %v3693_v53 = vsel %vm1377_vm3, %v3653_v28, 0.0  ;;  %v4557_v49 = vadd.f32 %v3391_v0, %v1996_v63  ;;  %v4425_v31 = vpop.f32.mrb[14].mxu1  ;;  %v4530_v29 = vpop.f32.mrb[16].mxu0 }
 0x379   : > { %v3593_v45 = vadd.f32 %v3592_v44, %v3591_v24  ;;  %v3523_v54 = vadd.f32 %v4556_v18, %v7390_v41  ;;  %v4558_v3 = vadd.f32 %v4527_v43, %v4425_v31  ;;  %v1999_v20 = vpop.f32.mrb[15].mxu1  ;;  %v3407_v48 = vpop.f32.mrb[17].mxu0  ;;  %v3694_v52 = vadd.f32 %v3693_v53, %v3692_v22 }
 0x37a   : > { %v3521_v11 = vadd.f32 %v4557_v49, %v7390_v41  ;;  %v4559_v61 = vadd.f32 %v3394_v62, %v1999_v20  ;;  %v4531_v34 = vpop.f32.mrb[18].mxu0 }
 0x37b   : > { %3555 = vst.msk [vmem:[%s7395_s14 + $0x70] sm:$0xff] %vm1377_vm3, %v3523_v54  ;;  %v3595_v60 = vadd.f32 %v3594_v58, %v3593_v45  ;;  %v3524_v30 = vadd.f32 %v4558_v3, %v7390_v41  ;;  %v3410_v39 = vpop.f32.mrb[19].mxu0  ;;  %v3696_v5 = vadd.f32 %v3695_v4, %v3694_v52  ;;  %v3658_v27 = vmul.f32 %v3523_v54, %v3523_v54 }
 0x37c   : > { %3553 = vst.msk [vmem:[%s7395_s14 + $0x60] sm:$0xff] %vm1377_vm3, %v3521_v11  ;;  %v3596_v14 = vsel %vm1377_vm3, %v3521_v11, 0.0  ;;  %v3656_v47 = vmul.f32 %v3521_v11, %v3521_v11  ;;  %v3522_v46 = vadd.f32 %v4559_v61, %v7390_v41  ;;  %v3600_v10 = vsel %vm1377_vm3, %v3523_v54, 0.0 }
 0x37d   : > { %v3597_v15 = vadd.f32 %v3596_v14, %v3595_v60  ;;  %3556 = vst.msk [vmem:[%s7395_s14 + $0x78] sm:$0xff] %vm1377_vm3, %v3524_v30  ;;  %v3698_v19 = vadd.f32 %v3697_v25, %v3696_v5  ;;  %v3659_v6 = vmul.f32 %v3524_v30, %v3524_v30  ;;  %v3602_v37 = vsel %vm1377_vm3, %v3524_v30, 0.0 }
 0x37e   : > { %v3699_v55 = vsel %vm1377_vm3, %v3656_v47, 0.0  ;;  %3554 = vst.msk [vmem:[%s7395_s14 + $0x68] sm:$0xff] %vm1377_vm3, %v3522_v46  ;;  %v3598_v16 = vsel %vm1377_vm3, %v3522_v46, 0.0  ;;  %v3657_v32 = vmul.f32 %v3522_v46, %v3522_v46  ;;  %v4428_v9 = vpop.f32.mrb[16].mxu1  ;;  %v3703_v7 = vsel %vm1377_vm3, %v3658_v27, 0.0 }
 0x37f   : > { %v3599_v40 = vadd.f32 %v3598_v16, %v3597_v15  ;;  %v4560_v8 = vadd.f32 %v4530_v29, %v4428_v9  ;;  %v2012_v50 = vpop.f32.mrb[17].mxu1  ;;  %v3700_v51 = vadd.f32 %v3699_v55, %v3698_v19  ;;  %v3705_v18 = vsel %vm1377_vm3, %v3659_v6, 0.0 }
 0x380   : > { %v3701_v0 = vsel %vm1377_vm3, %v3657_v32, 0.0  ;;  %v4561_v26 = vadd.f32 %v3407_v48, %v2012_v50  ;;  %v4429_v12 = vpop.f32.mrb[18].mxu1  ;;  %v4534_v13 = vpop.f32.mrb[20].mxu0 }
 0x381   : > { %v3601_v43 = vadd.f32 %v3600_v10, %v3599_v40  ;;  %v3527_v33 = vadd.f32 %v4560_v8, %v7390_v41  ;;  %v4562_v35 = vadd.f32 %v4531_v34, %v4429_v12  ;;  %v2015_v57 = vpop.f32.mrb[19].mxu1  ;;  %v3423_v62 = vpop.f32.mrb[21].mxu0  ;;  %v3702_v36 = vadd.f32 %v3701_v0, %v3700_v51 }
 0x382   : > { %v3525_v38 = vadd.f32 %v4561_v26, %v7390_v41  ;;  %v4563_v1 = vadd.f32 %v3410_v39, %v2015_v57  ;;  %v4535_v56 = vpop.f32.mrb[22].mxu0 }
 0x383   : > { %3559 = vst.msk [vmem:[%s7395_s14 + $0x90] sm:$0xff] %vm1377_vm3, %v3527_v33  ;;  %v3603_v17 = vadd.f32 %v3602_v37, %v3601_v43  ;;  %v3528_v42 = vadd.f32 %v4562_v35, %v7390_v41  ;;  %v3426_v21 = vpop.f32.mrb[23].mxu0  ;;  %v3704_v28 = vadd.f32 %v3703_v7, %v3702_v36  ;;  %v3662_v29 = vmul.f32 %v3527_v33, %v3527_v33 }
 0x384   : > { %3557 = vst.msk [vmem:[%s7395_s14 + $0x80] sm:$0xff] %vm1377_vm3, %v3525_v38  ;;  %v3604_v59 = vsel %vm1377_vm3, %v3525_v38, 0.0  ;;  %v3660_v2 = vmul.f32 %v3525_v38, %v3525_v38  ;;  %v3526_v24 = vadd.f32 %v4563_v1, %v7390_v41  ;;  %v3608_v3 = vsel %vm1377_vm3, %v3527_v33, 0.0 }
 0x385   : > { %v3605_v63 = vadd.f32 %v3604_v59, %v3603_v17  ;;  %3560 = vst.msk [vmem:[%s7395_s14 + $0x98] sm:$0xff] %vm1377_vm3, %v3528_v42  ;;  %v3706_v44 = vadd.f32 %v3705_v18, %v3704_v28  ;;  %v3663_v61 = vmul.f32 %v3528_v42, %v3528_v42  ;;  %v3610_v5 = vsel %vm1377_vm3, %v3528_v42, 0.0 }
 0x386   : > { %v3707_v22 = vsel %vm1377_vm3, %v3660_v2, 0.0  ;;  %3558 = vst.msk [vmem:[%s7395_s14 + $0x88] sm:$0xff] %vm1377_vm3, %v3526_v24  ;;  %v3606_v53 = vsel %vm1377_vm3, %v3526_v24, 0.0  ;;  %v3661_v49 = vmul.f32 %v3526_v24, %v3526_v24  ;;  %v4432_v31 = vpop.f32.mrb[20].mxu1  ;;  %v3711_v15 = vsel %vm1377_vm3, %v3662_v29, 0.0 }
 0x387   : > { %v3607_v23 = vadd.f32 %v3606_v53, %v3605_v63  ;;  %v4564_v45 = vadd.f32 %v4534_v13, %v4432_v31  ;;  %v2028_v54 = vpop.f32.mrb[21].mxu1  ;;  %v3708_v20 = vadd.f32 %v3707_v22, %v3706_v44  ;;  %v3713_v8 = vsel %vm1377_vm3, %v3663_v61, 0.0 }
 0x388   : > { %v3709_v48 = vsel %vm1377_vm3, %v3661_v49, 0.0  ;;  %v4565_v58 = vadd.f32 %v3423_v62, %v2028_v54  ;;  %v4433_v52 = vpop.f32.mrb[22].mxu1  ;;  %v4538_v11 = vpop.f32.mrb[24].mxu0 }
 0x389   : > { %v3609_v34 = vadd.f32 %v3608_v3, %v3607_v23  ;;  %v3531_v4 = vadd.f32 %v4564_v45, %v7390_v41  ;;  %v4566_v60 = vadd.f32 %v4535_v56, %v4433_v52  ;;  %v2031_v30 = vpop.f32.mrb[23].mxu1  ;;  %v3439_v39 = vpop.f32.mrb[25].mxu0  ;;  %v3710_v14 = vadd.f32 %v3709_v48, %v3708_v20 }
 0x38a   : > { %v3529_v47 = vadd.f32 %v4565_v58, %v7390_v41  ;;  %v4567_v46 = vadd.f32 %v3426_v21, %v2031_v30  ;;  %v4539_v25 = vpop.f32.mrb[26].mxu0 }
 0x38b   : > { %3563 = vst.msk [vmem:[%s7395_s14 + $0xb0] sm:$0xff] %vm1377_vm3, %v3531_v4  ;;  %v3611_v19 = vadd.f32 %v3610_v5, %v3609_v34  ;;  %v3532_v55 = vadd.f32 %v4566_v60, %v7390_v41  ;;  %v3442_v16 = vpop.f32.mrb[27].mxu0  ;;  %v3712_v32 = vadd.f32 %v3711_v15, %v3710_v14  ;;  %v3666_v13 = vmul.f32 %v3531_v4, %v3531_v4 }
 0x38c   : > { %3561 = vst.msk [vmem:[%s7395_s14 + $0xa0] sm:$0xff] %vm1377_vm3, %v3529_v47  ;;  %v3612_v9 = vsel %vm1377_vm3, %v3529_v47, 0.0  ;;  %v3664_v27 = vmul.f32 %v3529_v47, %v3529_v47  ;;  %v3530_v40 = vadd.f32 %v4567_v46, %v7390_v41  ;;  %v3616_v35 = vsel %vm1377_vm3, %v3531_v4, 0.0 }
 0x38d   : > { %v3613_v50 = vadd.f32 %v3612_v9, %v3611_v19  ;;  %3564 = vst.msk [vmem:[%s7395_s14 + $0xb8] sm:$0xff] %vm1377_vm3, %v3532_v55  ;;  %v3714_v10 = vadd.f32 %v3713_v8, %v3712_v32  ;;  %v3667_v1 = vmul.f32 %v3532_v55, %v3532_v55  ;;  %v3618_v28 = vsel %vm1377_vm3, %v3532_v55, 0.0 }
 0x38e   : > { %v3715_v51 = vsel %vm1377_vm3, %v3664_v27, 0.0  ;;  %3562 = vst.msk [vmem:[%s7395_s14 + $0xa8] sm:$0xff] %vm1377_vm3, %v3530_v40  ;;  %v3614_v0 = vsel %vm1377_vm3, %v3530_v40, 0.0  ;;  %v3665_v26 = vmul.f32 %v3530_v40, %v3530_v40  ;;  %v4436_v12 = vpop.f32.mrb[24].mxu1  ;;  %v3719_v63 = vsel %vm1377_vm3, %v3666_v13, 0.0 }
 0x38f   : > { %v3615_v6 = vadd.f32 %v3614_v0, %v3613_v50  ;;  %v4568_v43 = vadd.f32 %v4538_v11, %v4436_v12  ;;  %v2044_v33 = vpop.f32.mrb[25].mxu1  ;;  %v3716_v57 = vadd.f32 %v3715_v51, %v3714_v10  ;;  %v3721_v45 = vsel %vm1377_vm3, %v3667_v1, 0.0 }
 0x390   : > { %v3717_v62 = vsel %vm1377_vm3, %v3665_v26, 0.0  ;;  %v4569_v37 = vadd.f32 %v3439_v39, %v2044_v33  ;;  %v4437_v36 = vpop.f32.mrb[26].mxu1  ;;  %v4542_v38 = vpop.f32.mrb[28].mxu0 }
 0x391   : > { %v3617_v56 = vadd.f32 %v3616_v35, %v3615_v6  ;;  %v3535_v7 = vadd.f32 %v4568_v43, %v7390_v41  ;;  %v4570_v17 = vadd.f32 %v4539_v25, %v4437_v36  ;;  %v2047_v42 = vpop.f32.mrb[27].mxu1  ;;  %v3455_v21 = vpop.f32.mrb[29].mxu0  ;;  %v3718_v59 = vadd.f32 %v3717_v62, %v3716_v57 }
 0x392   : > { %v3533_v2 = vadd.f32 %v4569_v37, %v7390_v41  ;;  %v4571_v24 = vadd.f32 %v3442_v16, %v2047_v42  ;;  %v4543_v18 = vpop.f32.mrb[30].mxu0 }
 0x393   : > { %3567 = vst.msk [vmem:[%s7395_s14 + $0xd0] sm:$0xff] %vm1377_vm3, %v3535_v7  ;;  %v3619_v44 = vadd.f32 %v3618_v28, %v3617_v56  ;;  %v3536_v22 = vadd.f32 %v4570_v17, %v7390_v41  ;;  %v3458_v53 = vpop.f32.mrb[31].mxu0  ;;  %v3720_v49 = vadd.f32 %v3719_v63, %v3718_v59  ;;  %v3670_v11 = vmul.f32 %v3535_v7, %v3535_v7 }
 0x394   : > { %3565 = vst.msk [vmem:[%s7395_s14 + $0xc0] sm:$0xff] %vm1377_vm3, %v3533_v2  ;;  %v3620_v31 = vsel %vm1377_vm3, %v3533_v2, 0.0  ;;  %v3668_v29 = vmul.f32 %v3533_v2, %v3533_v2  ;;  %v3534_v23 = vadd.f32 %v4571_v24, %v7390_v41  ;;  %v3624_v60 = vsel %vm1377_vm3, %v3535_v7, 0.0 }
 0x395   : > { %v3621_v54 = vadd.f32 %v3620_v31, %v3619_v44  ;;  %3568 = vst.msk [vmem:[%s7395_s14 + $0xd8] sm:$0xff] %vm1377_vm3, %v3536_v22  ;;  %v3722_v3 = vadd.f32 %v3721_v45, %v3720_v49  ;;  %v3671_v47 = vmul.f32 %v3536_v22, %v3536_v22  ;;  %v3626_v55 = vsel %vm1377_vm3, %v3536_v22, 0.0 }
 0x396   : > { %v3723_v20 = vsel %vm1377_vm3, %v3668_v29, 0.0  ;;  %3566 = vst.msk [vmem:[%s7395_s14 + $0xc8] sm:$0xff] %vm1377_vm3, %v3534_v23  ;;  %v3622_v48 = vsel %vm1377_vm3, %v3534_v23, 0.0  ;;  %v3669_v58 = vmul.f32 %v3534_v23, %v3534_v23  ;;  %v4440_v52 = vpop.f32.mrb[28].mxu1  ;;  %v3727_v27 = vsel %vm1377_vm3, %v3670_v11, 0.0 }
 0x397   : > { %v3623_v61 = vadd.f32 %v3622_v48, %v3621_v54  ;;  %v4572_v34 = vadd.f32 %v4542_v38, %v4440_v52  ;;  %v2060_v4 = vpop.f32.mrb[29].mxu1  ;;  %v3724_v30 = vadd.f32 %v3723_v20, %v3722_v3  ;;  %v3729_v26 = vsel %vm1377_vm3, %v3671_v47, 0.0 }
 0x398   : > { %v3725_v39 = vsel %vm1377_vm3, %v3669_v58, 0.0  ;;  %v4573_v5 = vadd.f32 %v3455_v21, %v2060_v4  ;;  %v4441_v14 = vpop.f32.mrb[30].mxu1 }
 0x399   : > { %v3625_v46 = vadd.f32 %v3624_v60, %v3623_v61  ;;  %v3539_v25 = vadd.f32 %v4572_v34, %v7390_v41  ;;  %v4574_v15 = vadd.f32 %v4543_v18, %v4441_v14  ;;  %v2063_v19 = vpop.f32.mrb[31].mxu1  ;;  %v3726_v16 = vadd.f32 %v3725_v39, %v3724_v30 }
 0x39a   : > { %v3537_v32 = vadd.f32 %v4573_v5, %v7390_v41  ;;  %v4575_v9 = vadd.f32 %v3458_v53, %v2063_v19 }
 0x39b   : > { %3571 = vst.msk [vmem:[%s7395_s14 + $0xf0] sm:$0xff] %vm1377_vm3, %v3539_v25  ;;  %v3627_v40 = vadd.f32 %v3626_v55, %v3625_v46  ;;  %v3540_v8 = vadd.f32 %v4574_v15, %v7390_v41  ;;  %v3728_v50 = vadd.f32 %v3727_v27, %v3726_v16  ;;  %v3674_v35 = vmul.f32 %v3539_v25, %v3539_v25 }
 0x39c   : > { %3569 = vst.msk [vmem:[%s7395_s14 + $0xe0] sm:$0xff] %vm1377_vm3, %v3537_v32  ;;  %v3628_v10 = vsel %vm1377_vm3, %v3537_v32, 0.0  ;;  %v3672_v51 = vmul.f32 %v3537_v32, %v3537_v32  ;;  %v3538_v0 = vadd.f32 %v4575_v9, %v7390_v41 }
 0x39d   : > { %v3629_v12 = vadd.f32 %v3628_v10, %v3627_v40  ;;  %3572 = vst.msk [vmem:[%s7395_s14 + $0xf8] sm:$0xff] %vm1377_vm3, %v3540_v8  ;;  %v3730_v13 = vadd.f32 %v3729_v26, %v3728_v50 }
 0x39e   : > { %v3731_v6 = vsel %vm1377_vm3, %v3672_v51, 0.0  ;;  %3570 = vst.msk [vmem:[%s7395_s14 + $0xe8] sm:$0xff] %vm1377_vm3, %v3538_v0  ;;  %v3630_v43 = vsel %vm1377_vm3, %v3538_v0, 0.0  ;;  %v3673_v33 = vmul.f32 %v3538_v0, %v3538_v0 }
 0x39f   : > { %v3631_v41 = vadd.f32 %v3630_v43, %v3629_v12 }
 0x3a0   : > { %5480 = shalt.err (!%p5477_p5)
}
 0x3a1   : > { %s5481_s1 = scalar_lea.hbm %s7544_s25, 4096  ;;  %s5485_s19 = scalar_lea.hbm %s7863_s12, 8192 }
 0x3a2   : > { %p5482_p6 = scmp.ne.s32.totalorder %s7544_s25, %s5481_s1  ;;  %p5486_p13 = scmp.lt.u32.totalorder %s7544_s25, %s7863_s12 }
 0x3a3   : > { %p5487_p8 = scmp.lt.u32.totalorder %s5485_s19, %s5481_s1  ;;  %p5489_p1 = scmp.lt.u32.totalorder %s5481_s1, %s7544_s25 }
 0x3a4   : > { %p5483_p9 = pnand %p5482_p6, %p7865_p0 }
 0x3a5   : > { %p5488_p4 = por %p5487_p8, %p5486_p13 }
 0x3a6   : > { %p5484_p11 = pneg %p5483_p9 }
 0x3a7   : > { %p5490_p3 = por %p5489_p1, %p5488_p4 }
 0x3a9   : > { %p5491_p12 = pnand %p5490_p3, %p5484_p11 }
 0x3ab   : > { %5494 = shalt.err (!%p5491_p12)
}
 0x3ac   : > { %s5653_s22 = smov 128   ;;  %v3632_v57 = vsel %vm1377_vm3, %v3539_v25, 0.0  ;;  %v3732_v62 = vadd.f32 %v3731_v6, %v3730_v13  ;;  %v3733_v37 = vsel %vm1377_vm3, %v3673_v33, 0.0  ;;  %v3675_v36 = vmul.f32 %v3540_v8, %v3540_v8  ;;  %s4223_s26 = sshll.u32 %s7862_s18, 4 }
 0x3ad   : > { %4734 = dma.vmem_to_hbm [thread:$0]  (%p7865_p0), %s7550_s13, 4096, %s7544_s25, %s3747_s15, %s5653_s22, %s5653_s22, %s5651_s9   ;;  %v3633_v38 = vadd.f32 %v3632_v57, %v3631_v41  ;;  %v3634_v1 = vsel %vm1377_vm3, %v3540_v8, 0.0  ;;  %v3735_v7 = vsel %vm1377_vm3, %v3674_v35, 0.0  ;;  %vm3642_vm6 = vcmask 24576  }
 0x3ae   : > { %v3734_v56 = vadd.f32 %v3733_v37, %v3732_v62  ;;  %v3737_v21 = vsel %vm1377_vm3, %v3675_v36, 0.0  ;;  %s735_s23 = scalar_lea.vmem [#allocation16], %s6112_s20  ;;  %s741_s14 = scalar_lea.vmem [#allocation18], %s6112_s20 }
 0x3af   : > { %v3635_v17 = vadd.f32 %v3634_v1, %v3633_v38  ;;  %s3788_s9 = sshll.u32 %s735_s23, 4  ;;  %s3802_s7 = sshll.u32 %s741_s14, 4  ;;  %s7599_s9 = int_to_ptr.vmem [resolvable:$true] %s3788_s9  ;;  %s7607_s7 = int_to_ptr.vmem [resolvable:$true] %s3802_s7 }
 0x3b0   : > { %v3736_v42 = vadd.f32 %v3735_v7, %v3734_v56  ;;  %s7866_s30 = sld [smem:[#allocation70_spill]]  ;;  %s7867_s24 = sld [smem:[#allocation71_spill]] }
 0x3b1   : > { %v3636_v28 = vrot.slane %v3635_v17, 4  ;;  %s3752_s16 = scalar_lea.sflag [#allocation17], %s6109_s28  ;;  %s5495_s21 = scalar_lea.vmem %s7599_s9, 16 }
 0x3b2   : > { %v3738_v59 = vadd.f32 %v3737_v21, %v3736_v42  ;;  %p5496_p10 = scmp.ne.s32.totalorder %s7599_s9, %s5495_s21  ;;  %s5654_s1 = smov [#allocation16]  }
 0x3b3   : > { %v3637_v2 = vadd.f32 %v3636_v28, %v3635_v17  ;;  %s5499_s27 = sshll.u32 %s5654_s1, 4  ;;  %s5500_s27 = int_to_ptr.vmem [resolvable:$false] %s5499_s27 }
 0x3b4   : > { %v3739_v24 = vrot.slane %v3738_v59, 4  ;;  %p5497_p2 = pnand %p5496_p10, %p7865_p0  ;;  %s5501_s10 = scalar_lea.vmem %s5500_s27, 32 }
 0x3b5   : > { %v3638_v18 = vrot.slane %v3637_v2, 2  ;;  %p5502_p5 = scmp.lt.s32.totalorder %s7599_s9, %s5500_s27  ;;  %p5503_p6 = scmp.lt.s32.totalorder %s5501_s10, %s5495_s21 }
 0x3b6   : > { %v3740_v63 = vadd.f32 %v3739_v24, %v3738_v59  ;;  %s7597_s25 = scalar_lea.hbm %s7866_s30, %s4223_s26  ;;  %s7605_s29 = scalar_lea.hbm %s7867_s24, %s4223_s26 }
 0x3b7   : > { %v3639_v44 = vadd.f32 %v3638_v18, %v3637_v2  ;;  %p5498_p7 = pneg %p5497_p2  ;;  %p5504_p9 = por %p5503_p6, %p5502_p5 }
 0x3b8   : > { %v3741_v22 = vrot.slane %v3740_v63, 2 }
 0x3b9   : > { %v3640_v53 = vrot.slane %v3639_v44, 1  ;;  %p5505_p11 = pnand %p5504_p9, %p5498_p7 }
 0x3ba   : > { %v3742_v49 = vadd.f32 %v3741_v22, %v3740_v63 }
 0x3bb   : > { %v3641_v31 = vadd.f32 %v3640_v53, %v3639_v44 }
 0x3bc   : > { %v3743_v29 = vrot.slane %v3742_v49, 1 }
 0x3bd   : > { %3643 = vst.msk [vmem:[%s735_s23] sm:$0x1] %vm3642_vm6, %v3641_v31 }
 0x3be   : > { %5508 = shalt.err (!%p5505_p11)
}
 0x3bf   : > { %s5509_s19 = scalar_lea.hbm %s7597_s25, 16  ;;  %s5513_s22 = scalar_lea.hbm %s7866_s30, 32 }
 0x3c0   : > { %p5510_p13 = scmp.ne.s32.totalorder %s7597_s25, %s5509_s19  ;;  %p5514_p1 = scmp.lt.u32.totalorder %s7597_s25, %s7866_s30 }
 0x3c1   : > { %p5515_p3 = scmp.lt.u32.totalorder %s5513_s22, %s5509_s19  ;;  %p5517_p10 = scmp.lt.u32.totalorder %s5509_s19, %s7597_s25 }
 0x3c2   : > { %p5511_p8 = pnand %p5510_p13, %p7865_p0 }
 0x3c3   : > { %p5516_p12 = por %p5515_p3, %p5514_p1 }
 0x3c4   : > { %p5512_p4 = pneg %p5511_p8 }
 0x3c5   : > { %p5518_p2 = por %p5517_p10, %p5516_p12 }
 0x3c7   : > { %p5519_p7 = pnand %p5518_p2, %p5512_p4 }
 0x3c9   : > { %5522 = shalt.err (!%p5519_p7)
}
 0x3ca   : > { %4735 = dma.vmem_to_hbm [thread:$0]  (%p7865_p0), %s7599_s9, 16, %s7597_s25, %s3752_s16   ;;  %v3744_v23 = vadd.f32 %v3743_v29, %v3742_v49 }
 0x3cb   : > { %s5523_s13 = scalar_lea.vmem %s7607_s7, 16  ;;  %s5655_s0 = smov [#allocation18]  }
 0x3cc   : > { %3745 = vst.msk [vmem:[%s741_s14] sm:$0x1] %vm3642_vm6, %v3744_v23  ;;  %p5524_p5 = scmp.ne.s32.totalorder %s7607_s7, %s5523_s13  ;;  %s5527_s18 = sshll.u32 %s5655_s0, 4  ;;  %s5528_s18 = int_to_ptr.vmem [resolvable:$false] %s5527_s18 }
 0x3cd   : > { %s5529_s15 = scalar_lea.vmem %s5528_s18, 32  ;;  %p5530_p11 = scmp.lt.s32.totalorder %s7607_s7, %s5528_s18 }
 0x3ce   : > { %p5525_p6 = pnand %p5524_p5, %p7865_p0  ;;  %p5531_p13 = scmp.lt.s32.totalorder %s5529_s15, %s5523_s13 }
 0x3d0   : > { %p5526_p9 = pneg %p5525_p6  ;;  %p5532_p8 = por %p5531_p13, %p5530_p11 }
 0x3d2   : > { %p5533_p4 = pnand %p5532_p8, %p5526_p9 }
 0x3d4   : > { %5536 = shalt.err (!%p5533_p4)
}
 0x3d5   : > { %s5537_s20 = scalar_lea.hbm %s7605_s29, 16  ;;  %s5541_s25 = scalar_lea.hbm %s7867_s24, 32 }
 0x3d6   : > { %p5538_p1 = scmp.ne.s32.totalorder %s7605_s29, %s5537_s20  ;;  %p5542_p10 = scmp.lt.u32.totalorder %s7605_s29, %s7867_s24 }
 0x3d7   : > { %p5543_p2 = scmp.lt.u32.totalorder %s5541_s25, %s5537_s20  ;;  %p5545_p5 = scmp.lt.u32.totalorder %s5537_s20, %s7605_s29 }
 0x3d8   : > { %p5539_p3 = pnand %p5538_p1, %p7865_p0 }
 0x3d9   : > { %p5544_p7 = por %p5543_p2, %p5542_p10 }
 0x3da   : > { %p5540_p12 = pneg %p5539_p3 }
 0x3db   : > { %p5546_p6 = por %p5545_p5, %p5544_p7 }
 0x3dd   : > { %p5547_p9 = pnand %p5546_p6, %p5540_p12 }
 0x3df   : > { %5550 = shalt.err (!%p5547_p9)
}
 0x3e0   : > { %4736 = dma.vmem_to_hbm [thread:$0]  (%p7865_p0), %s7607_s7, 16, %s7605_s29, %s3752_s16  }
 0x3e1 PF: > { %s7868_s27 = sld [smem:[#allocation29_spill]]  ;;  %s7869_s10 = sld [smem:[#allocation36_spill]] }
 0x3e2   : > { %s7870_s19 = sld [smem:[#allocation34_spill]] }
 0x3e7   : > { %s3814_s11 = sand.u32 1, %s7868_s27   ;;  %p7871_p11 = scmp.ne.s32.totalorder %s7869_s10, 0 }
 0x3e8   : > { %p7872_p13 = scmp.ge.s32.totalorder %s7870_s19, 2  ;;  %s3815_s2 = scalar_lea.sflag [#allocation4], %s3814_s11 }
 0x3ea   : > { %p4770_p8 = pnand %p7872_p13, %p7871_p11 }
 0x3ec   : > { %5608 = dma.done.wait (!%p4770_p8), %s3815_s2, 4096  }
 0x3ed   : > { %5610 = vsyncadd (!%p4770_p8), %s3815_s2, 4294963200  ;;  %s7873_s22 = sadd.s32 4294967294, %s7870_s19  }
 0x3ee   : > { %s3823_s26 = sand.u32 1, %s7873_s22  }
 0x3ef   : > { %s3824_s17 = scalar_lea.sflag [#allocation17], %s3823_s26 }
 0x3f0   : > { %5612 = dma.done.wait (!%p4770_p8), %s3824_s17, 32  }
 0x3f1   : > { %5614 = vsyncadd (!%p4770_p8), %s3824_s17, 4294967264  ;;  %s35_s22 = sadd.s32 1, %s7870_s19   ;;  %s7874_s17 = sld [smem:[#allocation30_spill]] }
 0x3f2   : > { %p32_p0 = scmp.ge.s32.totalorder %s35_s22, 4   ;;  %s7875_s18 = sld [smem:[#allocation31_spill]] }
 0x3f3   : > { %s7876_s19 = sld [smem:[#allocation39_spill]]  ;;  %s7877_s20 = sld [smem:[#allocation33_spill]] }
 0x3f4   : > { %s7878_s21 = sld [smem:[#allocation37_spill]]  ;;  %34 = sbr.rel (!%p32_p0) target bundleno = 19 (0x13), region = 206 }
 0x3fb   :  { %3836 = vsyncpa [#allocation3], 1 }
 0x3fc   :  { %3838 = vsyncpa [#allocation3 + $0x1], 1 }
 0x3fd   :  { %3839 = vsyncpa [#allocation6], 1 }
 0x3fe   :  { %3841 = vsyncpa [#allocation6 + $0x1], 1 }
 0x3ff   :  { %3842 = vsyncpa [#allocation9], 1 }
 0x400   :  { %3843 = vsyncpa [#allocation4], 1 }
 0x401   :  { %3845 = vsyncpa [#allocation4 + $0x1], 1 }
 0x402   :  { %3846 = vsyncpa [#allocation17], 1 }
 0x403   :  { %3848 = vsyncpa [#allocation17 + $0x1], 1 }

</bundles_post_ra>
